<compile_context>
chip_gen: v7x
topology: tpu7x:2x2x1
jax: 0.10.0
libtpu: 0.0.40
codegen_flags: <defaults>
</compile_context>

<pallas_src>
import functools
import math

import jax
import jax.numpy as jnp
from jax.experimental import pallas as pl
from jax.experimental.pallas import tpu as pltpu

EPS = 1e-6


# --------------------------- fused decoder-layer kernel ---------------------------
def _decoder_layer_kernel(
        x_ref, mem_ref,
        t_keep_ref, s_keep_ref,
        ln_g_ref, ln_b_ref,
        sa_wqkv_ref, sa_bqkv_ref, sa_wo_ref, sa_bo_ref,
        ca_wqkv_ref, ca_bqkv_ref, ca_wo_ref, ca_bo_ref,
        w1_ref, b1_ref, w2_ref, b2_ref,
        o_ref, *, num_heads):
    x = x_ref[0]                                   # (S, D) f32 -- one batch element
    mem = mem_ref[0]                               # (S, D) f32
    S, D = x.shape
    H = num_heads
    dk = D // H

    def layer_norm(v, idx):
        g = ln_g_ref[idx]                          # (1, D)
        b = ln_b_ref[idx]                          # (1, D)
        mean = jnp.mean(v, axis=-1, keepdims=True)
        c = v - mean
        # torch.Tensor.std() is unbiased (divides by D-1); this LayerNorm uses
        # (std + eps), not sqrt(var + eps) -- kept to match the PyTorch module.
        var = jnp.sum(c * c, axis=-1, keepdims=True) * (1.0 / (D - 1))
        inv = 1.0 / (jnp.sqrt(var) + EPS)          # exact divide (review: no approx on norm path)
        return g * (c * inv) + b

    def split_heads(t):                            # (S, D) f32 -> (H, S, dk) f32
        # static lane slices + leading-axis stack: pure layout work, no per-head matmuls.
        return jnp.stack([t[:, h * dk:(h + 1) * dk] for h in range(H)], axis=0)

    def mha(xq, xkv, wqkv_ref, bqkv_ref, wo_ref, bo_ref, keep):
        # wqkv: (D, 3D) bf16 = [Wq/sqrt(dk) | Wk | Wv] in natural (d_in, d_out) layout,
        # bqkv: (1, 3D) f32; wo: (D, D) bf16 original layout; bo: (1, D) f32.
        # ONE lane-dense matmul for Q (from xq) and ONE for K|V (from xkv).
        q = jnp.dot(xq.astype(jnp.bfloat16), wqkv_ref[:, :D],
                    preferred_element_type=jnp.float32) + bqkv_ref[:, :D]       # (S, D)
        kv = jnp.dot(xkv.astype(jnp.bfloat16), wqkv_ref[:, D:],
                     preferred_element_type=jnp.float32) + bqkv_ref[:, D:]      # (S, 2D)
        qh = split_heads(q)                        # (H, S, dk) -- Q already pre-scaled
        kh = split_heads(kv[:, :D])
        vh = split_heads(kv[:, D:])

        scores = jnp.einsum("hqf,hkf->hqk",
                            qh.astype(jnp.bfloat16), kh.astype(jnp.bfloat16),
                            preferred_element_type=jnp.float32)                 # (H, S, S)
        # masked_fill(mask == 0, -1e9), exact: keep==1 -> scores, keep==0 -> -1e9.
        scores = scores * keep + (keep - 1.0) * 1e9
        scores = scores - jnp.max(scores, axis=-1, keepdims=True)
        p = jnp.exp(scores)
        p = p * pl.reciprocal(jnp.sum(p, axis=-1, keepdims=True), approx=True)
        ctx = jnp.einsum("hqk,hkf->hqf",
                         p.astype(jnp.bfloat16), vh.astype(jnp.bfloat16),
                         preferred_element_type=jnp.float32)                    # (H, S, dk)
        # concat heads back into a lane-dense (S, D) slab -> ONE (S,D)@(D,D) matmul (K=512).
        ctx = jnp.concatenate([ctx[h] for h in range(H)], axis=-1)              # (S, D)
        return jnp.dot(ctx.astype(jnp.bfloat16), wo_ref[...],
                       preferred_element_type=jnp.float32) + bo_ref[...]

    # sublayer 0: x = x + self_attn(norm(x), norm(x), norm(x), target_mask)
    xn = layer_norm(x, 0)
    x = x + mha(xn, xn, sa_wqkv_ref, sa_bqkv_ref, sa_wo_ref, sa_bo_ref, t_keep_ref[...])
    # sublayer 1: x = x + src_attn(norm(x), memory, memory, source_mask)
    xn = layer_norm(x, 1)
    x = x + mha(xn, mem, ca_wqkv_ref, ca_bqkv_ref, ca_wo_ref, ca_bo_ref, s_keep_ref[...])
    # sublayer 2: x = x + w2(relu(w1(norm(x))))      (dropout = identity in eval mode)
    xn = layer_norm(x, 2)
    hdn = jnp.dot(xn.astype(jnp.bfloat16), w1_ref[...],
                  preferred_element_type=jnp.float32) + b1_ref[...]
    hdn = jnp.maximum(hdn, 0.0)
    y = jnp.dot(hdn.astype(jnp.bfloat16), w2_ref[...],
                preferred_element_type=jnp.float32) + b2_ref[...]
    o_ref[0] = x + y


# ------------------------------ host-side wrapper ---------------------------------
def pack_params(params, num_heads):
    """Pack weights once on the host into the lane-dense bf16 layout the kernel uses."""
    def pack_attn(p):
        wq, bq, wk, bk, wv, bv, wo, bo = p
        D = wq.shape[0]
        scale = 1.0 / math.sqrt(D // num_heads)
        # Fold 1/sqrt(dk) into the Q projection; keep natural (d_in, d_out) orientation.
        wqkv = jnp.concatenate([wq * scale, wk, wv], axis=1).astype(jnp.bfloat16)  # (D, 3D)
        bqkv = jnp.concatenate([bq * scale, bk, bv], axis=1).astype(jnp.float32)   # (1, 3D)
        return wqkv, bqkv, wo.astype(jnp.bfloat16), bo.astype(jnp.float32)

    w1, b1, w2, b2 = params["ff"]
    return {
        "ln_g": jnp.stack([params["ln0_g"], params["ln1_g"], params["ln2_g"]]),  # (3,1,D)
        "ln_b": jnp.stack([params["ln0_b"], params["ln1_b"], params["ln2_b"]]),  # (3,1,D)
        "self_attn": pack_attn(params["self_attn"]),
        "src_attn": pack_attn(params["src_attn"]),
        "ff": (w1.astype(jnp.bfloat16), b1, w2.astype(jnp.bfloat16), b2),
    }


def decoder_layer(x, memory, source_mask, target_mask, packed, num_heads):
    B, S, D = x.shape
    H = num_heads
    sa_wqkv, sa_bqkv, sa_wo, sa_bo = packed["self_attn"]
    ca_wqkv, ca_bqkv, ca_wo, ca_bo = packed["src_attn"]
    w1, b1, w2, b2 = packed["ff"]

    # Only `keep` is shipped; the -1e9 fill is reconstructed in-kernel (exact).
    t_keep = (target_mask != 0).astype(jnp.float32)
    s_keep = (source_mask != 0).astype(jnp.float32)

    act_spec = pl.BlockSpec((1, S, D), lambda b: (b, 0, 0))

    def const(a):
        # Whole array resident in VMEM; block index never changes across the grid,
        # so a single buffer is enough (default double buffer is pure VMEM waste).
        return pl.BlockSpec(a.shape, lambda b, _nd=a.ndim: (0,) * _nd,
                            pipeline_mode=pl.Buffered(buffer_count=1))

    kernel = functools.partial(_decoder_layer_kernel, num_heads=H)
    return pl.pallas_call(
        kernel,
        out_shape=jax.ShapeDtypeStruct((B, S, D), jnp.float32),
        grid=(B,),
        in_specs=[
            act_spec, act_spec,                                   # x, memory
            const(t_keep), const(s_keep),                         # masks (keep only)
            const(packed["ln_g"]), const(packed["ln_b"]),
            const(sa_wqkv), const(sa_bqkv), const(sa_wo), const(sa_bo),
            const(ca_wqkv), const(ca_bqkv), const(ca_wo), const(ca_bo),
            const(w1), const(b1), const(w2), const(b2),
        ],
        out_specs=act_spec,
        compiler_params=pltpu.CompilerParams(
            # B grid steps -> both v7x TensorCores; a cheap serial loop on v5e/v6e.
            dimension_semantics=("parallel",),
            vmem_limit_bytes=32 * 1024 * 1024),
    )(x, memory, t_keep, s_keep,
      packed["ln_g"], packed["ln_b"],
      sa_wqkv, sa_bqkv, sa_wo, sa_bo,
      ca_wqkv, ca_bqkv, ca_wo, ca_bo,
      w1, b1, w2, b2)


# ----------------------------- pure-JAX reference ----------------------------------
def _ref_layernorm(x, g, b):
    mean = jnp.mean(x, axis=-1, keepdims=True)
    xc = x - mean
    var = jnp.sum(xc * xc, axis=-1, keepdims=True) / (x.shape[-1] - 1)
    return g * xc / (jnp.sqrt(var) + EPS) + b


def _ref_mha(q_in, kv_in, mask, p, h):
    wq, bq, wk, bk, wv, bv, wo, bo = p
    B, S, D = q_in.shape
    dk = D // h
    q = (q_in @ wq + bq).reshape(B, S, h, dk).transpose(0, 2, 1, 3)
    k = (kv_in @ wk + bk).reshape(B, S, h, dk).transpose(0, 2, 1, 3)
    v = (kv_in @ wv + bv).reshape(B, S, h, dk).transpose(0, 2, 1, 3)
    scores = jnp.einsum("bhqd,bhkd->bhqk", q, k) / math.sqrt(dk)
    scores = jnp.where(mask[None] == 0, -1e9, scores)
    pattn = jax.nn.softmax(scores, axis=-1)
    out = jnp.einsum("bhqk,bhkd->bhqd", pattn, v).transpose(0, 2, 1, 3).reshape(B, S, D)
    return out @ wo + bo


def _ref_decoder_layer(x, memory, smask, tmask, params, h):
    xn = _ref_layernorm(x, params["ln0_g"], params["ln0_b"])
    x = x + _ref_mha(xn, xn, tmask, params["self_attn"], h)
    xn = _ref_layernorm(x, params["ln1_g"], params["ln1_b"])
    x = x + _ref_mha(xn, memory, smask, params["src_attn"], h)
    xn = _ref_layernorm(x, params["ln2_g"], params["ln2_b"])
    w1, b1, w2, b2 = params["ff"]
    return x + (jnp.maximum(xn @ w1 + b1, 0.0) @ w2 + b2)


# --------------------------------- init + main --------------------------------------
def _init_linear(key, din, dout):
    k1, k2 = jax.random.split(key)
    w = jax.random.normal(k1, (din, dout), jnp.float32) * 0.02
    b = jax.random.normal(k2, (1, dout), jnp.float32) * 0.02
    return w, b


def init_params(key, d_model, d_ff):
    keys = jax.random.split(key, 4)

    def attn_params(k):
        ks = jax.random.split(k, 4)
        wq, bq = _init_linear(ks[0], d_model, d_model)
        wk, bk = _init_linear(ks[1], d_model, d_model)
        wv, bv = _init_linear(ks[2], d_model, d_model)
        wo, bo = _init_linear(ks[3], d_model, d_model)
        return (wq, bq, wk, bk, wv, bv, wo, bo)

    w1, b1 = _init_linear(keys[2], d_model, d_ff)
    w2, b2 = _init_linear(keys[3], d_ff, d_model)
    ones = jnp.ones((1, d_model), jnp.float32)
    zeros = jnp.zeros((1, d_model), jnp.float32)
    return {
        "self_attn": attn_params(keys[0]),
        "src_attn": attn_params(keys[1]),
        "ff": (w1, b1, w2, b2),
        "ln0_g": ones, "ln0_b": zeros,
        "ln1_g": ones, "ln1_b": zeros,
        "ln2_g": ones, "ln2_b": zeros,
    }


if __name__ == "__main__":
    B, S, D, H, D_FF = 2, 4, 512, 8, 64       # matches the spec: masks are zeros(8, 4, 4)

    key = jax.random.PRNGKey(0)
    kx, km, kp = jax.random.split(key, 3)
    x = jax.random.normal(kx, (B, S, D), jnp.float32)
    memory = jax.random.normal(km, (B, S, D), jnp.float32)
    source_mask = jnp.zeros((H, S, S), jnp.float32)
    target_mask = jnp.zeros((H, S, S), jnp.float32)

    params = init_params(kp, D, D_FF)
    packed = pack_params(params, H)

    out = decoder_layer(x, memory, source_mask, target_mask, packed, H)
    out = jax.block_until_ready(out)

    ref = _ref_decoder_layer(x, memory, source_mask, target_mask, params, H)
    max_err = float(jnp.max(jnp.abs(out - ref)))
    assert max_err < 2e-2, f"mismatch vs reference: {max_err}"

    print("KERNEL_OK")
</pallas_src>

<mosaic_0001>
module attributes {stable_mosaic.version = 11 : i64} {
  func.func @_decoder_layer_kernel(%arg0: i32, %arg1: memref<1x4x512xf32, #tpu.memory_space<vmem>>, %arg2: memref<1x4x512xf32, #tpu.memory_space<vmem>>, %arg3: memref<8x4x4xf32, #tpu.memory_space<vmem>>, %arg4: memref<8x4x4xf32, #tpu.memory_space<vmem>>, %arg5: memref<3x1x512xf32, #tpu.memory_space<vmem>>, %arg6: memref<3x1x512xf32, #tpu.memory_space<vmem>>, %arg7: memref<512x1536xbf16, #tpu.memory_space<vmem>>, %arg8: memref<1x1536xf32, #tpu.memory_space<vmem>>, %arg9: memref<512x512xbf16, #tpu.memory_space<vmem>>, %arg10: memref<1x512xf32, #tpu.memory_space<vmem>>, %arg11: memref<512x1536xbf16, #tpu.memory_space<vmem>>, %arg12: memref<1x1536xf32, #tpu.memory_space<vmem>>, %arg13: memref<512x512xbf16, #tpu.memory_space<vmem>>, %arg14: memref<1x512xf32, #tpu.memory_space<vmem>>, %arg15: memref<512x64xbf16, #tpu.memory_space<vmem>>, %arg16: memref<1x64xf32, #tpu.memory_space<vmem>>, %arg17: memref<64x512xbf16, #tpu.memory_space<vmem>>, %arg18: memref<1x512xf32, #tpu.memory_space<vmem>>, %arg19: memref<1x4x512xf32, #tpu.memory_space<vmem>>) attributes {dimension_semantics = [#tpu.dimension_semantics<parallel>], iteration_bounds = array<i64: 2>, scalar_prefetch = 0 : i64, scratch_operands = 0 : i64, tpu.core_type = #tpu.core_type<tc>, window_params = [{transform_indices = @transform_0, window_bounds = array<i64: 1, 4, 512>}, {transform_indices = @transform_1, window_bounds = array<i64: 1, 4, 512>}, {pipeline_mode = #tpu.pipeline_mode<synchronous>, transform_indices = @transform_2, window_bounds = array<i64: 8, 4, 4>}, {pipeline_mode = #tpu.pipeline_mode<synchronous>, transform_indices = @transform_3, window_bounds = array<i64: 8, 4, 4>}, {pipeline_mode = #tpu.pipeline_mode<synchronous>, transform_indices = @transform_4, window_bounds = array<i64: 3, 1, 512>}, {pipeline_mode = #tpu.pipeline_mode<synchronous>, transform_indices = @transform_5, window_bounds = array<i64: 3, 1, 512>}, {pipeline_mode = #tpu.pipeline_mode<synchronous>, transform_indices = @transform_6, window_bounds = array<i64: 512, 1536>}, {pipeline_mode = #tpu.pipeline_mode<synchronous>, transform_indices = @transform_7, window_bounds = array<i64: 1, 1536>}, {pipeline_mode = #tpu.pipeline_mode<synchronous>, transform_indices = @transform_8, window_bounds = array<i64: 512, 512>}, {pipeline_mode = #tpu.pipeline_mode<synchronous>, transform_indices = @transform_9, window_bounds = array<i64: 1, 512>}, {pipeline_mode = #tpu.pipeline_mode<synchronous>, transform_indices = @transform_10, window_bounds = array<i64: 512, 1536>}, {pipeline_mode = #tpu.pipeline_mode<synchronous>, transform_indices = @transform_11, window_bounds = array<i64: 1, 1536>}, {pipeline_mode = #tpu.pipeline_mode<synchronous>, transform_indices = @transform_12, window_bounds = array<i64: 512, 512>}, {pipeline_mode = #tpu.pipeline_mode<synchronous>, transform_indices = @transform_13, window_bounds = array<i64: 1, 512>}, {pipeline_mode = #tpu.pipeline_mode<synchronous>, transform_indices = @transform_14, window_bounds = array<i64: 512, 64>}, {pipeline_mode = #tpu.pipeline_mode<synchronous>, transform_indices = @transform_15, window_bounds = array<i64: 1, 64>}, {pipeline_mode = #tpu.pipeline_mode<synchronous>, transform_indices = @transform_16, window_bounds = array<i64: 64, 512>}, {pipeline_mode = #tpu.pipeline_mode<synchronous>, transform_indices = @transform_17, window_bounds = array<i64: 1, 512>}, {transform_indices = @transform_18, window_bounds = array<i64: 1, 4, 512>}]} {
    %c0 = arith.constant 0 : index
    %c0_0 = arith.constant 0 : index
    %c0_1 = arith.constant 0 : index
    %0 = vector.load %arg1[%c0, %c0_0, %c0_1] : memref<1x4x512xf32, #tpu.memory_space<vmem>>, vector<1x4x512xf32>
    %1 = vector.shape_cast %0 : vector<1x4x512xf32> to vector<4x512xf32>
    %c0_2 = arith.constant 0 : index
    %c0_3 = arith.constant 0 : index
    %c0_4 = arith.constant 0 : index
    %2 = vector.load %arg2[%c0_2, %c0_3, %c0_4] : memref<1x4x512xf32, #tpu.memory_space<vmem>>, vector<1x4x512xf32>
    %3 = vector.shape_cast %2 : vector<1x4x512xf32> to vector<4x512xf32>
    %c0_5 = arith.constant 0 : index
    %c0_6 = arith.constant 0 : index
    %c0_7 = arith.constant 0 : index
    %4 = vector.load %arg5[%c0_5, %c0_6, %c0_7] : memref<3x1x512xf32, #tpu.memory_space<vmem>>, vector<1x1x512xf32>
    %5 = vector.shape_cast %4 : vector<1x1x512xf32> to vector<1x512xf32>
    %c0_8 = arith.constant 0 : index
    %c0_9 = arith.constant 0 : index
    %c0_10 = arith.constant 0 : index
    %6 = vector.load %arg6[%c0_8, %c0_9, %c0_10] : memref<3x1x512xf32, #tpu.memory_space<vmem>>, vector<1x1x512xf32>
    %7 = vector.shape_cast %6 : vector<1x1x512xf32> to vector<1x512xf32>
    %cst = arith.constant dense<0.000000e+00> : vector<4xf32>
    %8 = vector.multi_reduction <add>, %1, %cst [1] : vector<4x512xf32> to vector<4xf32>
    %9 = vector.shape_cast %8 : vector<4xf32> to vector<4x1xf32>
    %cst_11 = arith.constant 5.120000e+02 : f32
    %10 = vector.broadcast %cst_11 : f32 to vector<4x1xf32>
    %11 = arith.divf %9, %10 : vector<4x1xf32>
    %12 = vector.broadcast %11 : vector<4x1xf32> to vector<4x512xf32>
    %13 = arith.subf %1, %12 : vector<4x512xf32>
    %14 = arith.mulf %13, %13 : vector<4x512xf32>
    %cst_12 = arith.constant dense<0.000000e+00> : vector<4xf32>
    %15 = vector.multi_reduction <add>, %14, %cst_12 [1] : vector<4x512xf32> to vector<4xf32>
    %16 = vector.shape_cast %15 : vector<4xf32> to vector<4x1xf32>
    %cst_13 = arith.constant 0.00195694715 : f32
    %17 = vector.broadcast %cst_13 : f32 to vector<4x1xf32>
    %18 = arith.mulf %16, %17 : vector<4x1xf32>
    %19 = math.sqrt %18 : vector<4x1xf32>
    %cst_14 = arith.constant 9.99999997E-7 : f32
    %20 = vector.broadcast %cst_14 : f32 to vector<4x1xf32>
    %21 = arith.addf %19, %20 : vector<4x1xf32>
    %cst_15 = arith.constant 1.000000e+00 : f32
    %22 = vector.broadcast %cst_15 : f32 to vector<4x1xf32>
    %23 = arith.divf %22, %21 : vector<4x1xf32>
    %24 = vector.broadcast %23 : vector<4x1xf32> to vector<4x512xf32>
    %25 = arith.mulf %13, %24 : vector<4x512xf32>
    %26 = vector.broadcast %5 : vector<1x512xf32> to vector<4x512xf32>
    %27 = arith.mulf %26, %25 : vector<4x512xf32>
    %28 = vector.broadcast %7 : vector<1x512xf32> to vector<4x512xf32>
    %29 = arith.addf %27, %28 : vector<4x512xf32>
    %c0_16 = arith.constant 0 : index
    %c0_17 = arith.constant 0 : index
    %c0_18 = arith.constant 0 : index
    %30 = vector.load %arg3[%c0_16, %c0_17, %c0_18] : memref<8x4x4xf32, #tpu.memory_space<vmem>>, vector<8x4x4xf32>
    %31 = arith.truncf %29 : vector<4x512xf32> to vector<4x512xbf16>
    %c0_19 = arith.constant 0 : index
    %c0_20 = arith.constant 0 : index
    %32 = vector.load %arg7[%c0_19, %c0_20] : memref<512x1536xbf16, #tpu.memory_space<vmem>>, vector<512x512xbf16>
    %cst_21 = arith.constant dense<0.000000e+00> : vector<4x512xf32>
    %33 = tpu.matmul %31, %32, %cst_21 {dimension_numbers = #tpu.dot_dimension_numbers<[1], [0], [0], [1], [0, 0, 1, 1], [], []>} : vector<4x512xbf16>, vector<512x512xbf16>, vector<4x512xf32> -> vector<4x512xf32>
    %c0_22 = arith.constant 0 : index
    %c0_23 = arith.constant 0 : index
    %34 = vector.load %arg8[%c0_22, %c0_23] : memref<1x1536xf32, #tpu.memory_space<vmem>>, vector<1x512xf32>
    %35 = vector.broadcast %34 : vector<1x512xf32> to vector<4x512xf32>
    %36 = arith.addf %33, %35 : vector<4x512xf32>
    %37 = arith.truncf %29 : vector<4x512xf32> to vector<4x512xbf16>
    %c0_24 = arith.constant 0 : index
    %c512 = arith.constant 512 : index
    %38 = vector.load %arg7[%c0_24, %c512] : memref<512x1536xbf16, #tpu.memory_space<vmem>>, vector<512x1024xbf16>
    %cst_25 = arith.constant dense<0.000000e+00> : vector<4x1024xf32>
    %39 = tpu.matmul %37, %38, %cst_25 {dimension_numbers = #tpu.dot_dimension_numbers<[1], [0], [0], [1], [0, 0, 1, 1], [], []>} : vector<4x512xbf16>, vector<512x1024xbf16>, vector<4x1024xf32> -> vector<4x1024xf32>
    %c0_26 = arith.constant 0 : index
    %c512_27 = arith.constant 512 : index
    %40 = vector.load %arg8[%c0_26, %c512_27] : memref<1x1536xf32, #tpu.memory_space<vmem>>, vector<1x1024xf32>
    %41 = vector.broadcast %40 : vector<1x1024xf32> to vector<4x1024xf32>
    %42 = arith.addf %39, %41 : vector<4x1024xf32>
    %43 = vector.extract_strided_slice %36 {offsets = [0, 0], sizes = [4, 64], strides = [1, 1]} : vector<4x512xf32> to vector<4x64xf32>
    %44 = vector.extract_strided_slice %36 {offsets = [0, 64], sizes = [4, 64], strides = [1, 1]} : vector<4x512xf32> to vector<4x64xf32>
    %45 = vector.extract_strided_slice %36 {offsets = [0, 128], sizes = [4, 64], strides = [1, 1]} : vector<4x512xf32> to vector<4x64xf32>
    %46 = vector.extract_strided_slice %36 {offsets = [0, 192], sizes = [4, 64], strides = [1, 1]} : vector<4x512xf32> to vector<4x64xf32>
    %47 = vector.extract_strided_slice %36 {offsets = [0, 256], sizes = [4, 64], strides = [1, 1]} : vector<4x512xf32> to vector<4x64xf32>
    %48 = vector.extract_strided_slice %36 {offsets = [0, 320], sizes = [4, 64], strides = [1, 1]} : vector<4x512xf32> to vector<4x64xf32>
    %49 = vector.extract_strided_slice %36 {offsets = [0, 384], sizes = [4, 64], strides = [1, 1]} : vector<4x512xf32> to vector<4x64xf32>
    %50 = vector.extract_strided_slice %36 {offsets = [0, 448], sizes = [4, 64], strides = [1, 1]} : vector<4x512xf32> to vector<4x64xf32>
    %51 = vector.shape_cast %43 : vector<4x64xf32> to vector<1x4x64xf32>
    %52 = vector.shape_cast %44 : vector<4x64xf32> to vector<1x4x64xf32>
    %53 = vector.shape_cast %45 : vector<4x64xf32> to vector<1x4x64xf32>
    %54 = vector.shape_cast %46 : vector<4x64xf32> to vector<1x4x64xf32>
    %55 = vector.shape_cast %47 : vector<4x64xf32> to vector<1x4x64xf32>
    %56 = vector.shape_cast %48 : vector<4x64xf32> to vector<1x4x64xf32>
    %57 = vector.shape_cast %49 : vector<4x64xf32> to vector<1x4x64xf32>
    %58 = vector.shape_cast %50 : vector<4x64xf32> to vector<1x4x64xf32>
    %59 = tpu.concatenate %51, %52, %53, %54, %55, %56, %57, %58 in 0 : vector<1x4x64xf32>, vector<1x4x64xf32>, vector<1x4x64xf32>, vector<1x4x64xf32>, vector<1x4x64xf32>, vector<1x4x64xf32>, vector<1x4x64xf32>, vector<1x4x64xf32> -> vector<8x4x64xf32>
    %60 = vector.extract_strided_slice %42 {offsets = [0, 0], sizes = [4, 512], strides = [1, 1]} : vector<4x1024xf32> to vector<4x512xf32>
    %61 = vector.extract_strided_slice %60 {offsets = [0, 0], sizes = [4, 64], strides = [1, 1]} : vector<4x512xf32> to vector<4x64xf32>
    %62 = vector.extract_strided_slice %60 {offsets = [0, 64], sizes = [4, 64], strides = [1, 1]} : vector<4x512xf32> to vector<4x64xf32>
    %63 = vector.extract_strided_slice %60 {offsets = [0, 128], sizes = [4, 64], strides = [1, 1]} : vector<4x512xf32> to vector<4x64xf32>
    %64 = vector.extract_strided_slice %60 {offsets = [0, 192], sizes = [4, 64], strides = [1, 1]} : vector<4x512xf32> to vector<4x64xf32>
    %65 = vector.extract_strided_slice %60 {offsets = [0, 256], sizes = [4, 64], strides = [1, 1]} : vector<4x512xf32> to vector<4x64xf32>
    %66 = vector.extract_strided_slice %60 {offsets = [0, 320], sizes = [4, 64], strides = [1, 1]} : vector<4x512xf32> to vector<4x64xf32>
    %67 = vector.extract_strided_slice %60 {offsets = [0, 384], sizes = [4, 64], strides = [1, 1]} : vector<4x512xf32> to vector<4x64xf32>
    %68 = vector.extract_strided_slice %60 {offsets = [0, 448], sizes = [4, 64], strides = [1, 1]} : vector<4x512xf32> to vector<4x64xf32>
    %69 = vector.shape_cast %61 : vector<4x64xf32> to vector<1x4x64xf32>
    %70 = vector.shape_cast %62 : vector<4x64xf32> to vector<1x4x64xf32>
    %71 = vector.shape_cast %63 : vector<4x64xf32> to vector<1x4x64xf32>
    %72 = vector.shape_cast %64 : vector<4x64xf32> to vector<1x4x64xf32>
    %73 = vector.shape_cast %65 : vector<4x64xf32> to vector<1x4x64xf32>
    %74 = vector.shape_cast %66 : vector<4x64xf32> to vector<1x4x64xf32>
    %75 = vector.shape_cast %67 : vector<4x64xf32> to vector<1x4x64xf32>
    %76 = vector.shape_cast %68 : vector<4x64xf32> to vector<1x4x64xf32>
    %77 = tpu.concatenate %69, %70, %71, %72, %73, %74, %75, %76 in 0 : vector<1x4x64xf32>, vector<1x4x64xf32>, vector<1x4x64xf32>, vector<1x4x64xf32>, vector<1x4x64xf32>, vector<1x4x64xf32>, vector<1x4x64xf32>, vector<1x4x64xf32> -> vector<8x4x64xf32>
    %78 = vector.extract_strided_slice %42 {offsets = [0, 512], sizes = [4, 512], strides = [1, 1]} : vector<4x1024xf32> to vector<4x512xf32>
    %79 = vector.extract_strided_slice %78 {offsets = [0, 0], sizes = [4, 64], strides = [1, 1]} : vector<4x512xf32> to vector<4x64xf32>
    %80 = vector.extract_strided_slice %78 {offsets = [0, 64], sizes = [4, 64], strides = [1, 1]} : vector<4x512xf32> to vector<4x64xf32>
    %81 = vector.extract_strided_slice %78 {offsets = [0, 128], sizes = [4, 64], strides = [1, 1]} : vector<4x512xf32> to vector<4x64xf32>
    %82 = vector.extract_strided_slice %78 {offsets = [0, 192], sizes = [4, 64], strides = [1, 1]} : vector<4x512xf32> to vector<4x64xf32>
    %83 = vector.extract_strided_slice %78 {offsets = [0, 256], sizes = [4, 64], strides = [1, 1]} : vector<4x512xf32> to vector<4x64xf32>
    %84 = vector.extract_strided_slice %78 {offsets = [0, 320], sizes = [4, 64], strides = [1, 1]} : vector<4x512xf32> to vector<4x64xf32>
    %85 = vector.extract_strided_slice %78 {offsets = [0, 384], sizes = [4, 64], strides = [1, 1]} : vector<4x512xf32> to vector<4x64xf32>
    %86 = vector.extract_strided_slice %78 {offsets = [0, 448], sizes = [4, 64], strides = [1, 1]} : vector<4x512xf32> to vector<4x64xf32>
    %87 = vector.shape_cast %79 : vector<4x64xf32> to vector<1x4x64xf32>
    %88 = vector.shape_cast %80 : vector<4x64xf32> to vector<1x4x64xf32>
    %89 = vector.shape_cast %81 : vector<4x64xf32> to vector<1x4x64xf32>
    %90 = vector.shape_cast %82 : vector<4x64xf32> to vector<1x4x64xf32>
    %91 = vector.shape_cast %83 : vector<4x64xf32> to vector<1x4x64xf32>
    %92 = vector.shape_cast %84 : vector<4x64xf32> to vector<1x4x64xf32>
    %93 = vector.shape_cast %85 : vector<4x64xf32> to vector<1x4x64xf32>
    %94 = vector.shape_cast %86 : vector<4x64xf32> to vector<1x4x64xf32>
    %95 = tpu.concatenate %87, %88, %89, %90, %91, %92, %93, %94 in 0 : vector<1x4x64xf32>, vector<1x4x64xf32>, vector<1x4x64xf32>, vector<1x4x64xf32>, vector<1x4x64xf32>, vector<1x4x64xf32>, vector<1x4x64xf32>, vector<1x4x64xf32> -> vector<8x4x64xf32>
    %96 = arith.truncf %59 : vector<8x4x64xf32> to vector<8x4x64xbf16>
    %97 = arith.truncf %77 : vector<8x4x64xf32> to vector<8x4x64xbf16>
    "tpu.trace_start"() <{level = 10 : i32, message = "hqf,hkf->hqk"}> : () -> ()
    %cst_28 = arith.constant dense<0.000000e+00> : vector<8x4x4xf32>
    %98 = tpu.matmul %96, %97, %cst_28 {dimension_numbers = #tpu.dot_dimension_numbers<[2], [2], [1], [1], [0, 0, 0, 1, 1, 1], [0], [0]>} : vector<8x4x64xbf16>, vector<8x4x64xbf16>, vector<8x4x4xf32> -> vector<8x4x4xf32>
    "tpu.trace_stop"() : () -> ()
    %99 = arith.mulf %98, %30 : vector<8x4x4xf32>
    %cst_29 = arith.constant 1.000000e+00 : f32
    %100 = vector.broadcast %cst_29 : f32 to vector<8x4x4xf32>
    %101 = arith.subf %30, %100 : vector<8x4x4xf32>
    %cst_30 = arith.constant 1.000000e+09 : f32
    %102 = vector.broadcast %cst_30 : f32 to vector<8x4x4xf32>
    %103 = arith.mulf %101, %102 : vector<8x4x4xf32>
    %104 = arith.addf %99, %103 : vector<8x4x4xf32>
    %cst_31 = arith.constant dense<0xFF800000> : vector<8x4xf32>
    %105 = vector.multi_reduction <maximumf>, %104, %cst_31 [2] : vector<8x4x4xf32> to vector<8x4xf32>
    %106 = vector.shape_cast %105 : vector<8x4xf32> to vector<8x4x1xf32>
    %107 = vector.broadcast %106 : vector<8x4x1xf32> to vector<8x4x4xf32>
    %108 = arith.subf %104, %107 : vector<8x4x4xf32>
    %109 = math.exp %108 : vector<8x4x4xf32>
    %cst_32 = arith.constant dense<0.000000e+00> : vector<8x4xf32>
    %110 = vector.multi_reduction <add>, %109, %cst_32 [2] : vector<8x4x4xf32> to vector<8x4xf32>
    %111 = vector.shape_cast %110 : vector<8x4xf32> to vector<8x4x1xf32>
    %112 = tpu.reciprocal %111 {approx = true} : vector<8x4x1xf32> -> vector<8x4x1xf32>
    %113 = vector.broadcast %112 : vector<8x4x1xf32> to vector<8x4x4xf32>
    %114 = arith.mulf %109, %113 : vector<8x4x4xf32>
    %115 = arith.truncf %114 : vector<8x4x4xf32> to vector<8x4x4xbf16>
    %116 = arith.truncf %95 : vector<8x4x64xf32> to vector<8x4x64xbf16>
    "tpu.trace_start"() <{level = 10 : i32, message = "hqk,hkf->hqf"}> : () -> ()
    %cst_33 = arith.constant dense<0.000000e+00> : vector<8x4x64xf32>
    %117 = tpu.matmul %115, %116, %cst_33 {dimension_numbers = #tpu.dot_dimension_numbers<[2], [1], [1], [2], [0, 0, 0, 1, 1, 2], [0], [0]>} : vector<8x4x4xbf16>, vector<8x4x64xbf16>, vector<8x4x64xf32> -> vector<8x4x64xf32>
    "tpu.trace_stop"() : () -> ()
    %118 = vector.extract_strided_slice %117 {offsets = [0, 0, 0], sizes = [1, 4, 64], strides = [1, 1, 1]} : vector<8x4x64xf32> to vector<1x4x64xf32>
    %119 = vector.shape_cast %118 : vector<1x4x64xf32> to vector<4x64xf32>
    %120 = vector.extract_strided_slice %117 {offsets = [1, 0, 0], sizes = [1, 4, 64], strides = [1, 1, 1]} : vector<8x4x64xf32> to vector<1x4x64xf32>
    %121 = vector.shape_cast %120 : vector<1x4x64xf32> to vector<4x64xf32>
    %122 = vector.extract_strided_slice %117 {offsets = [2, 0, 0], sizes = [1, 4, 64], strides = [1, 1, 1]} : vector<8x4x64xf32> to vector<1x4x64xf32>
    %123 = vector.shape_cast %122 : vector<1x4x64xf32> to vector<4x64xf32>
    %124 = vector.extract_strided_slice %117 {offsets = [3, 0, 0], sizes = [1, 4, 64], strides = [1, 1, 1]} : vector<8x4x64xf32> to vector<1x4x64xf32>
    %125 = vector.shape_cast %124 : vector<1x4x64xf32> to vector<4x64xf32>
    %126 = vector.extract_strided_slice %117 {offsets = [4, 0, 0], sizes = [1, 4, 64], strides = [1, 1, 1]} : vector<8x4x64xf32> to vector<1x4x64xf32>
    %127 = vector.shape_cast %126 : vector<1x4x64xf32> to vector<4x64xf32>
    %128 = vector.extract_strided_slice %117 {offsets = [5, 0, 0], sizes = [1, 4, 64], strides = [1, 1, 1]} : vector<8x4x64xf32> to vector<1x4x64xf32>
    %129 = vector.shape_cast %128 : vector<1x4x64xf32> to vector<4x64xf32>
    %130 = vector.extract_strided_slice %117 {offsets = [6, 0, 0], sizes = [1, 4, 64], strides = [1, 1, 1]} : vector<8x4x64xf32> to vector<1x4x64xf32>
    %131 = vector.shape_cast %130 : vector<1x4x64xf32> to vector<4x64xf32>
    %132 = vector.extract_strided_slice %117 {offsets = [7, 0, 0], sizes = [1, 4, 64], strides = [1, 1, 1]} : vector<8x4x64xf32> to vector<1x4x64xf32>
    %133 = vector.shape_cast %132 : vector<1x4x64xf32> to vector<4x64xf32>
    %134 = tpu.concatenate %119, %121, %123, %125, %127, %129, %131, %133 in 1 : vector<4x64xf32>, vector<4x64xf32>, vector<4x64xf32>, vector<4x64xf32>, vector<4x64xf32>, vector<4x64xf32>, vector<4x64xf32>, vector<4x64xf32> -> vector<4x512xf32>
    %135 = arith.truncf %134 : vector<4x512xf32> to vector<4x512xbf16>
    %c0_34 = arith.constant 0 : index
    %c0_35 = arith.constant 0 : index
    %136 = vector.load %arg9[%c0_34, %c0_35] : memref<512x512xbf16, #tpu.memory_space<vmem>>, vector<512x512xbf16>
    %cst_36 = arith.constant dense<0.000000e+00> : vector<4x512xf32>
    %137 = tpu.matmul %135, %136, %cst_36 {dimension_numbers = #tpu.dot_dimension_numbers<[1], [0], [0], [1], [0, 0, 1, 1], [], []>} : vector<4x512xbf16>, vector<512x512xbf16>, vector<4x512xf32> -> vector<4x512xf32>
    %c0_37 = arith.constant 0 : index
    %c0_38 = arith.constant 0 : index
    %138 = vector.load %arg10[%c0_37, %c0_38] : memref<1x512xf32, #tpu.memory_space<vmem>>, vector<1x512xf32>
    %139 = vector.broadcast %138 : vector<1x512xf32> to vector<4x512xf32>
    %140 = arith.addf %137, %139 : vector<4x512xf32>
    %141 = arith.addf %1, %140 : vector<4x512xf32>
    %c1 = arith.constant 1 : index
    %c0_39 = arith.constant 0 : index
    %c0_40 = arith.constant 0 : index
    %142 = vector.load %arg5[%c1, %c0_39, %c0_40] : memref<3x1x512xf32, #tpu.memory_space<vmem>>, vector<1x1x512xf32>
    %143 = vector.shape_cast %142 : vector<1x1x512xf32> to vector<1x512xf32>
    %c1_41 = arith.constant 1 : index
    %c0_42 = arith.constant 0 : index
    %c0_43 = arith.constant 0 : index
    %144 = vector.load %arg6[%c1_41, %c0_42, %c0_43] : memref<3x1x512xf32, #tpu.memory_space<vmem>>, vector<1x1x512xf32>
    %145 = vector.shape_cast %144 : vector<1x1x512xf32> to vector<1x512xf32>
    %cst_44 = arith.constant dense<0.000000e+00> : vector<4xf32>
    %146 = vector.multi_reduction <add>, %141, %cst_44 [1] : vector<4x512xf32> to vector<4xf32>
    %147 = vector.shape_cast %146 : vector<4xf32> to vector<4x1xf32>
    %cst_45 = arith.constant 5.120000e+02 : f32
    %148 = vector.broadcast %cst_45 : f32 to vector<4x1xf32>
    %149 = arith.divf %147, %148 : vector<4x1xf32>
    %150 = vector.broadcast %149 : vector<4x1xf32> to vector<4x512xf32>
    %151 = arith.subf %141, %150 : vector<4x512xf32>
    %152 = arith.mulf %151, %151 : vector<4x512xf32>
    %cst_46 = arith.constant dense<0.000000e+00> : vector<4xf32>
    %153 = vector.multi_reduction <add>, %152, %cst_46 [1] : vector<4x512xf32> to vector<4xf32>
    %154 = vector.shape_cast %153 : vector<4xf32> to vector<4x1xf32>
    %cst_47 = arith.constant 0.00195694715 : f32
    %155 = vector.broadcast %cst_47 : f32 to vector<4x1xf32>
    %156 = arith.mulf %154, %155 : vector<4x1xf32>
    %157 = math.sqrt %156 : vector<4x1xf32>
    %cst_48 = arith.constant 9.99999997E-7 : f32
    %158 = vector.broadcast %cst_48 : f32 to vector<4x1xf32>
    %159 = arith.addf %157, %158 : vector<4x1xf32>
    %cst_49 = arith.constant 1.000000e+00 : f32
    %160 = vector.broadcast %cst_49 : f32 to vector<4x1xf32>
    %161 = arith.divf %160, %159 : vector<4x1xf32>
    %162 = vector.broadcast %161 : vector<4x1xf32> to vector<4x512xf32>
    %163 = arith.mulf %151, %162 : vector<4x512xf32>
    %164 = vector.broadcast %143 : vector<1x512xf32> to vector<4x512xf32>
    %165 = arith.mulf %164, %163 : vector<4x512xf32>
    %166 = vector.broadcast %145 : vector<1x512xf32> to vector<4x512xf32>
    %167 = arith.addf %165, %166 : vector<4x512xf32>
    %c0_50 = arith.constant 0 : index
    %c0_51 = arith.constant 0 : index
    %c0_52 = arith.constant 0 : index
    %168 = vector.load %arg4[%c0_50, %c0_51, %c0_52] : memref<8x4x4xf32, #tpu.memory_space<vmem>>, vector<8x4x4xf32>
    %169 = arith.truncf %167 : vector<4x512xf32> to vector<4x512xbf16>
    %c0_53 = arith.constant 0 : index
    %c0_54 = arith.constant 0 : index
    %170 = vector.load %arg11[%c0_53, %c0_54] : memref<512x1536xbf16, #tpu.memory_space<vmem>>, vector<512x512xbf16>
    %cst_55 = arith.constant dense<0.000000e+00> : vector<4x512xf32>
    %171 = tpu.matmul %169, %170, %cst_55 {dimension_numbers = #tpu.dot_dimension_numbers<[1], [0], [0], [1], [0, 0, 1, 1], [], []>} : vector<4x512xbf16>, vector<512x512xbf16>, vector<4x512xf32> -> vector<4x512xf32>
    %c0_56 = arith.constant 0 : index
    %c0_57 = arith.constant 0 : index
    %172 = vector.load %arg12[%c0_56, %c0_57] : memref<1x1536xf32, #tpu.memory_space<vmem>>, vector<1x512xf32>
    %173 = vector.broadcast %172 : vector<1x512xf32> to vector<4x512xf32>
    %174 = arith.addf %171, %173 : vector<4x512xf32>
    %175 = arith.truncf %3 : vector<4x512xf32> to vector<4x512xbf16>
    %c0_58 = arith.constant 0 : index
    %c512_59 = arith.constant 512 : index
    %176 = vector.load %arg11[%c0_58, %c512_59] : memref<512x1536xbf16, #tpu.memory_space<vmem>>, vector<512x1024xbf16>
    %cst_60 = arith.constant dense<0.000000e+00> : vector<4x1024xf32>
    %177 = tpu.matmul %175, %176, %cst_60 {dimension_numbers = #tpu.dot_dimension_numbers<[1], [0], [0], [1], [0, 0, 1, 1], [], []>} : vector<4x512xbf16>, vector<512x1024xbf16>, vector<4x1024xf32> -> vector<4x1024xf32>
    %c0_61 = arith.constant 0 : index
    %c512_62 = arith.constant 512 : index
    %178 = vector.load %arg12[%c0_61, %c512_62] : memref<1x1536xf32, #tpu.memory_space<vmem>>, vector<1x1024xf32>
    %179 = vector.broadcast %178 : vector<1x1024xf32> to vector<4x1024xf32>
    %180 = arith.addf %177, %179 : vector<4x1024xf32>
    %181 = vector.extract_strided_slice %174 {offsets = [0, 0], sizes = [4, 64], strides = [1, 1]} : vector<4x512xf32> to vector<4x64xf32>
    %182 = vector.extract_strided_slice %174 {offsets = [0, 64], sizes = [4, 64], strides = [1, 1]} : vector<4x512xf32> to vector<4x64xf32>
    %183 = vector.extract_strided_slice %174 {offsets = [0, 128], sizes = [4, 64], strides = [1, 1]} : vector<4x512xf32> to vector<4x64xf32>
    %184 = vector.extract_strided_slice %174 {offsets = [0, 192], sizes = [4, 64], strides = [1, 1]} : vector<4x512xf32> to vector<4x64xf32>
    %185 = vector.extract_strided_slice %174 {offsets = [0, 256], sizes = [4, 64], strides = [1, 1]} : vector<4x512xf32> to vector<4x64xf32>
    %186 = vector.extract_strided_slice %174 {offsets = [0, 320], sizes = [4, 64], strides = [1, 1]} : vector<4x512xf32> to vector<4x64xf32>
    %187 = vector.extract_strided_slice %174 {offsets = [0, 384], sizes = [4, 64], strides = [1, 1]} : vector<4x512xf32> to vector<4x64xf32>
    %188 = vector.extract_strided_slice %174 {offsets = [0, 448], sizes = [4, 64], strides = [1, 1]} : vector<4x512xf32> to vector<4x64xf32>
    %189 = vector.shape_cast %181 : vector<4x64xf32> to vector<1x4x64xf32>
    %190 = vector.shape_cast %182 : vector<4x64xf32> to vector<1x4x64xf32>
    %191 = vector.shape_cast %183 : vector<4x64xf32> to vector<1x4x64xf32>
    %192 = vector.shape_cast %184 : vector<4x64xf32> to vector<1x4x64xf32>
    %193 = vector.shape_cast %185 : vector<4x64xf32> to vector<1x4x64xf32>
    %194 = vector.shape_cast %186 : vector<4x64xf32> to vector<1x4x64xf32>
    %195 = vector.shape_cast %187 : vector<4x64xf32> to vector<1x4x64xf32>
    %196 = vector.shape_cast %188 : vector<4x64xf32> to vector<1x4x64xf32>
    %197 = tpu.concatenate %189, %190, %191, %192, %193, %194, %195, %196 in 0 : vector<1x4x64xf32>, vector<1x4x64xf32>, vector<1x4x64xf32>, vector<1x4x64xf32>, vector<1x4x64xf32>, vector<1x4x64xf32>, vector<1x4x64xf32>, vector<1x4x64xf32> -> vector<8x4x64xf32>
    %198 = vector.extract_strided_slice %180 {offsets = [0, 0], sizes = [4, 512], strides = [1, 1]} : vector<4x1024xf32> to vector<4x512xf32>
    %199 = vector.extract_strided_slice %198 {offsets = [0, 0], sizes = [4, 64], strides = [1, 1]} : vector<4x512xf32> to vector<4x64xf32>
    %200 = vector.extract_strided_slice %198 {offsets = [0, 64], sizes = [4, 64], strides = [1, 1]} : vector<4x512xf32> to vector<4x64xf32>
    %201 = vector.extract_strided_slice %198 {offsets = [0, 128], sizes = [4, 64], strides = [1, 1]} : vector<4x512xf32> to vector<4x64xf32>
    %202 = vector.extract_strided_slice %198 {offsets = [0, 192], sizes = [4, 64], strides = [1, 1]} : vector<4x512xf32> to vector<4x64xf32>
    %203 = vector.extract_strided_slice %198 {offsets = [0, 256], sizes = [4, 64], strides = [1, 1]} : vector<4x512xf32> to vector<4x64xf32>
    %204 = vector.extract_strided_slice %198 {offsets = [0, 320], sizes = [4, 64], strides = [1, 1]} : vector<4x512xf32> to vector<4x64xf32>
    %205 = vector.extract_strided_slice %198 {offsets = [0, 384], sizes = [4, 64], strides = [1, 1]} : vector<4x512xf32> to vector<4x64xf32>
    %206 = vector.extract_strided_slice %198 {offsets = [0, 448], sizes = [4, 64], strides = [1, 1]} : vector<4x512xf32> to vector<4x64xf32>
    %207 = vector.shape_cast %199 : vector<4x64xf32> to vector<1x4x64xf32>
    %208 = vector.shape_cast %200 : vector<4x64xf32> to vector<1x4x64xf32>
    %209 = vector.shape_cast %201 : vector<4x64xf32> to vector<1x4x64xf32>
    %210 = vector.shape_cast %202 : vector<4x64xf32> to vector<1x4x64xf32>
    %211 = vector.shape_cast %203 : vector<4x64xf32> to vector<1x4x64xf32>
    %212 = vector.shape_cast %204 : vector<4x64xf32> to vector<1x4x64xf32>
    %213 = vector.shape_cast %205 : vector<4x64xf32> to vector<1x4x64xf32>
    %214 = vector.shape_cast %206 : vector<4x64xf32> to vector<1x4x64xf32>
    %215 = tpu.concatenate %207, %208, %209, %210, %211, %212, %213, %214 in 0 : vector<1x4x64xf32>, vector<1x4x64xf32>, vector<1x4x64xf32>, vector<1x4x64xf32>, vector<1x4x64xf32>, vector<1x4x64xf32>, vector<1x4x64xf32>, vector<1x4x64xf32> -> vector<8x4x64xf32>
    %216 = vector.extract_strided_slice %180 {offsets = [0, 512], sizes = [4, 512], strides = [1, 1]} : vector<4x1024xf32> to vector<4x512xf32>
    %217 = vector.extract_strided_slice %216 {offsets = [0, 0], sizes = [4, 64], strides = [1, 1]} : vector<4x512xf32> to vector<4x64xf32>
    %218 = vector.extract_strided_slice %216 {offsets = [0, 64], sizes = [4, 64], strides = [1, 1]} : vector<4x512xf32> to vector<4x64xf32>
    %219 = vector.extract_strided_slice %216 {offsets = [0, 128], sizes = [4, 64], strides = [1, 1]} : vector<4x512xf32> to vector<4x64xf32>
    %220 = vector.extract_strided_slice %216 {offsets = [0, 192], sizes = [4, 64], strides = [1, 1]} : vector<4x512xf32> to vector<4x64xf32>
    %221 = vector.extract_strided_slice %216 {offsets = [0, 256], sizes = [4, 64], strides = [1, 1]} : vector<4x512xf32> to vector<4x64xf32>
    %222 = vector.extract_strided_slice %216 {offsets = [0, 320], sizes = [4, 64], strides = [1, 1]} : vector<4x512xf32> to vector<4x64xf32>
    %223 = vector.extract_strided_slice %216 {offsets = [0, 384], sizes = [4, 64], strides = [1, 1]} : vector<4x512xf32> to vector<4x64xf32>
    %224 = vector.extract_strided_slice %216 {offsets = [0, 448], sizes = [4, 64], strides = [1, 1]} : vector<4x512xf32> to vector<4x64xf32>
    %225 = vector.shape_cast %217 : vector<4x64xf32> to vector<1x4x64xf32>
    %226 = vector.shape_cast %218 : vector<4x64xf32> to vector<1x4x64xf32>
    %227 = vector.shape_cast %219 : vector<4x64xf32> to vector<1x4x64xf32>
    %228 = vector.shape_cast %220 : vector<4x64xf32> to vector<1x4x64xf32>
    %229 = vector.shape_cast %221 : vector<4x64xf32> to vector<1x4x64xf32>
    %230 = vector.shape_cast %222 : vector<4x64xf32> to vector<1x4x64xf32>
    %231 = vector.shape_cast %223 : vector<4x64xf32> to vector<1x4x64xf32>
    %232 = vector.shape_cast %224 : vector<4x64xf32> to vector<1x4x64xf32>
    %233 = tpu.concatenate %225, %226, %227, %228, %229, %230, %231, %232 in 0 : vector<1x4x64xf32>, vector<1x4x64xf32>, vector<1x4x64xf32>, vector<1x4x64xf32>, vector<1x4x64xf32>, vector<1x4x64xf32>, vector<1x4x64xf32>, vector<1x4x64xf32> -> vector<8x4x64xf32>
    %234 = arith.truncf %197 : vector<8x4x64xf32> to vector<8x4x64xbf16>
    %235 = arith.truncf %215 : vector<8x4x64xf32> to vector<8x4x64xbf16>
    "tpu.trace_start"() <{level = 10 : i32, message = "hqf,hkf->hqk"}> : () -> ()
    %cst_63 = arith.constant dense<0.000000e+00> : vector<8x4x4xf32>
    %236 = tpu.matmul %234, %235, %cst_63 {dimension_numbers = #tpu.dot_dimension_numbers<[2], [2], [1], [1], [0, 0, 0, 1, 1, 1], [0], [0]>} : vector<8x4x64xbf16>, vector<8x4x64xbf16>, vector<8x4x4xf32> -> vector<8x4x4xf32>
    "tpu.trace_stop"() : () -> ()
    %237 = arith.mulf %236, %168 : vector<8x4x4xf32>
    %cst_64 = arith.constant 1.000000e+00 : f32
    %238 = vector.broadcast %cst_64 : f32 to vector<8x4x4xf32>
    %239 = arith.subf %168, %238 : vector<8x4x4xf32>
    %cst_65 = arith.constant 1.000000e+09 : f32
    %240 = vector.broadcast %cst_65 : f32 to vector<8x4x4xf32>
    %241 = arith.mulf %239, %240 : vector<8x4x4xf32>
    %242 = arith.addf %237, %241 : vector<8x4x4xf32>
    %cst_66 = arith.constant dense<0xFF800000> : vector<8x4xf32>
    %243 = vector.multi_reduction <maximumf>, %242, %cst_66 [2] : vector<8x4x4xf32> to vector<8x4xf32>
    %244 = vector.shape_cast %243 : vector<8x4xf32> to vector<8x4x1xf32>
    %245 = vector.broadcast %244 : vector<8x4x1xf32> to vector<8x4x4xf32>
    %246 = arith.subf %242, %245 : vector<8x4x4xf32>
    %247 = math.exp %246 : vector<8x4x4xf32>
    %cst_67 = arith.constant dense<0.000000e+00> : vector<8x4xf32>
    %248 = vector.multi_reduction <add>, %247, %cst_67 [2] : vector<8x4x4xf32> to vector<8x4xf32>
    %249 = vector.shape_cast %248 : vector<8x4xf32> to vector<8x4x1xf32>
    %250 = tpu.reciprocal %249 {approx = true} : vector<8x4x1xf32> -> vector<8x4x1xf32>
    %251 = vector.broadcast %250 : vector<8x4x1xf32> to vector<8x4x4xf32>
    %252 = arith.mulf %247, %251 : vector<8x4x4xf32>
    %253 = arith.truncf %252 : vector<8x4x4xf32> to vector<8x4x4xbf16>
    %254 = arith.truncf %233 : vector<8x4x64xf32> to vector<8x4x64xbf16>
    "tpu.trace_start"() <{level = 10 : i32, message = "hqk,hkf->hqf"}> : () -> ()
    %cst_68 = arith.constant dense<0.000000e+00> : vector<8x4x64xf32>
    %255 = tpu.matmul %253, %254, %cst_68 {dimension_numbers = #tpu.dot_dimension_numbers<[2], [1], [1], [2], [0, 0, 0, 1, 1, 2], [0], [0]>} : vector<8x4x4xbf16>, vector<8x4x64xbf16>, vector<8x4x64xf32> -> vector<8x4x64xf32>
    "tpu.trace_stop"() : () -> ()
    %256 = vector.extract_strided_slice %255 {offsets = [0, 0, 0], sizes = [1, 4, 64], strides = [1, 1, 1]} : vector<8x4x64xf32> to vector<1x4x64xf32>
    %257 = vector.shape_cast %256 : vector<1x4x64xf32> to vector<4x64xf32>
    %258 = vector.extract_strided_slice %255 {offsets = [1, 0, 0], sizes = [1, 4, 64], strides = [1, 1, 1]} : vector<8x4x64xf32> to vector<1x4x64xf32>
    %259 = vector.shape_cast %258 : vector<1x4x64xf32> to vector<4x64xf32>
    %260 = vector.extract_strided_slice %255 {offsets = [2, 0, 0], sizes = [1, 4, 64], strides = [1, 1, 1]} : vector<8x4x64xf32> to vector<1x4x64xf32>
    %261 = vector.shape_cast %260 : vector<1x4x64xf32> to vector<4x64xf32>
    %262 = vector.extract_strided_slice %255 {offsets = [3, 0, 0], sizes = [1, 4, 64], strides = [1, 1, 1]} : vector<8x4x64xf32> to vector<1x4x64xf32>
    %263 = vector.shape_cast %262 : vector<1x4x64xf32> to vector<4x64xf32>
    %264 = vector.extract_strided_slice %255 {offsets = [4, 0, 0], sizes = [1, 4, 64], strides = [1, 1, 1]} : vector<8x4x64xf32> to vector<1x4x64xf32>
    %265 = vector.shape_cast %264 : vector<1x4x64xf32> to vector<4x64xf32>
    %266 = vector.extract_strided_slice %255 {offsets = [5, 0, 0], sizes = [1, 4, 64], strides = [1, 1, 1]} : vector<8x4x64xf32> to vector<1x4x64xf32>
    %267 = vector.shape_cast %266 : vector<1x4x64xf32> to vector<4x64xf32>
    %268 = vector.extract_strided_slice %255 {offsets = [6, 0, 0], sizes = [1, 4, 64], strides = [1, 1, 1]} : vector<8x4x64xf32> to vector<1x4x64xf32>
    %269 = vector.shape_cast %268 : vector<1x4x64xf32> to vector<4x64xf32>
    %270 = vector.extract_strided_slice %255 {offsets = [7, 0, 0], sizes = [1, 4, 64], strides = [1, 1, 1]} : vector<8x4x64xf32> to vector<1x4x64xf32>
    %271 = vector.shape_cast %270 : vector<1x4x64xf32> to vector<4x64xf32>
    %272 = tpu.concatenate %257, %259, %261, %263, %265, %267, %269, %271 in 1 : vector<4x64xf32>, vector<4x64xf32>, vector<4x64xf32>, vector<4x64xf32>, vector<4x64xf32>, vector<4x64xf32>, vector<4x64xf32>, vector<4x64xf32> -> vector<4x512xf32>
    %273 = arith.truncf %272 : vector<4x512xf32> to vector<4x512xbf16>
    %c0_69 = arith.constant 0 : index
    %c0_70 = arith.constant 0 : index
    %274 = vector.load %arg13[%c0_69, %c0_70] : memref<512x512xbf16, #tpu.memory_space<vmem>>, vector<512x512xbf16>
    %cst_71 = arith.constant dense<0.000000e+00> : vector<4x512xf32>
    %275 = tpu.matmul %273, %274, %cst_71 {dimension_numbers = #tpu.dot_dimension_numbers<[1], [0], [0], [1], [0, 0, 1, 1], [], []>} : vector<4x512xbf16>, vector<512x512xbf16>, vector<4x512xf32> -> vector<4x512xf32>
    %c0_72 = arith.constant 0 : index
    %c0_73 = arith.constant 0 : index
    %276 = vector.load %arg14[%c0_72, %c0_73] : memref<1x512xf32, #tpu.memory_space<vmem>>, vector<1x512xf32>
    %277 = vector.broadcast %276 : vector<1x512xf32> to vector<4x512xf32>
    %278 = arith.addf %275, %277 : vector<4x512xf32>
    %279 = arith.addf %141, %278 : vector<4x512xf32>
    %c2 = arith.constant 2 : index
    %c0_74 = arith.constant 0 : index
    %c0_75 = arith.constant 0 : index
    %280 = vector.load %arg5[%c2, %c0_74, %c0_75] : memref<3x1x512xf32, #tpu.memory_space<vmem>>, vector<1x1x512xf32>
    %281 = vector.shape_cast %280 : vector<1x1x512xf32> to vector<1x512xf32>
    %c2_76 = arith.constant 2 : index
    %c0_77 = arith.constant 0 : index
    %c0_78 = arith.constant 0 : index
    %282 = vector.load %arg6[%c2_76, %c0_77, %c0_78] : memref<3x1x512xf32, #tpu.memory_space<vmem>>, vector<1x1x512xf32>
    %283 = vector.shape_cast %282 : vector<1x1x512xf32> to vector<1x512xf32>
    %cst_79 = arith.constant dense<0.000000e+00> : vector<4xf32>
    %284 = vector.multi_reduction <add>, %279, %cst_79 [1] : vector<4x512xf32> to vector<4xf32>
    %285 = vector.shape_cast %284 : vector<4xf32> to vector<4x1xf32>
    %cst_80 = arith.constant 5.120000e+02 : f32
    %286 = vector.broadcast %cst_80 : f32 to vector<4x1xf32>
    %287 = arith.divf %285, %286 : vector<4x1xf32>
    %288 = vector.broadcast %287 : vector<4x1xf32> to vector<4x512xf32>
    %289 = arith.subf %279, %288 : vector<4x512xf32>
    %290 = arith.mulf %289, %289 : vector<4x512xf32>
    %cst_81 = arith.constant dense<0.000000e+00> : vector<4xf32>
    %291 = vector.multi_reduction <add>, %290, %cst_81 [1] : vector<4x512xf32> to vector<4xf32>
    %292 = vector.shape_cast %291 : vector<4xf32> to vector<4x1xf32>
    %cst_82 = arith.constant 0.00195694715 : f32
    %293 = vector.broadcast %cst_82 : f32 to vector<4x1xf32>
    %294 = arith.mulf %292, %293 : vector<4x1xf32>
    %295 = math.sqrt %294 : vector<4x1xf32>
    %cst_83 = arith.constant 9.99999997E-7 : f32
    %296 = vector.broadcast %cst_83 : f32 to vector<4x1xf32>
    %297 = arith.addf %295, %296 : vector<4x1xf32>
    %cst_84 = arith.constant 1.000000e+00 : f32
    %298 = vector.broadcast %cst_84 : f32 to vector<4x1xf32>
    %299 = arith.divf %298, %297 : vector<4x1xf32>
    %300 = vector.broadcast %299 : vector<4x1xf32> to vector<4x512xf32>
    %301 = arith.mulf %289, %300 : vector<4x512xf32>
    %302 = vector.broadcast %281 : vector<1x512xf32> to vector<4x512xf32>
    %303 = arith.mulf %302, %301 : vector<4x512xf32>
    %304 = vector.broadcast %283 : vector<1x512xf32> to vector<4x512xf32>
    %305 = arith.addf %303, %304 : vector<4x512xf32>
    %306 = arith.truncf %305 : vector<4x512xf32> to vector<4x512xbf16>
    %c0_85 = arith.constant 0 : index
    %c0_86 = arith.constant 0 : index
    %307 = vector.load %arg15[%c0_85, %c0_86] : memref<512x64xbf16, #tpu.memory_space<vmem>>, vector<512x64xbf16>
    %cst_87 = arith.constant dense<0.000000e+00> : vector<4x64xf32>
    %308 = tpu.matmul %306, %307, %cst_87 {dimension_numbers = #tpu.dot_dimension_numbers<[1], [0], [0], [1], [0, 0, 1, 1], [], []>} : vector<4x512xbf16>, vector<512x64xbf16>, vector<4x64xf32> -> vector<4x64xf32>
    %c0_88 = arith.constant 0 : index
    %c0_89 = arith.constant 0 : index
    %309 = vector.load %arg16[%c0_88, %c0_89] : memref<1x64xf32, #tpu.memory_space<vmem>>, vector<1x64xf32>
    %310 = vector.broadcast %309 : vector<1x64xf32> to vector<4x64xf32>
    %311 = arith.addf %308, %310 : vector<4x64xf32>
    %cst_90 = arith.constant 0.000000e+00 : f32
    %312 = vector.broadcast %cst_90 : f32 to vector<4x64xf32>
    %313 = arith.maximumf %311, %312 : vector<4x64xf32>
    %314 = arith.truncf %313 : vector<4x64xf32> to vector<4x64xbf16>
    %c0_91 = arith.constant 0 : index
    %c0_92 = arith.constant 0 : index
    %315 = vector.load %arg17[%c0_91, %c0_92] : memref<64x512xbf16, #tpu.memory_space<vmem>>, vector<64x512xbf16>
    %cst_93 = arith.constant dense<0.000000e+00> : vector<4x512xf32>
    %316 = tpu.matmul %314, %315, %cst_93 {dimension_numbers = #tpu.dot_dimension_numbers<[1], [0], [0], [1], [0, 0, 1, 1], [], []>} : vector<4x64xbf16>, vector<64x512xbf16>, vector<4x512xf32> -> vector<4x512xf32>
    %c0_94 = arith.constant 0 : index
    %c0_95 = arith.constant 0 : index
    %317 = vector.load %arg18[%c0_94, %c0_95] : memref<1x512xf32, #tpu.memory_space<vmem>>, vector<1x512xf32>
    %318 = vector.broadcast %317 : vector<1x512xf32> to vector<4x512xf32>
    %319 = arith.addf %316, %318 : vector<4x512xf32>
    %320 = arith.addf %279, %319 : vector<4x512xf32>
    %c0_96 = arith.constant 0 : index
    %c0_97 = arith.constant 0 : index
    %c0_98 = arith.constant 0 : index
    %321 = vector.load %arg19[%c0_96, %c0_97, %c0_98] : memref<1x4x512xf32, #tpu.memory_space<vmem>>, vector<1x4x512xf32>
    %322 = vector.shape_cast %321 : vector<1x4x512xf32> to vector<4x512xf32>
    %323 = vector.shape_cast %320 : vector<4x512xf32> to vector<1x4x512xf32>
    tpu.vector_store %arg19[%c0_96, %c0_97, %c0_98], %323 {strides = array<i32>} : memref<1x4x512xf32, #tpu.memory_space<vmem>>, vector<1x4x512xf32>,
    return
  }
  func.func @transform_0(%arg0: i32) -> (i32, i32, i32) {
    %c0_i32 = arith.constant 0 : i32
    %c0_i32_0 = arith.constant 0 : i32
    %c0_i32_1 = arith.constant 0 : i32
    return %arg0, %c0_i32, %c0_i32_0 : i32, i32, i32
  }
  func.func @transform_1(%arg0: i32) -> (i32, i32, i32) {
    %c0_i32 = arith.constant 0 : i32
    %c0_i32_0 = arith.constant 0 : i32
    %c0_i32_1 = arith.constant 0 : i32
    return %arg0, %c0_i32, %c0_i32_0 : i32, i32, i32
  }
  func.func @transform_2(%arg0: i32) -> (i32, i32, i32) {
    %c0_i32 = arith.constant 0 : i32
    %c0_i32_0 = arith.constant 0 : i32
    %c0_i32_1 = arith.constant 0 : i32
    %c0_i32_2 = arith.constant 0 : i32
    return %c0_i32, %c0_i32_0, %c0_i32_1 : i32, i32, i32
  }
  func.func @transform_3(%arg0: i32) -> (i32, i32, i32) {
    %c0_i32 = arith.constant 0 : i32
    %c0_i32_0 = arith.constant 0 : i32
    %c0_i32_1 = arith.constant 0 : i32
    %c0_i32_2 = arith.constant 0 : i32
    return %c0_i32, %c0_i32_0, %c0_i32_1 : i32, i32, i32
  }
  func.func @transform_4(%arg0: i32) -> (i32, i32, i32) {
    %c0_i32 = arith.constant 0 : i32
    %c0_i32_0 = arith.constant 0 : i32
    %c0_i32_1 = arith.constant 0 : i32
    %c0_i32_2 = arith.constant 0 : i32
    return %c0_i32, %c0_i32_0, %c0_i32_1 : i32, i32, i32
  }
  func.func @transform_5(%arg0: i32) -> (i32, i32, i32) {
    %c0_i32 = arith.constant 0 : i32
    %c0_i32_0 = arith.constant 0 : i32
    %c0_i32_1 = arith.constant 0 : i32
    %c0_i32_2 = arith.constant 0 : i32
    return %c0_i32, %c0_i32_0, %c0_i32_1 : i32, i32, i32
  }
  func.func @transform_6(%arg0: i32) -> (i32, i32) {
    %c0_i32 = arith.constant 0 : i32
    %c0_i32_0 = arith.constant 0 : i32
    %c0_i32_1 = arith.constant 0 : i32
    return %c0_i32, %c0_i32_0 : i32, i32
  }
  func.func @transform_7(%arg0: i32) -> (i32, i32) {
    %c0_i32 = arith.constant 0 : i32
    %c0_i32_0 = arith.constant 0 : i32
    %c0_i32_1 = arith.constant 0 : i32
    return %c0_i32, %c0_i32_0 : i32, i32
  }
  func.func @transform_8(%arg0: i32) -> (i32, i32) {
    %c0_i32 = arith.constant 0 : i32
    %c0_i32_0 = arith.constant 0 : i32
    %c0_i32_1 = arith.constant 0 : i32
    return %c0_i32, %c0_i32_0 : i32, i32
  }
  func.func @transform_9(%arg0: i32) -> (i32, i32) {
    %c0_i32 = arith.constant 0 : i32
    %c0_i32_0 = arith.constant 0 : i32
    %c0_i32_1 = arith.constant 0 : i32
    return %c0_i32, %c0_i32_0 : i32, i32
  }
  func.func @transform_10(%arg0: i32) -> (i32, i32) {
    %c0_i32 = arith.constant 0 : i32
    %c0_i32_0 = arith.constant 0 : i32
    %c0_i32_1 = arith.constant 0 : i32
    return %c0_i32, %c0_i32_0 : i32, i32
  }
  func.func @transform_11(%arg0: i32) -> (i32, i32) {
    %c0_i32 = arith.constant 0 : i32
    %c0_i32_0 = arith.constant 0 : i32
    %c0_i32_1 = arith.constant 0 : i32
    return %c0_i32, %c0_i32_0 : i32, i32
  }
  func.func @transform_12(%arg0: i32) -> (i32, i32) {
    %c0_i32 = arith.constant 0 : i32
    %c0_i32_0 = arith.constant 0 : i32
    %c0_i32_1 = arith.constant 0 : i32
    return %c0_i32, %c0_i32_0 : i32, i32
  }
  func.func @transform_13(%arg0: i32) -> (i32, i32) {
    %c0_i32 = arith.constant 0 : i32
    %c0_i32_0 = arith.constant 0 : i32
    %c0_i32_1 = arith.constant 0 : i32
    return %c0_i32, %c0_i32_0 : i32, i32
  }
  func.func @transform_14(%arg0: i32) -> (i32, i32) {
    %c0_i32 = arith.constant 0 : i32
    %c0_i32_0 = arith.constant 0 : i32
    %c0_i32_1 = arith.constant 0 : i32
    return %c0_i32, %c0_i32_0 : i32, i32
  }
  func.func @transform_15(%arg0: i32) -> (i32, i32) {
    %c0_i32 = arith.constant 0 : i32
    %c0_i32_0 = arith.constant 0 : i32
    %c0_i32_1 = arith.constant 0 : i32
    return %c0_i32, %c0_i32_0 : i32, i32
  }
  func.func @transform_16(%arg0: i32) -> (i32, i32) {
    %c0_i32 = arith.constant 0 : i32
    %c0_i32_0 = arith.constant 0 : i32
    %c0_i32_1 = arith.constant 0 : i32
    return %c0_i32, %c0_i32_0 : i32, i32
  }
  func.func @transform_17(%arg0: i32) -> (i32, i32) {
    %c0_i32 = arith.constant 0 : i32
    %c0_i32_0 = arith.constant 0 : i32
    %c0_i32_1 = arith.constant 0 : i32
    return %c0_i32, %c0_i32_0 : i32, i32
  }
  func.func @transform_18(%arg0: i32) -> (i32, i32, i32) {
    %c0_i32 = arith.constant 0 : i32
    %c0_i32_0 = arith.constant 0 : i32
    %c0_i32_1 = arith.constant 0 : i32
    return %arg0, %c0_i32, %c0_i32_0 : i32, i32, i32
  }
}

</mosaic_0001>

<bundles_post_ra>
// kernel: tpu_custom_call.1
= control target key start
LH: loop header
LB: loop body
LE: loop exit
PB: predicated region body
PF: predicated region fallthrough
CT: control target
= control target key end

     0   :  { %s17088_s0 = inlined_call_operand.hbm [shape: f32[2,4,512], index: 0, kind: input, shape index: {}]   ;;  %s17089_s1 = inlined_call_operand.hbm [shape: f32[2,4,512], index: 1, kind: input, shape index: {}]   ;;  %s17090_s2 = inlined_call_operand.vmem [shape: f32[8,4,4], index: 2, kind: input, shape index: {}]   ;;  %s17091_s3 = inlined_call_operand.vmem [shape: f32[8,4,4], index: 3, kind: input, shape index: {}]   ;;  %s17092_s4 = inlined_call_operand.hbm [shape: f32[3,1,512], index: 4, kind: input, shape index: {}]   ;;  %s17093_s5 = inlined_call_operand.hbm [shape: f32[3,1,512], index: 5, kind: input, shape index: {}]   ;;  %s17094_s6 = inlined_call_operand.hbm [shape: bf16[512,1536], index: 6, kind: input, shape index: {}]   ;;  %s17095_s7 = inlined_call_operand.hbm [shape: f32[1,1536], index: 7, kind: input, shape index: {}]   ;;  %s17096_s8 = inlined_call_operand.hbm [shape: bf16[512,512], index: 8, kind: input, shape index: {}]   ;;  %s17097_s9 = inlined_call_operand.hbm [shape: f32[1,512], index: 9, kind: input, shape index: {}]   ;;  %s17098_s10 = inlined_call_operand.hbm [shape: bf16[512,1536], index: 10, kind: input, shape index: {}]   ;;  %s17099_s11 = inlined_call_operand.hbm [shape: f32[1,1536], index: 11, kind: input, shape index: {}]   ;;  %s17100_s12 = inlined_call_operand.hbm [shape: bf16[512,512], index: 12, kind: input, shape index: {}]   ;;  %s17101_s13 = inlined_call_operand.hbm [shape: f32[1,512], index: 13, kind: input, shape index: {}]   ;;  %s17102_s14 = inlined_call_operand.vmem [shape: bf16[512,64], index: 14, kind: input, shape index: {}]   ;;  %s17103_s15 = inlined_call_operand.hbm [shape: f32[1,64], index: 15, kind: input, shape index: {}]   ;;  %s17104_s16 = inlined_call_operand.hbm [shape: bf16[64,512], index: 16, kind: input, shape index: {}]   ;;  %s17105_s17 = inlined_call_operand.hbm [shape: f32[1,512], index: 17, kind: input, shape index: {}]   ;;  %s17106_s18 = inlined_call_operand.hbm [shape: f32[2,4,512], index: 18, kind: output, shape index: {}]  }
   0x1   :  { %17127 = sst [smem:[#allocation41_spill]] %s17088_s0 }
   0x2   :  { %17128 = sst [smem:[#allocation42_spill]] %s17089_s1 }
   0x3   :  { %17129 = sst [smem:[#allocation43_spill]] %s17090_s2 }
   0x4   :  { %17130 = sst [smem:[#allocation44_spill]] %s17091_s3 }
   0x5   :  { %17131 = sst [smem:[#allocation45_spill]] %s17092_s4 }
   0x6   :  { %17132 = sst [smem:[#allocation46_spill]] %s17093_s5 }
   0x7   :  { %17133 = sst [smem:[#allocation47_spill]] %s17094_s6 }
   0x8   :  { %17134 = sst [smem:[#allocation48_spill]] %s17095_s7 }
   0x9   :  { %17135 = sst [smem:[#allocation49_spill]] %s17096_s8 }
   0xa   :  { %17136 = sst [smem:[#allocation50_spill]] %s17097_s9 }
   0xb   :  { %17137 = sst [smem:[#allocation51_spill]] %s17098_s10 }
   0xc   :  { %17138 = sst [smem:[#allocation52_spill]] %s17099_s11 }
   0xd   :  { %17139 = sst [smem:[#allocation53_spill]] %s17102_s14 }
   0xe   :  { %17140 = sst [smem:[#allocation54_spill]] %s17106_s18 }
   0xf   :  { %23 = vsyncpa [#allocation3], 0 }
  0x10   :  { %25 = vsyncpa [#allocation3 + $0x1], 0 }
  0x11   :  { %26 = vsyncpa [#allocation6], 0 }
  0x12   :  { %28 = vsyncpa [#allocation6 + $0x1], 0 }
  0x13   :  { %29 = vsyncpa [#allocation9], 0 }
  0x14   :  { %30 = vsyncpa [#allocation12], 0 }
  0x15   :  { %31 = vsyncpa [#allocation15], 0 }
  0x16   :  { %32 = vsyncpa [#allocation18], 0 }
  0x17   :  { %33 = vsyncpa [#allocation21], 0 }
  0x18   :  { %34 = vsyncpa [#allocation24], 0 }
  0x19   :  { %35 = vsyncpa [#allocation4], 0 }
  0x1a   :  { %37 = vsyncpa [#allocation4 + $0x1], 0  ;;  %s15719_s27 = smov 0   ;;  %s15721_s28 = smov 0  }
  0x1b   :  { %s15723_s29 = smov 0   ;;  %s15725_s30 = smov 0  }
  0x1c LB: > { %17141 = sst [smem:[#allocation37_spill]] %s15583_s27  ;;  %s15597_s0 = smov [#allocation7]   ;;  %s15595_s30 = sphi %s15725_s30, %s17200_s30   ;;  %s15591_s29 = sphi %s15723_s29, %s17199_s29   ;;  %s15587_s28 = sphi %s15721_s28, %s17198_s28   ;;  %s15583_s27 = sphi %s15719_s27, %s17197_s27  }
  0x1d   : > { %17142 = sst [smem:[#allocation38_spill]] %s15587_s28  ;;  %s480_s19 = sshll.u32 %s15597_s0, 4  ;;  %s15745_s19 = int_to_ptr.vmem [resolvable:$true] %s480_s19 }
  0x1e   : > { %s15740_s1 = sadd.s32 4294967295, %s15595_s30   ;;  %p11591_p0 = scmp.ge.s32.totalorder %s15595_s30, 1 }
  0x1f   : > { %17143 = sst [smem:[#allocation39_spill]] %s15740_s1  ;;  %p17118_p1 = scmp.eq.s32.totalorder %s15740_s1, 0 }
  0x20   : > { %p462_p2 = scmp.lt.s32.totalorder %s15595_s30, 3  ;;  %s15598_s21 = smov [#allocation8]  }
  0x21   : > { %s493_s22 = sshll.u32 %s15598_s21, 4  ;;  %s15599_s23 = smov [#allocation11]   ;;  %s15760_s22 = int_to_ptr.vmem [resolvable:$true] %s493_s22 }
  0x22   : > { %p15747_p3 = pnand %p11591_p0, %p462_p2  ;;  %s520_s24 = sshll.u32 %s15599_s23, 4  ;;  %s15762_s24 = int_to_ptr.vmem [resolvable:$true] %s520_s24 }
  0x23   : > { %s17147_s4 = sld [smem:[#allocation45_spill]] }
  0x24   : > { %s17144_s20 = scalar_select %p15747_p3, 1, 0 }
  0x25   : > { %p13214_p5 = pneg %p15747_p3 }
  0x26   : > { %17145 = sst [smem:[#allocation40_spill]] %s17144_s20 }
  0x27   : > { %p15756_p6 = pnand %p13214_p5, %p17118_p1 }
  0x29   : > { %s15073_s0 = scalar_lea.hbm %s17147_s4, 192  ;;  %p15772_p8 = pneg %p15756_p6 }
  0x2a   : > { %p15074_p7 = scmp.ne.s32.totalorder %s17147_s4, %s15073_s0  ;;  %p15080_p11 = scmp.lt.u32.totalorder %s15073_s0, %s17147_s4 }
  0x2c   : > { %p15076_p9 = pnand %p15772_p8, %p15074_p7 }
  0x2e   : > { %p15077_p10 = pneg %p15076_p9 }
  0x30   : > { %p15082_p12 = pnand %p15080_p11, %p15077_p10 }
  0x32   : > { %15085 = shalt.err (!%p15082_p12)
}
  0x33   : > { %s15086_s14 = scalar_lea.vmem %s15745_s19, 192  ;;  %p15094_p5 = scmp.lt.s32.totalorder %s15745_s19, %s15745_s19 }
  0x34   : > { %p15087_p13 = scmp.ne.s32.totalorder %s15745_s19, %s15086_s14  ;;  %p15095_p4 = scmp.lt.s32.totalorder %s15086_s14, %s15086_s14 }
  0x36   : > { %p15089_p0 = pnand %p15087_p13, %p15772_p8  ;;  %p15096_p7 = por %p15095_p4, %p15094_p5 }
  0x38   : > { %p15090_p2 = pneg %p15089_p0 }
  0x3a   : > { %p15097_p9 = pnand %p15096_p7, %p15090_p2 }
  0x3c   : > { %15100 = shalt.err (!%p15097_p9)
}
  0x3d   : > { %s15600_s18 = smov 64   ;;  %s15601_s3 = smov 4  }
  0x3e   : > { %13217 = dma.hbm_to_vmem [thread:$0]  (!%p15756_p6), %s17147_s4, 192, %s15745_s19, [#allocation6], %s15600_s18, %s15600_s18, %s15601_s3  }
  0x3f   : > { %s17149_s5 = sld [smem:[#allocation46_spill]] }
  0x45   : > { %s15101_s20 = scalar_lea.hbm %s17149_s5, 192 }
  0x46   : > { %p15102_p4 = scmp.ne.s32.totalorder %s17149_s5, %s15101_s20  ;;  %p15108_p12 = scmp.lt.u32.totalorder %s15101_s20, %s17149_s5 }
  0x48   : > { %p15104_p10 = pnand %p15102_p4, %p15772_p8 }
  0x4a   : > { %p15105_p11 = pneg %p15104_p10 }
  0x4c   : > { %p15110_p13 = pnand %p15108_p12, %p15105_p11 }
  0x4e   : > { %15113 = shalt.err (!%p15110_p13)
}
  0x4f   : > { %s15114_s19 = scalar_lea.vmem %s15760_s22, 192  ;;  %p15122_p7 = scmp.lt.s32.totalorder %s15760_s22, %s15760_s22 }
  0x50   : > { %p15115_p0 = scmp.ne.s32.totalorder %s15760_s22, %s15114_s19  ;;  %p15123_p9 = scmp.lt.s32.totalorder %s15114_s19, %s15114_s19 }
  0x52   : > { %p15117_p2 = pnand %p15115_p0, %p15772_p8  ;;  %p15124_p4 = por %p15123_p9, %p15122_p7 }
  0x54   : > { %p15118_p5 = pneg %p15117_p2 }
  0x56   : > { %p15125_p10 = pnand %p15124_p4, %p15118_p5 }
  0x58   : > { %15128 = shalt.err (!%p15125_p10)
}
  0x59   : > { %13220 = dma.hbm_to_vmem [thread:$0]  (!%p15756_p6), %s17149_s5, 192, %s15760_s22, [#allocation9], %s15600_s18, %s15600_s18, %s15601_s3  }
  0x5a   : > { %s17150_s7 = sld [smem:[#allocation48_spill]] }
  0x60   : > { %s15129_s25 = scalar_lea.hbm %s17150_s7, 192 }
  0x61   : > { %p15130_p11 = scmp.ne.s32.totalorder %s17150_s7, %s15129_s25  ;;  %p15136_p0 = scmp.lt.u32.totalorder %s15129_s25, %s17150_s7 }
  0x63   : > { %p15132_p12 = pnand %p15130_p11, %p15772_p8 }
  0x65   : > { %p15133_p13 = pneg %p15132_p12 }
  0x67   : > { %p15138_p2 = pnand %p15136_p0, %p15133_p13 }
  0x69   : > { %15141 = shalt.err (!%p15138_p2)
}
  0x6a   : > { %s15142_s22 = scalar_lea.vmem %s15762_s24, 192  ;;  %p15150_p4 = scmp.lt.s32.totalorder %s15762_s24, %s15762_s24 }
  0x6b   : > { %p15143_p5 = scmp.ne.s32.totalorder %s15762_s24, %s15142_s22  ;;  %p15151_p10 = scmp.lt.s32.totalorder %s15142_s22, %s15142_s22 }
  0x6d   : > { %p15145_p7 = pnand %p15143_p5, %p15772_p8  ;;  %p15152_p11 = por %p15151_p10, %p15150_p4 }
  0x6f   : > { %p15146_p9 = pneg %p15145_p7 }
  0x71   : > { %p15153_p12 = pnand %p15152_p11, %p15146_p9 }
  0x73   : > { %15156 = shalt.err (!%p15153_p12)
}
  0x74   : > { %13226 = dma.hbm_to_vmem [thread:$0]  (!%p15756_p6), %s17150_s7, 192, %s15762_s24, [#allocation12]  }
  0x75   : > { %s15602_s19 = smov [#allocation14]   ;;  %s15603_s28 = smov [#allocation17]  }
  0x76   : > { %s544_s27 = sshll.u32 %s15602_s19, 4  ;;  %s568_s1 = sshll.u32 %s15603_s28, 4  ;;  %s545_s27 = int_to_ptr.vmem [resolvable:$true] %s544_s27  ;;  %s569_s1 = int_to_ptr.vmem [resolvable:$true] %s568_s1 }
  0x77   : > { %s17151_s9 = sld [smem:[#allocation50_spill]] }
  0x7d   : > { %s15157_s26 = scalar_lea.hbm %s17151_s9, 64 }
  0x7e   : > { %p15158_p13 = scmp.ne.s32.totalorder %s17151_s9, %s15157_s26  ;;  %p15164_p5 = scmp.lt.u32.totalorder %s15157_s26, %s17151_s9 }
  0x80   : > { %p15160_p0 = pnand %p15158_p13, %p15772_p8 }
  0x82   : > { %p15161_p2 = pneg %p15160_p0 }
  0x84   : > { %p15166_p7 = pnand %p15164_p5, %p15161_p2 }
  0x86   : > { %15169 = shalt.err (!%p15166_p7)
}
  0x87   : > { %s15170_s24 = scalar_lea.vmem %s545_s27, 64  ;;  %p15178_p11 = scmp.lt.s32.totalorder %s545_s27, %s545_s27 }
  0x88   : > { %p15171_p9 = scmp.ne.s32.totalorder %s545_s27, %s15170_s24  ;;  %p15179_p12 = scmp.lt.s32.totalorder %s15170_s24, %s15170_s24 }
  0x8a   : > { %p15173_p4 = pnand %p15171_p9, %p15772_p8  ;;  %p15180_p1 = por %p15179_p12, %p15178_p11 }
  0x8c   : > { %p15174_p10 = pneg %p15173_p4 }
  0x8e   : > { %p15181_p3 = pnand %p15180_p1, %p15174_p10 }
  0x90   : > { %15184 = shalt.err (!%p15181_p3)
}
  0x91   : > { %13232 = dma.hbm_to_vmem [thread:$0]  (!%p15756_p6), %s17151_s9, 64, %s545_s27, [#allocation15]  }
  0x92   : > { %s17152_s11 = sld [smem:[#allocation52_spill]] }
  0x98   : > { %s15185_s20 = scalar_lea.hbm %s17152_s11, 192 }
  0x99   : > { %p15186_p13 = scmp.ne.s32.totalorder %s17152_s11, %s15185_s20  ;;  %p15192_p3 = scmp.lt.u32.totalorder %s15185_s20, %s17152_s11 }
  0x9b   : > { %p15188_p0 = pnand %p15186_p13, %p15772_p8 }
  0x9d   : > { %p15189_p1 = pneg %p15188_p0 }
  0x9f   : > { %p15194_p2 = pnand %p15192_p3, %p15189_p1 }
  0xa1   : > { %15197 = shalt.err (!%p15194_p2)
}
  0xa2   : > { %s15198_s14 = scalar_lea.vmem %s569_s1, 192  ;;  %p15206_p4 = scmp.lt.s32.totalorder %s569_s1, %s569_s1 }
  0xa3   : > { %p15199_p5 = scmp.ne.s32.totalorder %s569_s1, %s15198_s14  ;;  %p15207_p10 = scmp.lt.s32.totalorder %s15198_s14, %s15198_s14 }
  0xa5   : > { %p15201_p7 = pnand %p15199_p5, %p15772_p8  ;;  %p15208_p11 = por %p15207_p10, %p15206_p4 }
  0xa7   : > { %p15202_p9 = pneg %p15201_p7 }
  0xa9   : > { %p15209_p12 = pnand %p15208_p11, %p15202_p9 }
  0xab   : > { %15212 = shalt.err (!%p15209_p12)
}
  0xac   : > { %13238 = dma.hbm_to_vmem [thread:$0]  (!%p15756_p6), %s17152_s11, 192, %s569_s1, [#allocation18]  }
  0xad   : > { %s15604_s24 = smov [#allocation20]   ;;  %s15213_s28 = scalar_lea.hbm %s17101_s13, 64 }
  0xae   : > { %s592_s18 = sshll.u32 %s15604_s24, 4  ;;  %p15214_p13 = scmp.ne.s32.totalorder %s17101_s13, %s15213_s28  ;;  %s593_s18 = int_to_ptr.vmem [resolvable:$true] %s592_s18 }
  0xaf   : > { %p15220_p3 = scmp.lt.u32.totalorder %s15213_s28, %s17101_s13 }
  0xb0   : > { %p15216_p0 = pnand %p15214_p13, %p15772_p8 }
  0xb2   : > { %p15217_p1 = pneg %p15216_p0 }
  0xb4   : > { %p15222_p2 = pnand %p15220_p3, %p15217_p1 }
  0xb6   : > { %15225 = shalt.err (!%p15222_p2)
}
  0xb7   : > { %s15226_s1 = scalar_lea.vmem %s593_s18, 64  ;;  %p15234_p4 = scmp.lt.s32.totalorder %s593_s18, %s593_s18 }
  0xb8   : > { %p15227_p5 = scmp.ne.s32.totalorder %s593_s18, %s15226_s1  ;;  %p15235_p10 = scmp.lt.s32.totalorder %s15226_s1, %s15226_s1 }
  0xba   : > { %p15229_p7 = pnand %p15227_p5, %p15772_p8  ;;  %p15236_p11 = por %p15235_p10, %p15234_p4 }
  0xbc   : > { %p15230_p9 = pneg %p15229_p7 }
  0xbe   : > { %p15237_p12 = pnand %p15236_p11, %p15230_p9 }
  0xc0   : > { %15240 = shalt.err (!%p15237_p12)
}
  0xc1   : > { %13244 = dma.hbm_to_vmem [thread:$0]  (!%p15756_p6), %s17101_s13, 64, %s593_s18, [#allocation21]  }
  0xc2   : > { %s15605_s27 = smov [#allocation23]   ;;  %s15606_s24 = smov [#allocation10]  }
  0xc3   : > { %s616_s22 = sshll.u32 %s15605_s27, 4  ;;  %s506_s3 = sshll.u32 %s15606_s24, 4  ;;  %s617_s22 = int_to_ptr.vmem [resolvable:$true] %s616_s22  ;;  %s15893_s3 = int_to_ptr.vmem [resolvable:$true] %s506_s3 }
  0xc4   : > { %s15241_s20 = scalar_lea.hbm %s17104_s16, 2048 }
  0xc5   : > { %p15242_p13 = scmp.ne.s32.totalorder %s17104_s16, %s15241_s20  ;;  %p15248_p3 = scmp.lt.u32.totalorder %s15241_s20, %s17104_s16 }
  0xc7   : > { %p15244_p0 = pnand %p15242_p13, %p15772_p8 }
  0xc9   : > { %p15245_p1 = pneg %p15244_p0 }
  0xcb   : > { %p15250_p2 = pnand %p15248_p3, %p15245_p1 }
  0xcd   : > { %15253 = shalt.err (!%p15250_p2)
}
  0xce   : > { %s15254_s1 = scalar_lea.vmem %s617_s22, 2048  ;;  %p15262_p4 = scmp.lt.s32.totalorder %s617_s22, %s617_s22 }
  0xcf   : > { %p15255_p5 = scmp.ne.s32.totalorder %s617_s22, %s15254_s1  ;;  %p15263_p10 = scmp.lt.s32.totalorder %s15254_s1, %s15254_s1 }
  0xd1   : > { %p15257_p7 = pnand %p15255_p5, %p15772_p8  ;;  %p15264_p11 = por %p15263_p10, %p15262_p4 }
  0xd3   : > { %p15258_p9 = pneg %p15257_p7 }
  0xd5   : > { %p15265_p12 = pnand %p15264_p11, %p15258_p9 }
  0xd7   : > { %15268 = shalt.err (!%p15265_p12)
}
  0xd8   : > { %s17120_s23 = smov 256   ;;  %s17122_s14 = smov 16  }
  0xd9   : > { %13250 = dma.hbm_to_vmem [thread:$0]  (!%p15756_p6), %s17104_s16, 2048, %s617_s22, [#allocation24], %s17120_s23, %s17120_s23, %s17122_s14  }
  0xda   : > { %s17153_s6 = sld [smem:[#allocation47_spill]] }
  0xe0   : > { %s15269_s20 = scalar_lea.hbm %s17153_s6, 49152 }
  0xe1   : > { %p15270_p13 = scmp.ne.s32.totalorder %s17153_s6, %s15269_s20  ;;  %p15276_p3 = scmp.lt.u32.totalorder %s15269_s20, %s17153_s6 }
  0xe3   : > { %p15272_p0 = pnand %p15270_p13, %p15772_p8 }
  0xe5   : > { %p15273_p1 = pneg %p15272_p0 }
  0xe7   : > { %p15278_p2 = pnand %p15276_p3, %p15273_p1 }
  0xe9   : > { %15281 = shalt.err (!%p15278_p2)
}
  0xea   : > { %s15282_s22 = scalar_lea.vmem %s15893_s3, 49152  ;;  %p15290_p4 = scmp.lt.s32.totalorder %s15893_s3, %s15893_s3 }
  0xeb   : > { %p15283_p5 = scmp.ne.s32.totalorder %s15893_s3, %s15282_s22  ;;  %p15291_p10 = scmp.lt.s32.totalorder %s15282_s22, %s15282_s22 }
  0xed   : > { %p15285_p7 = pnand %p15283_p5, %p15772_p8  ;;  %p15292_p11 = por %p15291_p10, %p15290_p4 }
  0xef   : > { %p15286_p9 = pneg %p15285_p7 }
  0xf1   : > { %p15293_p12 = pnand %p15292_p11, %p15286_p9 }
  0xf3   : > { %15296 = shalt.err (!%p15293_p12)
}
  0xf4   : > { %s17124_s1 = smov 768   ;;  %s15610_s27 = smov 48  }
  0xf5   : > { %13223 = dma.hbm_to_vmem [thread:$0]  (!%p15756_p6), %s17153_s6, 49152, %s15893_s3, [#allocation9], %s17124_s1, %s17124_s1, %s15610_s27  }
  0xf6   : > { %s15611_s28 = smov [#allocation13]   ;;  %s15612_s25 = smov [#allocation16]  }
  0xf7   : > { %s530_s20 = sshll.u32 %s15611_s28, 4  ;;  %s554_s26 = sshll.u32 %s15612_s25, 4  ;;  %s531_s20 = int_to_ptr.vmem [resolvable:$true] %s530_s20  ;;  %s15942_s26 = int_to_ptr.vmem [resolvable:$true] %s554_s26 }
  0xf8   : > { %s17154_s8 = sld [smem:[#allocation49_spill]] }
  0xfe   : > { %s15297_s22 = scalar_lea.hbm %s17154_s8, 16384 }
  0xff   : > { %p15298_p13 = scmp.ne.s32.totalorder %s17154_s8, %s15297_s22  ;;  %p15304_p3 = scmp.lt.u32.totalorder %s15297_s22, %s17154_s8 }
 0x101   : > { %p15300_p0 = pnand %p15298_p13, %p15772_p8 }
 0x103   : > { %p15301_p1 = pneg %p15300_p0 }
 0x105   : > { %p15306_p2 = pnand %p15304_p3, %p15301_p1 }
 0x107   : > { %15309 = shalt.err (!%p15306_p2)
}
 0x108   : > { %s15310_s19 = scalar_lea.vmem %s531_s20, 16384  ;;  %p15318_p4 = scmp.lt.s32.totalorder %s531_s20, %s531_s20 }
 0x109   : > { %p15311_p5 = scmp.ne.s32.totalorder %s531_s20, %s15310_s19  ;;  %p15319_p10 = scmp.lt.s32.totalorder %s15310_s19, %s15310_s19 }
 0x10b   : > { %p15313_p7 = pnand %p15311_p5, %p15772_p8  ;;  %p15320_p11 = por %p15319_p10, %p15318_p4 }
 0x10d   : > { %p15314_p9 = pneg %p15313_p7 }
 0x10f   : > { %p15321_p12 = pnand %p15320_p11, %p15314_p9 }
 0x111   : > { %15324 = shalt.err (!%p15321_p12)
}
 0x112   : > { %s17155_s23 = smov 16   ;;  %s17156_s14 = smov 256  }
 0x113   : > { %13229 = dma.hbm_to_vmem [thread:$0]  (!%p15756_p6), %s17154_s8, 16384, %s531_s20, [#allocation12], %s17156_s14, %s17156_s14, %s17155_s23  }
 0x114   : > { %s17157_s10 = sld [smem:[#allocation51_spill]] }
 0x11a   : > { %s15325_s22 = scalar_lea.hbm %s17157_s10, 49152 }
 0x11b   : > { %p15326_p13 = scmp.ne.s32.totalorder %s17157_s10, %s15325_s22  ;;  %p15332_p3 = scmp.lt.u32.totalorder %s15325_s22, %s17157_s10 }
 0x11d   : > { %p15328_p0 = pnand %p15326_p13, %p15772_p8 }
 0x11f   : > { %p15329_p1 = pneg %p15328_p0 }
 0x121   : > { %p15334_p2 = pnand %p15332_p3, %p15329_p1 }
 0x123   : > { %15337 = shalt.err (!%p15334_p2)
}
 0x124   : > { %s15338_s20 = scalar_lea.vmem %s15942_s26, 49152  ;;  %p15346_p4 = scmp.lt.s32.totalorder %s15942_s26, %s15942_s26 }
 0x125   : > { %p15339_p5 = scmp.ne.s32.totalorder %s15942_s26, %s15338_s20  ;;  %p15347_p10 = scmp.lt.s32.totalorder %s15338_s20, %s15338_s20 }
 0x127   : > { %p15341_p7 = pnand %p15339_p5, %p15772_p8  ;;  %p15348_p11 = por %p15347_p10, %p15346_p4 }
 0x129   : > { %p15342_p9 = pneg %p15341_p7 }
 0x12b   : > { %p15349_p12 = pnand %p15348_p11, %p15342_p9 }
 0x12d   : > { %15352 = shalt.err (!%p15349_p12)
}
 0x12e   : > { %s17158_s1 = smov 768   ;;  %s15613_s0 = smov [#allocation19]  }
 0x12f   : > { %13235 = dma.hbm_to_vmem [thread:$0]  (!%p15756_p6), %s17157_s10, 49152, %s15942_s26, [#allocation15], %s17158_s1, %s17158_s1, %s15610_s27  }
 0x130   : > { %s578_s18 = sshll.u32 %s15613_s0, 4  ;;  %s15614_s22 = smov [#allocation22]   ;;  %s579_s18 = int_to_ptr.vmem [resolvable:$true] %s578_s18 }
 0x131   : > { %s606_s24 = sshll.u32 %s15614_s22, 4  ;;  %s15353_s20 = scalar_lea.hbm %s17100_s12, 16384  ;;  %s15991_s24 = int_to_ptr.vmem [resolvable:$true] %s606_s24 }
 0x132   : > { %p15354_p13 = scmp.ne.s32.totalorder %s17100_s12, %s15353_s20  ;;  %p15360_p3 = scmp.lt.u32.totalorder %s15353_s20, %s17100_s12 }
 0x134   : > { %p15356_p0 = pnand %p15354_p13, %p15772_p8 }
 0x136   : > { %p15357_p1 = pneg %p15356_p0 }
 0x138   : > { %p15362_p2 = pnand %p15360_p3, %p15357_p1 }
 0x13a   : > { %15365 = shalt.err (!%p15362_p2)
}
 0x13b   : > { %s15366_s26 = scalar_lea.vmem %s579_s18, 16384  ;;  %p15374_p4 = scmp.lt.s32.totalorder %s579_s18, %s579_s18 }
 0x13c   : > { %p15367_p5 = scmp.ne.s32.totalorder %s579_s18, %s15366_s26  ;;  %p15375_p10 = scmp.lt.s32.totalorder %s15366_s26, %s15366_s26 }
 0x13e   : > { %p15369_p7 = pnand %p15367_p5, %p15772_p8  ;;  %p15376_p11 = por %p15375_p10, %p15374_p4 }
 0x140   : > { %p15370_p9 = pneg %p15369_p7 }
 0x142   : > { %p15377_p12 = pnand %p15376_p11, %p15370_p9 }
 0x144   : > { %15380 = shalt.err (!%p15377_p12)
}
 0x145   : > { %13241 = dma.hbm_to_vmem [thread:$0]  (!%p15756_p6), %s17100_s12, 16384, %s579_s18, [#allocation18], %s17156_s14, %s17156_s14, %s17155_s23  }
 0x146   : > { %s15381_s0 = scalar_lea.hbm %s17103_s15, 16 }
 0x147   : > { %p15382_p13 = scmp.ne.s32.totalorder %s17103_s15, %s15381_s0  ;;  %p15388_p3 = scmp.lt.u32.totalorder %s15381_s0, %s17103_s15 }
 0x149   : > { %p15384_p0 = pnand %p15382_p13, %p15772_p8 }
 0x14b   : > { %p15385_p1 = pneg %p15384_p0 }
 0x14d   : > { %p15390_p2 = pnand %p15388_p3, %p15385_p1 }
 0x14f   : > { %15393 = shalt.err (!%p15390_p2)
}
 0x150   : > { %s15394_s23 = scalar_lea.vmem %s15991_s24, 16  ;;  %s15401_s14 = scalar_lea.vmem %s15991_s24, 32 }
 0x151   : > { %p15395_p5 = scmp.ne.s32.totalorder %s15991_s24, %s15394_s23  ;;  %p15402_p4 = scmp.lt.s32.totalorder %s15991_s24, %s15991_s24 }
 0x152   : > { %p15403_p10 = scmp.lt.s32.totalorder %s15401_s14, %s15394_s23 }
 0x153   : > { %p15397_p7 = pnand %p15395_p5, %p15772_p8 }
 0x154   : > { %p15404_p11 = por %p15403_p10, %p15402_p4 }
 0x155   : > { %p15398_p9 = pneg %p15397_p7 }
 0x157   : > { %p15405_p12 = pnand %p15404_p11, %p15398_p9 }
 0x159   : > { %15408 = shalt.err (!%p15405_p12)
}
 0x15a   : > { %13247 = dma.hbm_to_vmem [thread:$0]  (!%p15756_p6), %s17103_s15, 16, %s15991_s24, [#allocation21]  }
 0x15b   : > { %s15615_s27 = smov [#allocation25]   ;;  %s15409_s1 = scalar_lea.hbm %s17105_s17, 64 }
 0x15c   : > { %s630_s26 = sshll.u32 %s15615_s27, 4  ;;  %p15410_p13 = scmp.ne.s32.totalorder %s17105_s17, %s15409_s1  ;;  %s631_s26 = int_to_ptr.vmem [resolvable:$true] %s630_s26 }
 0x15d   : > { %p15416_p3 = scmp.lt.u32.totalorder %s15409_s1, %s17105_s17 }
 0x15e   : > { %p15412_p0 = pnand %p15410_p13, %p15772_p8 }
 0x160   : > { %p15413_p1 = pneg %p15412_p0 }
 0x162   : > { %p15418_p2 = pnand %p15416_p3, %p15413_p1 }
 0x164   : > { %15421 = shalt.err (!%p15418_p2)
}
 0x165   : > { %s15422_s24 = scalar_lea.vmem %s631_s26, 64  ;;  %p15430_p4 = scmp.lt.s32.totalorder %s631_s26, %s631_s26 }
 0x166   : > { %p15423_p5 = scmp.ne.s32.totalorder %s631_s26, %s15422_s24  ;;  %p15431_p10 = scmp.lt.s32.totalorder %s15422_s24, %s15422_s24 }
 0x168   : > { %p15425_p7 = pnand %p15423_p5, %p15772_p8  ;;  %p15432_p11 = por %p15431_p10, %p15430_p4 }
 0x16a   : > { %p15426_p9 = pneg %p15425_p7 }
 0x16c   : > { %p15433_p12 = pnand %p15432_p11, %p15426_p9 }
 0x16e   : > { %15436 = shalt.err (!%p15433_p12)
}
 0x16f   : > { %s17159_s23 = sld [smem:[#allocation38_spill]]  ;;  %s17160_s21 = sld [smem:[#allocation37_spill]] }
 0x170   : > { %s17161_s14 = sld [smem:[#allocation39_spill]]  ;;  %s11590_s18 = sadd.s32 4294967294, %s15595_s30  }
 0x171   : > { %13253 = dma.hbm_to_vmem [thread:$0]  (!%p15756_p6), %s17105_s17, 64, %s631_s26, [#allocation24]  }
 0x172   : > { %s16058_s2 = sadd.s32 1, %s15595_s30   ;;  %s50_s28 = sadd.s32 1, %s15591_s29 }
 0x173   : > { %s47_s27 = ssub.s32 %s15595_s30, %s16058_s2  ;;  %p58_p0 = scmp.eq.s32.totalorder %s15595_s30, 0 }
 0x174   : > { %p48_p13 = scmp.eq.s32.totalorder %s47_s27, 0  ;;  %p455_p9 = scmp.eq.s32.totalorder %s11590_s18, 1 }
 0x175   : > { %p57_p8 = scmp.ne.s32.totalorder %s15591_s29, %s17159_s23  ;;  %p63_p1 = scmp.ne.s32.totalorder %s17159_s23, %s17160_s21 }
 0x176   : > { %p449_p3 = scmp.eq.s32.totalorder %s17161_s14, 1  ;;  %p17162_p5 = scmp.eq.s32.totalorder %s17161_s14, 0 }
 0x177   : > { %s16070_s4 = scalar_select %p48_p13, %s15591_s29, %s50_s28  }
 0x178   : > { %p59_p2 = por %p58_p0, %p57_p8  ;;  %p16074_p7 = por %p17162_p5, %p63_p1 }
 0x179   : > { %p16078_p6 = por %p449_p3, %p57_p8  ;;  %p13278_p4 = scmp.lt.s32.totalorder %s15595_s30, 2 }
 0x17a   : > { %s17163_s5 = scalar_select %p16074_p7, 1, 0 }
 0x17b   : > { %s17164_s26 = scalar_select %p16078_p6, 1, 0 }
 0x17c   : > { %s641_s1 = sand.u32 1, %s15591_s29   ;;  %p16084_p10 = por %p455_p9, %p63_p1 }
 0x17d   : > { %s16088_s0 = sshll.u32 %s641_s1, 4  ;;  %s12757_s22 = sshll.u32 %s15595_s30, 8 }
 0x17e   : > { %s17165_s25 = scalar_select %p16084_p10, 1, 0 }
 0x17f   : > { %s17166_s19 = sld [smem:[#allocation41_spill]]  ;;  %s645_s23 = scalar_lea.vmem [#allocation2], %s16088_s0 }
 0x180   : > { %s653_s21 = sshll.u32 %s645_s23, 4  ;;  %p16097_p11 = pnand %p13278_p4, %p59_p2  ;;  %s16101_s21 = int_to_ptr.vmem [resolvable:$true] %s653_s21 }
 0x181   : > { %s17168_s27 = sld [smem:[#allocation42_spill]]  ;;  %s642_s24 = scalar_lea.sflag [#allocation3], %s641_s1 }
 0x182   : > { %p15439_p8 = pneg %p16097_p11 }
 0x185   : > { %s16094_s20 = scalar_lea.hbm %s17166_s19, %s12757_s22  ;;  %s15442_s9 = scalar_lea.hbm %s17166_s19, 512 }
 0x186   : > { %s15437_s7 = scalar_lea.hbm %s16094_s20, 256  ;;  %p15443_p1 = scmp.lt.u32.totalorder %s16094_s20, %s17166_s19 }
 0x187   : > { %s17169_s6 = smov %s17168_s27  ;;  %s16106_s3 = scalar_lea.hbm %s17168_s27, %s12757_s22 }
 0x188   : > { %p15438_p12 = scmp.ne.s32.totalorder %s16094_s20, %s15437_s7  ;;  %p15444_p3 = scmp.lt.u32.totalorder %s15442_s9, %s15437_s7 }
 0x189   : > { %p15446_p5 = scmp.lt.u32.totalorder %s15437_s7, %s16094_s20 }
 0x18a   : > { %p15440_p13 = pnand %p15439_p8, %p15438_p12  ;;  %p15445_p2 = por %p15444_p3, %p15443_p1 }
 0x18c   : > { %p15441_p0 = pneg %p15440_p13  ;;  %p15447_p9 = por %p15446_p5, %p15445_p2 }
 0x18e   : > { %p15448_p4 = pnand %p15447_p9, %p15441_p0 }
 0x190   : > { %15451 = shalt.err (!%p15448_p4)
}
 0x191   : > { %s15452_s1 = scalar_lea.vmem %s16101_s21, 256  ;;  %s15616_s8 = smov [#allocation2]  }
 0x192   : > { %p15453_p12 = scmp.ne.s32.totalorder %s16101_s21, %s15452_s1  ;;  %s15457_s22 = sshll.u32 %s15616_s8, 4  ;;  %s15458_s22 = int_to_ptr.vmem [resolvable:$false] %s15457_s22 }
 0x193   : > { %s15459_s10 = scalar_lea.vmem %s15458_s22, 512  ;;  %p15460_p6 = scmp.lt.s32.totalorder %s16101_s21, %s15458_s22 }
 0x194   : > { %p15455_p13 = pnand %p15453_p12, %p15439_p8  ;;  %p15461_p1 = scmp.lt.s32.totalorder %s15459_s10, %s15452_s1 }
 0x196   : > { %p15456_p10 = pneg %p15455_p13  ;;  %p15462_p3 = por %p15461_p1, %p15460_p6 }
 0x198   : > { %p15463_p2 = pnand %p15462_p3, %p15456_p10 }
 0x19a   : > { %15466 = shalt.err (!%p15463_p2)
}
 0x19b   : > { %13257 = dma.hbm_to_vmem [thread:$0]  (!%p16097_p11), %s16094_s20, 256, %s16101_s21, %s642_s24  }
 0x19c   : > { %s660_s7 = sand.u32 1, %s15595_s30   ;;  %s664_s9 = scalar_lea.vmem [#allocation5], %s16088_s0 }
 0x19d   : > { %s672_s11 = sshll.u32 %s664_s9, 4  ;;  %s661_s18 = scalar_lea.sflag [#allocation6], %s660_s7  ;;  %s673_s11 = int_to_ptr.vmem [resolvable:$true] %s672_s11 }
 0x19e   : > { %s15467_s28 = scalar_lea.hbm %s16106_s3, 256  ;;  %s15472_s1 = scalar_lea.hbm %s17169_s6, 512 }
 0x19f   : > { %p15468_p6 = scmp.ne.s32.totalorder %s16106_s3, %s15467_s28  ;;  %p15473_p5 = scmp.lt.u32.totalorder %s16106_s3, %s17169_s6 }
 0x1a0   : > { %p15474_p9 = scmp.lt.u32.totalorder %s15472_s1, %s15467_s28  ;;  %p15476_p12 = scmp.lt.u32.totalorder %s15467_s28, %s16106_s3 }
 0x1a1   : > { %p15470_p10 = pnand %p15468_p6, %p15439_p8 }
 0x1a2   : > { %p15475_p4 = por %p15474_p9, %p15473_p5 }
 0x1a3   : > { %p15471_p0 = pneg %p15470_p10 }
 0x1a4   : > { %p15477_p13 = por %p15476_p12, %p15475_p4 }
 0x1a6   : > { %p15478_p1 = pnand %p15477_p13, %p15471_p0 }
 0x1a8   : > { %15481 = shalt.err (!%p15478_p1)
}
 0x1a9   : > { %s15482_s0 = scalar_lea.vmem %s673_s11, 256  ;;  %s15617_s20 = smov [#allocation5]  }
 0x1aa   : > { %p15483_p3 = scmp.ne.s32.totalorder %s673_s11, %s15482_s0  ;;  %s15487_s21 = sshll.u32 %s15617_s20, 4  ;;  %s15488_s21 = int_to_ptr.vmem [resolvable:$false] %s15487_s21 }
 0x1ab   : > { %s15489_s24 = scalar_lea.vmem %s15488_s21, 512  ;;  %p15490_p10 = scmp.lt.s32.totalorder %s673_s11, %s15488_s21 }
 0x1ac   : > { %p15485_p2 = pnand %p15483_p3, %p15439_p8  ;;  %p15491_p7 = scmp.lt.s32.totalorder %s15489_s24, %s15482_s0 }
 0x1ae   : > { %p15486_p6 = pneg %p15485_p2  ;;  %p15492_p5 = por %p15491_p7, %p15490_p10 }
 0x1b0   : > { %p15493_p9 = pnand %p15492_p5, %p15486_p6 }
 0x1b2   : > { %15496 = shalt.err (!%p15493_p9)
}
 0x1b3   : > { %13260 = dma.hbm_to_vmem [thread:$0]  (!%p16097_p11), %s16106_s3, 256, %s673_s11, %s661_s18  }
 0x1b4   : > { %s17170_s10 = sld [smem:[#allocation40_spill]] }
 0x1ba   : > { %p17171_p0 = scmp.ne.s32.totalorder %s17170_s10, 0 }
 0x1bb   : > { %s17172_s7 = sld [smem:[#allocation38_spill]] (!%p17171_p0)  ;;  %p17173_p7 = scmp.ne.s32.totalorder (!%p17171_p0), %s17163_s5, 0 }
 0x1bc   : > { %681 = sbr.rel (%p17171_p0) target bundleno = 5379 (0x1503), region = 92 }
 0x1c1   : > { %s16157_s9 = sand.u32 (!%p17171_p0), 1, %s17172_s7  }
 0x1c2   : > { %s16160_s28 = sshll.u32 (!%p17171_p0), %s16157_s9, 4  ;;  %s684_s27 = scalar_lea.sflag (!%p17171_p0), [#allocation3], %s16157_s9 }
 0x1c3   : > { %s16164_s23 = scalar_lea.vmem [#allocation2], %s16160_s28 }
 0x1c4   : > { %15542 = dma.done.wait (%p17173_p7), %s684_s27, 256  }
 0x1c5   : > { %15544 = vsyncadd (%p17173_p7), %s684_s27, 4294967040  ;;  %s17174_s14 = sld [smem:[#allocation39_spill]]  ;;  %s696_s18 = scalar_lea.vmem [#allocation5], %s16160_s28 }
 0x1cb   : > { %s692_s3 = sand.u32 1, %s17174_s14  }
 0x1cc   : > { %s693_s11 = scalar_lea.sflag [#allocation6], %s692_s3 }
 0x1cd   : > { %15546 = dma.done.wait (%p17173_p7), %s693_s11, 256  }
 0x1ce   : > { %15548 = vsyncadd (%p17173_p7), %s693_s11, 4294967040  ;;  %p17175_p11 = scmp.eq.s32.totalorder %s17174_s14, 0 }
 0x1d0   : > { %15550 = dma.done.wait (%p17175_p11), [#allocation6], 192   ;;  %p17176_p8 = pmov %p17175_p11 }
 0x1d2   : > { %15552 = vsyncadd (%p17176_p8), [#allocation6], 4294967104  ;;  %p17177_p4 = pmov %p17176_p8 }
 0x1d4   : > { %15554 = dma.done.wait (%p17177_p4), [#allocation9], 49344   ;;  %p17178_p12 = pmov %p17177_p4 }
 0x1d5   : > { %p17179_p13 = pmov %p17177_p4 }
 0x1d6   : > { %15556 = vsyncadd (%p17178_p12), [#allocation9], 4294917952 }
 0x1d7   : > { %15558 = dma.done.wait (%p17179_p13), [#allocation12], 16576   ;;  %p17180_p1 = pmov %p17177_p4 }
 0x1d9   : > { %15560 = vsyncadd (%p17180_p1), [#allocation12], 4294950720  ;;  %p17181_p3 = pmov %p17180_p1 }
 0x1da   : > { %p17182_p2 = pmov %p17180_p1 }
 0x1db   : > { %15562 = dma.done.wait (%p17181_p3), [#allocation15], 49216  }
 0x1dc   : > { %15564 = vsyncadd (%p17182_p2), [#allocation15], 4294918080  ;;  %p17183_p6 = pmov %p17180_p1 }
 0x1dd   : > { %p17184_p10 = pmov %p17180_p1 }
 0x1de   : > { %15566 = dma.done.wait (%p17183_p6), [#allocation18], 16576  }
 0x1df   : > { %15568 = vsyncadd (%p17184_p10), [#allocation18], 4294950720  ;;  %p17185_p5 = pmov %p17180_p1 }
 0x1e0   : > { %p17186_p9 = pmov %p17180_p1 }
 0x1e1   : > { %15570 = dma.done.wait (%p17185_p5), [#allocation21], 80  }
 0x1e2   : > { %15572 = vsyncadd (%p17186_p9), [#allocation21], 4294967216  ;;  %p17187_p0 = pmov %p17180_p1 }
 0x1e4   : > { %15574 = dma.done.wait (%p17187_p0), [#allocation24], 2112   ;;  %p17188_p7 = pmov %p17187_p0 }
 0x1e5   : > { %vm819_vm0 = vcmask 1043456   ;;  %v16205_v0 = vld [vmem:[%s16164_s23] sm:$0xff]  ;;  %v16208_v1 = vld [vmem:[%s16164_s23 + $0x8] sm:$0xff]  ;;  %v15618_v35 = vmov 839922192   ;;  %v835_v37 = vlaneseq  ;;  %s15619_s5 = smov 64  }
 0x1e6   : > { %15576 = vsyncadd (%p17188_p7), [#allocation24], 4294965184  ;;  %v815_v2 = vcombine.high %v16205_v0, %v16205_v0  ;;  %v816_v3 = vcombine.high %v16208_v1, %v16208_v1  ;;  %v820_v4 = vsel %vm819_vm0, %v16205_v0, 0.0  ;;  %v823_v6 = vsel %vm819_vm0, %v16208_v1, 0.0  ;;  %v13401_v11 = vld [vmem:[#allocation10 + $0x4] ss:$48 sps:$4 sm:$0xff]  }
 0x1e7   : > { %v13403_v12 = vld [vmem:[#allocation10 + $0xc] ss:$48 sps:$4 sm:$0xff]   ;;  %v13405_v13 = vld [vmem:[#allocation10] ss:$48 sps:$4 sm:$0xff]   ;;  %v13406_v14 = vld [vmem:[#allocation10 + $0x8] ss:$48 sps:$4 sm:$0xff]   ;;  %1739 = vmatprep.subr.bf16.mxu0 %v13401_v11  ;;  %v833_v36 = vunpack.c.l.s4 %v15618_v35 }
 0x1e8   : > { %v821_v5 = vsel %vm819_vm0, %v815_v2, 0.0  ;;  %v825_v8 = vsel %vm819_vm0, %v816_v3, 0.0  ;;  %v13407_v15 = vld [vmem:[#allocation10 + $0x64] ss:$48 sps:$4 sm:$0xff]   ;;  %v13409_v16 = vld [vmem:[#allocation10 + $0x6c] ss:$48 sps:$4 sm:$0xff]   ;;  %1821 = vmatprep.subr.bf16.mxu1 %v13403_v12  ;;  %1740 = vmatpush1.bf16.msra.mxu0 %v13405_v13 }
 0x1e9   : > { %v822_v7 = vadd.f32 %v821_v5, %v820_v4  ;;  %1822 = vmatpush1.bf16.msra.mxu1 %v13406_v14  ;;  %v13411_v17 = vld [vmem:[#allocation10 + $0x60] ss:$48 sps:$4 sm:$0xff]   ;;  %v13412_v18 = vld [vmem:[#allocation10 + $0x68] ss:$48 sps:$4 sm:$0xff]   ;;  %1741 = vmatprep.subr.bf16.mxu0 %v13407_v15  ;;  %v13413_v19 = vld [vmem:[#allocation10 + $0xc4] ss:$48 sps:$4 sm:$0xff]   ;;  %v834_v38 = vunpack.c.0.s8 %v833_v36 }
 0x1ea   : > { %1823 = vmatprep.subr.bf16.mxu1 %v13409_v16  ;;  %v13415_v20 = vld [vmem:[#allocation10 + $0xcc] ss:$48 sps:$4 sm:$0xff]   ;;  %v13417_v21 = vld [vmem:[#allocation10 + $0xc0] ss:$48 sps:$4 sm:$0xff]   ;;  %v13418_v22 = vld [vmem:[#allocation10 + $0xc8] ss:$48 sps:$4 sm:$0xff]  }
 0x1eb   : > { %v824_v9 = vadd.f32 %v823_v6, %v822_v7  ;;  %v13419_v23 = vld [vmem:[#allocation10 + $0x124] ss:$48 sps:$4 sm:$0xff]   ;;  %v13421_v24 = vld [vmem:[#allocation10 + $0x12c] ss:$48 sps:$4 sm:$0xff]   ;;  %v13423_v25 = vld [vmem:[#allocation10 + $0x120] ss:$48 sps:$4 sm:$0xff]  }
 0x1ec   : > { %1742 = vmatpush1.bf16.msra.mxu0 %v13411_v17  ;;  %v13424_v26 = vld [vmem:[#allocation10 + $0x128] ss:$48 sps:$4 sm:$0xff]   ;;  %v13425_v27 = vld [vmem:[#allocation10 + $0x184] ss:$48 sps:$4 sm:$0xff]   ;;  %v13427_v28 = vld [vmem:[#allocation10 + $0x18c] ss:$48 sps:$4 sm:$0xff]  }
 0x1ed   : > { %v826_v10 = vadd.f32 %v825_v8, %v824_v9  ;;  %1824 = vmatpush1.bf16.msra.mxu1 %v13412_v18  ;;  %1743 = vmatprep.subr.bf16.mxu0 %v13413_v19  ;;  %v13429_v29 = vld [vmem:[#allocation10 + $0x180] ss:$48 sps:$4 sm:$0xff]   ;;  %v13430_v30 = vld [vmem:[#allocation10 + $0x188] ss:$48 sps:$4 sm:$0xff]   ;;  %v13431_v31 = vld [vmem:[#allocation10 + $0x1e4] ss:$48 sps:$4 sm:$0xff]  }
 0x1ee   : > { %1825 = vmatprep.subr.bf16.mxu1 %v13415_v20  ;;  %v13433_v32 = vld [vmem:[#allocation10 + $0x1ec] ss:$48 sps:$4 sm:$0xff]   ;;  %v13435_v33 = vld [vmem:[#allocation10 + $0x1e0] ss:$48 sps:$4 sm:$0xff]   ;;  %v13436_v34 = vld [vmem:[#allocation10 + $0x1e8] ss:$48 sps:$4 sm:$0xff]  }
 0x1ef   : > { %827 = vadd.xlane.f32.xlu0 %v826_v10  ;;  %v16220_v39 = vshrl.u32 %v835_v37, 7  ;;  %v13437_v57 = vld [vmem:[#allocation10 + $0x244] ss:$48 sps:$4 sm:$0xff]   ;;  %v13439_v58 = vld [vmem:[#allocation10 + $0x24c] ss:$48 sps:$4 sm:$0xff]   ;;  %vm15621_vm3 = vmmov 0  }
 0x1f0   : > { %1744 = vmatpush1.bf16.msra.mxu0 %v13417_v21  ;;  %v13441_v59 = vld [vmem:[#allocation10 + $0x240] ss:$48 sps:$4 sm:$0xff]   ;;  %v13442_v60 = vld [vmem:[#allocation10 + $0x248] ss:$48 sps:$4 sm:$0xff]   ;;  %v13443_v61 = vld [vmem:[#allocation10 + $0x2a4] ss:$48 sps:$4 sm:$0xff]  }
 0x1f1   : > { %1826 = vmatpush1.bf16.msra.mxu1 %v13418_v22  ;;  %1745 = vmatprep.subr.bf16.mxu0 %v13419_v23  ;;  %v16223_v40 = vsub.s32 %v834_v38, %v16220_v39  ;;  %v13445_v62 = vld [vmem:[#allocation10 + $0x2ac] ss:$48 sps:$4 sm:$0xff]   ;;  %v13447_v63 = vld [vmem:[#allocation10 + $0x2a0] ss:$48 sps:$4 sm:$0xff]   ;;  %v13454_v4 = vld [vmem:[#allocation10 + $0x308] ss:$48 sps:$4 sm:$0xff]  }
 0x1f2   : > { %1827 = vmatprep.subr.bf16.mxu1 %v13421_v24  ;;  %v13451_v2 = vld [vmem:[#allocation10 + $0x30c] ss:$48 sps:$4 sm:$0xff]   ;;  %v13453_v3 = vld [vmem:[#allocation10 + $0x300] ss:$48 sps:$4 sm:$0xff]   ;;  %v13455_v5 = vld [vmem:[#allocation10 + $0x364] ss:$48 sps:$4 sm:$0xff]  }
 0x1f3   : > { %v13457_v6 = vld [vmem:[#allocation10 + $0x36c] ss:$48 sps:$4 sm:$0xff]   ;;  %v13459_v7 = vld [vmem:[#allocation10 + $0x360] ss:$48 sps:$4 sm:$0xff]   ;;  %v13460_v8 = vld [vmem:[#allocation10 + $0x368] ss:$48 sps:$4 sm:$0xff]  }
 0x1f4   : > { %1746 = vmatpush1.bf16.msra.mxu0 %v13423_v25  ;;  %v13461_v9 = vld [vmem:[#allocation10 + $0x3c4] ss:$48 sps:$4 sm:$0xff]   ;;  %v13463_v10 = vld [vmem:[#allocation10 + $0x3cc] ss:$48 sps:$4 sm:$0xff]   ;;  %v13465_v11 = vld [vmem:[#allocation10 + $0x3c0] ss:$48 sps:$4 sm:$0xff]  }
 0x1f5   : > { %1828 = vmatpush1.bf16.msra.mxu1 %v13424_v26  ;;  %1747 = vmatprep.subr.bf16.mxu0 %v13425_v27  ;;  %v13466_v12 = vld [vmem:[#allocation10 + $0x3c8] ss:$48 sps:$4 sm:$0xff]   ;;  %v13467_v13 = vld [vmem:[#allocation10 + $0x424] ss:$48 sps:$4 sm:$0xff]   ;;  %v13469_v14 = vld [vmem:[#allocation10 + $0x42c] ss:$48 sps:$4 sm:$0xff]  }
 0x1f6   : > { %1829 = vmatprep.subr.bf16.mxu1 %v13427_v28  ;;  %v13471_v15 = vld [vmem:[#allocation10 + $0x420] ss:$48 sps:$4 sm:$0xff]   ;;  %v13472_v16 = vld [vmem:[#allocation10 + $0x428] ss:$48 sps:$4 sm:$0xff]   ;;  %v13473_v17 = vld [vmem:[#allocation10 + $0x484] ss:$48 sps:$4 sm:$0xff]  }
 0x1f7   : > { %v13475_v18 = vld [vmem:[#allocation10 + $0x48c] ss:$48 sps:$4 sm:$0xff]   ;;  %v13477_v19 = vld [vmem:[#allocation10 + $0x480] ss:$48 sps:$4 sm:$0xff]   ;;  %v13478_v20 = vld [vmem:[#allocation10 + $0x488] ss:$48 sps:$4 sm:$0xff]  }
 0x1f8   : > { %1748 = vmatpush1.bf16.msra.mxu0 %v13429_v29  ;;  %v13479_v21 = vld [vmem:[#allocation10 + $0x4e4] ss:$48 sps:$4 sm:$0xff]   ;;  %v13481_v22 = vld [vmem:[#allocation10 + $0x4ec] ss:$48 sps:$4 sm:$0xff]   ;;  %v13483_v23 = vld [vmem:[#allocation10 + $0x4e0] ss:$48 sps:$4 sm:$0xff]  }
 0x1f9   : > { %1830 = vmatpush1.bf16.msra.mxu1 %v13430_v30  ;;  %1749 = vmatprep.subr.bf16.mxu0 %v13431_v31  ;;  %v13484_v24 = vld [vmem:[#allocation10 + $0x4e8] ss:$48 sps:$4 sm:$0xff]   ;;  %v13485_v25 = vld [vmem:[#allocation10 + $0x544] ss:$48 sps:$4 sm:$0xff]   ;;  %v13487_v26 = vld [vmem:[#allocation10 + $0x54c] ss:$48 sps:$4 sm:$0xff]  }
 0x1fa   : > { %1831 = vmatprep.subr.bf16.mxu1 %v13433_v32  ;;  %v13489_v27 = vld [vmem:[#allocation10 + $0x540] ss:$48 sps:$4 sm:$0xff]   ;;  %v13490_v28 = vld [vmem:[#allocation10 + $0x548] ss:$48 sps:$4 sm:$0xff]   ;;  %v13491_v29 = vld [vmem:[#allocation10 + $0x5a4] ss:$48 sps:$4 sm:$0xff]  }
 0x1fb   : > { %v13493_v30 = vld [vmem:[#allocation10 + $0x5ac] ss:$48 sps:$4 sm:$0xff]   ;;  %v13495_v31 = vld [vmem:[#allocation10 + $0x5a0] ss:$48 sps:$4 sm:$0xff]   ;;  %v13496_v32 = vld [vmem:[#allocation10 + $0x5a8] ss:$48 sps:$4 sm:$0xff]  }
 0x1fc   : > { %1750 = vmatpush1.bf16.msra.mxu0 %v13435_v33  ;;  %v13499_v33 = vld [vmem:[#allocation10 + $0x604] ss:$48 sps:$4 sm:$0xff]   ;;  %vm3873_vm4 = vcmask 523264   ;;  %vm4383_vm5 = vcmask 1041408   ;;  %s17189_s22 = sld [smem:[#allocation43_spill]]  ;;  %vm4274_vm6 = vcmask 27648  }
 0x1fd   : > { %1832 = vmatpush1.bf16.msra.mxu1 %v13436_v34  ;;  %1751 = vmatprep.subr.bf16.mxu0 %v13437_v57  ;;  %v13502_v34 = vld [vmem:[#allocation10 + $0x60c] ss:$48 sps:$4 sm:$0xff]   ;;  %vm4379_vm7 = vcmask 31744   ;;  %s17190_s24 = sld [smem:[#allocation44_spill]]  ;;  %s17191_s3 = sld [smem:[#allocation53_spill]] }
 0x1fe   : > { %1833 = vmatprep.subr.bf16.mxu1 %v13439_v58  ;;  %s12759_s8 = sshll.u32 %s17174_s14, 8  ;;  %s805_s0 = scalar_lea.vmem [#allocation26], %s16160_s28 }
 0x1ff   : > { %s11374_s20 = sshll.u32 %s805_s0, 4  ;;  %s11360_s28 = scalar_lea.sflag [#allocation4], %s16157_s9  ;;  %s17046_s20 = int_to_ptr.vmem [resolvable:$true] %s11374_s20 }
 0x200   : > { %1752 = vmatpush1.bf16.msra.mxu0 %v13441_v59  ;;  %s15497_s14 = scalar_lea.vmem %s17046_s20, 256  ;;  %p17193_p8 = scmp.ne.s32.totalorder %s17164_s26, 0 }
 0x201   : > { %1834 = vmatpush1.bf16.msra.mxu1 %v13442_v60  ;;  %1753 = vmatprep.subr.bf16.mxu0 %v13443_v61  ;;  %p15498_p11 = scmp.ne.s32.totalorder %s17046_s20, %s15497_s14  ;;  %s15623_s7 = smov [#allocation26]  }
 0x202   : > { %1835 = vmatprep.subr.bf16.mxu1 %v13445_v62 }
 0x203   : > { %p15499_p4 = pnand %p15498_p11, %p17193_p8 }
 0x204   : > { %1754 = vmatpush1.bf16.msra.mxu0 %v13447_v63 }
 0x205   : > { %p15500_p12 = pneg %p15499_p4 }
 0x27c   : > { %v828_v41 = vpop.xlane.xlu0 %827 }
 0x27d   : > { %v830_v42 = vmul.f32 0.001953125, %v828_v41 }
 0x27f   : > { %v838_v43 = vrot.slane %v830_v42, %v16223_v40 }
 0x281   : > { %v16227_v44 = vsub.f32 %v16205_v0, %v838_v43  ;;  %v16230_v45 = vsub.f32 %v16208_v1, %v838_v43  ;;  %v13448_v0 = vld [vmem:[#allocation10 + $0x2a8] ss:$48 sps:$4 sm:$0xff]   ;;  %v13449_v1 = vld [vmem:[#allocation10 + $0x304] ss:$48 sps:$4 sm:$0xff]  }
 0x282   : > { %1836 = vmatpush1.bf16.msra.mxu1 %v13448_v0  ;;  %1755 = vmatprep.subr.bf16.mxu0 %v13449_v1 }
 0x283   : > { %v842_v46 = vmul.f32 %v16227_v44, %v16227_v44  ;;  %v843_v47 = vmul.f32 %v16230_v45, %v16230_v45  ;;  %1837 = vmatprep.subr.bf16.mxu1 %v13451_v2  ;;  %1756 = vmatpush1.bf16.msra.mxu0 %v13453_v3 }
 0x284   : > { %1757 = vmatprep.subr.bf16.mxu0 %v13455_v5 }
 0x285   : > { %v846_v48 = vcombine.high %v842_v46, %v842_v46  ;;  %v847_v49 = vcombine.high %v843_v47, %v843_v47  ;;  %v850_v50 = vsel %vm819_vm0, %v842_v46, 0.0  ;;  %v853_v53 = vsel %vm819_vm0, %v843_v47, 0.0 }
 0x286   : > { %1838 = vmatpush1.bf16.msra.mxu1 %v13454_v4  ;;  %v16241_v47 = vsub.s32 0, %v16220_v39 }
 0x287   : > { %v851_v51 = vsel %vm819_vm0, %v846_v48, 0.0  ;;  %v855_v55 = vsel %vm819_vm0, %v847_v49, 0.0  ;;  %1839 = vmatprep.subr.bf16.mxu1 %v13457_v6  ;;  %1758 = vmatpush1.bf16.msra.mxu0 %v13459_v7  ;;  %v16244_v48 = vsub.s32 2, %v16220_v39  ;;  %v811_v49 = vld [vmem:[#allocation7] sm:$0xf] }
 0x288   : > { %v852_v52 = vadd.f32 %v851_v51, %v850_v50  ;;  %1759 = vmatprep.subr.bf16.mxu0 %v13461_v9  ;;  %v16247_v50 = vsub.s32 1, %v16220_v39  ;;  %v16250_v51 = vsub.s32 3, %v16220_v39  ;;  %v13500_v9 = vld [vmem:[#allocation10 + $0x608] ss:$48 sps:$4 sm:$0xff]  }
 0x28a   : > { %v854_v54 = vadd.f32 %v853_v53, %v852_v52  ;;  %1840 = vmatpush1.bf16.msra.mxu1 %v13460_v8  ;;  %v812_v53 = vld [vmem:[#allocation8] sm:$0xf]  ;;  %v889_v57 = vrot.slane %v811_v49, %v16247_v50  ;;  %v897_v60 = vrot.slane %v811_v49, %v16250_v51  ;;  %v13497_v8 = vld [vmem:[#allocation10 + $0x600] ss:$48 sps:$4 sm:$0xff]  }
 0x28b   : > { %1841 = vmatprep.subr.bf16.mxu1 %v13463_v10  ;;  %1760 = vmatpush1.bf16.msra.mxu0 %v13465_v11  ;;  %v924_v61 = vrot.slane %v812_v53, %v16244_v48  ;;  %v920_v62 = vrot.slane %v812_v53, %v16247_v50  ;;  %v916_v63 = vrot.slane %v812_v53, %v16241_v47 }
 0x28c   : > { %v856_v56 = vadd.f32 %v855_v55, %v854_v54  ;;  %1761 = vmatprep.subr.bf16.mxu0 %v13467_v13  ;;  %v885_v55 = vrot.slane %v811_v49, %v16241_v47  ;;  %v928_v4 = vrot.slane %v812_v53, %v16250_v51  ;;  %v13548_v53 = vld [vmem:[#allocation10 + $0x908] ss:$48 sps:$4 sm:$0xff]  }
 0x28e   : > { %857 = vadd.xlane.f32.xlu0 %v856_v56  ;;  %1842 = vmatpush1.bf16.msra.mxu1 %v13466_v12  ;;  %v893_v56 = vrot.slane %v811_v49, %v16244_v48  ;;  %v13505_v12 = vld [vmem:[#allocation10 + $0x664] ss:$48 sps:$4 sm:$0xff]   ;;  %v13550_v49 = vld [vmem:[#allocation10 + $0x90c] ss:$48 sps:$4 sm:$0xff]  }
 0x28f   : > { %1843 = vmatprep.subr.bf16.mxu1 %v13469_v14  ;;  %1762 = vmatpush1.bf16.msra.mxu0 %v13471_v15  ;;  %v13503_v14 = vld [vmem:[#allocation10 + $0x660] ss:$48 sps:$4 sm:$0xff]   ;;  %v13506_v15 = vld [vmem:[#allocation10 + $0x668] ss:$48 sps:$4 sm:$0xff]  }
 0x290   : > { %1763 = vmatprep.subr.bf16.mxu0 %v13473_v17 }
 0x292   : > { %1844 = vmatpush1.bf16.msra.mxu1 %v13472_v16  ;;  %v13508_v16 = vld [vmem:[#allocation10 + $0x66c] ss:$48 sps:$4 sm:$0xff]  }
 0x293   : > { %1845 = vmatprep.subr.bf16.mxu1 %v13475_v18  ;;  %1764 = vmatpush1.bf16.msra.mxu0 %v13477_v19  ;;  %v13511_v18 = vld [vmem:[#allocation10 + $0x6c4] ss:$48 sps:$4 sm:$0xff]   ;;  %v13514_v19 = vld [vmem:[#allocation10 + $0x6cc] ss:$48 sps:$4 sm:$0xff]  }
 0x294   : > { %1765 = vmatprep.subr.bf16.mxu0 %v13479_v21  ;;  %v13512_v21 = vld [vmem:[#allocation10 + $0x6c8] ss:$48 sps:$4 sm:$0xff]  }
 0x296   : > { %1846 = vmatpush1.bf16.msra.mxu1 %v13478_v20  ;;  %v13509_v20 = vld [vmem:[#allocation10 + $0x6c0] ss:$48 sps:$4 sm:$0xff]  }
 0x297   : > { %1847 = vmatprep.subr.bf16.mxu1 %v13481_v22  ;;  %1766 = vmatpush1.bf16.msra.mxu0 %v13483_v23  ;;  %v13517_v22 = vld [vmem:[#allocation10 + $0x724] ss:$48 sps:$4 sm:$0xff]   ;;  %v13520_v23 = vld [vmem:[#allocation10 + $0x72c] ss:$48 sps:$4 sm:$0xff]  }
 0x298   : > { %1767 = vmatprep.subr.bf16.mxu0 %v13485_v25  ;;  %v13518_v25 = vld [vmem:[#allocation10 + $0x728] ss:$48 sps:$4 sm:$0xff]  }
 0x29a   : > { %1848 = vmatpush1.bf16.msra.mxu1 %v13484_v24  ;;  %v13515_v24 = vld [vmem:[#allocation10 + $0x720] ss:$48 sps:$4 sm:$0xff]  }
 0x29b   : > { %1849 = vmatprep.subr.bf16.mxu1 %v13487_v26  ;;  %1768 = vmatpush1.bf16.msra.mxu0 %v13489_v27  ;;  %v13523_v26 = vld [vmem:[#allocation10 + $0x784] ss:$48 sps:$4 sm:$0xff]   ;;  %v13526_v27 = vld [vmem:[#allocation10 + $0x78c] ss:$48 sps:$4 sm:$0xff]  }
 0x29c   : > { %1769 = vmatprep.subr.bf16.mxu0 %v13491_v29  ;;  %v13524_v29 = vld [vmem:[#allocation10 + $0x788] ss:$48 sps:$4 sm:$0xff]  }
 0x29e   : > { %1850 = vmatpush1.bf16.msra.mxu1 %v13490_v28  ;;  %v13521_v28 = vld [vmem:[#allocation10 + $0x780] ss:$48 sps:$4 sm:$0xff]  }
 0x29f   : > { %1851 = vmatprep.subr.bf16.mxu1 %v13493_v30  ;;  %1770 = vmatpush1.bf16.msra.mxu0 %v13495_v31  ;;  %v13529_v30 = vld [vmem:[#allocation10 + $0x7e4] ss:$48 sps:$4 sm:$0xff]   ;;  %v13532_v31 = vld [vmem:[#allocation10 + $0x7ec] ss:$48 sps:$4 sm:$0xff]  }
 0x2a0   : > { %1780 = vmatprep.subr.bf16.mxu0 %v13499_v33  ;;  %v13530_v33 = vld [vmem:[#allocation10 + $0x7e8] ss:$48 sps:$4 sm:$0xff]  }
 0x2a2   : > { %1852 = vmatpush1.bf16.msra.mxu1 %v13496_v32  ;;  %v13527_v32 = vld [vmem:[#allocation10 + $0x7e0] ss:$48 sps:$4 sm:$0xff]  }
 0x2a3   : > { %1862 = vmatprep.subr.bf16.mxu1 %v13502_v34  ;;  %v13535_v34 = vld [vmem:[#allocation10 + $0x844] ss:$48 sps:$4 sm:$0xff]  }
 0x31b   : > { %v858_v35 = vpop.xlane.xlu0 %857 }
 0x31c   : > { %v859_v36 = vmul.f32 0.0019569471, %v858_v35  ;;  %v13538_v35 = vld [vmem:[#allocation10 + $0x84c] ss:$48 sps:$4 sm:$0xff]  }
 0x31e   : > { %14995 = vrsqrt.f32 %v859_v36  ;;  %vm862_vm1 = vcmp.eq.f32.partialorder %v859_v36, inf  ;;  %v865_v41 = vand.u32 2147483648, %v859_v36  ;;  %vm864_vm2 = vcmp.eq.f32.partialorder %v859_v36, 0.0 }
 0x328   : > { %v14996_v37 = vpop.eup %14995 }
 0x329   : > { %v861_v38 = vmul.f32 %v14996_v37, %v859_v36  ;;  %v13536_v37 = vld [vmem:[#allocation10 + $0x848] ss:$48 sps:$4 sm:$0xff]  }
 0x32b   : > { %v863_v42 = vsel %vm862_vm1, %v859_v36, %v861_v38  ;;  %v13533_v36 = vld [vmem:[#allocation10 + $0x840] ss:$48 sps:$4 sm:$0xff]   ;;  %v13541_v38 = vld [vmem:[#allocation10 + $0x8a4] ss:$48 sps:$4 sm:$0xff]  }
 0x32c   : > { %v866_v43 = vsel %vm864_vm2, %v865_v41, %v863_v42  ;;  %v13544_v41 = vld [vmem:[#allocation10 + $0x8ac] ss:$48 sps:$4 sm:$0xff]   ;;  %v13539_v42 = vld [vmem:[#allocation10 + $0x8a0] ss:$48 sps:$4 sm:$0xff]  }
 0x32d   : > { %v867_v46 = vadd.f32 1e-06, %v866_v43  ;;  %v13542_v43 = vld [vmem:[#allocation10 + $0x8a8] ss:$48 sps:$4 sm:$0xff]  }
 0x32f   : > { %14997 = vrcp.f32 %v867_v46  ;;  %v13547_v46 = vld [vmem:[#allocation10 + $0x904] ss:$48 sps:$4 sm:$0xff]  }
 0x339   : > { %v14998_v52 = vpop.eup %14997 }
 0x33a   : > { %v877_v54 = vrot.slane %v14998_v52, %v16223_v40  ;;  %v13545_v52 = vld [vmem:[#allocation10 + $0x900] ss:$48 sps:$4 sm:$0xff]  }
 0x33c   : > { %v879_v58 = vmul.f32 %v877_v54, %v16227_v44  ;;  %v880_v59 = vmul.f32 %v877_v54, %v16230_v45  ;;  %v13553_v54 = vld [vmem:[#allocation10 + $0x964] ss:$48 sps:$4 sm:$0xff]  }
 0x33e   : > { %v904_v0 = vcombine.high %v879_v58, %v879_v58  ;;  %v908_v1 = vmul.f32 %v885_v55, %v879_v58  ;;  %v905_v2 = vcombine.high %v880_v59, %v880_v59  ;;  %v910_v3 = vmul.f32 %v893_v56, %v880_v59  ;;  %v13556_v55 = vld [vmem:[#allocation10 + $0x96c] ss:$48 sps:$4 sm:$0xff]   ;;  %v13551_v56 = vld [vmem:[#allocation10 + $0x960] ss:$48 sps:$4 sm:$0xff]   ;;  %v13559_v58 = vld [vmem:[#allocation10 + $0x9c4] ss:$48 sps:$4 sm:$0xff]  }
 0x33f   : > { %v13562_v59 = vld [vmem:[#allocation10 + $0x9cc] ss:$48 sps:$4 sm:$0xff]  }
 0x340   : > { %v909_v5 = vmul.f32 %v904_v0, %v889_v57  ;;  %v911_v6 = vmul.f32 %v905_v2, %v897_v60  ;;  %v16263_v7 = vadd.f32 %v924_v61, %v910_v3  ;;  %v933_v44 = vadd.f32 %v916_v63, %v908_v1  ;;  %v13554_v57 = vld [vmem:[#allocation10 + $0x968] ss:$48 sps:$4 sm:$0xff]   ;;  %v13557_v60 = vld [vmem:[#allocation10 + $0x9c0] ss:$48 sps:$4 sm:$0xff]   ;;  %v13568_v63 = vld [vmem:[#allocation10 + $0xa2c] ss:$48 sps:$4 sm:$0xff]  }
 0x341   : > { %v13560_v61 = vld [vmem:[#allocation10 + $0x9c8] ss:$48 sps:$4 sm:$0xff]   ;;  %v13563_v0 = vld [vmem:[#allocation10 + $0xa20] ss:$48 sps:$4 sm:$0xff]   ;;  %v13571_v2 = vld [vmem:[#allocation10 + $0xa84] ss:$48 sps:$4 sm:$0xff]  }
 0x342   : > { %v934_v45 = vadd.f32 %v920_v62, %v909_v5  ;;  %v936_v10 = vadd.f32 %v928_v4, %v911_v6  ;;  %v16267_v13 = vpack.c.bf16 %v933_v44, %v933_v44  ;;  %v13565_v62 = vld [vmem:[#allocation10 + $0xa24] ss:$48 sps:$4 sm:$0xff]   ;;  %v13566_v1 = vld [vmem:[#allocation10 + $0xa28] ss:$48 sps:$4 sm:$0xff]   ;;  %v13574_v3 = vld [vmem:[#allocation10 + $0xa8c] ss:$48 sps:$4 sm:$0xff]  }
 0x343   : > { %v13569_v4 = vld [vmem:[#allocation10 + $0xa80] ss:$48 sps:$4 sm:$0xff]   ;;  %v13572_v5 = vld [vmem:[#allocation10 + $0xa88] ss:$48 sps:$4 sm:$0xff]   ;;  %v13577_v6 = vld [vmem:[#allocation10 + $0xae4] ss:$48 sps:$4 sm:$0xff]  }
 0x344   : > { %v16265_v11 = vpack.c.bf16 %v934_v45, %v934_v45  ;;  %v16273_v17 = vpack.c.bf16 %v936_v10, %v936_v10  ;;  %v13580_v44 = vld [vmem:[#allocation10 + $0xaec] ss:$48 sps:$4 sm:$0xff]   ;;  %v13575_v45 = vld [vmem:[#allocation10 + $0xae0] ss:$48 sps:$4 sm:$0xff]  }
 0x345   : > { %v13586_v10 = vld [vmem:[#allocation10 + $0xb4c] ss:$48 sps:$4 sm:$0xff]  }
 0x346   : > { %1771 = vmatprep.mubr.bf16.mxu0 %v16265_v11  ;;  %1853 = vmatprep.mubr.bf16.mxu1 %v16265_v11 }
 0x347   : > { %1772 = vmatmul.mubr.bf16.vlgmr.msra.gmra.mrb[0].mxu0 %v16267_v13  ;;  %1854 = vmatmul.mubr.bf16.vlgmr.msra.gmra.mrb[0].mxu1 %v16267_v13 }
 0x348   : > { %1781 = vmatpush1.bf16.msra.mxu0 %v13497_v8  ;;  %1863 = vmatpush1.bf16.msra.mxu1 %v13500_v9  ;;  %v13578_v8 = vld [vmem:[#allocation10 + $0xae8] ss:$48 sps:$4 sm:$0xff]   ;;  %v13583_v9 = vld [vmem:[#allocation10 + $0xb44] ss:$48 sps:$4 sm:$0xff]  }
 0x349   : > { %1812 = vmatprep.mubr.bf16.mxu0 %v16273_v17  ;;  %1894 = vmatprep.mubr.bf16.mxu1 %v16273_v17 }
 0x34a   : > { %1782 = vmatprep.subr.bf16.mxu0 %v13505_v12  ;;  %1864 = vmatprep.subr.bf16.mxu1 %v13508_v16  ;;  %v13581_v12 = vld [vmem:[#allocation10 + $0xb40] ss:$48 sps:$4 sm:$0xff]   ;;  %v13592_v16 = vld [vmem:[#allocation10 + $0xbac] ss:$48 sps:$4 sm:$0xff]  }
 0x34c   : > { %1783 = vmatpush1.bf16.msra.mxu0 %v13503_v14  ;;  %1865 = vmatpush1.bf16.msra.mxu1 %v13506_v15  ;;  %v13584_v14 = vld [vmem:[#allocation10 + $0xb48] ss:$48 sps:$4 sm:$0xff]   ;;  %v13589_v15 = vld [vmem:[#allocation10 + $0xba4] ss:$48 sps:$4 sm:$0xff]  }
 0x34d   : > { %1784 = vmatprep.subr.bf16.mxu0 %v13511_v18  ;;  %1866 = vmatprep.subr.bf16.mxu1 %v13514_v19  ;;  %v13587_v18 = vld [vmem:[#allocation10 + $0xba0] ss:$48 sps:$4 sm:$0xff]   ;;  %v13590_v19 = vld [vmem:[#allocation10 + $0xba8] ss:$48 sps:$4 sm:$0xff]  }
 0x350   : > { %1785 = vmatpush1.bf16.msra.mxu0 %v13509_v20  ;;  %1867 = vmatpush1.bf16.msra.mxu1 %v13512_v21  ;;  %v13595_v20 = vld [vmem:[#allocation10 + $0x14] ss:$48 sps:$4 sm:$0xff]   ;;  %v13598_v21 = vld [vmem:[#allocation10 + $0x1c] ss:$48 sps:$4 sm:$0xff]  }
 0x351   : > { %1786 = vmatprep.subr.bf16.mxu0 %v13517_v22  ;;  %1868 = vmatprep.subr.bf16.mxu1 %v13520_v23  ;;  %v13593_v22 = vld [vmem:[#allocation10 + $0x10] ss:$48 sps:$4 sm:$0xff]   ;;  %v13596_v23 = vld [vmem:[#allocation10 + $0x18] ss:$48 sps:$4 sm:$0xff]  }
 0x354   : > { %1787 = vmatpush1.bf16.msra.mxu0 %v13515_v24  ;;  %1869 = vmatpush1.bf16.msra.mxu1 %v13518_v25  ;;  %v13601_v24 = vld [vmem:[#allocation10 + $0x74] ss:$48 sps:$4 sm:$0xff]   ;;  %v13604_v25 = vld [vmem:[#allocation10 + $0x7c] ss:$48 sps:$4 sm:$0xff]  }
 0x355   : > { %1788 = vmatprep.subr.bf16.mxu0 %v13523_v26  ;;  %1870 = vmatprep.subr.bf16.mxu1 %v13526_v27  ;;  %v16279_v26 = vpack.c.bf16 %v16263_v7, %v16263_v7  ;;  %v13599_v27 = vld [vmem:[#allocation10 + $0x70] ss:$48 sps:$4 sm:$0xff]  }
 0x356   : > { %v13605_v7 = vld [vmem:[#allocation10 + $0xd0] ss:$48 sps:$4 sm:$0xff]  }
 0x358   : > { %1789 = vmatpush1.bf16.msra.mxu0 %v13521_v28  ;;  %1871 = vmatpush1.bf16.msra.mxu1 %v13524_v29  ;;  %v13602_v28 = vld [vmem:[#allocation10 + $0x78] ss:$48 sps:$4 sm:$0xff]   ;;  %v13607_v29 = vld [vmem:[#allocation10 + $0xd4] ss:$48 sps:$4 sm:$0xff]  }
 0x359   : > { %1790 = vmatprep.subr.bf16.mxu0 %v13529_v30  ;;  %1872 = vmatprep.subr.bf16.mxu1 %v13532_v31  ;;  %v13610_v30 = vld [vmem:[#allocation10 + $0xdc] ss:$48 sps:$4 sm:$0xff]   ;;  %v13608_v31 = vld [vmem:[#allocation10 + $0xd8] ss:$48 sps:$4 sm:$0xff]  }
 0x35c   : > { %1791 = vmatpush1.bf16.msra.mxu0 %v13527_v32  ;;  %1873 = vmatpush1.bf16.msra.mxu1 %v13530_v33  ;;  %v13613_v32 = vld [vmem:[#allocation10 + $0x134] ss:$48 sps:$4 sm:$0xff]   ;;  %v13611_v33 = vld [vmem:[#allocation10 + $0x130] ss:$48 sps:$4 sm:$0xff]  }
 0x35d   : > { %1792 = vmatprep.subr.bf16.mxu0 %v13535_v34  ;;  %1874 = vmatprep.subr.bf16.mxu1 %v13538_v35  ;;  %v13616_v34 = vld [vmem:[#allocation10 + $0x13c] ss:$48 sps:$4 sm:$0xff]   ;;  %v13614_v35 = vld [vmem:[#allocation10 + $0x138] ss:$48 sps:$4 sm:$0xff]  }
 0x360   : > { %1793 = vmatpush1.bf16.msra.mxu0 %v13533_v36  ;;  %1875 = vmatpush1.bf16.msra.mxu1 %v13536_v37  ;;  %v13619_v36 = vld [vmem:[#allocation10 + $0x194] ss:$48 sps:$4 sm:$0xff]   ;;  %v13617_v37 = vld [vmem:[#allocation10 + $0x190] ss:$48 sps:$4 sm:$0xff]  }
 0x361   : > { %1794 = vmatprep.subr.bf16.mxu0 %v13541_v38  ;;  %1876 = vmatprep.subr.bf16.mxu1 %v13544_v41  ;;  %v13622_v38 = vld [vmem:[#allocation10 + $0x19c] ss:$48 sps:$4 sm:$0xff]   ;;  %v13620_v41 = vld [vmem:[#allocation10 + $0x198] ss:$48 sps:$4 sm:$0xff]  }
 0x364   : > { %1795 = vmatpush1.bf16.msra.mxu0 %v13539_v42  ;;  %1877 = vmatpush1.bf16.msra.mxu1 %v13542_v43  ;;  %v13625_v42 = vld [vmem:[#allocation10 + $0x1f4] ss:$48 sps:$4 sm:$0xff]   ;;  %v13623_v43 = vld [vmem:[#allocation10 + $0x1f0] ss:$48 sps:$4 sm:$0xff]  }
 0x365   : > { %1796 = vmatprep.subr.bf16.mxu0 %v13547_v46  ;;  %1878 = vmatprep.subr.bf16.mxu1 %v13550_v49  ;;  %v13628_v46 = vld [vmem:[#allocation10 + $0x1fc] ss:$48 sps:$4 sm:$0xff]   ;;  %v13626_v49 = vld [vmem:[#allocation10 + $0x1f8] ss:$48 sps:$4 sm:$0xff]  }
 0x368   : > { %1797 = vmatpush1.bf16.msra.mxu0 %v13545_v52  ;;  %1879 = vmatpush1.bf16.msra.mxu1 %v13548_v53  ;;  %v13631_v52 = vld [vmem:[#allocation10 + $0x254] ss:$48 sps:$4 sm:$0xff]   ;;  %v13629_v53 = vld [vmem:[#allocation10 + $0x250] ss:$48 sps:$4 sm:$0xff]  }
 0x369   : > { %1798 = vmatprep.subr.bf16.mxu0 %v13553_v54  ;;  %1880 = vmatprep.subr.bf16.mxu1 %v13556_v55  ;;  %v13634_v54 = vld [vmem:[#allocation10 + $0x25c] ss:$48 sps:$4 sm:$0xff]   ;;  %v13632_v55 = vld [vmem:[#allocation10 + $0x258] ss:$48 sps:$4 sm:$0xff]  }
 0x36c   : > { %1799 = vmatpush1.bf16.msra.mxu0 %v13551_v56  ;;  %1881 = vmatpush1.bf16.msra.mxu1 %v13554_v57  ;;  %v13637_v56 = vld [vmem:[#allocation10 + $0x2b4] ss:$48 sps:$4 sm:$0xff]   ;;  %v13635_v57 = vld [vmem:[#allocation10 + $0x2b0] ss:$48 sps:$4 sm:$0xff]  }
 0x36d   : > { %1800 = vmatprep.subr.bf16.mxu0 %v13559_v58  ;;  %1882 = vmatprep.subr.bf16.mxu1 %v13562_v59  ;;  %v13640_v58 = vld [vmem:[#allocation10 + $0x2bc] ss:$48 sps:$4 sm:$0xff]   ;;  %v13638_v59 = vld [vmem:[#allocation10 + $0x2b8] ss:$48 sps:$4 sm:$0xff]  }
 0x370   : > { %1801 = vmatpush1.bf16.msra.mxu0 %v13557_v60  ;;  %1883 = vmatpush1.bf16.msra.mxu1 %v13560_v61  ;;  %v13643_v60 = vld [vmem:[#allocation10 + $0x314] ss:$48 sps:$4 sm:$0xff]   ;;  %v13641_v61 = vld [vmem:[#allocation10 + $0x310] ss:$48 sps:$4 sm:$0xff]  }
 0x371   : > { %1802 = vmatprep.subr.bf16.mxu0 %v13565_v62  ;;  %1884 = vmatprep.subr.bf16.mxu1 %v13568_v63  ;;  %v13646_v62 = vld [vmem:[#allocation10 + $0x31c] ss:$48 sps:$4 sm:$0xff]   ;;  %v13644_v63 = vld [vmem:[#allocation10 + $0x318] ss:$48 sps:$4 sm:$0xff]  }
 0x374   : > { %1803 = vmatpush1.bf16.msra.mxu0 %v13563_v0  ;;  %1885 = vmatpush1.bf16.msra.mxu1 %v13566_v1  ;;  %v13649_v0 = vld [vmem:[#allocation10 + $0x374] ss:$48 sps:$4 sm:$0xff]   ;;  %v13647_v1 = vld [vmem:[#allocation10 + $0x370] ss:$48 sps:$4 sm:$0xff]  }
 0x375   : > { %1804 = vmatprep.subr.bf16.mxu0 %v13571_v2  ;;  %1886 = vmatprep.subr.bf16.mxu1 %v13574_v3  ;;  %v13652_v2 = vld [vmem:[#allocation10 + $0x37c] ss:$48 sps:$4 sm:$0xff]   ;;  %v13650_v3 = vld [vmem:[#allocation10 + $0x378] ss:$48 sps:$4 sm:$0xff]  }
 0x378   : > { %1805 = vmatpush1.bf16.msra.mxu0 %v13569_v4  ;;  %1887 = vmatpush1.bf16.msra.mxu1 %v13572_v5  ;;  %v13655_v4 = vld [vmem:[#allocation10 + $0x3d4] ss:$48 sps:$4 sm:$0xff]   ;;  %v13653_v5 = vld [vmem:[#allocation10 + $0x3d0] ss:$48 sps:$4 sm:$0xff]  }
 0x379   : > { %1806 = vmatprep.subr.bf16.mxu0 %v13577_v6  ;;  %1888 = vmatprep.subr.bf16.mxu1 %v13580_v44  ;;  %v13658_v6 = vld [vmem:[#allocation10 + $0x3dc] ss:$48 sps:$4 sm:$0xff]   ;;  %v13656_v44 = vld [vmem:[#allocation10 + $0x3d8] ss:$48 sps:$4 sm:$0xff]  }
 0x37c   : > { %1807 = vmatpush1.bf16.msra.mxu0 %v13575_v45  ;;  %1889 = vmatpush1.bf16.msra.mxu1 %v13578_v8  ;;  %v13661_v45 = vld [vmem:[#allocation10 + $0x434] ss:$48 sps:$4 sm:$0xff]   ;;  %v13659_v8 = vld [vmem:[#allocation10 + $0x430] ss:$48 sps:$4 sm:$0xff]  }
 0x37d   : > { %1808 = vmatprep.subr.bf16.mxu0 %v13583_v9  ;;  %1890 = vmatprep.subr.bf16.mxu1 %v13586_v10  ;;  %v13664_v9 = vld [vmem:[#allocation10 + $0x43c] ss:$48 sps:$4 sm:$0xff]   ;;  %v13662_v10 = vld [vmem:[#allocation10 + $0x438] ss:$48 sps:$4 sm:$0xff]  }
 0x380   : > { %1809 = vmatpush1.bf16.msra.mxu0 %v13581_v12  ;;  %1891 = vmatpush1.bf16.msra.mxu1 %v13584_v14  ;;  %v13667_v12 = vld [vmem:[#allocation10 + $0x494] ss:$48 sps:$4 sm:$0xff]   ;;  %v13665_v14 = vld [vmem:[#allocation10 + $0x490] ss:$48 sps:$4 sm:$0xff]  }
 0x381   : > { %1810 = vmatprep.subr.bf16.mxu0 %v13589_v15  ;;  %1892 = vmatprep.subr.bf16.mxu1 %v13592_v16  ;;  %v13670_v15 = vld [vmem:[#allocation10 + $0x49c] ss:$48 sps:$4 sm:$0xff]   ;;  %v13668_v16 = vld [vmem:[#allocation10 + $0x498] ss:$48 sps:$4 sm:$0xff]  }
 0x384   : > { %1811 = vmatpush1.bf16.msra.mxu0 %v13587_v18  ;;  %1893 = vmatpush1.bf16.msra.mxu1 %v13590_v19  ;;  %v13673_v18 = vld [vmem:[#allocation10 + $0x4f4] ss:$48 sps:$4 sm:$0xff]   ;;  %v13671_v19 = vld [vmem:[#allocation10 + $0x4f0] ss:$48 sps:$4 sm:$0xff]  }
 0x385   : > { %3481 = vmatprep.subr.bf16.mxu0 %v13595_v20  ;;  %3563 = vmatprep.subr.bf16.mxu1 %v13598_v21  ;;  %v13676_v20 = vld [vmem:[#allocation10 + $0x4fc] ss:$48 sps:$4 sm:$0xff]   ;;  %v13674_v21 = vld [vmem:[#allocation10 + $0x4f8] ss:$48 sps:$4 sm:$0xff]  }
 0x387   : > { %1813 = vmatmul.mubr.bf16.vlgmr.msra.gmra.mrb[0].mxu0 %v16279_v26  ;;  %1895 = vmatmul.mubr.bf16.vlgmr.msra.gmra.mrb[0].mxu1 %v16279_v26 }
 0x388   : > { %3482 = vmatpush1.bf16.msra.mxu0 %v13593_v22  ;;  %3513 = vmatprep.mubr.bf16.mxu0 %v16265_v11  ;;  %v13679_v22 = vld [vmem:[#allocation10 + $0x554] ss:$48 sps:$4 sm:$0xff]  }
 0x389   : > { %3564 = vmatpush1.bf16.msra.mxu1 %v13596_v23  ;;  %3595 = vmatprep.mubr.bf16.mxu1 %v16265_v11  ;;  %v13677_v23 = vld [vmem:[#allocation10 + $0x550] ss:$48 sps:$4 sm:$0xff]  }
 0x38a   : > { %3483 = vmatprep.subr.bf16.mxu0 %v13601_v24  ;;  %3565 = vmatprep.subr.bf16.mxu1 %v13604_v25  ;;  %v13682_v24 = vld [vmem:[#allocation10 + $0x55c] ss:$48 sps:$4 sm:$0xff]   ;;  %v13680_v25 = vld [vmem:[#allocation10 + $0x558] ss:$48 sps:$4 sm:$0xff]  }
 0x38c   : > { %3484 = vmatpush1.bf16.msra.mxu0 %v13599_v27  ;;  %v13685_v27 = vld [vmem:[#allocation10 + $0x5b4] ss:$48 sps:$4 sm:$0xff]  }
 0x38d   : > { %3566 = vmatpush1.bf16.msra.mxu1 %v13602_v28  ;;  %3485 = vmatprep.subr.bf16.mxu0 %v13607_v29  ;;  %v13688_v28 = vld [vmem:[#allocation10 + $0x5bc] ss:$48 sps:$4 sm:$0xff]   ;;  %v13683_v29 = vld [vmem:[#allocation10 + $0x5b0] ss:$48 sps:$4 sm:$0xff]  }
 0x38e   : > { %3567 = vmatprep.subr.bf16.mxu1 %v13610_v30  ;;  %v13686_v30 = vld [vmem:[#allocation10 + $0x5b8] ss:$48 sps:$4 sm:$0xff]  }
 0x390   : > { %3486 = vmatpush1.bf16.msra.mxu0 %v13605_v7  ;;  %v13691_v7 = vld [vmem:[#allocation10 + $0x614] ss:$48 sps:$4 sm:$0xff]  }
 0x391   : > { %3568 = vmatpush1.bf16.msra.mxu1 %v13608_v31  ;;  %3487 = vmatprep.subr.bf16.mxu0 %v13613_v32  ;;  %v13694_v31 = vld [vmem:[#allocation10 + $0x61c] ss:$48 sps:$4 sm:$0xff]   ;;  %v13689_v32 = vld [vmem:[#allocation10 + $0x610] ss:$48 sps:$4 sm:$0xff]  }
 0x392   : > { %3569 = vmatprep.subr.bf16.mxu1 %v13616_v34  ;;  %v13697_v34 = vld [vmem:[#allocation10 + $0x674] ss:$48 sps:$4 sm:$0xff]  }
 0x394   : > { %3488 = vmatpush1.bf16.msra.mxu0 %v13611_v33  ;;  %v13692_v33 = vld [vmem:[#allocation10 + $0x618] ss:$48 sps:$4 sm:$0xff]  }
 0x395   : > { %3570 = vmatpush1.bf16.msra.mxu1 %v13614_v35  ;;  %3489 = vmatprep.subr.bf16.mxu0 %v13619_v36  ;;  %v13700_v35 = vld [vmem:[#allocation10 + $0x67c] ss:$48 sps:$4 sm:$0xff]   ;;  %v13695_v36 = vld [vmem:[#allocation10 + $0x670] ss:$48 sps:$4 sm:$0xff]  }
 0x396   : > { %3571 = vmatprep.subr.bf16.mxu1 %v13622_v38  ;;  %v13703_v38 = vld [vmem:[#allocation10 + $0x6d4] ss:$48 sps:$4 sm:$0xff]  }
 0x398   : > { %3490 = vmatpush1.bf16.msra.mxu0 %v13617_v37  ;;  %v13698_v37 = vld [vmem:[#allocation10 + $0x678] ss:$48 sps:$4 sm:$0xff]  }
 0x399   : > { %3572 = vmatpush1.bf16.msra.mxu1 %v13620_v41  ;;  %3491 = vmatprep.subr.bf16.mxu0 %v13625_v42  ;;  %v13706_v41 = vld [vmem:[#allocation10 + $0x6dc] ss:$48 sps:$4 sm:$0xff]   ;;  %v13701_v42 = vld [vmem:[#allocation10 + $0x6d0] ss:$48 sps:$4 sm:$0xff]  }
 0x39a   : > { %3573 = vmatprep.subr.bf16.mxu1 %v13628_v46  ;;  %v13709_v46 = vld [vmem:[#allocation10 + $0x734] ss:$48 sps:$4 sm:$0xff]  }
 0x39c   : > { %3492 = vmatpush1.bf16.msra.mxu0 %v13623_v43  ;;  %v13704_v43 = vld [vmem:[#allocation10 + $0x6d8] ss:$48 sps:$4 sm:$0xff]  }
 0x39d   : > { %3574 = vmatpush1.bf16.msra.mxu1 %v13626_v49  ;;  %3493 = vmatprep.subr.bf16.mxu0 %v13631_v52  ;;  %v13712_v49 = vld [vmem:[#allocation10 + $0x73c] ss:$48 sps:$4 sm:$0xff]   ;;  %v13707_v52 = vld [vmem:[#allocation10 + $0x730] ss:$48 sps:$4 sm:$0xff]  }
 0x39e   : > { %3575 = vmatprep.subr.bf16.mxu1 %v13634_v54  ;;  %v13715_v54 = vld [vmem:[#allocation10 + $0x794] ss:$48 sps:$4 sm:$0xff]  }
 0x3a0   : > { %3494 = vmatpush1.bf16.msra.mxu0 %v13629_v53  ;;  %v13710_v53 = vld [vmem:[#allocation10 + $0x738] ss:$48 sps:$4 sm:$0xff]  }
 0x3a1   : > { %3576 = vmatpush1.bf16.msra.mxu1 %v13632_v55  ;;  %3495 = vmatprep.subr.bf16.mxu0 %v13637_v56  ;;  %v13718_v55 = vld [vmem:[#allocation10 + $0x79c] ss:$48 sps:$4 sm:$0xff]   ;;  %v13713_v56 = vld [vmem:[#allocation10 + $0x790] ss:$48 sps:$4 sm:$0xff]  }
 0x3a2   : > { %3577 = vmatprep.subr.bf16.mxu1 %v13640_v58  ;;  %v13721_v58 = vld [vmem:[#allocation10 + $0x7f4] ss:$48 sps:$4 sm:$0xff]  }
 0x3a4   : > { %3496 = vmatpush1.bf16.msra.mxu0 %v13635_v57  ;;  %v13716_v57 = vld [vmem:[#allocation10 + $0x798] ss:$48 sps:$4 sm:$0xff]  }
 0x3a5   : > { %3578 = vmatpush1.bf16.msra.mxu1 %v13638_v59  ;;  %3497 = vmatprep.subr.bf16.mxu0 %v13643_v60  ;;  %v13724_v59 = vld [vmem:[#allocation10 + $0x7fc] ss:$48 sps:$4 sm:$0xff]   ;;  %v13719_v60 = vld [vmem:[#allocation10 + $0x7f0] ss:$48 sps:$4 sm:$0xff]  }
 0x3a6   : > { %3579 = vmatprep.subr.bf16.mxu1 %v13646_v62  ;;  %v13727_v62 = vld [vmem:[#allocation10 + $0x854] ss:$48 sps:$4 sm:$0xff]  }
 0x3a8   : > { %3498 = vmatpush1.bf16.msra.mxu0 %v13641_v61  ;;  %v13722_v61 = vld [vmem:[#allocation10 + $0x7f8] ss:$48 sps:$4 sm:$0xff]  }
 0x3a9   : > { %3580 = vmatpush1.bf16.msra.mxu1 %v13644_v63  ;;  %3499 = vmatprep.subr.bf16.mxu0 %v13649_v0  ;;  %v13730_v63 = vld [vmem:[#allocation10 + $0x85c] ss:$48 sps:$4 sm:$0xff]   ;;  %v13725_v0 = vld [vmem:[#allocation10 + $0x850] ss:$48 sps:$4 sm:$0xff]  }
 0x3aa   : > { %3581 = vmatprep.subr.bf16.mxu1 %v13652_v2  ;;  %v13733_v2 = vld [vmem:[#allocation10 + $0x8b4] ss:$48 sps:$4 sm:$0xff]  }
 0x3ac   : > { %3500 = vmatpush1.bf16.msra.mxu0 %v13647_v1  ;;  %v13728_v1 = vld [vmem:[#allocation10 + $0x858] ss:$48 sps:$4 sm:$0xff]  }
 0x3ad   : > { %3582 = vmatpush1.bf16.msra.mxu1 %v13650_v3  ;;  %3501 = vmatprep.subr.bf16.mxu0 %v13655_v4  ;;  %v13736_v3 = vld [vmem:[#allocation10 + $0x8bc] ss:$48 sps:$4 sm:$0xff]   ;;  %v13731_v4 = vld [vmem:[#allocation10 + $0x8b0] ss:$48 sps:$4 sm:$0xff]  }
 0x3ae   : > { %3583 = vmatprep.subr.bf16.mxu1 %v13658_v6  ;;  %v13739_v6 = vld [vmem:[#allocation10 + $0x914] ss:$48 sps:$4 sm:$0xff]  }
 0x3b0   : > { %3502 = vmatpush1.bf16.msra.mxu0 %v13653_v5  ;;  %v13734_v5 = vld [vmem:[#allocation10 + $0x8b8] ss:$48 sps:$4 sm:$0xff]  }
 0x3b1   : > { %3584 = vmatpush1.bf16.msra.mxu1 %v13656_v44  ;;  %3503 = vmatprep.subr.bf16.mxu0 %v13661_v45  ;;  %v13742_v44 = vld [vmem:[#allocation10 + $0x91c] ss:$48 sps:$4 sm:$0xff]   ;;  %v13737_v45 = vld [vmem:[#allocation10 + $0x910] ss:$48 sps:$4 sm:$0xff]  }
 0x3b2   : > { %3585 = vmatprep.subr.bf16.mxu1 %v13664_v9  ;;  %v13745_v9 = vld [vmem:[#allocation10 + $0x974] ss:$48 sps:$4 sm:$0xff]  }
 0x3b4   : > { %3504 = vmatpush1.bf16.msra.mxu0 %v13659_v8  ;;  %v13740_v8 = vld [vmem:[#allocation10 + $0x918] ss:$48 sps:$4 sm:$0xff]  }
 0x3b5   : > { %3586 = vmatpush1.bf16.msra.mxu1 %v13662_v10  ;;  %3505 = vmatprep.subr.bf16.mxu0 %v13667_v12  ;;  %v13748_v10 = vld [vmem:[#allocation10 + $0x97c] ss:$48 sps:$4 sm:$0xff]   ;;  %v13743_v12 = vld [vmem:[#allocation10 + $0x970] ss:$48 sps:$4 sm:$0xff]  }
 0x3b6   : > { %3587 = vmatprep.subr.bf16.mxu1 %v13670_v15  ;;  %v13751_v15 = vld [vmem:[#allocation10 + $0x9d4] ss:$48 sps:$4 sm:$0xff]  }
 0x3b8   : > { %3506 = vmatpush1.bf16.msra.mxu0 %v13665_v14  ;;  %v13746_v14 = vld [vmem:[#allocation10 + $0x978] ss:$48 sps:$4 sm:$0xff]  }
 0x3b9   : > { %3588 = vmatpush1.bf16.msra.mxu1 %v13668_v16  ;;  %3507 = vmatprep.subr.bf16.mxu0 %v13673_v18  ;;  %v13754_v16 = vld [vmem:[#allocation10 + $0x9dc] ss:$48 sps:$4 sm:$0xff]   ;;  %v13749_v18 = vld [vmem:[#allocation10 + $0x9d0] ss:$48 sps:$4 sm:$0xff]  }
 0x3ba   : > { %3589 = vmatprep.subr.bf16.mxu1 %v13676_v20  ;;  %v13757_v20 = vld [vmem:[#allocation10 + $0xa34] ss:$48 sps:$4 sm:$0xff]  }
 0x3bc   : > { %3508 = vmatpush1.bf16.msra.mxu0 %v13671_v19  ;;  %v13752_v19 = vld [vmem:[#allocation10 + $0x9d8] ss:$48 sps:$4 sm:$0xff]  }
 0x3bd   : > { %3590 = vmatpush1.bf16.msra.mxu1 %v13674_v21  ;;  %3509 = vmatprep.subr.bf16.mxu0 %v13679_v22  ;;  %v13760_v21 = vld [vmem:[#allocation10 + $0xa3c] ss:$48 sps:$4 sm:$0xff]   ;;  %v13755_v22 = vld [vmem:[#allocation10 + $0xa30] ss:$48 sps:$4 sm:$0xff]  }
 0x3be   : > { %3591 = vmatprep.subr.bf16.mxu1 %v13682_v24  ;;  %v13763_v24 = vld [vmem:[#allocation10 + $0xa94] ss:$48 sps:$4 sm:$0xff]  }
 0x3c0   : > { %3510 = vmatpush1.bf16.msra.mxu0 %v13677_v23  ;;  %v13758_v23 = vld [vmem:[#allocation10 + $0xa38] ss:$48 sps:$4 sm:$0xff]  }
 0x3c1   : > { %3592 = vmatpush1.bf16.msra.mxu1 %v13680_v25  ;;  %3511 = vmatprep.subr.bf16.mxu0 %v13685_v27  ;;  %v13766_v25 = vld [vmem:[#allocation10 + $0xa9c] ss:$48 sps:$4 sm:$0xff]   ;;  %v13761_v27 = vld [vmem:[#allocation10 + $0xa90] ss:$48 sps:$4 sm:$0xff]  }
 0x3c2   : > { %3593 = vmatprep.subr.bf16.mxu1 %v13688_v28  ;;  %v13764_v28 = vld [vmem:[#allocation10 + $0xa98] ss:$48 sps:$4 sm:$0xff]  }
 0x3c4   : > { %3512 = vmatpush1.bf16.msra.mxu0 %v13683_v29  ;;  %v13769_v29 = vld [vmem:[#allocation10 + $0xaf4] ss:$48 sps:$4 sm:$0xff]  }
 0x3c5   : > { %3594 = vmatpush1.bf16.msra.mxu1 %v13686_v30  ;;  %3522 = vmatprep.subr.bf16.mxu0 %v13691_v7  ;;  %v13772_v30 = vld [vmem:[#allocation10 + $0xafc] ss:$48 sps:$4 sm:$0xff]   ;;  %v13767_v7 = vld [vmem:[#allocation10 + $0xaf0] ss:$48 sps:$4 sm:$0xff]  }
 0x3c6   : > { %3604 = vmatprep.subr.bf16.mxu1 %v13694_v31  ;;  %v13770_v31 = vld [vmem:[#allocation10 + $0xaf8] ss:$48 sps:$4 sm:$0xff]  }
 0x3c7   : > { %3514 = vmatmul.mubr.bf16.vlgmr.msra.gmra.mrb[4].mxu0 %v16267_v13 }
 0x3c8   : > { %3596 = vmatmul.mubr.bf16.vlgmr.msra.gmra.mrb[4].mxu1 %v16267_v13  ;;  %3523 = vmatpush1.bf16.msra.mxu0 %v13689_v32  ;;  %v13775_v32 = vld [vmem:[#allocation10 + $0xb54] ss:$48 sps:$4 sm:$0xff]  }
 0x3c9   : > { %3554 = vmatprep.mubr.bf16.mxu0 %v16273_v17  ;;  %3605 = vmatpush1.bf16.msra.mxu1 %v13692_v33  ;;  %v13778_v33 = vld [vmem:[#allocation10 + $0xb5c] ss:$48 sps:$4 sm:$0xff]  }
 0x3ca   : > { %3636 = vmatprep.mubr.bf16.mxu1 %v16273_v17  ;;  %3524 = vmatprep.subr.bf16.mxu0 %v13697_v34  ;;  %v13773_v34 = vld [vmem:[#allocation10 + $0xb50] ss:$48 sps:$4 sm:$0xff]  }
 0x3cb   : > { %3606 = vmatprep.subr.bf16.mxu1 %v13700_v35  ;;  %v13776_v35 = vld [vmem:[#allocation10 + $0xb58] ss:$48 sps:$4 sm:$0xff]  }
 0x3cc   : > { %3525 = vmatpush1.bf16.msra.mxu0 %v13695_v36  ;;  %v13781_v36 = vld [vmem:[#allocation10 + $0xbb4] ss:$48 sps:$4 sm:$0xff]  }
 0x3cd   : > { %3607 = vmatpush1.bf16.msra.mxu1 %v13698_v37  ;;  %3526 = vmatprep.subr.bf16.mxu0 %v13703_v38  ;;  %v13784_v37 = vld [vmem:[#allocation10 + $0xbbc] ss:$48 sps:$4 sm:$0xff]   ;;  %v13779_v38 = vld [vmem:[#allocation10 + $0xbb0] ss:$48 sps:$4 sm:$0xff]  }
 0x3ce   : > { %3608 = vmatprep.subr.bf16.mxu1 %v13706_v41  ;;  %v13782_v41 = vld [vmem:[#allocation10 + $0xbb8] ss:$48 sps:$4 sm:$0xff]  }
 0x3d0   : > { %3527 = vmatpush1.bf16.msra.mxu0 %v13701_v42  ;;  %v13787_v42 = vld [vmem:[#allocation10 + $0x24] ss:$48 sps:$4 sm:$0xff]  }
 0x3d1   : > { %3609 = vmatpush1.bf16.msra.mxu1 %v13704_v43  ;;  %3528 = vmatprep.subr.bf16.mxu0 %v13709_v46  ;;  %v13790_v43 = vld [vmem:[#allocation10 + $0x2c] ss:$48 sps:$4 sm:$0xff]   ;;  %v13785_v46 = vld [vmem:[#allocation10 + $0x20] ss:$48 sps:$4 sm:$0xff]  }
 0x3d2   : > { %3610 = vmatprep.subr.bf16.mxu1 %v13712_v49  ;;  %v13788_v49 = vld [vmem:[#allocation10 + $0x28] ss:$48 sps:$4 sm:$0xff]  }
 0x3d4   : > { %3529 = vmatpush1.bf16.msra.mxu0 %v13707_v52  ;;  %v13793_v52 = vld [vmem:[#allocation10 + $0x84] ss:$48 sps:$4 sm:$0xff]  }
 0x3d5   : > { %3611 = vmatpush1.bf16.msra.mxu1 %v13710_v53  ;;  %3530 = vmatprep.subr.bf16.mxu0 %v13715_v54  ;;  %v13796_v53 = vld [vmem:[#allocation10 + $0x8c] ss:$48 sps:$4 sm:$0xff]   ;;  %v13791_v54 = vld [vmem:[#allocation10 + $0x80] ss:$48 sps:$4 sm:$0xff]  }
 0x3d6   : > { %3612 = vmatprep.subr.bf16.mxu1 %v13718_v55  ;;  %v13794_v55 = vld [vmem:[#allocation10 + $0x88] ss:$48 sps:$4 sm:$0xff]  }
 0x3d8   : > { %3531 = vmatpush1.bf16.msra.mxu0 %v13713_v56  ;;  %v13799_v56 = vld [vmem:[#allocation10 + $0xe4] ss:$48 sps:$4 sm:$0xff]  }
 0x3d9   : > { %3613 = vmatpush1.bf16.msra.mxu1 %v13716_v57  ;;  %3532 = vmatprep.subr.bf16.mxu0 %v13721_v58  ;;  %v13802_v57 = vld [vmem:[#allocation10 + $0xec] ss:$48 sps:$4 sm:$0xff]   ;;  %v13797_v58 = vld [vmem:[#allocation10 + $0xe0] ss:$48 sps:$4 sm:$0xff]  }
 0x3da   : > { %3614 = vmatprep.subr.bf16.mxu1 %v13724_v59  ;;  %v13800_v59 = vld [vmem:[#allocation10 + $0xe8] ss:$48 sps:$4 sm:$0xff]  }
 0x3dc   : > { %3533 = vmatpush1.bf16.msra.mxu0 %v13719_v60  ;;  %v13805_v60 = vld [vmem:[#allocation10 + $0x144] ss:$48 sps:$4 sm:$0xff]  }
 0x3dd   : > { %3615 = vmatpush1.bf16.msra.mxu1 %v13722_v61  ;;  %3534 = vmatprep.subr.bf16.mxu0 %v13727_v62  ;;  %v13808_v61 = vld [vmem:[#allocation10 + $0x14c] ss:$48 sps:$4 sm:$0xff]   ;;  %v13803_v62 = vld [vmem:[#allocation10 + $0x140] ss:$48 sps:$4 sm:$0xff]  }
 0x3de   : > { %3616 = vmatprep.subr.bf16.mxu1 %v13730_v63  ;;  %v13806_v63 = vld [vmem:[#allocation10 + $0x148] ss:$48 sps:$4 sm:$0xff]  }
 0x3e0   : > { %3535 = vmatpush1.bf16.msra.mxu0 %v13725_v0  ;;  %v13811_v0 = vld [vmem:[#allocation10 + $0x1a4] ss:$48 sps:$4 sm:$0xff]  }
 0x3e1   : > { %3617 = vmatpush1.bf16.msra.mxu1 %v13728_v1  ;;  %3536 = vmatprep.subr.bf16.mxu0 %v13733_v2  ;;  %v13814_v1 = vld [vmem:[#allocation10 + $0x1ac] ss:$48 sps:$4 sm:$0xff]   ;;  %v13812_v2 = vld [vmem:[#allocation10 + $0x1a8] ss:$48 sps:$4 sm:$0xff]  }
 0x3e2   : > { %3618 = vmatprep.subr.bf16.mxu1 %v13736_v3  ;;  %v13817_v3 = vld [vmem:[#allocation10 + $0x204] ss:$48 sps:$4 sm:$0xff]  }
 0x3e4   : > { %3537 = vmatpush1.bf16.msra.mxu0 %v13731_v4  ;;  %v13820_v4 = vld [vmem:[#allocation10 + $0x20c] ss:$48 sps:$4 sm:$0xff]  }
 0x3e5   : > { %3619 = vmatpush1.bf16.msra.mxu1 %v13734_v5  ;;  %3538 = vmatprep.subr.bf16.mxu0 %v13739_v6  ;;  %v13815_v5 = vld [vmem:[#allocation10 + $0x200] ss:$48 sps:$4 sm:$0xff]   ;;  %v13818_v6 = vld [vmem:[#allocation10 + $0x208] ss:$48 sps:$4 sm:$0xff]  }
 0x3e6   : > { %3620 = vmatprep.subr.bf16.mxu1 %v13742_v44  ;;  %v13823_v44 = vld [vmem:[#allocation10 + $0x264] ss:$48 sps:$4 sm:$0xff]  }
 0x3e8   : > { %3539 = vmatpush1.bf16.msra.mxu0 %v13737_v45  ;;  %v13826_v45 = vld [vmem:[#allocation10 + $0x26c] ss:$48 sps:$4 sm:$0xff]  }
 0x3e9   : > { %3621 = vmatpush1.bf16.msra.mxu1 %v13740_v8  ;;  %3540 = vmatprep.subr.bf16.mxu0 %v13745_v9  ;;  %v13821_v8 = vld [vmem:[#allocation10 + $0x260] ss:$48 sps:$4 sm:$0xff]   ;;  %v13824_v9 = vld [vmem:[#allocation10 + $0x268] ss:$48 sps:$4 sm:$0xff]  }
 0x3ea   : > { %3622 = vmatprep.subr.bf16.mxu1 %v13748_v10  ;;  %v13829_v10 = vld [vmem:[#allocation10 + $0x2c4] ss:$48 sps:$4 sm:$0xff]  }
 0x3ec   : > { %3541 = vmatpush1.bf16.msra.mxu0 %v13743_v12  ;;  %v13832_v12 = vld [vmem:[#allocation10 + $0x2cc] ss:$48 sps:$4 sm:$0xff]  }
 0x3ed   : > { %3623 = vmatpush1.bf16.msra.mxu1 %v13746_v14  ;;  %3542 = vmatprep.subr.bf16.mxu0 %v13751_v15  ;;  %v13827_v14 = vld [vmem:[#allocation10 + $0x2c0] ss:$48 sps:$4 sm:$0xff]   ;;  %v13830_v15 = vld [vmem:[#allocation10 + $0x2c8] ss:$48 sps:$4 sm:$0xff]  }
 0x3ee   : > { %3624 = vmatprep.subr.bf16.mxu1 %v13754_v16  ;;  %v13835_v16 = vld [vmem:[#allocation10 + $0x324] ss:$48 sps:$4 sm:$0xff]  }
 0x3f0   : > { %3543 = vmatpush1.bf16.msra.mxu0 %v13749_v18  ;;  %v13838_v18 = vld [vmem:[#allocation10 + $0x32c] ss:$48 sps:$4 sm:$0xff]  }
 0x3f1   : > { %3625 = vmatpush1.bf16.msra.mxu1 %v13752_v19  ;;  %3544 = vmatprep.subr.bf16.mxu0 %v13757_v20  ;;  %v13833_v19 = vld [vmem:[#allocation10 + $0x320] ss:$48 sps:$4 sm:$0xff]   ;;  %v13836_v20 = vld [vmem:[#allocation10 + $0x328] ss:$48 sps:$4 sm:$0xff]  }
 0x3f2   : > { %3626 = vmatprep.subr.bf16.mxu1 %v13760_v21  ;;  %v13841_v21 = vld [vmem:[#allocation10 + $0x384] ss:$48 sps:$4 sm:$0xff]  }
 0x3f4   : > { %3545 = vmatpush1.bf16.msra.mxu0 %v13755_v22  ;;  %v13844_v22 = vld [vmem:[#allocation10 + $0x38c] ss:$48 sps:$4 sm:$0xff]  }
 0x3f5   : > { %3627 = vmatpush1.bf16.msra.mxu1 %v13758_v23  ;;  %3546 = vmatprep.subr.bf16.mxu0 %v13763_v24  ;;  %v13839_v23 = vld [vmem:[#allocation10 + $0x380] ss:$48 sps:$4 sm:$0xff]   ;;  %v13842_v24 = vld [vmem:[#allocation10 + $0x388] ss:$48 sps:$4 sm:$0xff]  }
 0x3f6   : > { %3628 = vmatprep.subr.bf16.mxu1 %v13766_v25  ;;  %v13847_v25 = vld [vmem:[#allocation10 + $0x3e4] ss:$48 sps:$4 sm:$0xff]  }
 0x3f8   : > { %3547 = vmatpush1.bf16.msra.mxu0 %v13761_v27  ;;  %v13850_v27 = vld [vmem:[#allocation10 + $0x3ec] ss:$48 sps:$4 sm:$0xff]  }
 0x3f9   : > { %3629 = vmatpush1.bf16.msra.mxu1 %v13764_v28  ;;  %3548 = vmatprep.subr.bf16.mxu0 %v13769_v29  ;;  %v13845_v28 = vld [vmem:[#allocation10 + $0x3e0] ss:$48 sps:$4 sm:$0xff]   ;;  %v13848_v29 = vld [vmem:[#allocation10 + $0x3e8] ss:$48 sps:$4 sm:$0xff]  }
 0x3fa   : > { %3630 = vmatprep.subr.bf16.mxu1 %v13772_v30  ;;  %v13853_v30 = vld [vmem:[#allocation10 + $0x444] ss:$48 sps:$4 sm:$0xff]  }
 0x3fc   : > { %3549 = vmatpush1.bf16.msra.mxu0 %v13767_v7  ;;  %v13856_v7 = vld [vmem:[#allocation10 + $0x44c] ss:$48 sps:$4 sm:$0xff]  }
 0x3fd   : > { %3631 = vmatpush1.bf16.msra.mxu1 %v13770_v31  ;;  %3550 = vmatprep.subr.bf16.mxu0 %v13775_v32  ;;  %v13851_v31 = vld [vmem:[#allocation10 + $0x440] ss:$48 sps:$4 sm:$0xff]   ;;  %v13854_v32 = vld [vmem:[#allocation10 + $0x448] ss:$48 sps:$4 sm:$0xff]  }
 0x3fe   : > { %3632 = vmatprep.subr.bf16.mxu1 %v13778_v33  ;;  %v13859_v33 = vld [vmem:[#allocation10 + $0x4a4] ss:$48 sps:$4 sm:$0xff]  }
 0x400   : > { %3551 = vmatpush1.bf16.msra.mxu0 %v13773_v34  ;;  %v13862_v34 = vld [vmem:[#allocation10 + $0x4ac] ss:$48 sps:$4 sm:$0xff]  }
 0x401   : > { %3633 = vmatpush1.bf16.msra.mxu1 %v13776_v35  ;;  %3552 = vmatprep.subr.bf16.mxu0 %v13781_v36  ;;  %v13857_v35 = vld [vmem:[#allocation10 + $0x4a0] ss:$48 sps:$4 sm:$0xff]   ;;  %v13860_v36 = vld [vmem:[#allocation10 + $0x4a8] ss:$48 sps:$4 sm:$0xff]  }
 0x402   : > { %3634 = vmatprep.subr.bf16.mxu1 %v13784_v37  ;;  %v13865_v37 = vld [vmem:[#allocation10 + $0x504] ss:$48 sps:$4 sm:$0xff]  }
 0x404   : > { %3553 = vmatpush1.bf16.msra.mxu0 %v13779_v38  ;;  %v13868_v38 = vld [vmem:[#allocation10 + $0x50c] ss:$48 sps:$4 sm:$0xff]  }
 0x405   : > { %3635 = vmatpush1.bf16.msra.mxu1 %v13782_v41  ;;  %3645 = vmatprep.subr.bf16.mxu0 %v13787_v42  ;;  %v13863_v41 = vld [vmem:[#allocation10 + $0x500] ss:$48 sps:$4 sm:$0xff]   ;;  %v13866_v42 = vld [vmem:[#allocation10 + $0x508] ss:$48 sps:$4 sm:$0xff]  }
 0x406   : > { %3727 = vmatprep.subr.bf16.mxu1 %v13790_v43  ;;  %v13871_v43 = vld [vmem:[#allocation10 + $0x564] ss:$48 sps:$4 sm:$0xff]  }
 0x407   : > { %3555 = vmatmul.mubr.bf16.vlgmr.msra.gmra.mrb[4].mxu0 %v16279_v26 }
 0x408   : > { %3637 = vmatmul.mubr.bf16.vlgmr.msra.gmra.mrb[4].mxu1 %v16279_v26  ;;  %3646 = vmatpush1.bf16.msra.mxu0 %v13785_v46  ;;  %v13874_v46 = vld [vmem:[#allocation10 + $0x56c] ss:$48 sps:$4 sm:$0xff]  }
 0x409   : > { %3677 = vmatprep.mubr.bf16.mxu0 %v16265_v11  ;;  %3728 = vmatpush1.bf16.msra.mxu1 %v13788_v49  ;;  %v13869_v49 = vld [vmem:[#allocation10 + $0x560] ss:$48 sps:$4 sm:$0xff]  }
 0x40a   : > { %3759 = vmatprep.mubr.bf16.mxu1 %v16265_v11  ;;  %3647 = vmatprep.subr.bf16.mxu0 %v13793_v52  ;;  %v13809_v11 = vld [vmem:[#allocation10 + $0x1a0] ss:$48 sps:$4 sm:$0xff]   ;;  %v13872_v52 = vld [vmem:[#allocation10 + $0x568] ss:$48 sps:$4 sm:$0xff]  }
 0x40b   : > { %3729 = vmatprep.subr.bf16.mxu1 %v13796_v53  ;;  %v13877_v53 = vld [vmem:[#allocation10 + $0x5c4] ss:$48 sps:$4 sm:$0xff]  }
 0x40c   : > { %3648 = vmatpush1.bf16.msra.mxu0 %v13791_v54  ;;  %v13880_v54 = vld [vmem:[#allocation10 + $0x5cc] ss:$48 sps:$4 sm:$0xff]  }
 0x40d   : > { %3730 = vmatpush1.bf16.msra.mxu1 %v13794_v55  ;;  %3649 = vmatprep.subr.bf16.mxu0 %v13799_v56  ;;  %v13875_v55 = vld [vmem:[#allocation10 + $0x5c0] ss:$48 sps:$4 sm:$0xff]   ;;  %v13878_v56 = vld [vmem:[#allocation10 + $0x5c8] ss:$48 sps:$4 sm:$0xff]  }
 0x40e   : > { %3731 = vmatprep.subr.bf16.mxu1 %v13802_v57  ;;  %v13883_v57 = vld [vmem:[#allocation10 + $0x624] ss:$48 sps:$4 sm:$0xff]  }
 0x410   : > { %3650 = vmatpush1.bf16.msra.mxu0 %v13797_v58  ;;  %v13886_v58 = vld [vmem:[#allocation10 + $0x62c] ss:$48 sps:$4 sm:$0xff]  }
 0x411   : > { %3732 = vmatpush1.bf16.msra.mxu1 %v13800_v59  ;;  %3651 = vmatprep.subr.bf16.mxu0 %v13805_v60  ;;  %v13881_v59 = vld [vmem:[#allocation10 + $0x620] ss:$48 sps:$4 sm:$0xff]   ;;  %v13884_v60 = vld [vmem:[#allocation10 + $0x628] ss:$48 sps:$4 sm:$0xff]  }
 0x412   : > { %3733 = vmatprep.subr.bf16.mxu1 %v13808_v61  ;;  %v13889_v61 = vld [vmem:[#allocation10 + $0x684] ss:$48 sps:$4 sm:$0xff]  }
 0x414   : > { %3652 = vmatpush1.bf16.msra.mxu0 %v13803_v62  ;;  %v13892_v62 = vld [vmem:[#allocation10 + $0x68c] ss:$48 sps:$4 sm:$0xff]  }
 0x415   : > { %3734 = vmatpush1.bf16.msra.mxu1 %v13806_v63  ;;  %3653 = vmatprep.subr.bf16.mxu0 %v13811_v0  ;;  %v13887_v63 = vld [vmem:[#allocation10 + $0x680] ss:$48 sps:$4 sm:$0xff]   ;;  %v13890_v0 = vld [vmem:[#allocation10 + $0x688] ss:$48 sps:$4 sm:$0xff]  }
 0x416   : > { %3735 = vmatprep.subr.bf16.mxu1 %v13814_v1  ;;  %v13895_v1 = vld [vmem:[#allocation10 + $0x6e4] ss:$48 sps:$4 sm:$0xff]  }
 0x418   : > { %3654 = vmatpush1.bf16.msra.mxu0 %v13809_v11  ;;  %v13898_v11 = vld [vmem:[#allocation10 + $0x6ec] ss:$48 sps:$4 sm:$0xff]  }
 0x419   : > { %3736 = vmatpush1.bf16.msra.mxu1 %v13812_v2  ;;  %3655 = vmatprep.subr.bf16.mxu0 %v13817_v3  ;;  %v13893_v2 = vld [vmem:[#allocation10 + $0x6e0] ss:$48 sps:$4 sm:$0xff]   ;;  %v13896_v3 = vld [vmem:[#allocation10 + $0x6e8] ss:$48 sps:$4 sm:$0xff]  }
 0x41a   : > { %3737 = vmatprep.subr.bf16.mxu1 %v13820_v4  ;;  %v13901_v4 = vld [vmem:[#allocation10 + $0x744] ss:$48 sps:$4 sm:$0xff]  }
 0x41c   : > { %3656 = vmatpush1.bf16.msra.mxu0 %v13815_v5  ;;  %v13899_v5 = vld [vmem:[#allocation10 + $0x740] ss:$48 sps:$4 sm:$0xff]  }
 0x41d   : > { %3738 = vmatpush1.bf16.msra.mxu1 %v13818_v6  ;;  %3657 = vmatprep.subr.bf16.mxu0 %v13823_v44  ;;  %v13902_v6 = vld [vmem:[#allocation10 + $0x748] ss:$48 sps:$4 sm:$0xff]   ;;  %v13907_v44 = vld [vmem:[#allocation10 + $0x7a4] ss:$48 sps:$4 sm:$0xff]  }
 0x41e   : > { %3739 = vmatprep.subr.bf16.mxu1 %v13826_v45  ;;  %v13910_v45 = vld [vmem:[#allocation10 + $0x7ac] ss:$48 sps:$4 sm:$0xff]  }
 0x420   : > { %3658 = vmatpush1.bf16.msra.mxu0 %v13821_v8  ;;  %v1077_v8 = vld [vmem:[#allocation11] sm:$0xf] }
 0x421   : > { %3740 = vmatpush1.bf16.msra.mxu1 %v13824_v9  ;;  %3659 = vmatprep.subr.bf16.mxu0 %v13829_v10  ;;  %v13908_v9 = vld [vmem:[#allocation10 + $0x7a8] ss:$48 sps:$4 sm:$0xff]   ;;  %v13913_v10 = vld [vmem:[#allocation10 + $0x804] ss:$48 sps:$4 sm:$0xff]  }
 0x422   : > { %3741 = vmatprep.subr.bf16.mxu1 %v13832_v12  ;;  %v13916_v12 = vld [vmem:[#allocation10 + $0x80c] ss:$48 sps:$4 sm:$0xff]  }
 0x424   : > { %3660 = vmatpush1.bf16.msra.mxu0 %v13827_v14  ;;  %v1082_v14 = vrot.slane %v1077_v8, %v16241_v47 }
 0x425   : > { %3742 = vmatpush1.bf16.msra.mxu1 %v13830_v15  ;;  %3661 = vmatprep.subr.bf16.mxu0 %v13835_v16  ;;  %v1090_v15 = vrot.slane %v1077_v8, %v16244_v48  ;;  %v1086_v16 = vrot.slane %v1077_v8, %v16247_v50 }
 0x426   : > { %3743 = vmatprep.subr.bf16.mxu1 %v13838_v18  ;;  %v1094_v18 = vrot.slane %v1077_v8, %v16250_v51  ;;  %v13968_v8 = vld [vmem:[#allocation10 + $0xb68] ss:$48 sps:$4 sm:$0xff]  }
 0x428   : > { %3662 = vmatpush1.bf16.msra.mxu0 %v13833_v19  ;;  %v13911_v19 = vld [vmem:[#allocation10 + $0x800] ss:$48 sps:$4 sm:$0xff]  }
 0x429   : > { %3744 = vmatpush1.bf16.msra.mxu1 %v13836_v20  ;;  %3663 = vmatprep.subr.bf16.mxu0 %v13841_v21  ;;  %v13914_v20 = vld [vmem:[#allocation10 + $0x808] ss:$48 sps:$4 sm:$0xff]   ;;  %v13919_v21 = vld [vmem:[#allocation10 + $0x864] ss:$48 sps:$4 sm:$0xff]  }
 0x42a   : > { %3745 = vmatprep.subr.bf16.mxu1 %v13844_v22 }
 0x42c   : > { %3664 = vmatpush1.bf16.msra.mxu0 %v13839_v23 }
 0x42d   : > { %3746 = vmatpush1.bf16.msra.mxu1 %v13842_v24  ;;  %3665 = vmatprep.subr.bf16.mxu0 %v13847_v25  ;;  %v13922_v24 = vld [vmem:[#allocation10 + $0x86c] ss:$48 sps:$4 sm:$0xff]  }
 0x42e   : > { %3747 = vmatprep.subr.bf16.mxu1 %v13850_v27 }
 0x430   : > { %3666 = vmatpush1.bf16.msra.mxu0 %v13845_v28 }
 0x431   : > { %3748 = vmatpush1.bf16.msra.mxu1 %v13848_v29  ;;  %3667 = vmatprep.subr.bf16.mxu0 %v13853_v30 }
 0x432   : > { %3749 = vmatprep.subr.bf16.mxu1 %v13856_v7 }
 0x434   : > { %3668 = vmatpush1.bf16.msra.mxu0 %v13851_v31 }
 0x435   : > { %3750 = vmatpush1.bf16.msra.mxu1 %v13854_v32  ;;  %3669 = vmatprep.subr.bf16.mxu0 %v13859_v33  ;;  %v13917_v33 = vld [vmem:[#allocation10 + $0x860] ss:$48 sps:$4 sm:$0xff]  }
 0x436   : > { %3751 = vmatprep.subr.bf16.mxu1 %v13862_v34 }
 0x438   : > { %3670 = vmatpush1.bf16.msra.mxu0 %v13857_v35 }
 0x439   : > { %3752 = vmatpush1.bf16.msra.mxu1 %v13860_v36  ;;  %3671 = vmatprep.subr.bf16.mxu0 %v13865_v37  ;;  %v13920_v36 = vld [vmem:[#allocation10 + $0x868] ss:$48 sps:$4 sm:$0xff]   ;;  %v13925_v37 = vld [vmem:[#allocation10 + $0x8c4] ss:$48 sps:$4 sm:$0xff]  }
 0x43a   : > { %3753 = vmatprep.subr.bf16.mxu1 %v13868_v38  ;;  %v13928_v38 = vld [vmem:[#allocation10 + $0x8cc] ss:$48 sps:$4 sm:$0xff]  }
 0x43c   : > { %3672 = vmatpush1.bf16.msra.mxu0 %v13863_v41  ;;  %v13923_v41 = vld [vmem:[#allocation10 + $0x8c0] ss:$48 sps:$4 sm:$0xff]  }
 0x43d   : > { %3754 = vmatpush1.bf16.msra.mxu1 %v13866_v42  ;;  %3673 = vmatprep.subr.bf16.mxu0 %v13871_v43  ;;  %v13926_v42 = vld [vmem:[#allocation10 + $0x8c8] ss:$48 sps:$4 sm:$0xff]   ;;  %v13931_v43 = vld [vmem:[#allocation10 + $0x924] ss:$48 sps:$4 sm:$0xff]  }
 0x43e   : > { %3755 = vmatprep.subr.bf16.mxu1 %v13874_v46  ;;  %v13934_v46 = vld [vmem:[#allocation10 + $0x92c] ss:$48 sps:$4 sm:$0xff]  }
 0x440   : > { %3674 = vmatpush1.bf16.msra.mxu0 %v13869_v49  ;;  %v13929_v49 = vld [vmem:[#allocation10 + $0x920] ss:$48 sps:$4 sm:$0xff]  }
 0x441   : > { %3756 = vmatpush1.bf16.msra.mxu1 %v13872_v52  ;;  %3675 = vmatprep.subr.bf16.mxu0 %v13877_v53  ;;  %v13932_v52 = vld [vmem:[#allocation10 + $0x928] ss:$48 sps:$4 sm:$0xff]   ;;  %v13937_v53 = vld [vmem:[#allocation10 + $0x984] ss:$48 sps:$4 sm:$0xff]  }
 0x442   : > { %3757 = vmatprep.subr.bf16.mxu1 %v13880_v54  ;;  %v13940_v54 = vld [vmem:[#allocation10 + $0x98c] ss:$48 sps:$4 sm:$0xff]  }
 0x444   : > { %3676 = vmatpush1.bf16.msra.mxu0 %v13875_v55  ;;  %v13935_v55 = vld [vmem:[#allocation10 + $0x980] ss:$48 sps:$4 sm:$0xff]  }
 0x445   : > { %3758 = vmatpush1.bf16.msra.mxu1 %v13878_v56  ;;  %3686 = vmatprep.subr.bf16.mxu0 %v13883_v57  ;;  %v13938_v56 = vld [vmem:[#allocation10 + $0x988] ss:$48 sps:$4 sm:$0xff]   ;;  %v13943_v57 = vld [vmem:[#allocation10 + $0x9e4] ss:$48 sps:$4 sm:$0xff]  }
 0x446   : > { %3768 = vmatprep.subr.bf16.mxu1 %v13886_v58  ;;  %v13946_v58 = vld [vmem:[#allocation10 + $0x9ec] ss:$48 sps:$4 sm:$0xff]  }
 0x447   : > { %3678 = vmatmul.mubr.bf16.vlgmr.msra.gmra.mrb[8].mxu0 %v16267_v13 }
 0x448   : > { %3760 = vmatmul.mubr.bf16.vlgmr.msra.gmra.mrb[8].mxu1 %v16267_v13  ;;  %3687 = vmatpush1.bf16.msra.mxu0 %v13881_v59  ;;  %v13904_v13 = vld [vmem:[#allocation10 + $0x74c] ss:$48 sps:$4 sm:$0xff]   ;;  %v13941_v59 = vld [vmem:[#allocation10 + $0x9e0] ss:$48 sps:$4 sm:$0xff]  }
 0x449   : > { %3718 = vmatprep.mubr.bf16.mxu0 %v16273_v17  ;;  %3769 = vmatpush1.bf16.msra.mxu1 %v13884_v60  ;;  %v13944_v60 = vld [vmem:[#allocation10 + $0x9e8] ss:$48 sps:$4 sm:$0xff]  }
 0x44a   : > { %3800 = vmatprep.mubr.bf16.mxu1 %v16273_v17  ;;  %3688 = vmatprep.subr.bf16.mxu0 %v13889_v61  ;;  %v13905_v17 = vld [vmem:[#allocation10 + $0x7a0] ss:$48 sps:$4 sm:$0xff]   ;;  %v13949_v61 = vld [vmem:[#allocation10 + $0xa44] ss:$48 sps:$4 sm:$0xff]  }
 0x44b   : > { %3770 = vmatprep.subr.bf16.mxu1 %v13892_v62  ;;  %v13952_v62 = vld [vmem:[#allocation10 + $0xa4c] ss:$48 sps:$4 sm:$0xff]  }
 0x44c   : > { %3689 = vmatpush1.bf16.msra.mxu0 %v13887_v63  ;;  %v13947_v63 = vld [vmem:[#allocation10 + $0xa40] ss:$48 sps:$4 sm:$0xff]  }
 0x44d   : > { %3771 = vmatpush1.bf16.msra.mxu1 %v13890_v0  ;;  %3690 = vmatprep.subr.bf16.mxu0 %v13895_v1  ;;  %v13950_v0 = vld [vmem:[#allocation10 + $0xa48] ss:$48 sps:$4 sm:$0xff]   ;;  %v13955_v1 = vld [vmem:[#allocation10 + $0xaa4] ss:$48 sps:$4 sm:$0xff]  }
 0x44e   : > { %3772 = vmatprep.subr.bf16.mxu1 %v13898_v11  ;;  %v13958_v11 = vld [vmem:[#allocation10 + $0xaac] ss:$48 sps:$4 sm:$0xff]  }
 0x450   : > { %3691 = vmatpush1.bf16.msra.mxu0 %v13893_v2  ;;  %v13953_v2 = vld [vmem:[#allocation10 + $0xaa0] ss:$48 sps:$4 sm:$0xff]  }
 0x451   : > { %3773 = vmatpush1.bf16.msra.mxu1 %v13896_v3  ;;  %3692 = vmatprep.subr.bf16.mxu0 %v13901_v4  ;;  %v13956_v3 = vld [vmem:[#allocation10 + $0xaa8] ss:$48 sps:$4 sm:$0xff]   ;;  %v13961_v4 = vld [vmem:[#allocation10 + $0xb04] ss:$48 sps:$4 sm:$0xff]  }
 0x452   : > { %3774 = vmatprep.subr.bf16.mxu1 %v13904_v13  ;;  %v13964_v13 = vld [vmem:[#allocation10 + $0xb0c] ss:$48 sps:$4 sm:$0xff]  }
 0x454   : > { %3693 = vmatpush1.bf16.msra.mxu0 %v13899_v5  ;;  %v13959_v5 = vld [vmem:[#allocation10 + $0xb00] ss:$48 sps:$4 sm:$0xff]  }
 0x455   : > { %3775 = vmatpush1.bf16.msra.mxu1 %v13902_v6  ;;  %3694 = vmatprep.subr.bf16.mxu0 %v13907_v44  ;;  %v13962_v6 = vld [vmem:[#allocation10 + $0xb08] ss:$48 sps:$4 sm:$0xff]   ;;  %v13967_v44 = vld [vmem:[#allocation10 + $0xb64] ss:$48 sps:$4 sm:$0xff]  }
 0x456   : > { %3776 = vmatprep.subr.bf16.mxu1 %v13910_v45  ;;  %v13970_v45 = vld [vmem:[#allocation10 + $0xb6c] ss:$48 sps:$4 sm:$0xff]  }
 0x458   : > { %3695 = vmatpush1.bf16.msra.mxu0 %v13905_v17  ;;  %v13965_v17 = vld [vmem:[#allocation10 + $0xb60] ss:$48 sps:$4 sm:$0xff]  }
 0x459   : > { %3777 = vmatpush1.bf16.msra.mxu1 %v13908_v9  ;;  %3696 = vmatprep.subr.bf16.mxu0 %v13913_v10  ;;  %v13973_v9 = vld [vmem:[#allocation10 + $0xbc4] ss:$48 sps:$4 sm:$0xff]   ;;  %v13976_v10 = vld [vmem:[#allocation10 + $0xbcc] ss:$48 sps:$4 sm:$0xff]  }
 0x45a   : > { %v1814_v22 = vpop.f32.mrb[0].mxu0  ;;  %v1896_v23 = vpop.f32.mrb[0].mxu1  ;;  %3778 = vmatprep.subr.bf16.mxu1 %v13916_v12  ;;  %v13971_v12 = vld [vmem:[#allocation10 + $0xbc0] ss:$48 sps:$4 sm:$0xff]  }
 0x45b   : > { %v16301_v25 = vadd.f32 %v1814_v22, %v1082_v14  ;;  %v16303_v27 = vadd.f32 %v1896_v23, %v1090_v15  ;;  %v1816_v28 = vpop.f32.mrb[1].mxu0  ;;  %v1898_v29 = vpop.f32.mrb[1].mxu1  ;;  %v13974_v14 = vld [vmem:[#allocation10 + $0xbc8] ss:$48 sps:$4 sm:$0xff]   ;;  %v15620_v15 = vmov 0.0  }
 0x45c   : > { %v16305_v30 = vadd.f32 %v1816_v28, %v1086_v16  ;;  %v16307_v7 = vadd.f32 %v1898_v29, %v1094_v18  ;;  %v1818_v31 = vpop.f32.mrb[2].mxu0  ;;  %v1900_v32 = vpop.f32.mrb[2].mxu1  ;;  %3697 = vmatpush1.bf16.msra.mxu0 %v13911_v19  ;;  %v16319_v16 = vld [vmem:[#allocation11 + $0x4] sm:$0xff] }
 0x45d   : > { %3779 = vmatpush1.bf16.msra.mxu1 %v13914_v20  ;;  %v1819_v34 = vpop.f32.mrb[3].mxu0  ;;  %v1901_v35 = vpop.f32.mrb[3].mxu1  ;;  %3698 = vmatprep.subr.bf16.mxu0 %v13919_v21  ;;  %v2164_v18 = vrot.slane %v16319_v16, %v16241_v47  ;;  %v2168_v19 = vrot.slane %v16319_v16, %v16247_v50  ;;  %v2176_v20 = vrot.slane %v16319_v16, %v16250_v51 }
 0x45e   : > { %3814 = vrot.lane.b32.xlu0 %v16305_v30, %s15619_s5  ;;  %3780 = vmatprep.subr.bf16.mxu1 %v13922_v24 }
 0x460   : > { %3699 = vmatpush1.bf16.msra.mxu0 %v13917_v33 }
 0x461   : > { %3781 = vmatpush1.bf16.msra.mxu1 %v13920_v36  ;;  %3700 = vmatprep.subr.bf16.mxu0 %v13925_v37  ;;  %v2172_v37 = vrot.slane %v16319_v16, %v16244_v48 }
 0x462   : > { %3782 = vmatprep.subr.bf16.mxu1 %v13928_v38 }
 0x464   : > { %3701 = vmatpush1.bf16.msra.mxu0 %v13923_v41 }
 0x465   : > { %3783 = vmatpush1.bf16.msra.mxu1 %v13926_v42  ;;  %3702 = vmatprep.subr.bf16.mxu0 %v13931_v43 }
 0x466   : > { %3784 = vmatprep.subr.bf16.mxu1 %v13934_v46  ;;  %v3857_v46 = vpack.c.bf16 %v16301_v25, %v16301_v25 }
 0x468   : > { %3703 = vmatpush1.bf16.msra.mxu0 %v13929_v49 }
 0x469   : > { %3785 = vmatpush1.bf16.msra.mxu1 %v13932_v52  ;;  %3704 = vmatprep.subr.bf16.mxu0 %v13937_v53  ;;  %v3859_v53 = vpack.c.bf16 %v16305_v30, %v16305_v30 }
 0x46a   : > { %3786 = vmatprep.subr.bf16.mxu1 %v13940_v54 }
 0x46c   : > { %3705 = vmatpush1.bf16.msra.mxu0 %v13935_v55  ;;  %v3861_v55 = vpack.c.bf16 %v16303_v27, %v16303_v27 }
 0x46d   : > { %3787 = vmatpush1.bf16.msra.mxu1 %v13938_v56  ;;  %3706 = vmatprep.subr.bf16.mxu0 %v13943_v57  ;;  %v3863_v56 = vpack.c.bf16 %v16307_v7, %v16307_v7 }
 0x46e   : > { %3788 = vmatprep.subr.bf16.mxu1 %v13946_v58 }
 0x470   : > { %3707 = vmatpush1.bf16.msra.mxu0 %v13941_v59 }
 0x471   : > { %3789 = vmatpush1.bf16.msra.mxu1 %v13944_v60  ;;  %3708 = vmatprep.subr.bf16.mxu0 %v13949_v61  ;;  %v2179_v60 = vsub.s32 4, %v16220_v39 }
 0x472   : > { %3790 = vmatprep.subr.bf16.mxu1 %v13952_v62 }
 0x474   : > { %3709 = vmatpush1.bf16.msra.mxu0 %v13947_v63  ;;  %v2183_v63 = vsub.s32 5, %v16220_v39 }
 0x475   : > { %3791 = vmatpush1.bf16.msra.mxu1 %v13950_v0  ;;  %3710 = vmatprep.subr.bf16.mxu0 %v13955_v1  ;;  %v2180_v0 = vrot.slane %v16319_v16, %v2179_v60 }
 0x476   : > { %3792 = vmatprep.subr.bf16.mxu1 %v13958_v11  ;;  %v2184_v11 = vrot.slane %v16319_v16, %v2183_v63 }
 0x478   : > { %3711 = vmatpush1.bf16.msra.mxu0 %v13953_v2 }
 0x479   : > { %3793 = vmatpush1.bf16.msra.mxu1 %v13956_v3  ;;  %3712 = vmatprep.subr.bf16.mxu0 %v13961_v4 }
 0x47a   : > { %3794 = vmatprep.subr.bf16.mxu1 %v13964_v13 }
 0x47c   : > { %3713 = vmatpush1.bf16.msra.mxu0 %v13959_v5 }
 0x47d   : > { %3795 = vmatpush1.bf16.msra.mxu1 %v13962_v6  ;;  %3714 = vmatprep.subr.bf16.mxu0 %v13967_v44 }
 0x47e   : > { %3796 = vmatprep.subr.bf16.mxu1 %v13970_v45 }
 0x480   : > { %3715 = vmatpush1.bf16.msra.mxu0 %v13965_v17 }
 0x481   : > { %3797 = vmatpush1.bf16.msra.mxu1 %v13968_v8  ;;  %3716 = vmatprep.subr.bf16.mxu0 %v13973_v9 }
 0x482   : > { %3798 = vmatprep.subr.bf16.mxu1 %v13976_v10 }
 0x484   : > { %3717 = vmatpush1.bf16.msra.mxu0 %v13971_v12 }
 0x485   : > { %3799 = vmatpush1.bf16.msra.mxu1 %v13974_v14  ;;  %12868 = vmatprep.subr.bf16.mxu0 %v15620_v15 }
 0x486   : > { %12874 = vmatprep.subr.bf16.mxu1 %v15620_v15 }
 0x487   : > { %3719 = vmatmul.mubr.bf16.vlgmr.msra.gmra.mrb[8].mxu0 %v16279_v26 }
 0x488   : > { %3801 = vmatmul.mubr.bf16.vlgmr.msra.gmra.mrb[8].mxu1 %v16279_v26  ;;  %12870 = vmatprep.mubr.msk.bf16.mxu0 %vm15621_vm3, %v15620_v15 }
 0x489   : > { %12876 = vmatprep.mubr.msk.bf16.mxu1 %vm15621_vm3, %v15620_v15 }
 0x4d0   : > { %v3815_v44 = vpop.permute.xlu0 %3814 }
 0x4da   : > { %v3556_v21 = vpop.f32.mrb[4].mxu0 }
 0x4db   : > { %v13064_v26 = vadd.f32 %v3556_v21, %v2164_v18  ;;  %v3638_v22 = vpop.f32.mrb[4].mxu1  ;;  %v3558_v23 = vpop.f32.mrb[5].mxu0 }
 0x4dc   : > { %v13065_v24 = vadd.f32 %v3558_v23, %v2168_v19  ;;  %v3640_v28 = vpop.f32.mrb[5].mxu1  ;;  %v3560_v29 = vpop.f32.mrb[6].mxu0  ;;  %v13066_v42 = vadd.f32 %v3638_v22, %v2172_v37 }
 0x4dd   : > { %v3865_v31 = vpack.c.bf16 %v13064_v26, %v13064_v26  ;;  %v13067_v32 = vadd.f32 %v3640_v28, %v2176_v20  ;;  %v3642_v33 = vpop.f32.mrb[6].mxu1  ;;  %v3561_v34 = vpop.f32.mrb[7].mxu0  ;;  %3826 = vrot.lane.b32.xlu1 %v13064_v26, %s15619_s5  ;;  %v3860_v26 = vpack.c.bf16 %v3815_v44, %v3815_v44 }
 0x4de   : > { %v13349_v35 = vpack.i.bf16 %v13065_v24, %v16301_v25  ;;  %v3643_v36 = vpop.f32.mrb[7].mxu1  ;;  %v3867_v43 = vpack.c.bf16 %v13065_v24, %v13065_v24  ;;  %v3869_v52 = vpack.c.bf16 %v13066_v42, %v13066_v42 }
 0x4df   : > { %v13354_v38 = vpack.i.bf16 %v13067_v32, %v16303_v27  ;;  %v3878_v41 = vsel %vm3873_vm4, %v3865_v31, 0  ;;  %v3871_v54 = vpack.c.bf16 %v13067_v32, %v13067_v32 }
 0x4e0   : > { %12869 = vmatpush3.bf16.xpose.msra.mxu0 %v3878_v41  ;;  %v3970_v49 = vsel %vm3873_vm4, %v3867_v43, 0  ;;  %v4062_v25 = vsel %vm3873_vm4, %v3869_v52, 0 }
 0x4e1   : > { %13350 = vrot.lane.b32.xlu1 %v13349_v35, %s15619_s5  ;;  %12880 = vmatprep.subr.bf16.mxu0 %v15620_v15  ;;  %v4154_v30 = vsel %vm3873_vm4, %v3871_v54, 0 }
 0x4e5   : > { %3834 = vrot.lane.b32.xlu1 %v13066_v42, %s15619_s5 }
 0x4e7   : > { %12871 = vmatmul.mubr.msk.bf16.vlgmr.msra.gmra.mrb[12].mxu0 %vm3873_vm4, %v3857_v46 }
 0x4e8   : > { %12881 = vmatpush3.bf16.xpose.msra.mxu0 %v3970_v49  ;;  %12882 = vmatprep.mubr.msk.bf16.mxu0 %vm15621_vm3, %v15620_v15 }
 0x4e9   : > { %13355 = vrot.lane.b32.xlu1 %v13354_v38, %s15619_s5  ;;  %12892 = vmatprep.subr.bf16.mxu0 %v15620_v15 }
 0x4ed   : > { %3822 = vrot.lane.b32.xlu1 %v16307_v7, %s15619_s5 }
 0x4ef   : > { %12883 = vmatmul.mubr.msk.bf16.vlgmr.msra.gmra.mrb[16].mxu0 %vm3873_vm4, %v3859_v53 }
 0x4f0   : > { %12893 = vmatpush3.bf16.xpose.msra.mxu0 %v4062_v25  ;;  %12894 = vmatprep.mubr.msk.bf16.mxu0 %vm15621_vm3, %v15620_v15 }
 0x4f1   : > { %12904 = vmatprep.subr.bf16.mxu0 %v15620_v15 }
 0x4f7   : > { %12895 = vmatmul.mubr.msk.bf16.vlgmr.msra.gmra.mrb[20].mxu0 %vm3873_vm4, %v3861_v55 }
 0x4f8   : > { %12905 = vmatpush3.bf16.xpose.msra.mxu0 %v4154_v30  ;;  %12906 = vmatprep.mubr.msk.bf16.mxu0 %vm15621_vm3, %v15620_v15 }
 0x4f9   : > { %12916 = vmatprep.subr.bf16.mxu0 %v15620_v15 }
 0x4ff   : > { %12907 = vmatmul.mubr.msk.bf16.vlgmr.msra.gmra.mrb[24].mxu0 %vm3873_vm4, %v3863_v56  ;;  %v938_v56 = vld [vmem:[%s17189_s22 + $0x4] sm:$0xf] }
 0x500   : > { %12918 = vmatprep.mubr.msk.bf16.mxu0 %vm15621_vm3, %v15620_v15 }
 0x54f   : > { %v3827_v57 = vpop.permute.xlu1 %3826 }
 0x550   : > { %v3866_v27 = vpack.c.bf16 %v3827_v57, %v3827_v57  ;;  %v937_v57 = vld [vmem:[%s17189_s22] sm:$0xf] }
 0x552   : > { %v3924_v58 = vsel %vm3873_vm4, %v3866_v27, 0  ;;  %v12022_v27 = vadd.f32 -1.0, %v938_v56 }
 0x553   : > { %12875 = vmatpush3.bf16.xpose.msra.mxu1 %v3924_v58  ;;  %v13351_v59 = vpop.permute.xlu1 %13350  ;;  %v12021_v58 = vadd.f32 -1.0, %v937_v57 }
 0x554   : > { %v13353_v61 = vunpack.i.h.bf16 %v13351_v59  ;;  %v13352_v62 = vunpack.i.l.bf16 %v13351_v59  ;;  %12886 = vmatprep.subr.bf16.mxu1 %v15620_v15  ;;  %v4259_v59 = vmul.f32 1e+09, %v12022_v27 }
 0x556   : > { %v3868_v7 = vpack.c.bf16 %v13353_v61, %v13353_v61  ;;  %v3858_v1 = vpack.c.bf16 %v13352_v62, %v13352_v62  ;;  %v940_v62 = vld [vmem:[%s17189_s22 + $0xc] sm:$0xf] }
 0x557   : > { %v3835_v2 = vpop.permute.xlu1 %3834  ;;  %v12024_v44 = vadd.f32 -1.0, %v940_v62 }
 0x558   : > { %v4016_v4 = vsel %vm3873_vm4, %v3868_v7, 0  ;;  %v3870_v12 = vpack.c.bf16 %v3835_v2, %v3835_v2  ;;  %v939_v2 = vld [vmem:[%s17189_s22 + $0x8] sm:$0xf] }
 0x55a   : > { %v3720_v3 = vpop.f32.mrb[8].mxu0  ;;  %12877 = vmatmul.mubr.msk.bf16.vlgmr.msra.gmra.mrb[12].mxu1 %vm3873_vm4, %v3858_v1  ;;  %v4108_v22 = vsel %vm3873_vm4, %v3870_v12, 0  ;;  %v4261_v12 = vmul.f32 1e+09, %v12024_v44 }
 0x55b   : > { %v16377_v13 = vadd.f32 %v3720_v3, %v2180_v0  ;;  %v16379_v5 = vpop.f32.mrb[8].mxu1  ;;  %v3722_v6 = vpop.f32.mrb[9].mxu0  ;;  %12887 = vmatpush3.bf16.xpose.msra.mxu1 %v4016_v4  ;;  %12888 = vmatprep.mubr.msk.bf16.mxu1 %vm15621_vm3, %v15620_v15  ;;  %v4258_v0 = vmul.f32 1e+09, %v12021_v58 }
 0x55c   : > { %v16383_v45 = vadd.f32 %v3722_v6, %v2184_v11  ;;  %v16385_v17 = vpop.f32.mrb[9].mxu1  ;;  %12898 = vmatprep.subr.bf16.mxu1 %v15620_v15  ;;  %v3724_v9 = vpop.f32.mrb[10].mxu0 }
 0x55d   : > { %v4371_v8 = vpack.c.bf16 %v16377_v13, %v16377_v13  ;;  %v3806_v10 = vpop.f32.mrb[10].mxu1  ;;  %v3725_v18 = vpop.f32.mrb[11].mxu0 }
 0x55e   : > { %v13359_v14 = vpack.i.bf16 %v16383_v45, %v16377_v13  ;;  %v3807_v19 = vpop.f32.mrb[11].mxu1  ;;  %v13356_v20 = vpop.permute.xlu1 %13355 }
 0x55f   : > { %v4385_v21 = vsel %vm4383_vm5, %v4371_v8, 0  ;;  %v13358_v23 = vunpack.i.h.bf16 %v13356_v20  ;;  %v13357_v24 = vunpack.i.l.bf16 %v13356_v20  ;;  %v12023_v8 = vadd.f32 -1.0, %v939_v2  ;;  %v942_v19 = vld [vmem:[%s17189_s22 + $0x14] sm:$0xf] }
 0x560   : > { %12917 = vmatpush3.bf16.msra.mxu0 %v4385_v21 }
 0x561   : > { %12928 = vmatprep.subr.bf16.mxu0 %v15620_v15  ;;  %v3872_v28 = vpack.c.bf16 %v13358_v23, %v13358_v23  ;;  %v3862_v29 = vpack.c.bf16 %v13357_v24, %v13357_v24  ;;  %v4260_v21 = vmul.f32 1e+09, %v12023_v8 }
 0x562   : > { %12889 = vmatmul.mubr.msk.bf16.vlgmr.msra.gmra.mrb[16].mxu1 %vm3873_vm4, %v3860_v26  ;;  %v3823_v32 = vpop.permute.xlu1 %3822 }
 0x563   : > { %12899 = vmatpush3.bf16.xpose.msra.mxu1 %v4108_v22  ;;  %12900 = vmatprep.mubr.msk.bf16.mxu1 %vm15621_vm3, %v15620_v15  ;;  %v4200_v31 = vsel %vm3873_vm4, %v3872_v28, 0  ;;  %v3864_v33 = vpack.c.bf16 %v3823_v32, %v3823_v32 }
 0x564   : > { %12910 = vmatprep.subr.bf16.mxu1 %v15620_v15 }
 0x56a   : > { %12901 = vmatmul.mubr.msk.bf16.vlgmr.msra.gmra.mrb[20].mxu1 %vm3873_vm4, %v3862_v29 }
 0x56b   : > { %12911 = vmatpush3.bf16.xpose.msra.mxu1 %v4200_v31  ;;  %12912 = vmatprep.mubr.msk.bf16.mxu1 %vm15621_vm3, %v15620_v15  ;;  %v12026_v31 = vadd.f32 -1.0, %v942_v19 }
 0x56c   : > { %12922 = vmatprep.subr.bf16.mxu1 %v15620_v15 }
 0x572   : > { %12913 = vmatmul.mubr.msk.bf16.vlgmr.msra.gmra.mrb[24].mxu1 %vm3873_vm4, %v3864_v33 }
 0x573   : > { %12924 = vmatprep.mubr.msk.bf16.mxu1 %vm15621_vm3, %v15620_v15 }
 0x5ba   : > { %v3914_v34 = vpop.f32.mrb[12].mxu0 }
 0x5bb   : > { %v12872_v35 = vpop.f32.mrb[13].mxu0  ;;  %v4242_v7 = vmul.f32 %v3914_v34, %v937_v57  ;;  %v4263_v34 = vmul.f32 1e+09, %v12026_v31 }
 0x5bc   : > { %v3917_v36 = vpop.f32.mrb[14].mxu0 }
 0x5bd   : > { %v12873_v37 = vpop.f32.mrb[15].mxu0  ;;  %v4266_v10 = vadd.f32 %v4258_v0, %v4242_v7  ;;  %v944_v36 = vld [vmem:[%s17189_s22 + $0x1c] sm:$0xf] }
 0x5bf   : > { %v4275_v23 = vsel %vm4274_vm6, %v4266_v10, -inf }
 0x5c2   : > { %v4006_v38 = vpop.f32.mrb[16].mxu0 }
 0x5c3   : > { %v12884_v41 = vpop.f32.mrb[17].mxu0  ;;  %v4244_v20 = vmul.f32 %v4006_v38, %v939_v2 }
 0x5c4   : > { %v4009_v42 = vpop.f32.mrb[18].mxu0 }
 0x5c5   : > { %v12885_v43 = vpop.f32.mrb[19].mxu0  ;;  %v4268_v33 = vadd.f32 %v4260_v21, %v4244_v20 }
 0x5c7   : > { %v4281_v41 = vsel %vm4274_vm6, %v4268_v33, -inf }
 0x5ca   : > { %v16407_v46 = vpop.f32.mrb[20].mxu0 }
 0x5cb   : > { %v12896_v49 = vpop.f32.mrb[21].mxu0 }
 0x5cc   : > { %v4101_v52 = vpop.f32.mrb[22].mxu0 }
 0x5cd   : > { %v12897_v53 = vpop.f32.mrb[23].mxu0  ;;  %v12028_v52 = vadd.f32 -1.0, %v944_v36 }
 0x5d2   : > { %v16409_v25 = vpop.f32.mrb[24].mxu0 }
 0x5d3   : > { %v12908_v54 = vpop.f32.mrb[25].mxu0 }
 0x5d4   : > { %v4193_v55 = vpop.f32.mrb[26].mxu0  ;;  %v4265_v54 = vmul.f32 1e+09, %v12028_v52  ;;  %v2187_v52 = vsub.s32 6, %v16220_v39 }
 0x5d5   : > { %v12909_v30 = vpop.f32.mrb[27].mxu0 }
 0x5d6   : > { %v2188_v13 = vrot.slane %v16319_v16, %v2187_v52 }
 0x62d   : > { %v3960_v61 = vpop.f32.mrb[12].mxu1 }
 0x62e   : > { %v4243_v1 = vmul.f32 %v3960_v61, %v938_v56  ;;  %v12878_v11 = vpop.f32.mrb[13].mxu1 }
 0x62f   : > { %v3963_v3 = vpop.f32.mrb[14].mxu1 }
 0x630   : > { %v12879_v4 = vpop.f32.mrb[15].mxu1  ;;  %v4267_v6 = vadd.f32 %v4259_v59, %v4243_v1  ;;  %v941_v3 = vld [vmem:[%s17189_s22 + $0x10] sm:$0xf] }
 0x631   : > { %v12025_v8 = vadd.f32 -1.0, %v941_v3  ;;  %v4246_v20 = vmul.f32 %v16407_v46, %v941_v3 }
 0x632   : > { %v4278_v9 = vsel %vm4274_vm6, %v4267_v6, -inf }
 0x633   : > { %4279 = vmax.xlane.f32.xlu1 %v4278_v9  ;;  %v4262_v21 = vmul.f32 1e+09, %v12025_v8 }
 0x635   : > { %v4052_v18 = vpop.f32.mrb[16].mxu1 }
 0x636   : > { %v4245_v26 = vmul.f32 %v4052_v18, %v940_v62  ;;  %v12890_v22 = vpop.f32.mrb[17].mxu1 }
 0x637   : > { %v4055_v24 = vpop.f32.mrb[18].mxu1  ;;  %4276 = vmax.xlane.f32.xlu1 %v4275_v23 }
 0x638   : > { %v12891_v28 = vpop.f32.mrb[19].mxu1  ;;  %v4269_v29 = vadd.f32 %v4261_v12, %v4245_v26 }
 0x63a   : > { %v4284_v32 = vsel %vm4274_vm6, %v4269_v29, -inf }
 0x63b   : > { %4285 = vmax.xlane.f32.xlu0 %v4284_v32  ;;  %v4270_v32 = vadd.f32 %v4262_v21, %v4246_v20 }
 0x63d   : > { %v4144_v35 = vpop.f32.mrb[20].mxu1  ;;  %v4287_v46 = vsel %vm4274_vm6, %v4270_v32, -inf }
 0x63e   : > { %v4247_v37 = vmul.f32 %v4144_v35, %v942_v19  ;;  %v12902_v38 = vpop.f32.mrb[21].mxu1 }
 0x63f   : > { %v4147_v42 = vpop.f32.mrb[22].mxu1  ;;  %4282 = vmax.xlane.f32.xlu0 %v4281_v41 }
 0x640   : > { %v12903_v43 = vpop.f32.mrb[23].mxu1  ;;  %v4271_v49 = vadd.f32 %v4263_v34, %v4247_v37 }
 0x642   : > { %v4290_v53 = vsel %vm4274_vm6, %v4271_v49, -inf }
 0x643   : > { %4291 = vmax.xlane.f32.xlu1 %v4290_v53 }
 0x645   : > { %v4236_v55 = vpop.f32.mrb[24].mxu1 }
 0x646   : > { %v4249_v30 = vmul.f32 %v4236_v55, %v944_v36  ;;  %v12914_v56 = vpop.f32.mrb[25].mxu1 }
 0x647   : > { %v4239_v57 = vpop.f32.mrb[26].mxu1 }
 0x648   : > { %v12915_v27 = vpop.f32.mrb[27].mxu1  ;;  %v4273_v58 = vadd.f32 %v4265_v54, %v4249_v30  ;;  %v16475_v54 = vadd.f32 %v16379_v5, %v2188_v13 }
 0x64a   : > { %v4296_v59 = vsel %vm4274_vm6, %v4273_v58, -inf }
 0x64b   : > { %4297 = vmax.xlane.f32.xlu1 %v4296_v59 }
 0x6c0   : > { %v4280_v61 = vpop.xlane.xlu1 %4279 }
 0x6c1   : > { %v4300_v62 = vsub.f32 %v4267_v6, %v4280_v61  ;;  %v943_v6 = vld [vmem:[%s17189_s22 + $0x18] sm:$0xf] }
 0x6c2   : > { %v12027_v26 = vadd.f32 -1.0, %v943_v6  ;;  %v4248_v28 = vmul.f32 %v16409_v25, %v943_v6 }
 0x6c3   : > { %v4309_v7 = vmul.f32 1.442695, %v4300_v62 }
 0x6c4   : > { %v4277_v2 = vpop.xlane.xlu1 %4276 }
 0x6c5   : > { %14999 = vpow2.f32 %v4309_v7  ;;  %v4299_v44 = vsub.f32 %v4266_v10, %v4277_v2 }
 0x6c7   : > { %v4307_v18 = vmul.f32 1.442695, %v4299_v44 }
 0x6c8   : > { %v4286_v0 = vpop.xlane.xlu0 %4285 }
 0x6c9   : > { %v4302_v1 = vsub.f32 %v4269_v29, %v4286_v0  ;;  %v4264_v29 = vmul.f32 1e+09, %v12027_v26 }
 0x6cb   : > { %v4313_v11 = vmul.f32 1.442695, %v4302_v1  ;;  %v4272_v34 = vadd.f32 %v4264_v29, %v4248_v28  ;;  %v4373_v29 = vpack.c.bf16 %v16383_v45, %v16383_v45 }
 0x6cc   : > { %v4283_v9 = vpop.xlane.xlu0 %4282 }
 0x6cd   : > { %15001 = vpow2.f32 %v4313_v11  ;;  %v4301_v19 = vsub.f32 %v4268_v33, %v4283_v9  ;;  %v4293_v35 = vsel %vm4274_vm6, %v4272_v34, -inf }
 0x6ce   : > { %15003 = vpow2.f32 %v4307_v18 }
 0x6cf   : > { %v16438_v4 = vpop.eup %14999  ;;  %v4311_v10 = vmul.f32 1.442695, %v4301_v19 }
 0x6d0   : > { %v4326_v12 = vsel %vm4274_vm6, %v16438_v4, 0.0  ;;  %v4292_v22 = vpop.xlane.xlu1 %4291 }
 0x6d1   : > { %4327 = vadd.xlane.f32.xlu0 %v4326_v12  ;;  %v4304_v24 = vsub.f32 %v4271_v49, %v4292_v22  ;;  %15005 = vpow2.f32 %v4311_v10 }
 0x6d3   : > { %v4317_v33 = vmul.f32 1.442695, %v4304_v24 }
 0x6d5   : > { %15007 = vpow2.f32 %v4317_v33 }
 0x6d7   : > { %v16446_v23 = vpop.eup %15001 }
 0x6d8   : > { %v4332_v31 = vsel %vm4274_vm6, %v16446_v23, 0.0  ;;  %v16453_v36 = vpop.eup %15003  ;;  %v4298_v43 = vpop.xlane.xlu1 %4297 }
 0x6d9   : > { %4333 = vadd.xlane.f32.xlu1 %v4332_v31  ;;  %v4323_v25 = vsel %vm4274_vm6, %v16453_v36, 0.0  ;;  %v4306_v49 = vsub.f32 %v4273_v58, %v4298_v43  ;;  %v4375_v43 = vpack.c.bf16 %v16475_v54, %v16475_v54 }
 0x6db   : > { %v16457_v37 = vpop.eup %15005  ;;  %v4321_v53 = vmul.f32 1.442695, %v4306_v49 }
 0x6dc   : > { %v4329_v38 = vsel %vm4274_vm6, %v16457_v37, 0.0 }
 0x6dd   : > { %4288 = vmax.xlane.f32.xlu1 %v4287_v46  ;;  %15009 = vpow2.f32 %v4321_v53 }
 0x6df   : > { %v16465_v41 = vpop.eup %15007 }
 0x6e0   : > { %v4338_v42 = vsel %vm4274_vm6, %v16465_v41, 0.0 }
 0x6e1   : > { %4294 = vmax.xlane.f32.xlu1 %v4293_v35  ;;  %v4477_v35 = vsel %vm4383_vm5, %v4373_v29, 0  ;;  %v13985_v29 = vld [vmem:[#allocation13 + $0x24] ss:$16 sps:$4 sm:$0xff]  }
 0x6e5   : > { %4324 = vadd.xlane.f32.xlu1 %v4323_v25 }
 0x6e7   : > { %13360 = vrot.lane.b32.xlu0 %v13359_v14, %s15619_s5  ;;  %v2191_v14 = vsub.s32 7, %v16220_v39  ;;  %v16485_v56 = vpop.eup %15009 }
 0x6e8   : > { %v4344_v57 = vsel %vm4274_vm6, %v16485_v56, 0.0 }
 0x6e9   : > { %4330 = vadd.xlane.f32.xlu1 %v4329_v38  ;;  %v2192_v55 = vrot.slane %v16319_v16, %v2191_v14 }
 0x6eb   : > { %v16483_v30 = vadd.f32 %v16385_v17, %v2192_v55  ;;  %v4569_v55 = vsel %vm4383_vm5, %v4375_v43, 0  ;;  %v14052_v43 = vld [vmem:[#allocation13 + $0x188] ss:$16 sps:$4 sm:$0xff]  }
 0x6ed   : > { %4339 = vadd.xlane.f32.xlu1 %v4338_v42 }
 0x6fe   : > { %3850 = vrot.lane.b32.xlu1 %v16475_v54, %s15619_s5 }
 0x702   : > { %3854 = vrot.lane.b32.xlu1 %v16483_v30, %s15619_s5 }
 0x706   : > { %4345 = vadd.xlane.f32.xlu0 %v4344_v57 }
 0x75e   : > { %v4328_v5 = vpop.xlane.xlu0 %4327 }
 0x75f   : > { %15011 = vrcp.f32 %v4328_v5  ;;  %v13980_v5 = vld [vmem:[#allocation13 + $0x8] ss:$16 sps:$4 sm:$0xff]  }
 0x762   : > { %v13361_v27 = vpop.permute.xlu0 %13360 }
 0x763   : > { %v13362_v58 = vunpack.i.l.bf16 %v13361_v27  ;;  %v13363_v59 = vunpack.i.h.bf16 %v13361_v27  ;;  %v13982_v27 = vld [vmem:[#allocation13 + $0xc] ss:$16 sps:$4 sm:$0xff]  }
 0x765   : > { %v4372_v16 = vpack.c.bf16 %v13362_v58, %v13362_v58  ;;  %v4374_v0 = vpack.c.bf16 %v13363_v59, %v13363_v59  ;;  %v13988_v58 = vld [vmem:[#allocation13 + $0x2c] ss:$16 sps:$4 sm:$0xff]  }
 0x766   : > { %v4334_v61 = vpop.xlane.xlu1 %4333  ;;  %v13994_v59 = vld [vmem:[#allocation13 + $0x4c] ss:$16 sps:$4 sm:$0xff]  }
 0x767   : > { %15013 = vrcp.f32 %v4334_v61  ;;  %v4431_v17 = vsel %vm4383_vm5, %v4372_v16, 0  ;;  %v4523_v44 = vsel %vm4383_vm5, %v4374_v0, 0  ;;  %v13986_v16 = vld [vmem:[#allocation13 + $0x28] ss:$16 sps:$4 sm:$0xff]  }
 0x768   : > { %12923 = vmatpush3.bf16.msra.mxu1 %v4431_v17  ;;  %v13992_v61 = vld [vmem:[#allocation13 + $0x48] ss:$16 sps:$4 sm:$0xff]   ;;  %v14000_v17 = vld [vmem:[#allocation13 + $0x6c] ss:$16 sps:$4 sm:$0xff]  }
 0x769   : > { %v15012_v62 = vpop.eup %15011  ;;  %12934 = vmatprep.subr.bf16.mxu1 %v15620_v15  ;;  %v14004_v0 = vld [vmem:[#allocation13 + $0x88] ss:$16 sps:$4 sm:$0xff]  }
 0x76a   : > { %v4356_v7 = vmul.f32 %v15012_v62, %v16438_v4  ;;  %v4289_v1 = vpop.xlane.xlu1 %4288  ;;  %v13998_v62 = vld [vmem:[#allocation13 + $0x68] ss:$16 sps:$4 sm:$0xff]  }
 0x76b   : > { %v4303_v11 = vsub.f32 %v4270_v32, %v4289_v1  ;;  %v14012_v1 = vld [vmem:[#allocation13 + $0xac] ss:$16 sps:$4 sm:$0xff]  }
 0x76c   : > { %v4364_v2 = vpack.c.bf16 %v4356_v7, %v4356_v7  ;;  %v14006_v7 = vld [vmem:[#allocation13 + $0x8c] ss:$16 sps:$4 sm:$0xff]  }
 0x76d   : > { %v4315_v3 = vmul.f32 1.442695, %v4303_v11 }
 0x76e   : > { %12925 = vmatmul.mubr.msk.bf16.vlgmr.msra.gmra.mrb[28].mxu1 %vm4379_vm7, %v4364_v2  ;;  %v4295_v8 = vpop.xlane.xlu1 %4294  ;;  %v14010_v2 = vld [vmem:[#allocation13 + $0xa8] ss:$16 sps:$4 sm:$0xff]  }
 0x76f   : > { %15015 = vpow2.f32 %v4315_v3  ;;  %12935 = vmatpush3.bf16.msra.mxu1 %v4523_v44  ;;  %v4305_v9 = vsub.f32 %v4272_v34, %v4295_v8  ;;  %12936 = vmatprep.mubr.msk.bf16.mxu1 %vm15621_vm3, %v15620_v15  ;;  %v14018_v3 = vld [vmem:[#allocation13 + $0xcc] ss:$16 sps:$4 sm:$0xff]   ;;  %v14016_v44 = vld [vmem:[#allocation13 + $0xc8] ss:$16 sps:$4 sm:$0xff]  }
 0x770   : > { %12946 = vmatprep.subr.bf16.mxu1 %v15620_v15  ;;  %v14024_v8 = vld [vmem:[#allocation13 + $0xec] ss:$16 sps:$4 sm:$0xff]  }
 0x771   : > { %v15014_v4 = vpop.eup %15013  ;;  %v4319_v12 = vmul.f32 1.442695, %v4305_v9 }
 0x772   : > { %v4358_v6 = vmul.f32 %v15014_v4, %v16446_v23  ;;  %v4325_v18 = vpop.xlane.xlu1 %4324  ;;  %v4377_v4 = vpack.c.bf16 %v16483_v30, %v16483_v30  ;;  %v14028_v30 = vld [vmem:[#allocation13 + $0x108] ss:$16 sps:$4 sm:$0xff]  }
 0x773   : > { %15017 = vpow2.f32 %v4319_v12 }
 0x774   : > { %15019 = vrcp.f32 %v4325_v18  ;;  %v4366_v19 = vpack.c.bf16 %v4358_v6, %v4358_v6  ;;  %v13979_v18 = vld [vmem:[#allocation13 + $0x4] ss:$16 sps:$4 sm:$0xff]  }
 0x776   : > { %12937 = vmatmul.mubr.msk.bf16.vlgmr.msra.gmra.mrb[32].mxu1 %vm4379_vm7, %v4366_v19  ;;  %v4331_v20 = vpop.xlane.xlu1 %4330  ;;  %v14022_v19 = vld [vmem:[#allocation13 + $0xe8] ss:$16 sps:$4 sm:$0xff]  }
 0x777   : > { %12948 = vmatprep.mubr.msk.bf16.mxu1 %vm15621_vm3, %v15620_v15  ;;  %15021 = vrcp.f32 %v4331_v20 }
 0x779   : > { %v16503_v21 = vpop.eup %15015 }
 0x77a   : > { %v4340_v26 = vpop.xlane.xlu1 %4339  ;;  %v4335_v22 = vsel %vm4274_vm6, %v16503_v21, 0.0 }
 0x77b   : > { %15023 = vrcp.f32 %v4340_v26  ;;  %4336 = vadd.xlane.f32.xlu1 %v4335_v22  ;;  %v14030_v26 = vld [vmem:[#allocation13 + $0x10c] ss:$16 sps:$4 sm:$0xff]   ;;  %v4661_v22 = vsel %vm4383_vm5, %v4377_v4, 0  ;;  %v14043_v4 = vld [vmem:[#allocation13 + $0x160] ss:$16 sps:$4 sm:$0xff]  }
 0x77d   : > { %v16507_v23 = vpop.eup %15017 }
 0x77e   : > { %v15020_v10 = vpop.eup %15019  ;;  %v3851_v24 = vpop.permute.xlu1 %3850  ;;  %v4341_v28 = vsel %vm4274_vm6, %v16507_v23, 0.0 }
 0x77f   : > { %v4355_v31 = vmul.f32 %v15020_v10, %v16453_v36  ;;  %v4376_v32 = vpack.c.bf16 %v3851_v24, %v3851_v24  ;;  %4342 = vadd.xlane.f32.xlu0 %v4341_v28  ;;  %v13977_v24 = vld [vmem:[#allocation13] ss:$16 sps:$4 sm:$0xff]  }
 0x781   : > { %v4615_v33 = vsel %vm4383_vm5, %v4376_v32, 0  ;;  %v4363_v46 = vpack.c.bf16 %v4355_v31, %v4355_v31  ;;  %v15022_v34 = vpop.eup %15021  ;;  %v14034_v31 = vld [vmem:[#allocation13 + $0x128] ss:$16 sps:$4 sm:$0xff]   ;;  %v14042_v32 = vld [vmem:[#allocation13 + $0x14c] ss:$16 sps:$4 sm:$0xff]  }
 0x782   : > { %12947 = vmatpush3.bf16.msra.mxu1 %v4615_v33  ;;  %v3855_v25 = vpop.permute.xlu1 %3854  ;;  %v4357_v36 = vmul.f32 %v15022_v34, %v16457_v37  ;;  %v13983_v33 = vld [vmem:[#allocation13 + $0x20] ss:$16 sps:$4 sm:$0xff]   ;;  %v14048_v34 = vld [vmem:[#allocation13 + $0x16c] ss:$16 sps:$4 sm:$0xff]  }
 0x783   : > { %12919 = vmatmul.mubr.msk.bf16.vlgmr.msra.gmra.mrb[28].mxu0 %vm4379_vm7, %v4363_v46  ;;  %12958 = vmatprep.subr.bf16.mxu1 %v15620_v15  ;;  %v4378_v42 = vpack.c.bf16 %v3855_v25, %v3855_v25  ;;  %v13991_v46 = vld [vmem:[#allocation13 + $0x44] ss:$16 sps:$4 sm:$0xff]  }
 0x784   : > { %12929 = vmatpush3.bf16.msra.mxu0 %v4477_v35  ;;  %12930 = vmatprep.mubr.msk.bf16.mxu0 %vm15621_vm3, %v15620_v15  ;;  %v4365_v53 = vpack.c.bf16 %v4357_v36, %v4357_v36  ;;  %v13989_v35 = vld [vmem:[#allocation13 + $0x40] ss:$16 sps:$4 sm:$0xff]   ;;  %v13997_v25 = vld [vmem:[#allocation13 + $0x64] ss:$16 sps:$4 sm:$0xff]   ;;  %v14054_v36 = vld [vmem:[#allocation13 + $0x18c] ss:$16 sps:$4 sm:$0xff]  }
 0x785   : > { %v15024_v45 = vpop.eup %15023  ;;  %12940 = vmatprep.subr.bf16.mxu0 %v15620_v15  ;;  %v4707_v13 = vsel %vm4383_vm5, %v4378_v42, 0  ;;  %v14003_v42 = vld [vmem:[#allocation13 + $0x84] ss:$16 sps:$4 sm:$0xff]  }
 0x786   : > { %v4360_v38 = vmul.f32 %v15024_v45, %v16465_v41  ;;  %v14046_v45 = vld [vmem:[#allocation13 + $0x168] ss:$16 sps:$4 sm:$0xff]  }
 0x788   : > { %v4368_v49 = vpack.c.bf16 %v4360_v38, %v4360_v38  ;;  %v13995_v38 = vld [vmem:[#allocation13 + $0x60] ss:$16 sps:$4 sm:$0xff]  }
 0x78a   : > { %12949 = vmatmul.mubr.msk.bf16.vlgmr.msra.gmra.mrb[36].mxu1 %vm4379_vm7, %v4368_v49  ;;  %v14060_v49 = vld [vmem:[#allocation13 + $0x1ac] ss:$16 sps:$4 sm:$0xff]  }
 0x78b   : > { %12931 = vmatmul.mubr.msk.bf16.vlgmr.msra.gmra.mrb[32].mxu0 %vm4379_vm7, %v4365_v53  ;;  %12959 = vmatpush3.bf16.msra.mxu1 %v4707_v13  ;;  %v14001_v53 = vld [vmem:[#allocation13 + $0x80] ss:$16 sps:$4 sm:$0xff]   ;;  %v14009_v13 = vld [vmem:[#allocation13 + $0xa4] ss:$16 sps:$4 sm:$0xff]  }
 0x78c   : > { %12941 = vmatpush3.bf16.msra.mxu0 %v4569_v55  ;;  %12960 = vmatprep.mubr.msk.bf16.mxu1 %vm15621_vm3, %v15620_v15  ;;  %v14058_v55 = vld [vmem:[#allocation13 + $0x1a8] ss:$16 sps:$4 sm:$0xff]  }
 0x78d   : > { %12942 = vmatprep.mubr.msk.bf16.mxu0 %vm15621_vm3, %v15620_v15  ;;  %12952 = vmatprep.subr.bf16.mxu0 %v15620_v15 }
 0x78e   : > { %5645 = vmatprep.subr.bf16.mxu1 %v13982_v27  ;;  %v14021_v27 = vld [vmem:[#allocation13 + $0xe4] ss:$16 sps:$4 sm:$0xff]  }
 0x793   : > { %v4346_v37 = vpop.xlane.xlu0 %4345 }
 0x794   : > { %15025 = vrcp.f32 %v4346_v37  ;;  %v14066_v37 = vld [vmem:[#allocation13 + $0x1cc] ss:$16 sps:$4 sm:$0xff]  }
 0x79e   : > { %v15026_v41 = vpop.eup %15025 }
 0x79f   : > { %v4362_v54 = vmul.f32 %v15026_v41, %v16485_v56  ;;  %v14007_v41 = vld [vmem:[#allocation13 + $0xa0] ss:$16 sps:$4 sm:$0xff]  }
 0x7a1   : > { %v4370_v57 = vpack.c.bf16 %v4362_v54, %v4362_v54  ;;  %v14015_v54 = vld [vmem:[#allocation13 + $0xc4] ss:$16 sps:$4 sm:$0xff]  }
 0x7a3   : > { %12961 = vmatmul.mubr.msk.bf16.vlgmr.msra.gmra.mrb[40].mxu1 %vm4379_vm7, %v4370_v57  ;;  %v14064_v57 = vld [vmem:[#allocation13 + $0x1c8] ss:$16 sps:$4 sm:$0xff]  }
 0x7a4   : > { %5646 = vmatpush1.bf16.msra.mxu1 %v13980_v5  ;;  %v14013_v5 = vld [vmem:[#allocation13 + $0xc0] ss:$16 sps:$4 sm:$0xff]  }
 0x7a5   : > { %5647 = vmatprep.subr.bf16.mxu1 %v13988_v58  ;;  %v14019_v58 = vld [vmem:[#allocation13 + $0xe0] ss:$16 sps:$4 sm:$0xff]  }
 0x7a8   : > { %5648 = vmatpush1.bf16.msra.mxu1 %v13986_v16  ;;  %v14027_v16 = vld [vmem:[#allocation13 + $0x104] ss:$16 sps:$4 sm:$0xff]  }
 0x7a9   : > { %5649 = vmatprep.subr.bf16.mxu1 %v13994_v59  ;;  %v14025_v59 = vld [vmem:[#allocation13 + $0x100] ss:$16 sps:$4 sm:$0xff]  }
 0x7ac   : > { %5650 = vmatpush1.bf16.msra.mxu1 %v13992_v61  ;;  %v14033_v61 = vld [vmem:[#allocation13 + $0x124] ss:$16 sps:$4 sm:$0xff]  }
 0x7ad   : > { %5651 = vmatprep.subr.bf16.mxu1 %v14000_v17  ;;  %v14072_v17 = vld [vmem:[#allocation13 + $0x1ec] ss:$16 sps:$4 sm:$0xff]  }
 0x7b0   : > { %5652 = vmatpush1.bf16.msra.mxu1 %v13998_v62 }
 0x7b1   : > { %5653 = vmatprep.subr.bf16.mxu1 %v14006_v7  ;;  %v14031_v7 = vld [vmem:[#allocation13 + $0x120] ss:$16 sps:$4 sm:$0xff]  }
 0x7b4   : > { %5654 = vmatpush1.bf16.msra.mxu1 %v14004_v0 }
 0x7b5   : > { %5655 = vmatprep.subr.bf16.mxu1 %v14012_v1  ;;  %v14039_v1 = vld [vmem:[#allocation13 + $0x144] ss:$16 sps:$4 sm:$0xff]  }
 0x7b8   : > { %5656 = vmatpush1.bf16.msra.mxu1 %v14010_v2 }
 0x7b9   : > { %5657 = vmatprep.subr.bf16.mxu1 %v14018_v3  ;;  %v14037_v3 = vld [vmem:[#allocation13 + $0x140] ss:$16 sps:$4 sm:$0xff]  }
 0x7bc   : > { %5658 = vmatpush1.bf16.msra.mxu1 %v14016_v44  ;;  %v14078_v44 = vld [vmem:[#allocation13 + $0x20c] ss:$16 sps:$4 sm:$0xff]  }
 0x7bd   : > { %5659 = vmatprep.subr.bf16.mxu1 %v14024_v8  ;;  %v14045_v8 = vld [vmem:[#allocation13 + $0x164] ss:$16 sps:$4 sm:$0xff]  }
 0x7c0   : > { %5660 = vmatpush1.bf16.msra.mxu1 %v14022_v19 }
 0x7c1   : > { %5661 = vmatprep.subr.bf16.mxu1 %v14030_v26  ;;  %v14049_v26 = vld [vmem:[#allocation13 + $0x180] ss:$16 sps:$4 sm:$0xff]  }
 0x7c4   : > { %5662 = vmatpush1.bf16.msra.mxu1 %v14028_v30  ;;  %v14063_v30 = vld [vmem:[#allocation13 + $0x1c4] ss:$16 sps:$4 sm:$0xff]  }
 0x808   : > { %v4337_v56 = vpop.xlane.xlu1 %4336 }
 0x809   : > { %15027 = vrcp.f32 %v4337_v56  ;;  %v14070_v56 = vld [vmem:[#allocation13 + $0x1e8] ss:$16 sps:$4 sm:$0xff]  }
 0x80c   : > { %v4343_v11 = vpop.xlane.xlu0 %4342 }
 0x80d   : > { %15029 = vrcp.f32 %v4343_v11 }
 0x813   : > { %v15028_v9 = vpop.eup %15027 }
 0x814   : > { %v4359_v12 = vmul.f32 %v15028_v9, %v16503_v21  ;;  %v14036_v21 = vld [vmem:[#allocation13 + $0x12c] ss:$16 sps:$4 sm:$0xff]  }
 0x815   : > { %5663 = vmatprep.subr.bf16.mxu1 %v14036_v21  ;;  %v14061_v21 = vld [vmem:[#allocation13 + $0x1c0] ss:$16 sps:$4 sm:$0xff]  }
 0x816   : > { %v4367_v6 = vpack.c.bf16 %v4359_v12, %v4359_v12  ;;  %5664 = vmatpush1.bf16.msra.mxu1 %v14034_v31 }
 0x817   : > { %v15030_v20 = vpop.eup %15029  ;;  %5665 = vmatprep.subr.bf16.mxu1 %v14042_v32 }
 0x818   : > { %12943 = vmatmul.mubr.msk.bf16.vlgmr.msra.gmra.mrb[36].mxu0 %vm4379_vm7, %v4367_v6  ;;  %v4361_v10 = vmul.f32 %v15030_v20, %v16507_v23  ;;  %v14040_v23 = vld [vmem:[#allocation13 + $0x148] ss:$16 sps:$4 sm:$0xff]  }
 0x819   : > { %12953 = vmatpush3.bf16.msra.mxu0 %v4661_v22  ;;  %12954 = vmatprep.mubr.msk.bf16.mxu0 %vm15621_vm3, %v15620_v15  ;;  %v14057_v22 = vld [vmem:[#allocation13 + $0x1a4] ss:$16 sps:$4 sm:$0xff]  }
 0x81a   : > { %5563 = vmatprep.subr.bf16.mxu0 %v13979_v18  ;;  %v4369_v28 = vpack.c.bf16 %v4361_v10, %v4361_v10  ;;  %5666 = vmatpush1.bf16.msra.mxu1 %v14040_v23  ;;  %v14051_v18 = vld [vmem:[#allocation13 + $0x184] ss:$16 sps:$4 sm:$0xff]   ;;  %v14055_v10 = vld [vmem:[#allocation13 + $0x1a0] ss:$16 sps:$4 sm:$0xff]  }
 0x81b   : > { %5667 = vmatprep.subr.bf16.mxu1 %v14048_v34 }
 0x81e   : > { %5668 = vmatpush1.bf16.msra.mxu1 %v14046_v45 }
 0x81f   : > { %5669 = vmatprep.subr.bf16.mxu1 %v14054_v36 }
 0x820   : > { %12955 = vmatmul.mubr.msk.bf16.vlgmr.msra.gmra.mrb[40].mxu0 %vm4379_vm7, %v4369_v28  ;;  %v14069_v28 = vld [vmem:[#allocation13 + $0x1e4] ss:$16 sps:$4 sm:$0xff]  }
 0x821   : > { %5564 = vmatpush1.bf16.msra.mxu0 %v13977_v24 }
 0x822   : > { %5565 = vmatprep.subr.bf16.mxu0 %v13985_v29  ;;  %5670 = vmatpush1.bf16.msra.mxu1 %v14052_v43 }
 0x823   : > { %5671 = vmatprep.subr.bf16.mxu1 %v14060_v49 }
 0x825   : > { %5566 = vmatpush1.bf16.msra.mxu0 %v13983_v33  ;;  %v14067_v33 = vld [vmem:[#allocation13 + $0x1e0] ss:$16 sps:$4 sm:$0xff]  }
 0x826   : > { %5567 = vmatprep.subr.bf16.mxu0 %v13991_v46  ;;  %5672 = vmatpush1.bf16.msra.mxu1 %v14058_v55  ;;  %v14075_v46 = vld [vmem:[#allocation13 + $0x204] ss:$16 sps:$4 sm:$0xff]  }
 0x827   : > { %5673 = vmatprep.subr.bf16.mxu1 %v14066_v37 }
 0x829   : > { %5568 = vmatpush1.bf16.msra.mxu0 %v13989_v35 }
 0x82a   : > { %5569 = vmatprep.subr.bf16.mxu0 %v13997_v25  ;;  %5674 = vmatpush1.bf16.msra.mxu1 %v14064_v57 }
 0x82b   : > { %5675 = vmatprep.subr.bf16.mxu1 %v14072_v17  ;;  %v14084_v17 = vld [vmem:[#allocation13 + $0x22c] ss:$16 sps:$4 sm:$0xff]  }
 0x82d   : > { %5570 = vmatpush1.bf16.msra.mxu0 %v13995_v38 }
 0x82e   : > { %5571 = vmatprep.subr.bf16.mxu0 %v14003_v42  ;;  %5676 = vmatpush1.bf16.msra.mxu1 %v14070_v56  ;;  %v14087_v56 = vld [vmem:[#allocation13 + $0x244] ss:$16 sps:$4 sm:$0xff]  }
 0x82f   : > { %5686 = vmatprep.subr.bf16.mxu1 %v14078_v44  ;;  %v14091_v44 = vld [vmem:[#allocation13 + $0x260] ss:$16 sps:$4 sm:$0xff]  }
 0x831   : > { %5572 = vmatpush1.bf16.msra.mxu0 %v14001_v53 }
 0x832   : > { %5573 = vmatprep.subr.bf16.mxu0 %v14009_v13 }
 0x835   : > { %5574 = vmatpush1.bf16.msra.mxu0 %v14007_v41 }
 0x836   : > { %5575 = vmatprep.subr.bf16.mxu0 %v14015_v54 }
 0x839   : > { %5576 = vmatpush1.bf16.msra.mxu0 %v14013_v5 }
 0x83a   : > { %5577 = vmatprep.subr.bf16.mxu0 %v14021_v27 }
 0x83d   : > { %5578 = vmatpush1.bf16.msra.mxu0 %v14019_v58 }
 0x83e   : > { %5579 = vmatprep.subr.bf16.mxu0 %v14027_v16  ;;  %v14073_v16 = vld [vmem:[#allocation13 + $0x200] ss:$16 sps:$4 sm:$0xff]  }
 0x841   : > { %v4467_v62 = vpop.f32.mrb[28].mxu1  ;;  %5580 = vmatpush1.bf16.msra.mxu0 %v14025_v59  ;;  %v14076_v59 = vld [vmem:[#allocation13 + $0x208] ss:$16 sps:$4 sm:$0xff]  }
 0x842   : > { %v12926_v0 = vpop.f32.mrb[29].mxu1  ;;  %5581 = vmatprep.subr.bf16.mxu0 %v14033_v61  ;;  %v14081_v61 = vld [vmem:[#allocation13 + $0x224] ss:$16 sps:$4 sm:$0xff]  }
 0x843   : > { %v4470_v11 = vpop.f32.mrb[30].mxu1  ;;  %v14090_v0 = vld [vmem:[#allocation13 + $0x24c] ss:$16 sps:$4 sm:$0xff]  }
 0x844   : > { %v12927_v2 = vpop.f32.mrb[31].mxu1  ;;  %v14088_v11 = vld [vmem:[#allocation13 + $0x248] ss:$16 sps:$4 sm:$0xff]  }
 0x845   : > { %5582 = vmatpush1.bf16.msra.mxu0 %v14031_v7  ;;  %v14082_v7 = vld [vmem:[#allocation13 + $0x228] ss:$16 sps:$4 sm:$0xff]   ;;  %v14093_v2 = vld [vmem:[#allocation13 + $0x264] ss:$16 sps:$4 sm:$0xff]  }
 0x846   : > { %5583 = vmatprep.subr.bf16.mxu0 %v14039_v1  ;;  %v14085_v1 = vld [vmem:[#allocation13 + $0x240] ss:$16 sps:$4 sm:$0xff]  }
 0x849   : > { %v4559_v9 = vpop.f32.mrb[32].mxu1  ;;  %5584 = vmatpush1.bf16.msra.mxu0 %v14037_v3  ;;  %v14096_v3 = vld [vmem:[#allocation13 + $0x26c] ss:$16 sps:$4 sm:$0xff]  }
 0x84a   : > { %v13364_v12 = vpack.i.bf16 %v4467_v62, %v4559_v9  ;;  %v12938_v6 = vpop.f32.mrb[33].mxu1  ;;  %5585 = vmatprep.subr.bf16.mxu0 %v14045_v8  ;;  %v14079_v62 = vld [vmem:[#allocation13 + $0x220] ss:$16 sps:$4 sm:$0xff]   ;;  %v14094_v8 = vld [vmem:[#allocation13 + $0x268] ss:$16 sps:$4 sm:$0xff]  }
 0x84b   : > { %v4562_v19 = vpop.f32.mrb[34].mxu1  ;;  %v14099_v9 = vld [vmem:[#allocation13 + $0x284] ss:$16 sps:$4 sm:$0xff]   ;;  %v14100_v6 = vld [vmem:[#allocation13 + $0x288] ss:$16 sps:$4 sm:$0xff]  }
 0x84c   : > { %v12939_v20 = vpop.f32.mrb[35].mxu1  ;;  %13365 = vrot.lane.b32.xlu0 %v13364_v12, %s15619_s5  ;;  %v14097_v12 = vld [vmem:[#allocation13 + $0x280] ss:$16 sps:$4 sm:$0xff]   ;;  %v14108_v19 = vld [vmem:[#allocation13 + $0x2ac] ss:$16 sps:$4 sm:$0xff]  }
 0x84d   : > { %5586 = vmatpush1.bf16.msra.mxu0 %v14043_v4  ;;  %v14102_v4 = vld [vmem:[#allocation13 + $0x28c] ss:$16 sps:$4 sm:$0xff]   ;;  %v14103_v20 = vld [vmem:[#allocation13 + $0x2a0] ss:$16 sps:$4 sm:$0xff]  }
 0x84e   : > { %5587 = vmatprep.subr.bf16.mxu0 %v14051_v18  ;;  %v14105_v18 = vld [vmem:[#allocation13 + $0x2a4] ss:$16 sps:$4 sm:$0xff]  }
 0x851   : > { %5588 = vmatpush1.bf16.msra.mxu0 %v14049_v26  ;;  %v14106_v26 = vld [vmem:[#allocation13 + $0x2a8] ss:$16 sps:$4 sm:$0xff]  }
 0x852   : > { %5589 = vmatprep.subr.bf16.mxu0 %v14057_v22  ;;  %v14111_v22 = vld [vmem:[#allocation13 + $0x2c4] ss:$16 sps:$4 sm:$0xff]  }
 0x855   : > { %5590 = vmatpush1.bf16.msra.mxu0 %v14055_v10  ;;  %v14114_v10 = vld [vmem:[#allocation13 + $0x2cc] ss:$16 sps:$4 sm:$0xff]  }
 0x856   : > { %v4421_v24 = vpop.f32.mrb[28].mxu0  ;;  %5591 = vmatprep.subr.bf16.mxu0 %v14063_v30  ;;  %v14109_v30 = vld [vmem:[#allocation13 + $0x2c0] ss:$16 sps:$4 sm:$0xff]  }
 0x857   : > { %v12920_v29 = vpop.f32.mrb[29].mxu0 }
 0x858   : > { %v4424_v31 = vpop.f32.mrb[30].mxu0  ;;  %v14115_v29 = vld [vmem:[#allocation13 + $0x2e0] ss:$16 sps:$4 sm:$0xff]  }
 0x859   : > { %v12921_v32 = vpop.f32.mrb[31].mxu0  ;;  %5592 = vmatpush1.bf16.msra.mxu0 %v14061_v21  ;;  %v14112_v21 = vld [vmem:[#allocation13 + $0x2c8] ss:$16 sps:$4 sm:$0xff]  }
 0x85a   : > { %5593 = vmatprep.subr.bf16.mxu0 %v14069_v28  ;;  %v14120_v28 = vld [vmem:[#allocation13 + $0x2ec] ss:$16 sps:$4 sm:$0xff]   ;;  %v14118_v31 = vld [vmem:[#allocation13 + $0x2e8] ss:$16 sps:$4 sm:$0xff]   ;;  %v14123_v32 = vld [vmem:[#allocation13 + $0x304] ss:$16 sps:$4 sm:$0xff]  }
 0x85d   : > { %v4651_v23 = vpop.f32.mrb[36].mxu1  ;;  %5594 = vmatpush1.bf16.msra.mxu0 %v14067_v33  ;;  %v14126_v33 = vld [vmem:[#allocation13 + $0x30c] ss:$16 sps:$4 sm:$0xff]  }
 0x85e   : > { %v4513_v34 = vpop.f32.mrb[32].mxu0  ;;  %v12950_v35 = vpop.f32.mrb[37].mxu1  ;;  %5604 = vmatprep.subr.bf16.mxu0 %v14075_v46  ;;  %v14121_v46 = vld [vmem:[#allocation13 + $0x300] ss:$16 sps:$4 sm:$0xff]  }
 0x85f   : > { %v12932_v25 = vpop.f32.mrb[33].mxu0  ;;  %v4654_v45 = vpop.f32.mrb[38].mxu1  ;;  %v14132_v35 = vld [vmem:[#allocation13 + $0x32c] ss:$16 sps:$4 sm:$0xff]  }
 0x860   : > { %v4516_v36 = vpop.f32.mrb[34].mxu0  ;;  %v12951_v38 = vpop.f32.mrb[39].mxu1  ;;  %v14127_v25 = vld [vmem:[#allocation13 + $0x320] ss:$16 sps:$4 sm:$0xff]   ;;  %v14130_v45 = vld [vmem:[#allocation13 + $0x328] ss:$16 sps:$4 sm:$0xff]  }
 0x861   : > { %v12933_v42 = vpop.f32.mrb[35].mxu0  ;;  %v14135_v36 = vld [vmem:[#allocation13 + $0x344] ss:$16 sps:$4 sm:$0xff]   ;;  %v14138_v38 = vld [vmem:[#allocation13 + $0x34c] ss:$16 sps:$4 sm:$0xff]  }
 0x862   : > { %v14133_v42 = vld [vmem:[#allocation13 + $0x340] ss:$16 sps:$4 sm:$0xff]  }
 0x876   : > { %v4743_v43 = vpop.f32.mrb[40].mxu1 }
 0x877   : > { %v13369_v49 = vpack.i.bf16 %v4651_v23, %v4743_v43  ;;  %v12962_v53 = vpop.f32.mrb[41].mxu1  ;;  %v14124_v23 = vld [vmem:[#allocation13 + $0x308] ss:$16 sps:$4 sm:$0xff]  }
 0x878   : > { %v4746_v13 = vpop.f32.mrb[42].mxu1  ;;  %v14136_v43 = vld [vmem:[#allocation13 + $0x348] ss:$16 sps:$4 sm:$0xff]   ;;  %v14141_v53 = vld [vmem:[#allocation13 + $0x364] ss:$16 sps:$4 sm:$0xff]  }
 0x879   : > { %13370 = vrot.lane.b32.xlu0 %v13369_v49, %s15619_s5  ;;  %v12963_v55 = vpop.f32.mrb[43].mxu1  ;;  %v14144_v13 = vld [vmem:[#allocation13 + $0x36c] ss:$16 sps:$4 sm:$0xff]  }
 0x8be   : > { %v13366_v37 = vpop.permute.xlu0 %13365 }
 0x8bf   : > { %v13368_v41 = vunpack.i.h.bf16 %v13366_v37  ;;  %v13367_v54 = vunpack.i.l.bf16 %v13366_v37 }
 0x8c1   : > { %v4765_v57 = vsel %vm3873_vm4, %v4421_v24, %v13368_v41  ;;  %v4766_v5 = vsel %vm3873_vm4, %v4513_v34, %v13367_v54  ;;  %v14117_v24 = vld [vmem:[#allocation13 + $0x2e4] ss:$16 sps:$4 sm:$0xff]   ;;  %v14139_v54 = vld [vmem:[#allocation13 + $0x360] ss:$16 sps:$4 sm:$0xff]  }
 0x8c2   : > { %v4769_v27 = vpack.c.bf16 %v4765_v57, %v4765_v57  ;;  %v4770_v58 = vpack.c.bf16 %v4766_v5, %v4766_v5  ;;  %v14129_v34 = vld [vmem:[#allocation13 + $0x324] ss:$16 sps:$4 sm:$0xff]   ;;  %v14142_v57 = vld [vmem:[#allocation13 + $0x368] ss:$16 sps:$4 sm:$0xff]  }
 0x8c4   : > { %5595 = vmatprep.mubr.bf16.mxu0 %v4770_v58  ;;  %5677 = vmatprep.mubr.bf16.mxu1 %v4770_v58  ;;  %v14150_v58 = vld [vmem:[#allocation13 + $0x38c] ss:$16 sps:$4 sm:$0xff]  }
 0x8c5   : > { %5596 = vmatmul.mubr.bf16.vlgmr.msra.gmra.mrb[44].mxu0 %v4769_v27  ;;  %5678 = vmatmul.mubr.bf16.vlgmr.msra.gmra.mrb[44].mxu1 %v4769_v27  ;;  %v14147_v27 = vld [vmem:[#allocation13 + $0x384] ss:$16 sps:$4 sm:$0xff]  }
 0x8c6   : > { %5605 = vmatpush1.bf16.msra.mxu0 %v14073_v16  ;;  %5687 = vmatpush1.bf16.msra.mxu1 %v14076_v59  ;;  %v14145_v59 = vld [vmem:[#allocation13 + $0x380] ss:$16 sps:$4 sm:$0xff]  }
 0x8c7   : > { %5606 = vmatprep.subr.bf16.mxu0 %v14081_v61  ;;  %5688 = vmatprep.subr.bf16.mxu1 %v14084_v17  ;;  %v14148_v61 = vld [vmem:[#allocation13 + $0x388] ss:$16 sps:$4 sm:$0xff]  }
 0x8ca   : > { %5607 = vmatpush1.bf16.msra.mxu0 %v14079_v62  ;;  %5689 = vmatpush1.bf16.msra.mxu1 %v14082_v7 }
 0x8cb   : > { %5608 = vmatprep.subr.bf16.mxu0 %v14087_v56  ;;  %5690 = vmatprep.subr.bf16.mxu1 %v14090_v0  ;;  %v14153_v56 = vld [vmem:[#allocation13 + $0x3a4] ss:$16 sps:$4 sm:$0xff]   ;;  %v14156_v0 = vld [vmem:[#allocation13 + $0x3ac] ss:$16 sps:$4 sm:$0xff]  }
 0x8ce   : > { %5609 = vmatpush1.bf16.msra.mxu0 %v14085_v1  ;;  %5691 = vmatpush1.bf16.msra.mxu1 %v14088_v11 }
 0x8cf   : > { %5610 = vmatprep.subr.bf16.mxu0 %v14093_v2  ;;  %5692 = vmatprep.subr.bf16.mxu1 %v14096_v3  ;;  %v14151_v3 = vld [vmem:[#allocation13 + $0x3a0] ss:$16 sps:$4 sm:$0xff]  }
 0x8d2   : > { %5611 = vmatpush1.bf16.msra.mxu0 %v14091_v44  ;;  %5693 = vmatpush1.bf16.msra.mxu1 %v14094_v8  ;;  %v14154_v44 = vld [vmem:[#allocation13 + $0x3a8] ss:$16 sps:$4 sm:$0xff]   ;;  %v14159_v8 = vld [vmem:[#allocation13 + $0x3c4] ss:$16 sps:$4 sm:$0xff]  }
 0x8d3   : > { %5612 = vmatprep.subr.bf16.mxu0 %v14099_v9  ;;  %5694 = vmatprep.subr.bf16.mxu1 %v14102_v4  ;;  %v14162_v9 = vld [vmem:[#allocation13 + $0x3cc] ss:$16 sps:$4 sm:$0xff]   ;;  %v14157_v4 = vld [vmem:[#allocation13 + $0x3c0] ss:$16 sps:$4 sm:$0xff]  }
 0x8d6   : > { %5613 = vmatpush1.bf16.msra.mxu0 %v14097_v12  ;;  %5695 = vmatpush1.bf16.msra.mxu1 %v14100_v6  ;;  %v14160_v12 = vld [vmem:[#allocation13 + $0x3c8] ss:$16 sps:$4 sm:$0xff]   ;;  %v14165_v6 = vld [vmem:[#allocation13 + $0x3e4] ss:$16 sps:$4 sm:$0xff]  }
 0x8d7   : > { %5614 = vmatprep.subr.bf16.mxu0 %v14105_v18  ;;  %5696 = vmatprep.subr.bf16.mxu1 %v14108_v19  ;;  %v14168_v18 = vld [vmem:[#allocation13 + $0x3ec] ss:$16 sps:$4 sm:$0xff]  }
 0x8da   : > { %5615 = vmatpush1.bf16.msra.mxu0 %v14103_v20  ;;  %5697 = vmatpush1.bf16.msra.mxu1 %v14106_v26  ;;  %v14163_v20 = vld [vmem:[#allocation13 + $0x3e0] ss:$16 sps:$4 sm:$0xff]   ;;  %v14166_v26 = vld [vmem:[#allocation13 + $0x3e8] ss:$16 sps:$4 sm:$0xff]  }
 0x8db   : > { %5616 = vmatprep.subr.bf16.mxu0 %v14111_v22  ;;  %5698 = vmatprep.subr.bf16.mxu1 %v14114_v10 }
 0x8de   : > { %5617 = vmatpush1.bf16.msra.mxu0 %v14109_v30  ;;  %5699 = vmatpush1.bf16.msra.mxu1 %v14112_v21  ;;  %v4901_v30 = vld [vmem:[#allocation14] sm:$0xf] }
 0x8df   : > { %5618 = vmatprep.subr.bf16.mxu0 %v14117_v24  ;;  %5700 = vmatprep.subr.bf16.mxu1 %v14120_v28  ;;  %v4906_v21 = vrot.slane %v4901_v30, %v16241_v47  ;;  %v4914_v24 = vrot.slane %v4901_v30, %v16244_v48  ;;  %v4910_v28 = vrot.slane %v4901_v30, %v16247_v50 }
 0x8e2   : > { %5619 = vmatpush1.bf16.msra.mxu0 %v14115_v29  ;;  %5701 = vmatpush1.bf16.msra.mxu1 %v14118_v31  ;;  %v4918_v29 = vrot.slane %v4901_v30, %v16250_v51  ;;  %v14204_v30 = vld [vmem:[#allocation16 + $0x1ec] ss:$48 sps:$4 sm:$0xff]  }
 0x8e3   : > { %5620 = vmatprep.subr.bf16.mxu0 %v14123_v32  ;;  %5702 = vmatprep.subr.bf16.mxu1 %v14126_v33 }
 0x8e6   : > { %5621 = vmatpush1.bf16.msra.mxu0 %v14121_v46  ;;  %5703 = vmatpush1.bf16.msra.mxu1 %v14124_v23 }
 0x8e7   : > { %5622 = vmatprep.subr.bf16.mxu0 %v14129_v34  ;;  %5704 = vmatprep.subr.bf16.mxu1 %v14132_v35 }
 0x8ea   : > { %5623 = vmatpush1.bf16.msra.mxu0 %v14127_v25  ;;  %5705 = vmatpush1.bf16.msra.mxu1 %v14130_v45 }
 0x8eb   : > { %v4605_v49 = vpop.f32.mrb[36].mxu0  ;;  %5624 = vmatprep.subr.bf16.mxu0 %v14135_v36  ;;  %5706 = vmatprep.subr.bf16.mxu1 %v14138_v38  ;;  %v13371_v5 = vpop.permute.xlu0 %13370 }
 0x8ec   : > { %v12944_v55 = vpop.f32.mrb[37].mxu0  ;;  %v13372_v16 = vunpack.i.l.bf16 %v13371_v5  ;;  %v13373_v19 = vunpack.i.h.bf16 %v13371_v5 }
 0x8ed   : > { %v4608_v37 = vpop.f32.mrb[38].mxu0  ;;  %v15072_v55 = vld [vmem:[%s16164_s23 + $0x8] sm:$0xff] }
 0x8ee   : > { %5625 = vmatpush1.bf16.msra.mxu0 %v14133_v42  ;;  %5707 = vmatpush1.bf16.msra.mxu1 %v14136_v43  ;;  %v12945_v41 = vpop.f32.mrb[39].mxu0  ;;  %v4767_v22 = vsel %vm3873_vm4, %v4605_v49, %v13373_v19  ;;  %v14195_v19 = vld [vmem:[#allocation16 + $0x184] ss:$48 sps:$4 sm:$0xff]  }
 0x8ef   : > { %5626 = vmatprep.subr.bf16.mxu0 %v14141_v53  ;;  %5708 = vmatprep.subr.bf16.mxu1 %v14144_v13  ;;  %v4771_v10 = vpack.c.bf16 %v4767_v22, %v4767_v22  ;;  %v15071_v53 = vld [vmem:[%s16164_s23] sm:$0xff] }
 0x8f0   : > { %v14196_v22 = vld [vmem:[#allocation16 + $0x188] ss:$48 sps:$4 sm:$0xff]  }
 0x8f2   : > { %5627 = vmatpush1.bf16.msra.mxu0 %v14139_v54  ;;  %5709 = vmatpush1.bf16.msra.mxu1 %v14142_v57 }
 0x8f3   : > { %v4697_v17 = vpop.f32.mrb[40].mxu0  ;;  %5628 = vmatprep.subr.bf16.mxu0 %v14147_v27  ;;  %5710 = vmatprep.subr.bf16.mxu1 %v14150_v58 }
 0x8f4   : > { %v4768_v62 = vsel %vm3873_vm4, %v4697_v17, %v13372_v16  ;;  %v12956_v7 = vpop.f32.mrb[41].mxu0  ;;  %v14169_v17 = vld [vmem:[#allocation16] ss:$48 sps:$4 sm:$0xff]  }
 0x8f5   : > { %v4772_v1 = vpack.c.bf16 %v4768_v62, %v4768_v62  ;;  %v4700_v11 = vpop.f32.mrb[42].mxu0  ;;  %v14171_v62 = vld [vmem:[#allocation16 + $0x4] ss:$48 sps:$4 sm:$0xff]   ;;  %v14172_v7 = vld [vmem:[#allocation16 + $0x8] ss:$48 sps:$4 sm:$0xff]  }
 0x8f6   : > { %5629 = vmatpush1.bf16.msra.mxu0 %v14145_v59  ;;  %5711 = vmatpush1.bf16.msra.mxu1 %v14148_v61  ;;  %v12957_v2 = vpop.f32.mrb[43].mxu0  ;;  %v14175_v11 = vld [vmem:[#allocation16 + $0x60] ss:$48 sps:$4 sm:$0xff]  }
 0x8f7   : > { %5636 = vmatprep.mubr.bf16.mxu0 %v4772_v1  ;;  %5718 = vmatprep.mubr.bf16.mxu1 %v4772_v1  ;;  %v14180_v1 = vld [vmem:[#allocation16 + $0x6c] ss:$48 sps:$4 sm:$0xff]   ;;  %v14178_v2 = vld [vmem:[#allocation16 + $0x68] ss:$48 sps:$4 sm:$0xff]  }
 0x8f8   : > { %5630 = vmatprep.subr.bf16.mxu0 %v14153_v56  ;;  %5712 = vmatprep.subr.bf16.mxu1 %v14156_v0  ;;  %v14174_v56 = vld [vmem:[#allocation16 + $0xc] ss:$48 sps:$4 sm:$0xff]   ;;  %v14177_v0 = vld [vmem:[#allocation16 + $0x64] ss:$48 sps:$4 sm:$0xff]  }
 0x8fa   : > { %5631 = vmatpush1.bf16.msra.mxu0 %v14151_v3  ;;  %5713 = vmatpush1.bf16.msra.mxu1 %v14154_v44  ;;  %v14183_v3 = vld [vmem:[#allocation16 + $0xc4] ss:$48 sps:$4 sm:$0xff]   ;;  %v14186_v44 = vld [vmem:[#allocation16 + $0xcc] ss:$48 sps:$4 sm:$0xff]  }
 0x8fb   : > { %5632 = vmatprep.subr.bf16.mxu0 %v14159_v8  ;;  %5714 = vmatprep.subr.bf16.mxu1 %v14162_v9  ;;  %v14181_v8 = vld [vmem:[#allocation16 + $0xc0] ss:$48 sps:$4 sm:$0xff]   ;;  %v14184_v9 = vld [vmem:[#allocation16 + $0xc8] ss:$48 sps:$4 sm:$0xff]  }
 0x8fe   : > { %5633 = vmatpush1.bf16.msra.mxu0 %v14157_v4  ;;  %5715 = vmatpush1.bf16.msra.mxu1 %v14160_v12  ;;  %v14189_v4 = vld [vmem:[#allocation16 + $0x124] ss:$48 sps:$4 sm:$0xff]   ;;  %v14192_v12 = vld [vmem:[#allocation16 + $0x12c] ss:$48 sps:$4 sm:$0xff]  }
 0x8ff   : > { %5634 = vmatprep.subr.bf16.mxu0 %v14165_v6  ;;  %5716 = vmatprep.subr.bf16.mxu1 %v14168_v18  ;;  %v14187_v6 = vld [vmem:[#allocation16 + $0x120] ss:$48 sps:$4 sm:$0xff]   ;;  %v14190_v18 = vld [vmem:[#allocation16 + $0x128] ss:$48 sps:$4 sm:$0xff]  }
 0x902   : > { %5635 = vmatpush1.bf16.msra.mxu0 %v14163_v20  ;;  %5717 = vmatpush1.bf16.msra.mxu1 %v14166_v26  ;;  %v14198_v20 = vld [vmem:[#allocation16 + $0x18c] ss:$48 sps:$4 sm:$0xff]   ;;  %v14193_v26 = vld [vmem:[#allocation16 + $0x180] ss:$48 sps:$4 sm:$0xff]  }
 0x903   : > { %6665 = vmatprep.subr.bf16.mxu0 %v14171_v62  ;;  %6747 = vmatprep.subr.bf16.mxu1 %v14174_v56  ;;  %v14225_v62 = vld [vmem:[#allocation16 + $0x364] ss:$48 sps:$4 sm:$0xff]   ;;  %v14223_v56 = vld [vmem:[#allocation16 + $0x360] ss:$48 sps:$4 sm:$0xff]  }
 0x905   : > { %5637 = vmatmul.mubr.bf16.vlgmr.msra.gmra.mrb[44].mxu0 %v4771_v10  ;;  %5719 = vmatmul.mubr.bf16.vlgmr.msra.gmra.mrb[44].mxu1 %v4771_v10  ;;  %v14201_v10 = vld [vmem:[#allocation16 + $0x1e4] ss:$48 sps:$4 sm:$0xff]  }
 0x906   : > { %6666 = vmatpush1.bf16.msra.mxu0 %v14169_v17  ;;  %6748 = vmatpush1.bf16.msra.mxu1 %v14172_v7  ;;  %v14220_v17 = vld [vmem:[#allocation16 + $0x308] ss:$48 sps:$4 sm:$0xff]   ;;  %v14228_v7 = vld [vmem:[#allocation16 + $0x36c] ss:$48 sps:$4 sm:$0xff]  }
 0x907   : > { %6667 = vmatprep.subr.bf16.mxu0 %v14177_v0  ;;  %6749 = vmatprep.subr.bf16.mxu1 %v14180_v1  ;;  %v14226_v0 = vld [vmem:[#allocation16 + $0x368] ss:$48 sps:$4 sm:$0xff]   ;;  %v14231_v1 = vld [vmem:[#allocation16 + $0x3c4] ss:$48 sps:$4 sm:$0xff]  }
 0x90a   : > { %6668 = vmatpush1.bf16.msra.mxu0 %v14175_v11  ;;  %6750 = vmatpush1.bf16.msra.mxu1 %v14178_v2  ;;  %v14234_v11 = vld [vmem:[#allocation16 + $0x3cc] ss:$48 sps:$4 sm:$0xff]   ;;  %v14229_v2 = vld [vmem:[#allocation16 + $0x3c0] ss:$48 sps:$4 sm:$0xff]  }
 0x90b   : > { %6669 = vmatprep.subr.bf16.mxu0 %v14183_v3  ;;  %6751 = vmatprep.subr.bf16.mxu1 %v14186_v44  ;;  %v14232_v3 = vld [vmem:[#allocation16 + $0x3c8] ss:$48 sps:$4 sm:$0xff]   ;;  %v14237_v44 = vld [vmem:[#allocation16 + $0x424] ss:$48 sps:$4 sm:$0xff]  }
 0x90e   : > { %6670 = vmatpush1.bf16.msra.mxu0 %v14181_v8  ;;  %6752 = vmatpush1.bf16.msra.mxu1 %v14184_v9  ;;  %v14235_v8 = vld [vmem:[#allocation16 + $0x420] ss:$48 sps:$4 sm:$0xff]   ;;  %v14238_v9 = vld [vmem:[#allocation16 + $0x428] ss:$48 sps:$4 sm:$0xff]  }
 0x90f   : > { %6671 = vmatprep.subr.bf16.mxu0 %v14189_v4  ;;  %6753 = vmatprep.subr.bf16.mxu1 %v14192_v12  ;;  %v14240_v4 = vld [vmem:[#allocation16 + $0x42c] ss:$48 sps:$4 sm:$0xff]   ;;  %v14243_v12 = vld [vmem:[#allocation16 + $0x484] ss:$48 sps:$4 sm:$0xff]  }
 0x912   : > { %6672 = vmatpush1.bf16.msra.mxu0 %v14187_v6  ;;  %6754 = vmatpush1.bf16.msra.mxu1 %v14190_v18  ;;  %v14246_v6 = vld [vmem:[#allocation16 + $0x48c] ss:$48 sps:$4 sm:$0xff]   ;;  %v14241_v18 = vld [vmem:[#allocation16 + $0x480] ss:$48 sps:$4 sm:$0xff]  }
 0x913   : > { %6673 = vmatprep.subr.bf16.mxu0 %v14195_v19  ;;  %6755 = vmatprep.subr.bf16.mxu1 %v14198_v20  ;;  %v14244_v19 = vld [vmem:[#allocation16 + $0x488] ss:$48 sps:$4 sm:$0xff]   ;;  %v14249_v20 = vld [vmem:[#allocation16 + $0x4e4] ss:$48 sps:$4 sm:$0xff]  }
 0x916   : > { %6674 = vmatpush1.bf16.msra.mxu0 %v14193_v26  ;;  %6756 = vmatpush1.bf16.msra.mxu1 %v14196_v22  ;;  %v14252_v26 = vld [vmem:[#allocation16 + $0x4ec] ss:$48 sps:$4 sm:$0xff]   ;;  %v14247_v22 = vld [vmem:[#allocation16 + $0x4e0] ss:$48 sps:$4 sm:$0xff]  }
 0x917   : > { %6675 = vmatprep.subr.bf16.mxu0 %v14201_v10  ;;  %6757 = vmatprep.subr.bf16.mxu1 %v14204_v30  ;;  %v14250_v10 = vld [vmem:[#allocation16 + $0x4e8] ss:$48 sps:$4 sm:$0xff]   ;;  %v14255_v30 = vld [vmem:[#allocation16 + $0x544] ss:$48 sps:$4 sm:$0xff]  }
 0x9d8   : > { %v5638_v31 = vpop.f32.mrb[44].mxu0  ;;  %v5720_v32 = vpop.f32.mrb[44].mxu1 }
 0x9d9   : > { %v13072_v33 = vadd.f32 %v5638_v31, %v4906_v21  ;;  %v13074_v46 = vadd.f32 %v5720_v32, %v4914_v24  ;;  %v5640_v23 = vpop.f32.mrb[45].mxu0  ;;  %v5722_v34 = vpop.f32.mrb[45].mxu1  ;;  %v14199_v21 = vld [vmem:[#allocation16 + $0x1e0] ss:$48 sps:$4 sm:$0xff]   ;;  %v14202_v24 = vld [vmem:[#allocation16 + $0x1e8] ss:$48 sps:$4 sm:$0xff]  }
 0x9da   : > { %v13073_v35 = vadd.f32 %v5640_v23, %v4910_v28  ;;  %v13075_v25 = vadd.f32 %v5722_v34, %v4918_v29  ;;  %v5642_v45 = vpop.f32.mrb[46].mxu0  ;;  %v5724_v36 = vpop.f32.mrb[46].mxu1  ;;  %6676 = vmatpush1.bf16.msra.mxu0 %v14199_v21  ;;  %6758 = vmatpush1.bf16.msra.mxu1 %v14202_v24  ;;  %v14258_v21 = vld [vmem:[#allocation16 + $0x54c] ss:$48 sps:$4 sm:$0xff]   ;;  %v14253_v24 = vld [vmem:[#allocation16 + $0x540] ss:$48 sps:$4 sm:$0xff]  }
 0x9db   : > { %v5643_v38 = vpop.f32.mrb[47].mxu0  ;;  %v5725_v42 = vpop.f32.mrb[47].mxu1 }
 0x9dc   : > { %v5731_v43 = vcombine.low %v13072_v33, %v13073_v35  ;;  %v5732_v49 = vcombine.low %v13074_v46, %v13075_v25 }
 0x9de   : > { %v16556_v13 = vadd.f32 %v15071_v53, %v5731_v43  ;;  %v16559_v37 = vadd.f32 %v15072_v55, %v5732_v49  ;;  %v14207_v53 = vld [vmem:[#allocation16 + $0x244] ss:$48 sps:$4 sm:$0xff]   ;;  %v14210_v55 = vld [vmem:[#allocation16 + $0x24c] ss:$48 sps:$4 sm:$0xff]  }
 0x9df   : > { %6677 = vmatprep.subr.bf16.mxu0 %v14207_v53  ;;  %6759 = vmatprep.subr.bf16.mxu1 %v14210_v55  ;;  %v5738_v55 = vld [vmem:[#allocation7 + $0x4] sm:$0xf] }
 0x9e0   : > { %v5743_v41 = vcombine.high %v16556_v13, %v16556_v13  ;;  %v5744_v54 = vcombine.high %v16559_v37, %v16559_v37  ;;  %v5747_v57 = vsel %vm819_vm0, %v16556_v13, 0.0  ;;  %v5750_v58 = vsel %vm819_vm0, %v16559_v37, 0.0 }
 0x9e2   : > { %v5748_v5 = vsel %vm819_vm0, %v5743_v41, 0.0  ;;  %v5752_v59 = vsel %vm819_vm0, %v5744_v54, 0.0  ;;  %v14205_v41 = vld [vmem:[#allocation16 + $0x240] ss:$48 sps:$4 sm:$0xff]   ;;  %v14208_v54 = vld [vmem:[#allocation16 + $0x248] ss:$48 sps:$4 sm:$0xff]  }
 0x9e3   : > { %v5749_v27 = vadd.f32 %v5748_v5, %v5747_v57  ;;  %6678 = vmatpush1.bf16.msra.mxu0 %v14205_v41  ;;  %6760 = vmatpush1.bf16.msra.mxu1 %v14208_v54  ;;  %v14213_v57 = vld [vmem:[#allocation16 + $0x2a4] ss:$48 sps:$4 sm:$0xff]   ;;  %v14216_v5 = vld [vmem:[#allocation16 + $0x2ac] ss:$48 sps:$4 sm:$0xff]   ;;  %v5740_v54 = vld [vmem:[#allocation8 + $0x4] sm:$0xf] }
 0x9e4   : > { %6679 = vmatprep.subr.bf16.mxu0 %v14213_v57  ;;  %6761 = vmatprep.subr.bf16.mxu1 %v14216_v5  ;;  %v5811_v5 = vrot.slane %v5738_v55, %v16241_v47 }
 0x9e5   : > { %v5751_v16 = vadd.f32 %v5750_v58, %v5749_v27  ;;  %v14211_v27 = vld [vmem:[#allocation16 + $0x2a0] ss:$48 sps:$4 sm:$0xff]   ;;  %v14214_v58 = vld [vmem:[#allocation16 + $0x2a8] ss:$48 sps:$4 sm:$0xff]  }
 0x9e7   : > { %v5753_v61 = vadd.f32 %v5752_v59, %v5751_v16  ;;  %6680 = vmatpush1.bf16.msra.mxu0 %v14211_v27  ;;  %6762 = vmatpush1.bf16.msra.mxu1 %v14214_v58  ;;  %v14219_v16 = vld [vmem:[#allocation16 + $0x304] ss:$48 sps:$4 sm:$0xff]   ;;  %v14222_v59 = vld [vmem:[#allocation16 + $0x30c] ss:$48 sps:$4 sm:$0xff]   ;;  %v5819_v27 = vrot.slane %v5738_v55, %v16244_v48  ;;  %v5815_v58 = vrot.slane %v5738_v55, %v16247_v50 }
 0x9e8   : > { %6681 = vmatprep.subr.bf16.mxu0 %v14219_v16  ;;  %6763 = vmatprep.subr.bf16.mxu1 %v14222_v59 }
 0x9e9   : > { %5754 = vadd.xlane.f32.xlu1 %v5753_v61  ;;  %v14217_v61 = vld [vmem:[#allocation16 + $0x300] ss:$48 sps:$4 sm:$0xff]  }
 0x9eb   : > { %6682 = vmatpush1.bf16.msra.mxu0 %v14217_v61  ;;  %6764 = vmatpush1.bf16.msra.mxu1 %v14220_v17  ;;  %v5823_v61 = vrot.slane %v5738_v55, %v16250_v51  ;;  %v5850_v17 = vrot.slane %v5740_v54, %v16244_v48  ;;  %v14301_v55 = vld [vmem:[#allocation16 + $0x840] ss:$48 sps:$4 sm:$0xff]  }
 0x9ec   : > { %6683 = vmatprep.subr.bf16.mxu0 %v14225_v62  ;;  %6765 = vmatprep.subr.bf16.mxu1 %v14228_v7  ;;  %v5846_v62 = vrot.slane %v5740_v54, %v16247_v50  ;;  %v5842_v7 = vrot.slane %v5740_v54, %v16241_v47 }
 0x9ef   : > { %6684 = vmatpush1.bf16.msra.mxu0 %v14223_v56  ;;  %6766 = vmatpush1.bf16.msra.mxu1 %v14226_v0 }
 0x9f0   : > { %6685 = vmatprep.subr.bf16.mxu0 %v14231_v1  ;;  %6767 = vmatprep.subr.bf16.mxu1 %v14234_v11 }
 0x9f3   : > { %6686 = vmatpush1.bf16.msra.mxu0 %v14229_v2  ;;  %6768 = vmatpush1.bf16.msra.mxu1 %v14232_v3  ;;  %v5854_v2 = vrot.slane %v5740_v54, %v16250_v51  ;;  %v14309_v54 = vld [vmem:[#allocation16 + $0x8a4] ss:$48 sps:$4 sm:$0xff]  }
 0x9f4   : > { %6687 = vmatprep.subr.bf16.mxu0 %v14237_v44  ;;  %6769 = vmatprep.subr.bf16.mxu1 %v14240_v4 }
 0x9f7   : > { %6688 = vmatpush1.bf16.msra.mxu0 %v14235_v8  ;;  %6770 = vmatpush1.bf16.msra.mxu1 %v14238_v9 }
 0x9f8   : > { %6689 = vmatprep.subr.bf16.mxu0 %v14243_v12  ;;  %6771 = vmatprep.subr.bf16.mxu1 %v14246_v6  ;;  %v14265_v12 = vld [vmem:[#allocation16 + $0x600] ss:$48 sps:$4 sm:$0xff]   ;;  %v14268_v6 = vld [vmem:[#allocation16 + $0x608] ss:$48 sps:$4 sm:$0xff]  }
 0x9fb   : > { %6690 = vmatpush1.bf16.msra.mxu0 %v14241_v18  ;;  %6772 = vmatpush1.bf16.msra.mxu1 %v14244_v19  ;;  %v14273_v19 = vld [vmem:[#allocation16 + $0x664] ss:$48 sps:$4 sm:$0xff]  }
 0x9fc   : > { %6691 = vmatprep.subr.bf16.mxu0 %v14249_v20  ;;  %6773 = vmatprep.subr.bf16.mxu1 %v14252_v26  ;;  %v14276_v20 = vld [vmem:[#allocation16 + $0x66c] ss:$48 sps:$4 sm:$0xff]  }
 0x9ff   : > { %6692 = vmatpush1.bf16.msra.mxu0 %v14247_v22  ;;  %6774 = vmatpush1.bf16.msra.mxu1 %v14250_v10  ;;  %v14271_v22 = vld [vmem:[#allocation16 + $0x660] ss:$48 sps:$4 sm:$0xff]   ;;  %v14274_v10 = vld [vmem:[#allocation16 + $0x668] ss:$48 sps:$4 sm:$0xff]  }
 0xa00   : > { %6693 = vmatprep.subr.bf16.mxu0 %v14255_v30  ;;  %6775 = vmatprep.subr.bf16.mxu1 %v14258_v21  ;;  %v14279_v30 = vld [vmem:[#allocation16 + $0x6c4] ss:$48 sps:$4 sm:$0xff]   ;;  %v14282_v21 = vld [vmem:[#allocation16 + $0x6cc] ss:$48 sps:$4 sm:$0xff]  }
 0xa03   : > { %6694 = vmatpush1.bf16.msra.mxu0 %v14253_v24  ;;  %v14277_v24 = vld [vmem:[#allocation16 + $0x6c0] ss:$48 sps:$4 sm:$0xff]  }
 0xa76   : > { %v5755_v28 = vpop.xlane.xlu1 %5754 }
 0xa77   : > { %v5756_v29 = vmul.f32 0.001953125, %v5755_v28  ;;  %v14256_v28 = vld [vmem:[#allocation16 + $0x548] ss:$48 sps:$4 sm:$0xff]  }
 0xa78   : > { %6776 = vmatpush1.bf16.msra.mxu1 %v14256_v28  ;;  %v14280_v28 = vld [vmem:[#allocation16 + $0x6c8] ss:$48 sps:$4 sm:$0xff]  }
 0xa79   : > { %v5764_v31 = vrot.slane %v5756_v29, %v16223_v40  ;;  %v14261_v29 = vld [vmem:[#allocation16 + $0x5a4] ss:$48 sps:$4 sm:$0xff]  }
 0xa7a   : > { %6695 = vmatprep.subr.bf16.mxu0 %v14261_v29  ;;  %v14285_v29 = vld [vmem:[#allocation16 + $0x724] ss:$48 sps:$4 sm:$0xff]  }
 0xa7b   : > { %v16573_v32 = vsub.f32 %v16556_v13, %v5764_v31  ;;  %v16576_v33 = vsub.f32 %v16559_v37, %v5764_v31  ;;  %v14264_v31 = vld [vmem:[#allocation16 + $0x5ac] ss:$48 sps:$4 sm:$0xff]  }
 0xa7c   : > { %6777 = vmatprep.subr.bf16.mxu1 %v14264_v31  ;;  %v14288_v31 = vld [vmem:[#allocation16 + $0x72c] ss:$48 sps:$4 sm:$0xff]  }
 0xa7d   : > { %v5768_v46 = vmul.f32 %v16573_v32, %v16573_v32  ;;  %v5769_v23 = vmul.f32 %v16576_v33, %v16576_v33 }
 0xa7f   : > { %v5772_v34 = vcombine.high %v5768_v46, %v5768_v46  ;;  %v5773_v35 = vcombine.high %v5769_v23, %v5769_v23  ;;  %v5776_v25 = vsel %vm819_vm0, %v5768_v46, 0.0  ;;  %v5779_v38 = vsel %vm819_vm0, %v5769_v23, 0.0  ;;  %v14259_v46 = vld [vmem:[#allocation16 + $0x5a0] ss:$48 sps:$4 sm:$0xff]   ;;  %v14262_v23 = vld [vmem:[#allocation16 + $0x5a8] ss:$48 sps:$4 sm:$0xff]  }
 0xa80   : > { %6696 = vmatpush1.bf16.msra.mxu0 %v14259_v46  ;;  %6778 = vmatpush1.bf16.msra.mxu1 %v14262_v23  ;;  %v14283_v46 = vld [vmem:[#allocation16 + $0x720] ss:$48 sps:$4 sm:$0xff]   ;;  %v14286_v23 = vld [vmem:[#allocation16 + $0x728] ss:$48 sps:$4 sm:$0xff]  }
 0xa81   : > { %v5777_v45 = vsel %vm819_vm0, %v5772_v34, 0.0  ;;  %v5781_v43 = vsel %vm819_vm0, %v5773_v35, 0.0  ;;  %v14267_v34 = vld [vmem:[#allocation16 + $0x604] ss:$48 sps:$4 sm:$0xff]   ;;  %v14270_v35 = vld [vmem:[#allocation16 + $0x60c] ss:$48 sps:$4 sm:$0xff]  }
 0xa82   : > { %v5778_v36 = vadd.f32 %v5777_v45, %v5776_v25  ;;  %6706 = vmatprep.subr.bf16.mxu0 %v14267_v34  ;;  %6788 = vmatprep.subr.bf16.mxu1 %v14270_v35  ;;  %v14291_v34 = vld [vmem:[#allocation16 + $0x784] ss:$48 sps:$4 sm:$0xff]   ;;  %v14294_v35 = vld [vmem:[#allocation16 + $0x78c] ss:$48 sps:$4 sm:$0xff]  }
 0xa84   : > { %v5780_v42 = vadd.f32 %v5779_v38, %v5778_v36 }
 0xa86   : > { %v5782_v49 = vadd.f32 %v5781_v43, %v5780_v42 }
 0xa88   : > { %5783 = vadd.xlane.f32.xlu0 %v5782_v49 }
 0xb15   : > { %v5784_v25 = vpop.xlane.xlu0 %5783 }
 0xb16   : > { %v5785_v45 = vmul.f32 0.0019569471, %v5784_v25  ;;  %v14289_v25 = vld [vmem:[#allocation16 + $0x780] ss:$48 sps:$4 sm:$0xff]  }
 0xb18   : > { %15031 = vrsqrt.f32 %v5785_v45  ;;  %vm5788_vm8 = vcmp.eq.f32.partialorder %v5785_v45, inf  ;;  %v5791_v42 = vand.u32 2147483648, %v5785_v45  ;;  %vm5790_vm9 = vcmp.eq.f32.partialorder %v5785_v45, 0.0 }
 0xb22   : > { %v15032_v36 = vpop.eup %15031 }
 0xb23   : > { %v5787_v38 = vmul.f32 %v15032_v36, %v5785_v45  ;;  %v14297_v36 = vld [vmem:[#allocation16 + $0x7e4] ss:$48 sps:$4 sm:$0xff]  }
 0xb25   : > { %v5789_v43 = vsel %vm5788_vm8, %v5785_v45, %v5787_v38  ;;  %v14292_v45 = vld [vmem:[#allocation16 + $0x788] ss:$48 sps:$4 sm:$0xff]   ;;  %v14300_v38 = vld [vmem:[#allocation16 + $0x7ec] ss:$48 sps:$4 sm:$0xff]  }
 0xb26   : > { %v5792_v49 = vsel %vm5790_vm9, %v5791_v42, %v5789_v43  ;;  %v14295_v42 = vld [vmem:[#allocation16 + $0x7e0] ss:$48 sps:$4 sm:$0xff]   ;;  %v14298_v43 = vld [vmem:[#allocation16 + $0x7e8] ss:$48 sps:$4 sm:$0xff]  }
 0xb27   : > { %v5793_v53 = vadd.f32 1e-06, %v5792_v49  ;;  %v14303_v49 = vld [vmem:[#allocation16 + $0x844] ss:$48 sps:$4 sm:$0xff]  }
 0xb29   : > { %15033 = vrcp.f32 %v5793_v53  ;;  %v14306_v53 = vld [vmem:[#allocation16 + $0x84c] ss:$48 sps:$4 sm:$0xff]  }
 0xb33   : > { %v15034_v41 = vpop.eup %15033 }
 0xb34   : > { %v5803_v57 = vrot.slane %v15034_v41, %v16223_v40  ;;  %v14304_v41 = vld [vmem:[#allocation16 + $0x848] ss:$48 sps:$4 sm:$0xff]  }
 0xb36   : > { %v5805_v16 = vmul.f32 %v5803_v57, %v16573_v32  ;;  %v5806_v59 = vmul.f32 %v5803_v57, %v16576_v33  ;;  %v14312_v57 = vld [vmem:[#allocation16 + $0x8ac] ss:$48 sps:$4 sm:$0xff]  }
 0xb38   : > { %v5830_v56 = vcombine.high %v5805_v16, %v5805_v16  ;;  %v5834_v0 = vmul.f32 %v5811_v5, %v5805_v16  ;;  %v5831_v1 = vcombine.high %v5806_v59, %v5806_v59  ;;  %v5836_v11 = vmul.f32 %v5819_v27, %v5806_v59  ;;  %v14307_v5 = vld [vmem:[#allocation16 + $0x8a0] ss:$48 sps:$4 sm:$0xff]   ;;  %v14310_v27 = vld [vmem:[#allocation16 + $0x8a8] ss:$48 sps:$4 sm:$0xff]   ;;  %v14318_v16 = vld [vmem:[#allocation16 + $0x90c] ss:$48 sps:$4 sm:$0xff]  }
 0xb39   : > { %v14313_v59 = vld [vmem:[#allocation16 + $0x900] ss:$48 sps:$4 sm:$0xff]  }
 0xb3a   : > { %v5835_v3 = vmul.f32 %v5830_v56, %v5815_v58  ;;  %v5837_v44 = vmul.f32 %v5831_v1, %v5823_v61  ;;  %v16597_v8 = vadd.f32 %v5850_v17, %v5836_v11  ;;  %v5859_v32 = vadd.f32 %v5842_v7, %v5834_v0  ;;  %v14315_v58 = vld [vmem:[#allocation16 + $0x904] ss:$48 sps:$4 sm:$0xff]   ;;  %v14316_v61 = vld [vmem:[#allocation16 + $0x908] ss:$48 sps:$4 sm:$0xff]   ;;  %v14319_v7 = vld [vmem:[#allocation16 + $0x960] ss:$48 sps:$4 sm:$0xff]  }
 0xb3b   : > { %v14321_v17 = vld [vmem:[#allocation16 + $0x964] ss:$48 sps:$4 sm:$0xff]   ;;  %v14322_v56 = vld [vmem:[#allocation16 + $0x968] ss:$48 sps:$4 sm:$0xff]   ;;  %v14330_v1 = vld [vmem:[#allocation16 + $0x9cc] ss:$48 sps:$4 sm:$0xff]  }
 0xb3c   : > { %v5860_v33 = vadd.f32 %v5846_v62, %v5835_v3  ;;  %v5862_v9 = vadd.f32 %v5854_v2, %v5837_v44  ;;  %v5871_v18 = vpack.c.bf16 %v5859_v32, %v5859_v32  ;;  %v14324_v62 = vld [vmem:[#allocation16 + $0x96c] ss:$48 sps:$4 sm:$0xff]   ;;  %v14327_v0 = vld [vmem:[#allocation16 + $0x9c4] ss:$48 sps:$4 sm:$0xff]   ;;  %v14325_v11 = vld [vmem:[#allocation16 + $0x9c0] ss:$48 sps:$4 sm:$0xff]  }
 0xb3d   : > { %v14328_v2 = vld [vmem:[#allocation16 + $0x9c8] ss:$48 sps:$4 sm:$0xff]   ;;  %v14333_v3 = vld [vmem:[#allocation16 + $0xa24] ss:$48 sps:$4 sm:$0xff]   ;;  %v14336_v44 = vld [vmem:[#allocation16 + $0xa2c] ss:$48 sps:$4 sm:$0xff]  }
 0xb3e   : > { %v5872_v4 = vpack.c.bf16 %v5860_v33, %v5860_v33  ;;  %v5874_v26 = vpack.c.bf16 %v5862_v9, %v5862_v9  ;;  %v14331_v32 = vld [vmem:[#allocation16 + $0xa20] ss:$48 sps:$4 sm:$0xff]   ;;  %v14334_v33 = vld [vmem:[#allocation16 + $0xa28] ss:$48 sps:$4 sm:$0xff]   ;;  %v14339_v9 = vld [vmem:[#allocation16 + $0xa84] ss:$48 sps:$4 sm:$0xff]  }
 0xb40   : > { %6697 = vmatprep.mubr.bf16.mxu0 %v5872_v4  ;;  %6779 = vmatprep.mubr.bf16.mxu1 %v5872_v4  ;;  %v14342_v4 = vld [vmem:[#allocation16 + $0xa8c] ss:$48 sps:$4 sm:$0xff]  }
 0xb41   : > { %6698 = vmatmul.mubr.bf16.vlgmr.msra.gmra.mrb[48].mxu0 %v5871_v18  ;;  %6780 = vmatmul.mubr.bf16.vlgmr.msra.gmra.mrb[48].mxu1 %v5871_v18  ;;  %v14345_v18 = vld [vmem:[#allocation16 + $0xae4] ss:$48 sps:$4 sm:$0xff]  }
 0xb42   : > { %6707 = vmatpush1.bf16.msra.mxu0 %v14265_v12  ;;  %6789 = vmatpush1.bf16.msra.mxu1 %v14268_v6  ;;  %v14337_v12 = vld [vmem:[#allocation16 + $0xa80] ss:$48 sps:$4 sm:$0xff]   ;;  %v14340_v6 = vld [vmem:[#allocation16 + $0xa88] ss:$48 sps:$4 sm:$0xff]  }
 0xb43   : > { %6738 = vmatprep.mubr.bf16.mxu0 %v5874_v26  ;;  %6820 = vmatprep.mubr.bf16.mxu1 %v5874_v26  ;;  %v14346_v26 = vld [vmem:[#allocation16 + $0xae8] ss:$48 sps:$4 sm:$0xff]  }
 0xb44   : > { %6708 = vmatprep.subr.bf16.mxu0 %v14273_v19  ;;  %6790 = vmatprep.subr.bf16.mxu1 %v14276_v20  ;;  %v14348_v19 = vld [vmem:[#allocation16 + $0xaec] ss:$48 sps:$4 sm:$0xff]   ;;  %v14343_v20 = vld [vmem:[#allocation16 + $0xae0] ss:$48 sps:$4 sm:$0xff]  }
 0xb46   : > { %6709 = vmatpush1.bf16.msra.mxu0 %v14271_v22  ;;  %6791 = vmatpush1.bf16.msra.mxu1 %v14274_v10  ;;  %v14351_v22 = vld [vmem:[#allocation16 + $0xb44] ss:$48 sps:$4 sm:$0xff]   ;;  %v14354_v10 = vld [vmem:[#allocation16 + $0xb4c] ss:$48 sps:$4 sm:$0xff]  }
 0xb47   : > { %6710 = vmatprep.subr.bf16.mxu0 %v14279_v30  ;;  %6792 = vmatprep.subr.bf16.mxu1 %v14282_v21  ;;  %v14349_v30 = vld [vmem:[#allocation16 + $0xb40] ss:$48 sps:$4 sm:$0xff]   ;;  %v14352_v21 = vld [vmem:[#allocation16 + $0xb48] ss:$48 sps:$4 sm:$0xff]  }
 0xb4a   : > { %6711 = vmatpush1.bf16.msra.mxu0 %v14277_v24  ;;  %6793 = vmatpush1.bf16.msra.mxu1 %v14280_v28  ;;  %v14357_v24 = vld [vmem:[#allocation16 + $0xba4] ss:$48 sps:$4 sm:$0xff]   ;;  %v14360_v28 = vld [vmem:[#allocation16 + $0xbac] ss:$48 sps:$4 sm:$0xff]  }
 0xb4b   : > { %6712 = vmatprep.subr.bf16.mxu0 %v14285_v29  ;;  %6794 = vmatprep.subr.bf16.mxu1 %v14288_v31  ;;  %v16601_v29 = vld [vmem:[%s696_s18] sm:$0xff]  ;;  %v14355_v31 = vld [vmem:[#allocation16 + $0xba0] ss:$48 sps:$4 sm:$0xff]  }
 0xb4e   : > { %6713 = vmatpush1.bf16.msra.mxu0 %v14283_v46  ;;  %6795 = vmatpush1.bf16.msra.mxu1 %v14286_v23  ;;  %v14358_v46 = vld [vmem:[#allocation16 + $0xba8] ss:$48 sps:$4 sm:$0xff]   ;;  %v14363_v23 = vld [vmem:[#allocation16 + $0x14] ss:$48 sps:$4 sm:$0xff]  }
 0xb4f   : > { %6714 = vmatprep.subr.bf16.mxu0 %v14291_v34  ;;  %6796 = vmatprep.subr.bf16.mxu1 %v14294_v35  ;;  %v14366_v34 = vld [vmem:[#allocation16 + $0x1c] ss:$48 sps:$4 sm:$0xff]   ;;  %v6831_v35 = vcombine.high %v16601_v29, %v16601_v29 }
 0xb52   : > { %6715 = vmatpush1.bf16.msra.mxu0 %v14289_v25  ;;  %6797 = vmatpush1.bf16.msra.mxu1 %v14292_v45  ;;  %v14361_v25 = vld [vmem:[#allocation16 + $0x10] ss:$48 sps:$4 sm:$0xff]   ;;  %v14364_v45 = vld [vmem:[#allocation16 + $0x18] ss:$48 sps:$4 sm:$0xff]  }
 0xb53   : > { %6716 = vmatprep.subr.bf16.mxu0 %v14297_v36  ;;  %6798 = vmatprep.subr.bf16.mxu1 %v14300_v38  ;;  %v5873_v36 = vpack.c.bf16 %v16597_v8, %v16597_v8  ;;  %v14369_v38 = vld [vmem:[#allocation16 + $0x74] ss:$48 sps:$4 sm:$0xff]   ;;  %v14373_v8 = vld [vmem:[#allocation16 + $0xd0] ss:$48 sps:$4 sm:$0xff]  }
 0xb56   : > { %6717 = vmatpush1.bf16.msra.mxu0 %v14295_v42  ;;  %6799 = vmatpush1.bf16.msra.mxu1 %v14298_v43  ;;  %v14372_v42 = vld [vmem:[#allocation16 + $0x7c] ss:$48 sps:$4 sm:$0xff]   ;;  %v16607_v43 = vpack.c.bf16 %v6831_v35, %v6831_v35 }
 0xb57   : > { %6718 = vmatprep.subr.bf16.mxu0 %v14303_v49  ;;  %6800 = vmatprep.subr.bf16.mxu1 %v14306_v53  ;;  %v14367_v49 = vld [vmem:[#allocation16 + $0x70] ss:$48 sps:$4 sm:$0xff]   ;;  %v14370_v53 = vld [vmem:[#allocation16 + $0x78] ss:$48 sps:$4 sm:$0xff]   ;;  %v14438_v35 = vld [vmem:[#allocation16 + $0x49c] ss:$48 sps:$4 sm:$0xff]  }
 0xb5a   : > { %6719 = vmatpush1.bf16.msra.mxu0 %v14301_v55  ;;  %6801 = vmatpush1.bf16.msra.mxu1 %v14304_v41  ;;  %v14375_v55 = vld [vmem:[#allocation16 + $0xd4] ss:$48 sps:$4 sm:$0xff]   ;;  %v14378_v41 = vld [vmem:[#allocation16 + $0xdc] ss:$48 sps:$4 sm:$0xff]  }
 0xb5b   : > { %6720 = vmatprep.subr.bf16.mxu0 %v14309_v54  ;;  %6802 = vmatprep.subr.bf16.mxu1 %v14312_v57  ;;  %v14376_v54 = vld [vmem:[#allocation16 + $0xd8] ss:$48 sps:$4 sm:$0xff]   ;;  %v14381_v57 = vld [vmem:[#allocation16 + $0x134] ss:$48 sps:$4 sm:$0xff]  }
 0xb5e   : > { %6721 = vmatpush1.bf16.msra.mxu0 %v14307_v5  ;;  %6803 = vmatpush1.bf16.msra.mxu1 %v14310_v27  ;;  %v14384_v5 = vld [vmem:[#allocation16 + $0x13c] ss:$48 sps:$4 sm:$0xff]   ;;  %v14379_v27 = vld [vmem:[#allocation16 + $0x130] ss:$48 sps:$4 sm:$0xff]  }
 0xb5f   : > { %6722 = vmatprep.subr.bf16.mxu0 %v14315_v58  ;;  %6804 = vmatprep.subr.bf16.mxu1 %v14318_v16  ;;  %v14382_v58 = vld [vmem:[#allocation16 + $0x138] ss:$48 sps:$4 sm:$0xff]   ;;  %v14387_v16 = vld [vmem:[#allocation16 + $0x194] ss:$48 sps:$4 sm:$0xff]  }
 0xb62   : > { %6723 = vmatpush1.bf16.msra.mxu0 %v14313_v59  ;;  %6805 = vmatpush1.bf16.msra.mxu1 %v14316_v61  ;;  %v14390_v59 = vld [vmem:[#allocation16 + $0x19c] ss:$48 sps:$4 sm:$0xff]   ;;  %v14385_v61 = vld [vmem:[#allocation16 + $0x190] ss:$48 sps:$4 sm:$0xff]  }
 0xb63   : > { %6724 = vmatprep.subr.bf16.mxu0 %v14321_v17  ;;  %6806 = vmatprep.subr.bf16.mxu1 %v14324_v62  ;;  %v14388_v17 = vld [vmem:[#allocation16 + $0x198] ss:$48 sps:$4 sm:$0xff]   ;;  %v14393_v62 = vld [vmem:[#allocation16 + $0x1f4] ss:$48 sps:$4 sm:$0xff]  }
 0xb66   : > { %6725 = vmatpush1.bf16.msra.mxu0 %v14319_v7  ;;  %6807 = vmatpush1.bf16.msra.mxu1 %v14322_v56  ;;  %v14396_v7 = vld [vmem:[#allocation16 + $0x1fc] ss:$48 sps:$4 sm:$0xff]   ;;  %v14391_v56 = vld [vmem:[#allocation16 + $0x1f0] ss:$48 sps:$4 sm:$0xff]  }
 0xb67   : > { %6726 = vmatprep.subr.bf16.mxu0 %v14327_v0  ;;  %6808 = vmatprep.subr.bf16.mxu1 %v14330_v1  ;;  %v14394_v0 = vld [vmem:[#allocation16 + $0x1f8] ss:$48 sps:$4 sm:$0xff]   ;;  %v14399_v1 = vld [vmem:[#allocation16 + $0x254] ss:$48 sps:$4 sm:$0xff]  }
 0xb6a   : > { %6727 = vmatpush1.bf16.msra.mxu0 %v14325_v11  ;;  %6809 = vmatpush1.bf16.msra.mxu1 %v14328_v2  ;;  %v14402_v11 = vld [vmem:[#allocation16 + $0x25c] ss:$48 sps:$4 sm:$0xff]   ;;  %v14397_v2 = vld [vmem:[#allocation16 + $0x250] ss:$48 sps:$4 sm:$0xff]  }
 0xb6b   : > { %6728 = vmatprep.subr.bf16.mxu0 %v14333_v3  ;;  %6810 = vmatprep.subr.bf16.mxu1 %v14336_v44  ;;  %v14400_v3 = vld [vmem:[#allocation16 + $0x258] ss:$48 sps:$4 sm:$0xff]   ;;  %v14405_v44 = vld [vmem:[#allocation16 + $0x2b4] ss:$48 sps:$4 sm:$0xff]  }
 0xb6e   : > { %6729 = vmatpush1.bf16.msra.mxu0 %v14331_v32  ;;  %6811 = vmatpush1.bf16.msra.mxu1 %v14334_v33  ;;  %v14408_v32 = vld [vmem:[#allocation16 + $0x2bc] ss:$48 sps:$4 sm:$0xff]   ;;  %v14403_v33 = vld [vmem:[#allocation16 + $0x2b0] ss:$48 sps:$4 sm:$0xff]  }
 0xb6f   : > { %6730 = vmatprep.subr.bf16.mxu0 %v14339_v9  ;;  %6812 = vmatprep.subr.bf16.mxu1 %v14342_v4  ;;  %v14406_v9 = vld [vmem:[#allocation16 + $0x2b8] ss:$48 sps:$4 sm:$0xff]   ;;  %v14411_v4 = vld [vmem:[#allocation16 + $0x314] ss:$48 sps:$4 sm:$0xff]  }
 0xb72   : > { %6731 = vmatpush1.bf16.msra.mxu0 %v14337_v12  ;;  %6813 = vmatpush1.bf16.msra.mxu1 %v14340_v6  ;;  %v14414_v12 = vld [vmem:[#allocation16 + $0x31c] ss:$48 sps:$4 sm:$0xff]   ;;  %v14409_v6 = vld [vmem:[#allocation16 + $0x310] ss:$48 sps:$4 sm:$0xff]  }
 0xb73   : > { %6732 = vmatprep.subr.bf16.mxu0 %v14345_v18  ;;  %6814 = vmatprep.subr.bf16.mxu1 %v14348_v19  ;;  %v14412_v18 = vld [vmem:[#allocation16 + $0x318] ss:$48 sps:$4 sm:$0xff]   ;;  %v14417_v19 = vld [vmem:[#allocation16 + $0x374] ss:$48 sps:$4 sm:$0xff]  }
 0xb76   : > { %6733 = vmatpush1.bf16.msra.mxu0 %v14343_v20  ;;  %6815 = vmatpush1.bf16.msra.mxu1 %v14346_v26  ;;  %v14420_v20 = vld [vmem:[#allocation16 + $0x37c] ss:$48 sps:$4 sm:$0xff]   ;;  %v14415_v26 = vld [vmem:[#allocation16 + $0x370] ss:$48 sps:$4 sm:$0xff]  }
 0xb77   : > { %6734 = vmatprep.subr.bf16.mxu0 %v14351_v22  ;;  %6816 = vmatprep.subr.bf16.mxu1 %v14354_v10  ;;  %v14418_v22 = vld [vmem:[#allocation16 + $0x378] ss:$48 sps:$4 sm:$0xff]   ;;  %v14423_v10 = vld [vmem:[#allocation16 + $0x3d4] ss:$48 sps:$4 sm:$0xff]  }
 0xb7a   : > { %6735 = vmatpush1.bf16.msra.mxu0 %v14349_v30  ;;  %6817 = vmatpush1.bf16.msra.mxu1 %v14352_v21  ;;  %v14426_v30 = vld [vmem:[#allocation16 + $0x3dc] ss:$48 sps:$4 sm:$0xff]   ;;  %v14421_v21 = vld [vmem:[#allocation16 + $0x3d0] ss:$48 sps:$4 sm:$0xff]  }
 0xb7b   : > { %6736 = vmatprep.subr.bf16.mxu0 %v14357_v24  ;;  %6818 = vmatprep.subr.bf16.mxu1 %v14360_v28  ;;  %v14424_v24 = vld [vmem:[#allocation16 + $0x3d8] ss:$48 sps:$4 sm:$0xff]   ;;  %v14429_v28 = vld [vmem:[#allocation16 + $0x434] ss:$48 sps:$4 sm:$0xff]  }
 0xb7e   : > { %6737 = vmatpush1.bf16.msra.mxu0 %v14355_v31  ;;  %6819 = vmatpush1.bf16.msra.mxu1 %v14358_v46  ;;  %v14432_v31 = vld [vmem:[#allocation16 + $0x43c] ss:$48 sps:$4 sm:$0xff]   ;;  %v14427_v46 = vld [vmem:[#allocation16 + $0x430] ss:$48 sps:$4 sm:$0xff]  }
 0xb7f   : > { %8417 = vmatprep.subr.bf16.mxu0 %v14363_v23  ;;  %8499 = vmatprep.subr.bf16.mxu1 %v14366_v34  ;;  %v14430_v23 = vld [vmem:[#allocation16 + $0x438] ss:$48 sps:$4 sm:$0xff]   ;;  %v14435_v34 = vld [vmem:[#allocation16 + $0x494] ss:$48 sps:$4 sm:$0xff]  }
 0xb81   : > { %6739 = vmatmul.mubr.bf16.vlgmr.msra.gmra.mrb[48].mxu0 %v5873_v36  ;;  %6821 = vmatmul.mubr.bf16.vlgmr.msra.gmra.mrb[48].mxu1 %v5873_v36  ;;  %v14441_v36 = vld [vmem:[#allocation16 + $0x4f4] ss:$48 sps:$4 sm:$0xff]  }
 0xb82   : > { %8418 = vmatpush1.bf16.msra.mxu0 %v14361_v25  ;;  %8500 = vmatpush1.bf16.msra.mxu1 %v14364_v45  ;;  %v14433_v25 = vld [vmem:[#allocation16 + $0x490] ss:$48 sps:$4 sm:$0xff]   ;;  %v14436_v45 = vld [vmem:[#allocation16 + $0x498] ss:$48 sps:$4 sm:$0xff]  }
 0xb83   : > { %8419 = vmatprep.subr.bf16.mxu0 %v14369_v38  ;;  %8501 = vmatprep.subr.bf16.mxu1 %v14372_v42  ;;  %v14444_v38 = vld [vmem:[#allocation16 + $0x4fc] ss:$48 sps:$4 sm:$0xff]   ;;  %v14439_v42 = vld [vmem:[#allocation16 + $0x4f0] ss:$48 sps:$4 sm:$0xff]  }
 0xb84   : > { %8449 = vmatprep.mubr.bf16.mxu0 %v16607_v43  ;;  %8531 = vmatprep.mubr.bf16.mxu1 %v16607_v43 }
 0xb86   : > { %8420 = vmatpush1.bf16.msra.mxu0 %v14367_v49  ;;  %8502 = vmatpush1.bf16.msra.mxu1 %v14370_v53  ;;  %v14442_v49 = vld [vmem:[#allocation16 + $0x4f8] ss:$48 sps:$4 sm:$0xff]   ;;  %v14447_v53 = vld [vmem:[#allocation16 + $0x554] ss:$48 sps:$4 sm:$0xff]  }
 0xb87   : > { %8421 = vmatprep.subr.bf16.mxu0 %v14375_v55  ;;  %8503 = vmatprep.subr.bf16.mxu1 %v14378_v41  ;;  %v14450_v55 = vld [vmem:[#allocation16 + $0x55c] ss:$48 sps:$4 sm:$0xff]   ;;  %v14445_v41 = vld [vmem:[#allocation16 + $0x550] ss:$48 sps:$4 sm:$0xff]  }
 0xb8a   : > { %8422 = vmatpush1.bf16.msra.mxu0 %v14373_v8  ;;  %8504 = vmatpush1.bf16.msra.mxu1 %v14376_v54  ;;  %v14448_v8 = vld [vmem:[#allocation16 + $0x558] ss:$48 sps:$4 sm:$0xff]   ;;  %v14453_v54 = vld [vmem:[#allocation16 + $0x5b4] ss:$48 sps:$4 sm:$0xff]  }
 0xb8b   : > { %8423 = vmatprep.subr.bf16.mxu0 %v14381_v57  ;;  %8505 = vmatprep.subr.bf16.mxu1 %v14384_v5  ;;  %v14456_v57 = vld [vmem:[#allocation16 + $0x5bc] ss:$48 sps:$4 sm:$0xff]   ;;  %v16613_v5 = vld [vmem:[%s696_s18 + $0x8] sm:$0xff]  ;;  %s17192_s18 = sld [smem:[#allocation54_spill]] }
 0xb8e   : > { %8424 = vmatpush1.bf16.msra.mxu0 %v14379_v27  ;;  %8506 = vmatpush1.bf16.msra.mxu1 %v14382_v58  ;;  %v14451_v27 = vld [vmem:[#allocation16 + $0x5b0] ss:$48 sps:$4 sm:$0xff]   ;;  %v14454_v58 = vld [vmem:[#allocation16 + $0x5b8] ss:$48 sps:$4 sm:$0xff]  }
 0xb8f   : > { %8425 = vmatprep.subr.bf16.mxu0 %v14387_v16  ;;  %8507 = vmatprep.subr.bf16.mxu1 %v14390_v59  ;;  %v14460_v16 = vld [vmem:[#allocation16 + $0x614] ss:$48 sps:$4 sm:$0xff]   ;;  %v14463_v59 = vld [vmem:[#allocation16 + $0x61c] ss:$48 sps:$4 sm:$0xff]  }
 0xb91   : > { %s17044_s10 = scalar_lea.hbm %s17192_s18, %s12759_s8 }
 0xb92   : > { %8426 = vmatpush1.bf16.msra.mxu0 %v14385_v61  ;;  %8508 = vmatpush1.bf16.msra.mxu1 %v14388_v17  ;;  %v6832_v61 = vcombine.high %v16613_v5, %v16613_v5  ;;  %v16619_v17 = vpack.c.bf16 %v16601_v29, %v16601_v29  ;;  %v14472_v29 = vld [vmem:[#allocation16 + $0x6d4] ss:$48 sps:$4 sm:$0xff]  }
 0xb93   : > { %8427 = vmatprep.subr.bf16.mxu0 %v14393_v62  ;;  %8509 = vmatprep.subr.bf16.mxu1 %v14396_v7  ;;  %v14458_v62 = vld [vmem:[#allocation16 + $0x610] ss:$48 sps:$4 sm:$0xff]   ;;  %v14461_v7 = vld [vmem:[#allocation16 + $0x618] ss:$48 sps:$4 sm:$0xff]  }
 0xb96   : > { %8428 = vmatpush1.bf16.msra.mxu0 %v14391_v56  ;;  %8510 = vmatpush1.bf16.msra.mxu1 %v14394_v0  ;;  %v14466_v56 = vld [vmem:[#allocation16 + $0x674] ss:$48 sps:$4 sm:$0xff]   ;;  %v14469_v0 = vld [vmem:[#allocation16 + $0x67c] ss:$48 sps:$4 sm:$0xff]  }
 0xb97   : > { %8429 = vmatprep.subr.bf16.mxu0 %v14399_v1  ;;  %8511 = vmatprep.subr.bf16.mxu1 %v14402_v11  ;;  %v16621_v1 = vpack.c.bf16 %v6832_v61, %v6832_v61  ;;  %v14464_v11 = vld [vmem:[#allocation16 + $0x670] ss:$48 sps:$4 sm:$0xff]   ;;  %v14532_v61 = vld [vmem:[#allocation16 + $0xa94] ss:$48 sps:$4 sm:$0xff]  }
 0xb9a   : > { %8430 = vmatpush1.bf16.msra.mxu0 %v14397_v2  ;;  %8512 = vmatpush1.bf16.msra.mxu1 %v14400_v3  ;;  %v14467_v2 = vld [vmem:[#allocation16 + $0x678] ss:$48 sps:$4 sm:$0xff]   ;;  %v14475_v3 = vld [vmem:[#allocation16 + $0x6dc] ss:$48 sps:$4 sm:$0xff]  }
 0xb9b   : > { %8431 = vmatprep.subr.bf16.mxu0 %v14405_v44  ;;  %8513 = vmatprep.subr.bf16.mxu1 %v14408_v32  ;;  %v14470_v44 = vld [vmem:[#allocation16 + $0x6d0] ss:$48 sps:$4 sm:$0xff]   ;;  %v14473_v32 = vld [vmem:[#allocation16 + $0x6d8] ss:$48 sps:$4 sm:$0xff]  }
 0xb9e   : > { %8432 = vmatpush1.bf16.msra.mxu0 %v14403_v33  ;;  %8514 = vmatpush1.bf16.msra.mxu1 %v14406_v9  ;;  %v14478_v33 = vld [vmem:[#allocation16 + $0x734] ss:$48 sps:$4 sm:$0xff]   ;;  %v14481_v9 = vld [vmem:[#allocation16 + $0x73c] ss:$48 sps:$4 sm:$0xff]  }
 0xb9f   : > { %8433 = vmatprep.subr.bf16.mxu0 %v14411_v4  ;;  %8515 = vmatprep.subr.bf16.mxu1 %v14414_v12  ;;  %v14476_v4 = vld [vmem:[#allocation16 + $0x730] ss:$48 sps:$4 sm:$0xff]   ;;  %v14479_v12 = vld [vmem:[#allocation16 + $0x738] ss:$48 sps:$4 sm:$0xff]  }
 0xba2   : > { %8434 = vmatpush1.bf16.msra.mxu0 %v14409_v6  ;;  %8516 = vmatpush1.bf16.msra.mxu1 %v14412_v18  ;;  %v14484_v6 = vld [vmem:[#allocation16 + $0x794] ss:$48 sps:$4 sm:$0xff]   ;;  %v14487_v18 = vld [vmem:[#allocation16 + $0x79c] ss:$48 sps:$4 sm:$0xff]  }
 0xba3   : > { %8435 = vmatprep.subr.bf16.mxu0 %v14417_v19  ;;  %8517 = vmatprep.subr.bf16.mxu1 %v14420_v20  ;;  %v14482_v19 = vld [vmem:[#allocation16 + $0x790] ss:$48 sps:$4 sm:$0xff]   ;;  %v14485_v20 = vld [vmem:[#allocation16 + $0x798] ss:$48 sps:$4 sm:$0xff]  }
 0xba6   : > { %8436 = vmatpush1.bf16.msra.mxu0 %v14415_v26  ;;  %8518 = vmatpush1.bf16.msra.mxu1 %v14418_v22  ;;  %v14490_v26 = vld [vmem:[#allocation16 + $0x7f4] ss:$48 sps:$4 sm:$0xff]   ;;  %v14493_v22 = vld [vmem:[#allocation16 + $0x7fc] ss:$48 sps:$4 sm:$0xff]  }
 0xba7   : > { %8437 = vmatprep.subr.bf16.mxu0 %v14423_v10  ;;  %8519 = vmatprep.subr.bf16.mxu1 %v14426_v30  ;;  %v14488_v10 = vld [vmem:[#allocation16 + $0x7f0] ss:$48 sps:$4 sm:$0xff]   ;;  %v14491_v30 = vld [vmem:[#allocation16 + $0x7f8] ss:$48 sps:$4 sm:$0xff]  }
 0xbaa   : > { %8438 = vmatpush1.bf16.msra.mxu0 %v14421_v21  ;;  %8520 = vmatpush1.bf16.msra.mxu1 %v14424_v24  ;;  %v14496_v21 = vld [vmem:[#allocation16 + $0x854] ss:$48 sps:$4 sm:$0xff]   ;;  %v14499_v24 = vld [vmem:[#allocation16 + $0x85c] ss:$48 sps:$4 sm:$0xff]  }
 0xbab   : > { %8439 = vmatprep.subr.bf16.mxu0 %v14429_v28  ;;  %8521 = vmatprep.subr.bf16.mxu1 %v14432_v31  ;;  %v14494_v28 = vld [vmem:[#allocation16 + $0x850] ss:$48 sps:$4 sm:$0xff]   ;;  %v14497_v31 = vld [vmem:[#allocation16 + $0x858] ss:$48 sps:$4 sm:$0xff]  }
 0xbae   : > { %8440 = vmatpush1.bf16.msra.mxu0 %v14427_v46  ;;  %8522 = vmatpush1.bf16.msra.mxu1 %v14430_v23  ;;  %v14502_v46 = vld [vmem:[#allocation16 + $0x8b4] ss:$48 sps:$4 sm:$0xff]   ;;  %v14505_v23 = vld [vmem:[#allocation16 + $0x8bc] ss:$48 sps:$4 sm:$0xff]  }
 0xbaf   : > { %8441 = vmatprep.subr.bf16.mxu0 %v14435_v34  ;;  %8523 = vmatprep.subr.bf16.mxu1 %v14438_v35  ;;  %v14500_v34 = vld [vmem:[#allocation16 + $0x8b0] ss:$48 sps:$4 sm:$0xff]   ;;  %v14503_v35 = vld [vmem:[#allocation16 + $0x8b8] ss:$48 sps:$4 sm:$0xff]  }
 0xbb2   : > { %8442 = vmatpush1.bf16.msra.mxu0 %v14433_v25  ;;  %8524 = vmatpush1.bf16.msra.mxu1 %v14436_v45  ;;  %v14508_v25 = vld [vmem:[#allocation16 + $0x914] ss:$48 sps:$4 sm:$0xff]   ;;  %v14511_v45 = vld [vmem:[#allocation16 + $0x91c] ss:$48 sps:$4 sm:$0xff]  }
 0xbb3   : > { %8443 = vmatprep.subr.bf16.mxu0 %v14441_v36  ;;  %8525 = vmatprep.subr.bf16.mxu1 %v14444_v38  ;;  %v14506_v36 = vld [vmem:[#allocation16 + $0x910] ss:$48 sps:$4 sm:$0xff]   ;;  %v14509_v38 = vld [vmem:[#allocation16 + $0x918] ss:$48 sps:$4 sm:$0xff]  }
 0xbb6   : > { %8444 = vmatpush1.bf16.msra.mxu0 %v14439_v42  ;;  %8526 = vmatpush1.bf16.msra.mxu1 %v14442_v49  ;;  %v14514_v42 = vld [vmem:[#allocation16 + $0x974] ss:$48 sps:$4 sm:$0xff]   ;;  %v14517_v49 = vld [vmem:[#allocation16 + $0x97c] ss:$48 sps:$4 sm:$0xff]  }
 0xbb7   : > { %8445 = vmatprep.subr.bf16.mxu0 %v14447_v53  ;;  %8527 = vmatprep.subr.bf16.mxu1 %v14450_v55  ;;  %v14512_v53 = vld [vmem:[#allocation16 + $0x970] ss:$48 sps:$4 sm:$0xff]   ;;  %v14515_v55 = vld [vmem:[#allocation16 + $0x978] ss:$48 sps:$4 sm:$0xff]  }
 0xbba   : > { %8446 = vmatpush1.bf16.msra.mxu0 %v14445_v41  ;;  %8528 = vmatpush1.bf16.msra.mxu1 %v14448_v8  ;;  %v14520_v41 = vld [vmem:[#allocation16 + $0x9d4] ss:$48 sps:$4 sm:$0xff]   ;;  %v14523_v8 = vld [vmem:[#allocation16 + $0x9dc] ss:$48 sps:$4 sm:$0xff]  }
 0xbbb   : > { %8447 = vmatprep.subr.bf16.mxu0 %v14453_v54  ;;  %8529 = vmatprep.subr.bf16.mxu1 %v14456_v57  ;;  %v14518_v54 = vld [vmem:[#allocation16 + $0x9d0] ss:$48 sps:$4 sm:$0xff]   ;;  %v14521_v57 = vld [vmem:[#allocation16 + $0x9d8] ss:$48 sps:$4 sm:$0xff]  }
 0xbbe   : > { %8448 = vmatpush1.bf16.msra.mxu0 %v14451_v27  ;;  %8530 = vmatpush1.bf16.msra.mxu1 %v14454_v58  ;;  %v14526_v27 = vld [vmem:[#allocation16 + $0xa34] ss:$48 sps:$4 sm:$0xff]   ;;  %v14529_v58 = vld [vmem:[#allocation16 + $0xa3c] ss:$48 sps:$4 sm:$0xff]  }
 0xbbf   : > { %8458 = vmatprep.subr.bf16.mxu0 %v14460_v16  ;;  %8540 = vmatprep.subr.bf16.mxu1 %v14463_v59  ;;  %v14524_v16 = vld [vmem:[#allocation16 + $0xa30] ss:$48 sps:$4 sm:$0xff]   ;;  %v14527_v59 = vld [vmem:[#allocation16 + $0xa38] ss:$48 sps:$4 sm:$0xff]  }
 0xbc1   : > { %8450 = vmatmul.mubr.bf16.vlgmr.msra.gmra.mrb[52].mxu0 %v16619_v17  ;;  %8532 = vmatmul.mubr.bf16.vlgmr.msra.gmra.mrb[52].mxu1 %v16619_v17 }
 0xbc2   : > { %8459 = vmatpush1.bf16.msra.mxu0 %v14458_v62  ;;  %8541 = vmatpush1.bf16.msra.mxu1 %v14461_v7  ;;  %v14535_v62 = vld [vmem:[#allocation16 + $0xa9c] ss:$48 sps:$4 sm:$0xff]   ;;  %v14530_v7 = vld [vmem:[#allocation16 + $0xa90] ss:$48 sps:$4 sm:$0xff]  }
 0xbc3   : > { %8460 = vmatprep.subr.bf16.mxu0 %v14466_v56  ;;  %8542 = vmatprep.subr.bf16.mxu1 %v14469_v0  ;;  %v14533_v56 = vld [vmem:[#allocation16 + $0xa98] ss:$48 sps:$4 sm:$0xff]   ;;  %v14538_v0 = vld [vmem:[#allocation16 + $0xaf4] ss:$48 sps:$4 sm:$0xff]  }
 0xbc4   : > { %8490 = vmatprep.mubr.bf16.mxu0 %v16621_v1  ;;  %8572 = vmatprep.mubr.bf16.mxu1 %v16621_v1 }
 0xbc6   : > { %8461 = vmatpush1.bf16.msra.mxu0 %v14464_v11  ;;  %8543 = vmatpush1.bf16.msra.mxu1 %v14467_v2  ;;  %v14541_v11 = vld [vmem:[#allocation16 + $0xafc] ss:$48 sps:$4 sm:$0xff]   ;;  %v14536_v2 = vld [vmem:[#allocation16 + $0xaf0] ss:$48 sps:$4 sm:$0xff]  }
 0xbc7   : > { %8462 = vmatprep.subr.bf16.mxu0 %v14472_v29  ;;  %8544 = vmatprep.subr.bf16.mxu1 %v14475_v3  ;;  %v14539_v29 = vld [vmem:[#allocation16 + $0xaf8] ss:$48 sps:$4 sm:$0xff]   ;;  %v14544_v3 = vld [vmem:[#allocation16 + $0xb54] ss:$48 sps:$4 sm:$0xff]  }
 0xbca   : > { %8463 = vmatpush1.bf16.msra.mxu0 %v14470_v44  ;;  %8545 = vmatpush1.bf16.msra.mxu1 %v14473_v32  ;;  %v14547_v44 = vld [vmem:[#allocation16 + $0xb5c] ss:$48 sps:$4 sm:$0xff]   ;;  %v14542_v32 = vld [vmem:[#allocation16 + $0xb50] ss:$48 sps:$4 sm:$0xff]  }
 0xbcb   : > { %8464 = vmatprep.subr.bf16.mxu0 %v14478_v33  ;;  %8546 = vmatprep.subr.bf16.mxu1 %v14481_v9  ;;  %v14545_v33 = vld [vmem:[#allocation16 + $0xb58] ss:$48 sps:$4 sm:$0xff]   ;;  %v14550_v9 = vld [vmem:[#allocation16 + $0xbb4] ss:$48 sps:$4 sm:$0xff]  }
 0xbce   : > { %8465 = vmatpush1.bf16.msra.mxu0 %v14476_v4  ;;  %8547 = vmatpush1.bf16.msra.mxu1 %v14479_v12  ;;  %v14553_v4 = vld [vmem:[#allocation16 + $0xbbc] ss:$48 sps:$4 sm:$0xff]   ;;  %v14548_v12 = vld [vmem:[#allocation16 + $0xbb0] ss:$48 sps:$4 sm:$0xff]  }
 0xbcf   : > { %8466 = vmatprep.subr.bf16.mxu0 %v14484_v6  ;;  %8548 = vmatprep.subr.bf16.mxu1 %v14487_v18  ;;  %v14551_v6 = vld [vmem:[#allocation16 + $0xbb8] ss:$48 sps:$4 sm:$0xff]   ;;  %v14557_v18 = vld [vmem:[#allocation16 + $0x24] ss:$48 sps:$4 sm:$0xff]  }
 0xbd2   : > { %8467 = vmatpush1.bf16.msra.mxu0 %v14482_v19  ;;  %8549 = vmatpush1.bf16.msra.mxu1 %v14485_v20  ;;  %v14596_v19 = vld [vmem:[#allocation16 + $0x2c] ss:$48 sps:$4 sm:$0xff]   ;;  %v16629_v20 = vpack.c.bf16 %v16613_v5, %v16613_v5 }
 0xbd3   : > { %8468 = vmatprep.subr.bf16.mxu0 %v14490_v26  ;;  %8550 = vmatprep.subr.bf16.mxu1 %v14493_v22  ;;  %v14555_v26 = vld [vmem:[#allocation16 + $0x20] ss:$48 sps:$4 sm:$0xff]   ;;  %v14594_v22 = vld [vmem:[#allocation16 + $0x28] ss:$48 sps:$4 sm:$0xff]   ;;  %v14608_v5 = vld [vmem:[#allocation16 + $0xec] ss:$48 sps:$4 sm:$0xff]  }
 0xbd6   : > { %8469 = vmatpush1.bf16.msra.mxu0 %v14488_v10  ;;  %8551 = vmatpush1.bf16.msra.mxu1 %v14491_v30  ;;  %v14560_v10 = vld [vmem:[#allocation16 + $0x84] ss:$48 sps:$4 sm:$0xff]   ;;  %v14602_v30 = vld [vmem:[#allocation16 + $0x8c] ss:$48 sps:$4 sm:$0xff]  }
 0xbd7   : > { %8470 = vmatprep.subr.bf16.mxu0 %v14496_v21  ;;  %8552 = vmatprep.subr.bf16.mxu1 %v14499_v24  ;;  %v14558_v21 = vld [vmem:[#allocation16 + $0x80] ss:$48 sps:$4 sm:$0xff]   ;;  %v14600_v24 = vld [vmem:[#allocation16 + $0x88] ss:$48 sps:$4 sm:$0xff]  }
 0xbda   : > { %8471 = vmatpush1.bf16.msra.mxu0 %v14494_v28  ;;  %8553 = vmatpush1.bf16.msra.mxu1 %v14497_v31  ;;  %v14563_v28 = vld [vmem:[#allocation16 + $0xe4] ss:$48 sps:$4 sm:$0xff]   ;;  %v14561_v31 = vld [vmem:[#allocation16 + $0xe0] ss:$48 sps:$4 sm:$0xff]  }
 0xbdb   : > { %8472 = vmatprep.subr.bf16.mxu0 %v14502_v46  ;;  %8554 = vmatprep.subr.bf16.mxu1 %v14505_v23  ;;  %v14606_v46 = vld [vmem:[#allocation16 + $0xe8] ss:$48 sps:$4 sm:$0xff]   ;;  %v14566_v23 = vld [vmem:[#allocation16 + $0x144] ss:$48 sps:$4 sm:$0xff]  }
 0xbde   : > { %8473 = vmatpush1.bf16.msra.mxu0 %v14500_v34  ;;  %8555 = vmatpush1.bf16.msra.mxu1 %v14503_v35  ;;  %v14614_v34 = vld [vmem:[#allocation16 + $0x14c] ss:$48 sps:$4 sm:$0xff]   ;;  %v14564_v35 = vld [vmem:[#allocation16 + $0x140] ss:$48 sps:$4 sm:$0xff]  }
 0xbdf   : > { %8474 = vmatprep.subr.bf16.mxu0 %v14508_v25  ;;  %8556 = vmatprep.subr.bf16.mxu1 %v14511_v45  ;;  %v14612_v25 = vld [vmem:[#allocation16 + $0x148] ss:$48 sps:$4 sm:$0xff]   ;;  %v14569_v45 = vld [vmem:[#allocation16 + $0x1a4] ss:$48 sps:$4 sm:$0xff]  }
 0xbe2   : > { %8475 = vmatpush1.bf16.msra.mxu0 %v14506_v36  ;;  %8557 = vmatpush1.bf16.msra.mxu1 %v14509_v38  ;;  %v14620_v36 = vld [vmem:[#allocation16 + $0x1ac] ss:$48 sps:$4 sm:$0xff]   ;;  %v14567_v38 = vld [vmem:[#allocation16 + $0x1a0] ss:$48 sps:$4 sm:$0xff]  }
 0xbe3   : > { %8476 = vmatprep.subr.bf16.mxu0 %v14514_v42  ;;  %8558 = vmatprep.subr.bf16.mxu1 %v14517_v49  ;;  %v14572_v42 = vld [vmem:[#allocation16 + $0x204] ss:$48 sps:$4 sm:$0xff]   ;;  %v14626_v49 = vld [vmem:[#allocation16 + $0x20c] ss:$48 sps:$4 sm:$0xff]  }
 0xbe6   : > { %8477 = vmatpush1.bf16.msra.mxu0 %v14512_v53  ;;  %8559 = vmatpush1.bf16.msra.mxu1 %v14515_v55  ;;  %v14570_v53 = vld [vmem:[#allocation16 + $0x200] ss:$48 sps:$4 sm:$0xff]   ;;  %v14624_v55 = vld [vmem:[#allocation16 + $0x208] ss:$48 sps:$4 sm:$0xff]  }
 0xbe7   : > { %8478 = vmatprep.subr.bf16.mxu0 %v14520_v41  ;;  %8560 = vmatprep.subr.bf16.mxu1 %v14523_v8  ;;  %v14575_v41 = vld [vmem:[#allocation16 + $0x264] ss:$48 sps:$4 sm:$0xff]   ;;  %v14632_v8 = vld [vmem:[#allocation16 + $0x26c] ss:$48 sps:$4 sm:$0xff]  }
 0xbea   : > { %8479 = vmatpush1.bf16.msra.mxu0 %v14518_v54  ;;  %8561 = vmatpush1.bf16.msra.mxu1 %v14521_v57  ;;  %v14573_v54 = vld [vmem:[#allocation16 + $0x260] ss:$48 sps:$4 sm:$0xff]   ;;  %v14630_v57 = vld [vmem:[#allocation16 + $0x268] ss:$48 sps:$4 sm:$0xff]  }
 0xbeb   : > { %8480 = vmatprep.subr.bf16.mxu0 %v14526_v27  ;;  %8562 = vmatprep.subr.bf16.mxu1 %v14529_v58  ;;  %v14578_v27 = vld [vmem:[#allocation16 + $0x2c4] ss:$48 sps:$4 sm:$0xff]   ;;  %v14638_v58 = vld [vmem:[#allocation16 + $0x2cc] ss:$48 sps:$4 sm:$0xff]  }
 0xbee   : > { %8481 = vmatpush1.bf16.msra.mxu0 %v14524_v16  ;;  %8563 = vmatpush1.bf16.msra.mxu1 %v14527_v59  ;;  %v14576_v16 = vld [vmem:[#allocation16 + $0x2c0] ss:$48 sps:$4 sm:$0xff]   ;;  %v14636_v59 = vld [vmem:[#allocation16 + $0x2c8] ss:$48 sps:$4 sm:$0xff]  }
 0xbef   : > { %8482 = vmatprep.subr.bf16.mxu0 %v14532_v61  ;;  %8564 = vmatprep.subr.bf16.mxu1 %v14535_v62  ;;  %v14581_v61 = vld [vmem:[#allocation16 + $0x324] ss:$48 sps:$4 sm:$0xff]   ;;  %v14644_v62 = vld [vmem:[#allocation16 + $0x32c] ss:$48 sps:$4 sm:$0xff]  }
 0xbf2   : > { %8483 = vmatpush1.bf16.msra.mxu0 %v14530_v7  ;;  %8565 = vmatpush1.bf16.msra.mxu1 %v14533_v56  ;;  %v14579_v7 = vld [vmem:[#allocation16 + $0x320] ss:$48 sps:$4 sm:$0xff]   ;;  %v14642_v56 = vld [vmem:[#allocation16 + $0x328] ss:$48 sps:$4 sm:$0xff]  }
 0xbf3   : > { %8484 = vmatprep.subr.bf16.mxu0 %v14538_v0  ;;  %8566 = vmatprep.subr.bf16.mxu1 %v14541_v11  ;;  %v14584_v0 = vld [vmem:[#allocation16 + $0x384] ss:$48 sps:$4 sm:$0xff]   ;;  %v14650_v11 = vld [vmem:[#allocation16 + $0x38c] ss:$48 sps:$4 sm:$0xff]  }
 0xbf6   : > { %8485 = vmatpush1.bf16.msra.mxu0 %v14536_v2  ;;  %8567 = vmatpush1.bf16.msra.mxu1 %v14539_v29  ;;  %v14582_v2 = vld [vmem:[#allocation16 + $0x380] ss:$48 sps:$4 sm:$0xff]   ;;  %v14648_v29 = vld [vmem:[#allocation16 + $0x388] ss:$48 sps:$4 sm:$0xff]  }
 0xbf7   : > { %8486 = vmatprep.subr.bf16.mxu0 %v14544_v3  ;;  %8568 = vmatprep.subr.bf16.mxu1 %v14547_v44  ;;  %v14587_v3 = vld [vmem:[#allocation16 + $0x3e4] ss:$48 sps:$4 sm:$0xff]   ;;  %v14656_v44 = vld [vmem:[#allocation16 + $0x3ec] ss:$48 sps:$4 sm:$0xff]  }
 0xbfa   : > { %8487 = vmatpush1.bf16.msra.mxu0 %v14542_v32  ;;  %8569 = vmatpush1.bf16.msra.mxu1 %v14545_v33  ;;  %v14585_v32 = vld [vmem:[#allocation16 + $0x3e0] ss:$48 sps:$4 sm:$0xff]   ;;  %v14654_v33 = vld [vmem:[#allocation16 + $0x3e8] ss:$48 sps:$4 sm:$0xff]  }
 0xbfb   : > { %8488 = vmatprep.subr.bf16.mxu0 %v14550_v9  ;;  %8570 = vmatprep.subr.bf16.mxu1 %v14553_v4  ;;  %v14590_v9 = vld [vmem:[#allocation16 + $0x444] ss:$48 sps:$4 sm:$0xff]   ;;  %v14662_v4 = vld [vmem:[#allocation16 + $0x44c] ss:$48 sps:$4 sm:$0xff]  }
 0xbfe   : > { %8489 = vmatpush1.bf16.msra.mxu0 %v14548_v12  ;;  %8571 = vmatpush1.bf16.msra.mxu1 %v14551_v6  ;;  %v14588_v12 = vld [vmem:[#allocation16 + $0x440] ss:$48 sps:$4 sm:$0xff]   ;;  %v14660_v6 = vld [vmem:[#allocation16 + $0x448] ss:$48 sps:$4 sm:$0xff]  }
 0xbff   : > { %8581 = vmatprep.subr.bf16.mxu0 %v14557_v18  ;;  %8663 = vmatprep.subr.bf16.mxu1 %v14596_v19  ;;  %v14593_v18 = vld [vmem:[#allocation16 + $0x4a4] ss:$48 sps:$4 sm:$0xff]   ;;  %v14668_v19 = vld [vmem:[#allocation16 + $0x4ac] ss:$48 sps:$4 sm:$0xff]  }
 0xc01   : > { %8491 = vmatmul.mubr.bf16.vlgmr.msra.gmra.mrb[52].mxu0 %v16629_v20  ;;  %8573 = vmatmul.mubr.bf16.vlgmr.msra.gmra.mrb[52].mxu1 %v16629_v20 }
 0xc02   : > { %8582 = vmatpush1.bf16.msra.mxu0 %v14555_v26  ;;  %8664 = vmatpush1.bf16.msra.mxu1 %v14594_v22  ;;  %v14591_v26 = vld [vmem:[#allocation16 + $0x4a0] ss:$48 sps:$4 sm:$0xff]   ;;  %v14666_v22 = vld [vmem:[#allocation16 + $0x4a8] ss:$48 sps:$4 sm:$0xff]  }
 0xc03   : > { %8583 = vmatprep.subr.bf16.mxu0 %v14560_v10  ;;  %8665 = vmatprep.subr.bf16.mxu1 %v14602_v30  ;;  %v14599_v10 = vld [vmem:[#allocation16 + $0x504] ss:$48 sps:$4 sm:$0xff]   ;;  %v14674_v30 = vld [vmem:[#allocation16 + $0x50c] ss:$48 sps:$4 sm:$0xff]  }
 0xc04   : > { %8613 = vmatprep.mubr.bf16.mxu0 %v16607_v43  ;;  %8695 = vmatprep.mubr.bf16.mxu1 %v16607_v43  ;;  %v14618_v43 = vld [vmem:[#allocation16 + $0x1a8] ss:$48 sps:$4 sm:$0xff]  }
 0xc06   : > { %8584 = vmatpush1.bf16.msra.mxu0 %v14558_v21  ;;  %8666 = vmatpush1.bf16.msra.mxu1 %v14600_v24  ;;  %v14597_v21 = vld [vmem:[#allocation16 + $0x500] ss:$48 sps:$4 sm:$0xff]   ;;  %v14672_v24 = vld [vmem:[#allocation16 + $0x508] ss:$48 sps:$4 sm:$0xff]  }
 0xc07   : > { %8585 = vmatprep.subr.bf16.mxu0 %v14563_v28  ;;  %8667 = vmatprep.subr.bf16.mxu1 %v14608_v5  ;;  %v14605_v28 = vld [vmem:[#allocation16 + $0x564] ss:$48 sps:$4 sm:$0xff]   ;;  %v14680_v5 = vld [vmem:[#allocation16 + $0x56c] ss:$48 sps:$4 sm:$0xff]  }
 0xc0a   : > { %8586 = vmatpush1.bf16.msra.mxu0 %v14561_v31  ;;  %8668 = vmatpush1.bf16.msra.mxu1 %v14606_v46  ;;  %v14603_v31 = vld [vmem:[#allocation16 + $0x560] ss:$48 sps:$4 sm:$0xff]   ;;  %v14678_v46 = vld [vmem:[#allocation16 + $0x568] ss:$48 sps:$4 sm:$0xff]  }
 0xc0b   : > { %8587 = vmatprep.subr.bf16.mxu0 %v14566_v23  ;;  %8669 = vmatprep.subr.bf16.mxu1 %v14614_v34  ;;  %v14611_v23 = vld [vmem:[#allocation16 + $0x5c4] ss:$48 sps:$4 sm:$0xff]   ;;  %v14686_v34 = vld [vmem:[#allocation16 + $0x5cc] ss:$48 sps:$4 sm:$0xff]  }
 0xc0e   : > { %8588 = vmatpush1.bf16.msra.mxu0 %v14564_v35  ;;  %8670 = vmatpush1.bf16.msra.mxu1 %v14612_v25  ;;  %v14609_v35 = vld [vmem:[#allocation16 + $0x5c0] ss:$48 sps:$4 sm:$0xff]   ;;  %v14684_v25 = vld [vmem:[#allocation16 + $0x5c8] ss:$48 sps:$4 sm:$0xff]  }
 0xc0f   : > { %8589 = vmatprep.subr.bf16.mxu0 %v14569_v45  ;;  %8671 = vmatprep.subr.bf16.mxu1 %v14620_v36  ;;  %v14617_v45 = vld [vmem:[#allocation16 + $0x624] ss:$48 sps:$4 sm:$0xff]   ;;  %v14692_v36 = vld [vmem:[#allocation16 + $0x62c] ss:$48 sps:$4 sm:$0xff]  }
 0xc12   : > { %8590 = vmatpush1.bf16.msra.mxu0 %v14567_v38  ;;  %8672 = vmatpush1.bf16.msra.mxu1 %v14618_v43  ;;  %v14615_v38 = vld [vmem:[#allocation16 + $0x620] ss:$48 sps:$4 sm:$0xff]   ;;  %v14690_v43 = vld [vmem:[#allocation16 + $0x628] ss:$48 sps:$4 sm:$0xff]  }
 0xc13   : > { %8591 = vmatprep.subr.bf16.mxu0 %v14572_v42  ;;  %8673 = vmatprep.subr.bf16.mxu1 %v14626_v49  ;;  %v14623_v42 = vld [vmem:[#allocation16 + $0x684] ss:$48 sps:$4 sm:$0xff]   ;;  %v14698_v49 = vld [vmem:[#allocation16 + $0x68c] ss:$48 sps:$4 sm:$0xff]  }
 0xc16   : > { %8592 = vmatpush1.bf16.msra.mxu0 %v14570_v53  ;;  %8674 = vmatpush1.bf16.msra.mxu1 %v14624_v55  ;;  %v14621_v53 = vld [vmem:[#allocation16 + $0x680] ss:$48 sps:$4 sm:$0xff]   ;;  %v14696_v55 = vld [vmem:[#allocation16 + $0x688] ss:$48 sps:$4 sm:$0xff]  }
 0xc17   : > { %8593 = vmatprep.subr.bf16.mxu0 %v14575_v41  ;;  %8675 = vmatprep.subr.bf16.mxu1 %v14632_v8  ;;  %v14629_v41 = vld [vmem:[#allocation16 + $0x6e4] ss:$48 sps:$4 sm:$0xff]   ;;  %v14627_v8 = vld [vmem:[#allocation16 + $0x6e0] ss:$48 sps:$4 sm:$0xff]  }
 0xc1a   : > { %8594 = vmatpush1.bf16.msra.mxu0 %v14573_v54  ;;  %8676 = vmatpush1.bf16.msra.mxu1 %v14630_v57  ;;  %v14635_v54 = vld [vmem:[#allocation16 + $0x744] ss:$48 sps:$4 sm:$0xff]   ;;  %v14633_v57 = vld [vmem:[#allocation16 + $0x740] ss:$48 sps:$4 sm:$0xff]  }
 0xc1b   : > { %8595 = vmatprep.subr.bf16.mxu0 %v14578_v27  ;;  %8677 = vmatprep.subr.bf16.mxu1 %v14638_v58  ;;  %v14702_v27 = vld [vmem:[#allocation16 + $0x6e8] ss:$48 sps:$4 sm:$0xff]   ;;  %v14704_v58 = vld [vmem:[#allocation16 + $0x6ec] ss:$48 sps:$4 sm:$0xff]  }
 0xc1e   : > { %8596 = vmatpush1.bf16.msra.mxu0 %v14576_v16  ;;  %8678 = vmatpush1.bf16.msra.mxu1 %v14636_v59  ;;  %v14710_v16 = vld [vmem:[#allocation16 + $0x74c] ss:$48 sps:$4 sm:$0xff]   ;;  %v14639_v59 = vld [vmem:[#allocation16 + $0x7a0] ss:$48 sps:$4 sm:$0xff]  }
 0xc1f   : > { %8597 = vmatprep.subr.bf16.mxu0 %v14581_v61  ;;  %8679 = vmatprep.subr.bf16.mxu1 %v14644_v62  ;;  %v14708_v61 = vld [vmem:[#allocation16 + $0x748] ss:$48 sps:$4 sm:$0xff]   ;;  %v16639_v62 = vld [vmem:[#allocation17] sm:$0xf] }
 0xc22   : > { %8598 = vmatpush1.bf16.msra.mxu0 %v14579_v7  ;;  %8680 = vmatpush1.bf16.msra.mxu1 %v14642_v56  ;;  %v6020_v7 = vrot.slane %v16639_v62, %v16250_v51  ;;  %v14645_v56 = vld [vmem:[#allocation16 + $0x800] ss:$48 sps:$4 sm:$0xff]  }
 0xc23   : > { %8599 = vmatprep.subr.bf16.mxu0 %v14584_v0  ;;  %8681 = vmatprep.subr.bf16.mxu1 %v14650_v11  ;;  %v14653_v0 = vld [vmem:[#allocation16 + $0x864] ss:$48 sps:$4 sm:$0xff]   ;;  %v14713_v11 = vld [vmem:[#allocation16 + $0x7ac] ss:$48 sps:$4 sm:$0xff]  }
 0xc26   : > { %8600 = vmatpush1.bf16.msra.mxu0 %v14582_v2  ;;  %8682 = vmatpush1.bf16.msra.mxu1 %v14648_v29 }
 0xc27   : > { %8601 = vmatprep.subr.bf16.mxu0 %v14587_v3  ;;  %8683 = vmatprep.subr.bf16.mxu1 %v14656_v44  ;;  %v14711_v3 = vld [vmem:[#allocation16 + $0x7a8] ss:$48 sps:$4 sm:$0xff]  }
 0xc2a   : > { %8602 = vmatpush1.bf16.msra.mxu0 %v14585_v32  ;;  %8684 = vmatpush1.bf16.msra.mxu1 %v14654_v33 }
 0xc2b   : > { %8603 = vmatprep.subr.bf16.mxu0 %v14590_v9  ;;  %8685 = vmatprep.subr.bf16.mxu1 %v14662_v4 }
 0xc2e   : > { %8604 = vmatpush1.bf16.msra.mxu0 %v14588_v12  ;;  %8686 = vmatpush1.bf16.msra.mxu1 %v14660_v6  ;;  %v14651_v12 = vld [vmem:[#allocation16 + $0x860] ss:$48 sps:$4 sm:$0xff]  }
 0xc2f   : > { %8605 = vmatprep.subr.bf16.mxu0 %v14593_v18  ;;  %8687 = vmatprep.subr.bf16.mxu1 %v14668_v19  ;;  %v14659_v19 = vld [vmem:[#allocation16 + $0x8c4] ss:$48 sps:$4 sm:$0xff]  }
 0xc32   : > { %8606 = vmatpush1.bf16.msra.mxu0 %v14591_v26  ;;  %8688 = vmatpush1.bf16.msra.mxu1 %v14666_v22  ;;  %v14716_v26 = vld [vmem:[#allocation16 + $0x80c] ss:$48 sps:$4 sm:$0xff]   ;;  %v14714_v22 = vld [vmem:[#allocation16 + $0x808] ss:$48 sps:$4 sm:$0xff]  }
 0xc33   : > { %8607 = vmatprep.subr.bf16.mxu0 %v14599_v10  ;;  %8689 = vmatprep.subr.bf16.mxu1 %v14674_v30  ;;  %v14657_v10 = vld [vmem:[#allocation16 + $0x8c0] ss:$48 sps:$4 sm:$0xff]   ;;  %v14665_v30 = vld [vmem:[#allocation16 + $0x924] ss:$48 sps:$4 sm:$0xff]  }
 0xc36   : > { %8608 = vmatpush1.bf16.msra.mxu0 %v14597_v21  ;;  %8690 = vmatpush1.bf16.msra.mxu1 %v14672_v24  ;;  %v14717_v21 = vld [vmem:[#allocation16 + $0x868] ss:$48 sps:$4 sm:$0xff]   ;;  %v14719_v24 = vld [vmem:[#allocation16 + $0x86c] ss:$48 sps:$4 sm:$0xff]  }
 0xc37   : > { %8609 = vmatprep.subr.bf16.mxu0 %v14605_v28  ;;  %8691 = vmatprep.subr.bf16.mxu1 %v14680_v5  ;;  %v14663_v28 = vld [vmem:[#allocation16 + $0x920] ss:$48 sps:$4 sm:$0xff]   ;;  %v14671_v5 = vld [vmem:[#allocation16 + $0x984] ss:$48 sps:$4 sm:$0xff]  }
 0xc3a   : > { %8610 = vmatpush1.bf16.msra.mxu0 %v14603_v31  ;;  %8692 = vmatpush1.bf16.msra.mxu1 %v14678_v46  ;;  %v14720_v31 = vld [vmem:[#allocation16 + $0x8c8] ss:$48 sps:$4 sm:$0xff]   ;;  %v14722_v46 = vld [vmem:[#allocation16 + $0x8cc] ss:$48 sps:$4 sm:$0xff]  }
 0xc3b   : > { %8611 = vmatprep.subr.bf16.mxu0 %v14611_v23  ;;  %8693 = vmatprep.subr.bf16.mxu1 %v14686_v34  ;;  %v14669_v23 = vld [vmem:[#allocation16 + $0x980] ss:$48 sps:$4 sm:$0xff]   ;;  %v14677_v34 = vld [vmem:[#allocation16 + $0x9e4] ss:$48 sps:$4 sm:$0xff]  }
 0xc3e   : > { %8612 = vmatpush1.bf16.msra.mxu0 %v14609_v35  ;;  %8694 = vmatpush1.bf16.msra.mxu1 %v14684_v25  ;;  %v14723_v35 = vld [vmem:[#allocation16 + $0x928] ss:$48 sps:$4 sm:$0xff]   ;;  %v14725_v25 = vld [vmem:[#allocation16 + $0x92c] ss:$48 sps:$4 sm:$0xff]  }
 0xc3f   : > { %8622 = vmatprep.subr.bf16.mxu0 %v14617_v45  ;;  %8704 = vmatprep.subr.bf16.mxu1 %v14692_v36  ;;  %v14675_v45 = vld [vmem:[#allocation16 + $0x9e0] ss:$48 sps:$4 sm:$0xff]   ;;  %v14683_v36 = vld [vmem:[#allocation16 + $0xa44] ss:$48 sps:$4 sm:$0xff]  }
 0xc41   : > { %8614 = vmatmul.mubr.bf16.vlgmr.msra.gmra.mrb[56].mxu0 %v16619_v17  ;;  %8696 = vmatmul.mubr.bf16.vlgmr.msra.gmra.mrb[56].mxu1 %v16619_v17  ;;  %v14641_v17 = vld [vmem:[#allocation16 + $0x7a4] ss:$48 sps:$4 sm:$0xff]  }
 0xc42   : > { %8623 = vmatpush1.bf16.msra.mxu0 %v14615_v38  ;;  %8705 = vmatpush1.bf16.msra.mxu1 %v14690_v43  ;;  %v14726_v38 = vld [vmem:[#allocation16 + $0x988] ss:$48 sps:$4 sm:$0xff]   ;;  %v14728_v43 = vld [vmem:[#allocation16 + $0x98c] ss:$48 sps:$4 sm:$0xff]  }
 0xc43   : > { %8624 = vmatprep.subr.bf16.mxu0 %v14623_v42  ;;  %8706 = vmatprep.subr.bf16.mxu1 %v14698_v49  ;;  %v14681_v42 = vld [vmem:[#allocation16 + $0xa40] ss:$48 sps:$4 sm:$0xff]   ;;  %v14729_v49 = vld [vmem:[#allocation16 + $0x9e8] ss:$48 sps:$4 sm:$0xff]  }
 0xc44   : > { %8654 = vmatprep.mubr.bf16.mxu0 %v16621_v1  ;;  %8736 = vmatprep.mubr.bf16.mxu1 %v16621_v1  ;;  %v14647_v1 = vld [vmem:[#allocation16 + $0x804] ss:$48 sps:$4 sm:$0xff]  }
 0xc46   : > { %8625 = vmatpush1.bf16.msra.mxu0 %v14621_v53  ;;  %8707 = vmatpush1.bf16.msra.mxu1 %v14696_v55  ;;  %v14731_v53 = vld [vmem:[#allocation16 + $0x9ec] ss:$48 sps:$4 sm:$0xff]   ;;  %v14689_v55 = vld [vmem:[#allocation16 + $0xaa4] ss:$48 sps:$4 sm:$0xff]  }
 0xc47   : > { %8626 = vmatprep.subr.bf16.mxu0 %v14629_v41  ;;  %8708 = vmatprep.subr.bf16.mxu1 %v14704_v58  ;;  %v14734_v41 = vld [vmem:[#allocation16 + $0xa4c] ss:$48 sps:$4 sm:$0xff]  }
 0xc48   : > { %v14737_v58 = vld [vmem:[#allocation16 + $0xaac] ss:$48 sps:$4 sm:$0xff]  }
 0xc4a   : > { %8627 = vmatpush1.bf16.msra.mxu0 %v14627_v8  ;;  %8709 = vmatpush1.bf16.msra.mxu1 %v14702_v27  ;;  %v14687_v8 = vld [vmem:[#allocation16 + $0xaa0] ss:$48 sps:$4 sm:$0xff]   ;;  %v14735_v27 = vld [vmem:[#allocation16 + $0xaa8] ss:$48 sps:$4 sm:$0xff]  }
 0xc4b   : > { %8628 = vmatprep.subr.bf16.mxu0 %v14635_v54  ;;  %8710 = vmatprep.subr.bf16.mxu1 %v14710_v16  ;;  %v14732_v54 = vld [vmem:[#allocation16 + $0xa48] ss:$48 sps:$4 sm:$0xff]   ;;  %v14701_v16 = vld [vmem:[#allocation16 + $0xb64] ss:$48 sps:$4 sm:$0xff]  }
 0xc4e   : > { %8629 = vmatpush1.bf16.msra.mxu0 %v14633_v57  ;;  %8711 = vmatpush1.bf16.msra.mxu1 %v14708_v61  ;;  %v14695_v57 = vld [vmem:[#allocation16 + $0xb04] ss:$48 sps:$4 sm:$0xff]   ;;  %v14699_v61 = vld [vmem:[#allocation16 + $0xb60] ss:$48 sps:$4 sm:$0xff]  }
 0xc4f   : > { %8630 = vmatprep.subr.bf16.mxu0 %v14641_v17  ;;  %8712 = vmatprep.subr.bf16.mxu1 %v14713_v11  ;;  %v14693_v17 = vld [vmem:[#allocation16 + $0xb00] ss:$48 sps:$4 sm:$0xff]   ;;  %v14741_v11 = vld [vmem:[#allocation16 + $0xb68] ss:$48 sps:$4 sm:$0xff]  }
 0xc52   : > { %8631 = vmatpush1.bf16.msra.mxu0 %v14639_v59  ;;  %8713 = vmatpush1.bf16.msra.mxu1 %v14711_v3  ;;  %v14740_v59 = vld [vmem:[#allocation16 + $0xb0c] ss:$48 sps:$4 sm:$0xff]  }
 0xc53   : > { %8632 = vmatprep.subr.bf16.mxu0 %v14647_v1  ;;  %8714 = vmatprep.subr.bf16.mxu1 %v14716_v26  ;;  %v14738_v1 = vld [vmem:[#allocation16 + $0xb08] ss:$48 sps:$4 sm:$0xff]   ;;  %v14746_v3 = vld [vmem:[#allocation16 + $0xbcc] ss:$48 sps:$4 sm:$0xff]  }
 0xc54   : > { %v16643_v2 = vpop.f32.mrb[48].mxu0  ;;  %v16645_v29 = vpop.f32.mrb[48].mxu1 }
 0xc55   : > { %v16647_v44 = vpop.f32.mrb[49].mxu0  ;;  %v6824_v32 = vpop.f32.mrb[49].mxu1 }
 0xc56   : > { %v16649_v33 = vadd.f32 %v6824_v32, %v6020_v7  ;;  %v6744_v9 = vpop.f32.mrb[50].mxu0  ;;  %v6826_v4 = vpop.f32.mrb[50].mxu1  ;;  %8633 = vmatpush1.bf16.msra.mxu0 %v14645_v56  ;;  %8715 = vmatpush1.bf16.msra.mxu1 %v14714_v22  ;;  %v14707_v7 = vld [vmem:[#allocation16 + $0xbc4] ss:$48 sps:$4 sm:$0xff]   ;;  %v14743_v56 = vld [vmem:[#allocation16 + $0xb6c] ss:$48 sps:$4 sm:$0xff]  }
 0xc57   : > { %v6745_v6 = vpop.f32.mrb[51].mxu0  ;;  %v6827_v18 = vpop.f32.mrb[51].mxu1  ;;  %8634 = vmatprep.subr.bf16.mxu0 %v14653_v0  ;;  %8716 = vmatprep.subr.bf16.mxu1 %v14719_v24  ;;  %v14705_v0 = vld [vmem:[#allocation16 + $0xbc0] ss:$48 sps:$4 sm:$0xff]   ;;  %v14744_v32 = vld [vmem:[#allocation16 + $0xbc8] ss:$48 sps:$4 sm:$0xff]  }
 0xc58   : > { %8758 = vrot.lane.b32.xlu0 %v16649_v33, %s15619_s5  ;;  %v16661_v9 = vld [vmem:[#allocation17 + $0x4] sm:$0xff]  ;;  %v6016_v6 = vrot.slane %v16639_v62, %v16244_v48 }
 0xc59   : > { %v7100_v4 = vrot.slane %v16661_v9, %v16241_v47  ;;  %v7104_v18 = vrot.slane %v16661_v9, %v16247_v50 }
 0xc5a   : > { %8635 = vmatpush1.bf16.msra.mxu0 %v14651_v12  ;;  %8717 = vmatpush1.bf16.msra.mxu1 %v14717_v21  ;;  %v6008_v12 = vrot.slane %v16639_v62, %v16241_v47  ;;  %v13078_v24 = vadd.f32 %v16645_v29, %v6016_v6  ;;  %v7108_v29 = vrot.slane %v16661_v9, %v16244_v48 }
 0xc5b   : > { %8636 = vmatprep.subr.bf16.mxu0 %v14659_v19  ;;  %8718 = vmatprep.subr.bf16.mxu1 %v14722_v46 }
 0xc5c   : > { %v13076_v21 = vadd.f32 %v16643_v2, %v6008_v12 }
 0xc5e   : > { %8637 = vmatpush1.bf16.msra.mxu0 %v14657_v10  ;;  %8719 = vmatpush1.bf16.msra.mxu1 %v14720_v31 }
 0xc5f   : > { %8638 = vmatprep.subr.bf16.mxu0 %v14665_v30  ;;  %8720 = vmatprep.subr.bf16.mxu1 %v14725_v25 }
 0xc62   : > { %8639 = vmatpush1.bf16.msra.mxu0 %v14663_v28  ;;  %8721 = vmatpush1.bf16.msra.mxu1 %v14723_v35 }
 0xc63   : > { %8640 = vmatprep.subr.bf16.mxu0 %v14671_v5  ;;  %8722 = vmatprep.subr.bf16.mxu1 %v14728_v43 }
 0xc66   : > { %8641 = vmatpush1.bf16.msra.mxu0 %v14669_v23  ;;  %8723 = vmatpush1.bf16.msra.mxu1 %v14726_v38 }
 0xc67   : > { %8642 = vmatprep.subr.bf16.mxu0 %v14677_v34  ;;  %8724 = vmatprep.subr.bf16.mxu1 %v14731_v53 }
 0xc6a   : > { %8643 = vmatpush1.bf16.msra.mxu0 %v14675_v45  ;;  %8725 = vmatpush1.bf16.msra.mxu1 %v14729_v49 }
 0xc6b   : > { %8644 = vmatprep.subr.bf16.mxu0 %v14683_v36  ;;  %8726 = vmatprep.subr.bf16.mxu1 %v14734_v41  ;;  %v6012_v36 = vrot.slane %v16639_v62, %v16247_v50 }
 0xc6d   : > { %v13077_v2 = vadd.f32 %v16647_v44, %v6012_v36 }
 0xc6e   : > { %8645 = vmatpush1.bf16.msra.mxu0 %v14681_v42  ;;  %8727 = vmatpush1.bf16.msra.mxu1 %v14732_v54  ;;  %v8793_v42 = vpack.c.bf16 %v13076_v21, %v13076_v21 }
 0xc6f   : > { %8646 = vmatprep.subr.bf16.mxu0 %v14689_v55  ;;  %8728 = vmatprep.subr.bf16.mxu1 %v14737_v58  ;;  %v8795_v53 = vpack.c.bf16 %v13077_v2, %v13077_v2 }
 0xc72   : > { %8647 = vmatpush1.bf16.msra.mxu0 %v14687_v8  ;;  %8729 = vmatpush1.bf16.msra.mxu1 %v14735_v27  ;;  %v8797_v8 = vpack.c.bf16 %v13078_v24, %v13078_v24 }
 0xc73   : > { %8648 = vmatprep.subr.bf16.mxu0 %v14695_v57  ;;  %8730 = vmatprep.subr.bf16.mxu1 %v14740_v59  ;;  %v8799_v57 = vpack.c.bf16 %v16649_v33, %v16649_v33  ;;  %v7116_v33 = vrot.slane %v16661_v9, %v2179_v60 }
 0xc76   : > { %8649 = vmatpush1.bf16.msra.mxu0 %v14693_v17  ;;  %8731 = vmatpush1.bf16.msra.mxu1 %v14738_v1 }
 0xc77   : > { %8650 = vmatprep.subr.bf16.mxu0 %v14701_v16  ;;  %8732 = vmatprep.subr.bf16.mxu1 %v14743_v56 }
 0xc7a   : > { %8651 = vmatpush1.bf16.msra.mxu0 %v14699_v61  ;;  %8733 = vmatpush1.bf16.msra.mxu1 %v14741_v11 }
 0xc7b   : > { %8652 = vmatprep.subr.bf16.mxu0 %v14707_v7  ;;  %8734 = vmatprep.subr.bf16.mxu1 %v14746_v3 }
 0xc7e   : > { %8653 = vmatpush1.bf16.msra.mxu0 %v14705_v0  ;;  %8735 = vmatpush1.bf16.msra.mxu1 %v14744_v32  ;;  %v7120_v0 = vrot.slane %v16661_v9, %v2183_v63 }
 0xc7f   : > { %12964 = vmatprep.subr.bf16.mxu0 %v15620_v15  ;;  %12970 = vmatprep.subr.bf16.mxu1 %v15620_v15 }
 0xc81   : > { %8655 = vmatmul.mubr.bf16.vlgmr.msra.gmra.mrb[56].mxu0 %v16629_v20  ;;  %8737 = vmatmul.mubr.bf16.vlgmr.msra.gmra.mrb[56].mxu1 %v16629_v20  ;;  %v7112_v20 = vrot.slane %v16661_v9, %v16250_v51 }
 0xc82   : > { %12966 = vmatprep.mubr.msk.bf16.mxu0 %vm15621_vm3, %v15620_v15  ;;  %12972 = vmatprep.mubr.msk.bf16.mxu1 %vm15621_vm3, %v15620_v15 }
 0xcd4   : > { %v8492_v19 = vpop.f32.mrb[52].mxu0  ;;  %v8574_v26 = vpop.f32.mrb[52].mxu1 }
 0xcd5   : > { %v13080_v22 = vadd.f32 %v8492_v19, %v7100_v4  ;;  %v8494_v10 = vpop.f32.mrb[53].mxu0  ;;  %v8576_v30 = vpop.f32.mrb[53].mxu1  ;;  %v13082_v49 = vadd.f32 %v8574_v26, %v7108_v29 }
 0xcd6   : > { %v13081_v28 = vadd.f32 %v8494_v10, %v7104_v18  ;;  %v13083_v5 = vadd.f32 %v8576_v30, %v7112_v20  ;;  %v8496_v31 = vpop.f32.mrb[54].mxu0  ;;  %v8578_v46 = vpop.f32.mrb[54].mxu1 }
 0xcd7   : > { %v8801_v23 = vpack.c.bf16 %v13080_v22, %v13080_v22  ;;  %v8497_v34 = vpop.f32.mrb[55].mxu0  ;;  %v8579_v35 = vpop.f32.mrb[55].mxu1  ;;  %8762 = vrot.lane.b32.xlu1 %v13080_v22, %s15619_s5  ;;  %v8805_v44 = vpack.c.bf16 %v13082_v49, %v13082_v49 }
 0xcd8   : > { %v13374_v25 = vpack.i.bf16 %v13081_v28, %v13076_v21  ;;  %v13379_v45 = vpack.i.bf16 %v13083_v5, %v13078_v24  ;;  %v8803_v43 = vpack.c.bf16 %v13081_v28, %v13081_v28  ;;  %v8807_v41 = vpack.c.bf16 %v13083_v5, %v13083_v5 }
 0xcd9   : > { %v8813_v38 = vsel %vm3873_vm4, %v8801_v23, 0  ;;  %v8997_v55 = vsel %vm3873_vm4, %v8805_v44, 0 }
 0xcda   : > { %12965 = vmatpush3.bf16.xpose.msra.mxu0 %v8813_v38  ;;  %v8905_v62 = vsel %vm3873_vm4, %v8803_v43, 0  ;;  %v9089_v54 = vsel %vm3873_vm4, %v8807_v41, 0 }
 0xcdb   : > { %13375 = vrot.lane.b32.xlu1 %v13374_v25, %s15619_s5  ;;  %12976 = vmatprep.subr.bf16.mxu0 %v15620_v15  ;;  %v8759_v25 = vpop.permute.xlu0 %8758 }
 0xcdf   : > { %8750 = vrot.lane.b32.xlu1 %v13077_v2, %s15619_s5 }
 0xce1   : > { %12967 = vmatmul.mubr.msk.bf16.vlgmr.msra.gmra.mrb[60].mxu0 %vm3873_vm4, %v8793_v42 }
 0xce2   : > { %12977 = vmatpush3.bf16.xpose.msra.mxu0 %v8905_v62  ;;  %12978 = vmatprep.mubr.msk.bf16.mxu0 %vm15621_vm3, %v15620_v15 }
 0xce3   : > { %8770 = vrot.lane.b32.xlu1 %v13082_v49, %s15619_s5  ;;  %12988 = vmatprep.subr.bf16.mxu0 %v15620_v15 }
 0xce7   : > { %13380 = vrot.lane.b32.xlu1 %v13379_v45, %s15619_s5  ;;  %v8800_v45 = vpack.c.bf16 %v8759_v25, %v8759_v25 }
 0xce9   : > { %12979 = vmatmul.mubr.msk.bf16.vlgmr.msra.gmra.mrb[64].mxu0 %vm3873_vm4, %v8795_v53 }
 0xcea   : > { %12989 = vmatpush3.bf16.xpose.msra.mxu0 %v8997_v55  ;;  %12990 = vmatprep.mubr.msk.bf16.mxu0 %vm15621_vm3, %v15620_v15 }
 0xceb   : > { %13000 = vmatprep.subr.bf16.mxu0 %v15620_v15 }
 0xcf1   : > { %12991 = vmatmul.mubr.msk.bf16.vlgmr.msra.gmra.mrb[68].mxu0 %vm3873_vm4, %v8797_v8 }
 0xcf2   : > { %13001 = vmatpush3.bf16.xpose.msra.mxu0 %v9089_v54  ;;  %13002 = vmatprep.mubr.msk.bf16.mxu0 %vm15621_vm3, %v15620_v15 }
 0xcf3   : > { %13012 = vmatprep.subr.bf16.mxu0 %v15620_v15 }
 0xcf9   : > { %13003 = vmatmul.mubr.msk.bf16.vlgmr.msra.gmra.mrb[72].mxu0 %vm3873_vm4, %v8799_v57 }
 0xcfa   : > { %13014 = vmatprep.mubr.msk.bf16.mxu0 %vm15621_vm3, %v15620_v15 }
 0xd49   : > { %v8763_v17 = vpop.permute.xlu1 %8762 }
 0xd4a   : > { %v8802_v27 = vpack.c.bf16 %v8763_v17, %v8763_v17 }
 0xd4c   : > { %v8859_v58 = vsel %vm3873_vm4, %v8802_v27, 0  ;;  %v5864_v27 = vld [vmem:[%s17190_s24 + $0x4] sm:$0xf] }
 0xd4d   : > { %12971 = vmatpush3.bf16.xpose.msra.mxu1 %v8859_v58  ;;  %v13376_v16 = vpop.permute.xlu1 %13375  ;;  %v5863_v58 = vld [vmem:[%s17190_s24] sm:$0xf] }
 0xd4e   : > { %v13378_v59 = vunpack.i.h.bf16 %v13376_v16  ;;  %v13377_v61 = vunpack.i.l.bf16 %v13376_v16  ;;  %12982 = vmatprep.subr.bf16.mxu1 %v15620_v15  ;;  %v12558_v16 = vadd.f32 -1.0, %v5864_v27 }
 0xd50   : > { %v8804_v1 = vpack.c.bf16 %v13378_v59, %v13378_v59  ;;  %v8794_v56 = vpack.c.bf16 %v13377_v61, %v13377_v61  ;;  %v12557_v59 = vadd.f32 -1.0, %v5863_v58  ;;  %v9194_v61 = vmul.f32 1e+09, %v12558_v16 }
 0xd51   : > { %v8751_v7 = vpop.permute.xlu1 %8750 }
 0xd52   : > { %v8951_v11 = vsel %vm3873_vm4, %v8804_v1, 0  ;;  %v8796_v21 = vpack.c.bf16 %v8751_v7, %v8751_v7  ;;  %v5866_v7 = vld [vmem:[%s17190_s24 + $0xc] sm:$0xf] }
 0xd54   : > { %12973 = vmatmul.mubr.msk.bf16.vlgmr.msra.gmra.mrb[60].mxu1 %vm3873_vm4, %v8794_v56  ;;  %v8656_v3 = vpop.f32.mrb[56].mxu0  ;;  %v16728_v26 = vpop.f32.mrb[56].mxu1  ;;  %v9193_v56 = vmul.f32 1e+09, %v12557_v59 }
 0xd55   : > { %v8771_v32 = vpop.permute.xlu1 %8770  ;;  %12983 = vmatpush3.bf16.xpose.msra.mxu1 %v8951_v11  ;;  %12984 = vmatprep.mubr.msk.bf16.mxu1 %vm15621_vm3, %v15620_v15  ;;  %v16719_v4 = vadd.f32 %v8656_v3, %v7116_v33  ;;  %v8658_v12 = vpop.f32.mrb[57].mxu0 }
 0xd56   : > { %12994 = vmatprep.subr.bf16.mxu1 %v15620_v15  ;;  %v16722_v60 = vadd.f32 %v8658_v12, %v7120_v0  ;;  %v8660_v6 = vpop.f32.mrb[58].mxu0  ;;  %v8806_v20 = vpack.c.bf16 %v8771_v32, %v8771_v32  ;;  %v16730_v10 = vpop.f32.mrb[57].mxu1 }
 0xd57   : > { %v9305_v63 = vpack.c.bf16 %v16719_v4, %v16719_v4  ;;  %v8661_v18 = vpop.f32.mrb[59].mxu0  ;;  %v8742_v24 = vpop.f32.mrb[58].mxu1  ;;  %v12560_v6 = vadd.f32 -1.0, %v5866_v7 }
 0xd58   : > { %v13384_v19 = vpack.i.bf16 %v16722_v60, %v16719_v4  ;;  %v8743_v28 = vpop.f32.mrb[59].mxu1  ;;  %v9043_v5 = vsel %vm3873_vm4, %v8806_v20, 0 }
 0xd59   : > { %v13381_v22 = vpop.permute.xlu1 %13380  ;;  %v9317_v30 = vsel %vm4383_vm5, %v9305_v63, 0  ;;  %v9196_v20 = vmul.f32 1e+09, %v12560_v6 }
 0xd5a   : > { %13013 = vmatpush3.bf16.msra.mxu0 %v9317_v30  ;;  %v13383_v31 = vunpack.i.h.bf16 %v13381_v22  ;;  %v13382_v46 = vunpack.i.l.bf16 %v13381_v22  ;;  %v5868_v30 = vld [vmem:[%s17190_s24 + $0x14] sm:$0xf] }
 0xd5b   : > { %13024 = vmatprep.subr.bf16.mxu0 %v15620_v15 }
 0xd5c   : > { %12985 = vmatmul.mubr.msk.bf16.vlgmr.msra.gmra.mrb[64].mxu1 %vm3873_vm4, %v8796_v21  ;;  %v8808_v23 = vpack.c.bf16 %v13383_v31, %v13383_v31  ;;  %v8798_v34 = vpack.c.bf16 %v13382_v46, %v13382_v46 }
 0xd5d   : > { %12995 = vmatpush3.bf16.xpose.msra.mxu1 %v9043_v5  ;;  %12996 = vmatprep.mubr.msk.bf16.mxu1 %vm15621_vm3, %v15620_v15  ;;  %v5865_v5 = vld [vmem:[%s17190_s24 + $0x8] sm:$0xf] }
 0xd5e   : > { %13006 = vmatprep.subr.bf16.mxu1 %v15620_v15  ;;  %v9135_v35 = vsel %vm3873_vm4, %v8808_v23, 0 }
 0xd64   : > { %12997 = vmatmul.mubr.msk.bf16.vlgmr.msra.gmra.mrb[68].mxu1 %vm3873_vm4, %v8798_v34  ;;  %v12562_v34 = vadd.f32 -1.0, %v5868_v30 }
 0xd65   : > { %13007 = vmatpush3.bf16.xpose.msra.mxu1 %v9135_v35  ;;  %13008 = vmatprep.mubr.msk.bf16.mxu1 %vm15621_vm3, %v15620_v15  ;;  %v12559_v35 = vadd.f32 -1.0, %v5865_v5 }
 0xd66   : > { %13018 = vmatprep.subr.bf16.mxu1 %v15620_v15 }
 0xd6c   : > { %13009 = vmatmul.mubr.msk.bf16.vlgmr.msra.gmra.mrb[72].mxu1 %vm3873_vm4, %v8800_v45  ;;  %v9198_v45 = vmul.f32 1e+09, %v12562_v34 }
 0xd6d   : > { %13020 = vmatprep.mubr.msk.bf16.mxu1 %vm15621_vm3, %v15620_v15 }
 0xdb4   : > { %v8849_v36 = vpop.f32.mrb[60].mxu0 }
 0xdb5   : > { %v12968_v38 = vpop.f32.mrb[61].mxu0  ;;  %v9177_v33 = vmul.f32 %v8849_v36, %v5863_v58 }
 0xdb6   : > { %v8852_v2 = vpop.f32.mrb[62].mxu0  ;;  %v5870_v38 = vld [vmem:[%s17190_s24 + $0x1c] sm:$0xf] }
 0xdb7   : > { %v12969_v29 = vpop.f32.mrb[63].mxu0  ;;  %v9201_v18 = vadd.f32 %v9193_v56, %v9177_v33 }
 0xdb8   : > { %v9195_v29 = vmul.f32 1e+09, %v12559_v35 }
 0xdb9   : > { %v9209_v28 = vsel %vm4274_vm6, %v9201_v18, -inf }
 0xdbc   : > { %v8941_v43 = vpop.f32.mrb[64].mxu0 }
 0xdbd   : > { %v12980_v42 = vpop.f32.mrb[65].mxu0  ;;  %v9179_v2 = vmul.f32 %v8941_v43, %v5865_v5 }
 0xdbe   : > { %v8944_v49 = vpop.f32.mrb[66].mxu0 }
 0xdbf   : > { %v12981_v62 = vpop.f32.mrb[67].mxu0 }
 0xdc4   : > { %v16747_v44 = vpop.f32.mrb[68].mxu0 }
 0xdc5   : > { %v12992_v53 = vpop.f32.mrb[69].mxu0 }
 0xdc6   : > { %v9036_v55 = vpop.f32.mrb[70].mxu0 }
 0xdc7   : > { %v12993_v41 = vpop.f32.mrb[71].mxu0 }
 0xdc8   : > { %v12564_v41 = vadd.f32 -1.0, %v5870_v38 }
 0xdcc   : > { %v16749_v8 = vpop.f32.mrb[72].mxu0 }
 0xdcd   : > { %v13004_v54 = vpop.f32.mrb[73].mxu0 }
 0xdce   : > { %v9128_v57 = vpop.f32.mrb[74].mxu0 }
 0xdcf   : > { %v13005_v17 = vpop.f32.mrb[75].mxu0  ;;  %v9203_v57 = vadd.f32 %v9195_v29, %v9179_v2 }
 0xdd0   : > { %v9200_v17 = vmul.f32 1e+09, %v12564_v41 }
 0xdd1   : > { %v9215_v59 = vsel %vm4274_vm6, %v9203_v57, -inf }
 0xe27   : > { %v8895_v1 = vpop.f32.mrb[60].mxu1 }
 0xe28   : > { %v9178_v0 = vmul.f32 %v8895_v1, %v5864_v27  ;;  %v12974_v11 = vpop.f32.mrb[61].mxu1 }
 0xe29   : > { %v8898_v3 = vpop.f32.mrb[62].mxu1 }
 0xe2a   : > { %v12975_v32 = vpop.f32.mrb[63].mxu1  ;;  %v9202_v12 = vadd.f32 %v9194_v61, %v9178_v0 }
 0xe2c   : > { %v9212_v63 = vsel %vm4274_vm6, %v9202_v12, -inf }
 0xe2d   : > { %9213 = vmax.xlane.f32.xlu1 %v9212_v63  ;;  %v5867_v63 = vld [vmem:[%s17190_s24 + $0x10] sm:$0xf] }
 0xe2e   : > { %v9181_v5 = vmul.f32 %v16747_v44, %v5867_v63 }
 0xe2f   : > { %v8987_v22 = vpop.f32.mrb[64].mxu1 }
 0xe30   : > { %v9180_v21 = vmul.f32 %v8987_v22, %v5866_v7  ;;  %v12986_v24 = vpop.f32.mrb[65].mxu1 }
 0xe31   : > { %v8990_v31 = vpop.f32.mrb[66].mxu1  ;;  %9210 = vmax.xlane.f32.xlu1 %v9209_v28 }
 0xe32   : > { %v12987_v46 = vpop.f32.mrb[67].mxu1  ;;  %v9204_v23 = vadd.f32 %v9196_v20, %v9180_v21 }
 0xe34   : > { %v9218_v25 = vsel %vm4274_vm6, %v9204_v23, -inf }
 0xe35   : > { %9219 = vmax.xlane.f32.xlu0 %v9218_v25 }
 0xe37   : > { %v9079_v36 = vpop.f32.mrb[68].mxu1 }
 0xe38   : > { %v9182_v42 = vmul.f32 %v9079_v36, %v5868_v30  ;;  %v12998_v49 = vpop.f32.mrb[69].mxu1  ;;  %v12561_v30 = vadd.f32 -1.0, %v5867_v63 }
 0xe39   : > { %v9082_v62 = vpop.f32.mrb[70].mxu1 }
 0xe3a   : > { %v12999_v53 = vpop.f32.mrb[71].mxu1  ;;  %v9206_v55 = vadd.f32 %v9198_v45, %v9182_v42  ;;  %v9197_v31 = vmul.f32 1e+09, %v12561_v30 }
 0xe3c   : > { %v9224_v54 = vsel %vm4274_vm6, %v9206_v55, -inf  ;;  %v9205_v2 = vadd.f32 %v9197_v31, %v9181_v5 }
 0xe3d   : > { %9225 = vmax.xlane.f32.xlu1 %v9224_v54 }
 0xe3e   : > { %v9221_v44 = vsel %vm4274_vm6, %v9205_v2, -inf }
 0xe3f   : > { %v9171_v27 = vpop.f32.mrb[72].mxu1 }
 0xe40   : > { %v9184_v58 = vmul.f32 %v9171_v27, %v5870_v38  ;;  %v13010_v16 = vpop.f32.mrb[73].mxu1 }
 0xe41   : > { %v9174_v61 = vpop.f32.mrb[74].mxu1  ;;  %9216 = vmax.xlane.f32.xlu1 %v9215_v59 }
 0xe42   : > { %v13011_v43 = vpop.f32.mrb[75].mxu1  ;;  %v9208_v1 = vadd.f32 %v9200_v17, %v9184_v58  ;;  %v7124_v58 = vrot.slane %v16661_v9, %v2187_v52 }
 0xe44   : > { %v9230_v7 = vsel %vm4274_vm6, %v9208_v1, -inf  ;;  %v16813_v4 = vadd.f32 %v16728_v26, %v7124_v58 }
 0xe45   : > { %9231 = vmax.xlane.f32.xlu1 %v9230_v7 }
 0xeba   : > { %v9214_v33 = vpop.xlane.xlu1 %9213 }
 0xebb   : > { %v9234_v56 = vsub.f32 %v9202_v12, %v9214_v33  ;;  %v5869_v12 = vld [vmem:[%s17190_s24 + $0x18] sm:$0xf] }
 0xebc   : > { %v12563_v46 = vadd.f32 -1.0, %v5869_v12  ;;  %v9183_v45 = vmul.f32 %v16749_v8, %v5869_v12 }
 0xebd   : > { %v9243_v0 = vmul.f32 1.442695, %v9234_v56 }
 0xebe   : > { %v9211_v6 = vpop.xlane.xlu1 %9210  ;;  %v9199_v36 = vmul.f32 1e+09, %v12563_v46 }
 0xebf   : > { %15035 = vpow2.f32 %v9243_v0  ;;  %v9233_v22 = vsub.f32 %v9201_v18, %v9211_v6 }
 0xec0   : > { %v9207_v42 = vadd.f32 %v9199_v36, %v9183_v45 }
 0xec1   : > { %v9241_v28 = vmul.f32 1.442695, %v9233_v22 }
 0xec2   : > { %v9220_v11 = vpop.xlane.xlu0 %9219  ;;  %v9227_v49 = vsel %vm4274_vm6, %v9207_v42, -inf }
 0xec3   : > { %v9236_v3 = vsub.f32 %v9204_v23, %v9220_v11 }
 0xec5   : > { %v9247_v32 = vmul.f32 1.442695, %v9236_v3 }
 0xec7   : > { %15037 = vpow2.f32 %v9247_v32 }
 0xec8   : > { %15039 = vpow2.f32 %v9241_v28 }
 0xec9   : > { %v16778_v20 = vpop.eup %15035 }
 0xeca   : > { %v9226_v21 = vpop.xlane.xlu1 %9225  ;;  %v9260_v24 = vsel %vm4274_vm6, %v16778_v20, 0.0 }
 0xecb   : > { %9261 = vadd.xlane.f32.xlu0 %v9260_v24  ;;  %v9238_v18 = vsub.f32 %v9206_v55, %v9226_v21 }
 0xecd   : > { %v9251_v29 = vmul.f32 1.442695, %v9238_v18  ;;  %v9307_v18 = vpack.c.bf16 %v16722_v60, %v16722_v60 }
 0xece   : > { %v9217_v23 = vpop.xlane.xlu1 %9216 }
 0xecf   : > { %v9235_v34 = vsub.f32 %v9203_v57, %v9217_v23 }
 0xed1   : > { %v16786_v35 = vpop.eup %15037  ;;  %v9245_v25 = vmul.f32 1.442695, %v9235_v34 }
 0xed2   : > { %v9266_v38 = vsel %vm4274_vm6, %v16786_v35, 0.0  ;;  %v16793_v62 = vpop.eup %15039  ;;  %v9232_v57 = vpop.xlane.xlu1 %9231 }
 0xed3   : > { %9267 = vadd.xlane.f32.xlu1 %v9266_v38  ;;  %15041 = vpow2.f32 %v9245_v25  ;;  %v9257_v8 = vsel %vm4274_vm6, %v16793_v62, 0.0  ;;  %v9240_v17 = vsub.f32 %v9208_v1, %v9232_v57 }
 0xed4   : > { %15043 = vpow2.f32 %v9251_v29  ;;  %v9409_v29 = vsel %vm4383_vm5, %v9307_v18, 0  ;;  %v14753_v18 = vld [vmem:[#allocation19 + $0x20] ss:$16 sps:$4 sm:$0xff]  }
 0xed5   : > { %v9255_v27 = vmul.f32 1.442695, %v9240_v17 }
 0xed7   : > { %9222 = vmax.xlane.f32.xlu1 %v9221_v44  ;;  %15045 = vpow2.f32 %v9255_v27 }
 0xedb   : > { %9228 = vmax.xlane.f32.xlu1 %v9227_v49 }
 0xedd   : > { %v16797_v53 = vpop.eup %15041 }
 0xede   : > { %v9263_v55 = vsel %vm4274_vm6, %v16797_v53, 0.0  ;;  %v16805_v41 = vpop.eup %15043 }
 0xedf   : > { %9258 = vadd.xlane.f32.xlu1 %v9257_v8  ;;  %v9272_v54 = vsel %vm4274_vm6, %v16805_v41, 0.0  ;;  %v9309_v8 = vpack.c.bf16 %v16813_v4, %v16813_v4 }
 0xee1   : > { %13385 = vrot.lane.b32.xlu0 %v13384_v19, %s15619_s5  ;;  %v7128_v19 = vrot.slane %v16661_v9, %v2191_v14  ;;  %v16823_v59 = vpop.eup %15045  ;;  %v9501_v17 = vsel %vm4383_vm5, %v9309_v8, 0  ;;  %v14828_v8 = vld [vmem:[#allocation19 + $0x1a8] ss:$16 sps:$4 sm:$0xff]  }
 0xee2   : > { %v9278_v52 = vsel %vm4274_vm6, %v16823_v59, 0.0 }
 0xee3   : > { %9264 = vadd.xlane.f32.xlu1 %v9263_v55  ;;  %v16821_v16 = vadd.f32 %v16730_v10, %v7128_v19  ;;  %v14752_v19 = vld [vmem:[#allocation19 + $0xc] ss:$16 sps:$4 sm:$0xff]  }
 0xee7   : > { %9273 = vadd.xlane.f32.xlu1 %v9272_v54 }
 0xef8   : > { %8786 = vrot.lane.b32.xlu1 %v16813_v4, %s15619_s5  ;;  %v14750_v4 = vld [vmem:[#allocation19 + $0x8] ss:$16 sps:$4 sm:$0xff]  }
 0xefc   : > { %8790 = vrot.lane.b32.xlu1 %v16821_v16, %s15619_s5 }
 0xf00   : > { %9279 = vadd.xlane.f32.xlu0 %v9278_v52  ;;  %v14758_v52 = vld [vmem:[#allocation19 + $0x2c] ss:$16 sps:$4 sm:$0xff]  }
 0xf58   : > { %v9262_v26 = vpop.xlane.xlu0 %9261 }
 0xf59   : > { %15047 = vrcp.f32 %v9262_v26  ;;  %v14756_v26 = vld [vmem:[#allocation19 + $0x28] ss:$16 sps:$4 sm:$0xff]  }
 0xf5c   : > { %v13386_v39 = vpop.permute.xlu0 %13385 }
 0xf5d   : > { %v13387_v61 = vunpack.i.l.bf16 %v13386_v39  ;;  %v13388_v9 = vunpack.i.h.bf16 %v13386_v39  ;;  %v14764_v39 = vld [vmem:[#allocation19 + $0x4c] ss:$16 sps:$4 sm:$0xff]  }
 0xf5f   : > { %v9306_v14 = vpack.c.bf16 %v13387_v61, %v13387_v61  ;;  %v9308_v33 = vpack.c.bf16 %v13388_v9, %v13388_v9  ;;  %v14762_v61 = vld [vmem:[#allocation19 + $0x48] ss:$16 sps:$4 sm:$0xff]  }
 0xf60   : > { %v9268_v43 = vpop.xlane.xlu1 %9267  ;;  %v14768_v9 = vld [vmem:[#allocation19 + $0x68] ss:$16 sps:$4 sm:$0xff]  }
 0xf61   : > { %15049 = vrcp.f32 %v9268_v43  ;;  %v9363_v10 = vsel %vm4383_vm5, %v9306_v14, 0  ;;  %v9455_v32 = vsel %vm4383_vm5, %v9308_v33, 0  ;;  %v14770_v14 = vld [vmem:[#allocation19 + $0x6c] ss:$16 sps:$4 sm:$0xff]   ;;  %v14780_v33 = vld [vmem:[#allocation19 + $0xa8] ss:$16 sps:$4 sm:$0xff]  }
 0xf62   : > { %13019 = vmatpush3.bf16.msra.mxu1 %v9363_v10  ;;  %v14776_v43 = vld [vmem:[#allocation19 + $0x8c] ss:$16 sps:$4 sm:$0xff]   ;;  %v14774_v10 = vld [vmem:[#allocation19 + $0x88] ss:$16 sps:$4 sm:$0xff]  }
 0xf63   : > { %v15048_v1 = vpop.eup %15047  ;;  %13030 = vmatprep.subr.bf16.mxu1 %v15620_v15 }
 0xf64   : > { %v9290_v7 = vmul.f32 %v15048_v1, %v16778_v20  ;;  %v9223_v56 = vpop.xlane.xlu1 %9222  ;;  %v14782_v1 = vld [vmem:[#allocation19 + $0xac] ss:$16 sps:$4 sm:$0xff]  }
 0xf65   : > { %v9237_v0 = vsub.f32 %v9205_v2, %v9223_v56  ;;  %v14788_v56 = vld [vmem:[#allocation19 + $0xcc] ss:$16 sps:$4 sm:$0xff]  }
 0xf66   : > { %v9298_v11 = vpack.c.bf16 %v9290_v7, %v9290_v7 }
 0xf67   : > { %v9249_v3 = vmul.f32 1.442695, %v9237_v0  ;;  %v14786_v0 = vld [vmem:[#allocation19 + $0xc8] ss:$16 sps:$4 sm:$0xff]  }
 0xf68   : > { %13021 = vmatmul.mubr.msk.bf16.vlgmr.msra.gmra.mrb[76].mxu1 %vm4379_vm7, %v9298_v11  ;;  %v9229_v6 = vpop.xlane.xlu1 %9228  ;;  %v14794_v11 = vld [vmem:[#allocation19 + $0xec] ss:$16 sps:$4 sm:$0xff]  }
 0xf69   : > { %15051 = vpow2.f32 %v9249_v3  ;;  %13031 = vmatpush3.bf16.msra.mxu1 %v9455_v32  ;;  %v9239_v63 = vsub.f32 %v9207_v42, %v9229_v6  ;;  %13032 = vmatprep.mubr.msk.bf16.mxu1 %vm15621_vm3, %v15620_v15  ;;  %v9311_v32 = vpack.c.bf16 %v16821_v16, %v16821_v16  ;;  %v14798_v16 = vld [vmem:[#allocation19 + $0x108] ss:$16 sps:$4 sm:$0xff]  }
 0xf6a   : > { %13042 = vmatprep.subr.bf16.mxu1 %v15620_v15 }
 0xf6b   : > { %v15050_v22 = vpop.eup %15049  ;;  %v9253_v20 = vmul.f32 1.442695, %v9239_v63 }
 0xf6c   : > { %v9292_v30 = vmul.f32 %v15050_v22, %v16786_v35  ;;  %v9259_v21 = vpop.xlane.xlu1 %9258  ;;  %v14749_v22 = vld [vmem:[#allocation19 + $0x4] ss:$16 sps:$4 sm:$0xff]  }
 0xf6d   : > { %15053 = vpow2.f32 %v9253_v20  ;;  %v14792_v20 = vld [vmem:[#allocation19 + $0xe8] ss:$16 sps:$4 sm:$0xff]  }
 0xf6e   : > { %15055 = vrcp.f32 %v9259_v21  ;;  %v9300_v24 = vpack.c.bf16 %v9292_v30, %v9292_v30  ;;  %v14800_v21 = vld [vmem:[#allocation19 + $0x10c] ss:$16 sps:$4 sm:$0xff]  }
 0xf70   : > { %13033 = vmatmul.mubr.msk.bf16.vlgmr.msra.gmra.mrb[80].mxu1 %vm4379_vm7, %v9300_v24  ;;  %v9265_v12 = vpop.xlane.xlu1 %9264  ;;  %v9593_v24 = vsel %vm4383_vm5, %v9311_v32, 0 }
 0xf71   : > { %13044 = vmatprep.mubr.msk.bf16.mxu1 %vm15621_vm3, %v15620_v15  ;;  %15057 = vrcp.f32 %v9265_v12 }
 0xf73   : > { %v16841_v28 = vpop.eup %15051 }
 0xf74   : > { %v9274_v5 = vpop.xlane.xlu1 %9273  ;;  %v9269_v31 = vsel %vm4274_vm6, %v16841_v28, 0.0 }
 0xf75   : > { %15059 = vrcp.f32 %v9274_v5  ;;  %9270 = vadd.xlane.f32.xlu1 %v9269_v31  ;;  %v14747_v5 = vld [vmem:[#allocation19] ss:$16 sps:$4 sm:$0xff]  }
 0xf77   : > { %v16845_v46 = vpop.eup %15053 }
 0xf78   : > { %v15056_v23 = vpop.eup %15055  ;;  %v8787_v34 = vpop.permute.xlu1 %8786  ;;  %v9275_v35 = vsel %vm4274_vm6, %v16845_v46, 0.0 }
 0xf79   : > { %v9289_v25 = vmul.f32 %v15056_v23, %v16793_v62  ;;  %v9310_v45 = vpack.c.bf16 %v8787_v34, %v8787_v34  ;;  %9276 = vadd.xlane.f32.xlu0 %v9275_v35  ;;  %v14755_v23 = vld [vmem:[#allocation19 + $0x24] ss:$16 sps:$4 sm:$0xff]   ;;  %v14804_v34 = vld [vmem:[#allocation19 + $0x128] ss:$16 sps:$4 sm:$0xff]   ;;  %v14812_v35 = vld [vmem:[#allocation19 + $0x14c] ss:$16 sps:$4 sm:$0xff]  }
 0xf7b   : > { %v9547_v36 = vsel %vm4383_vm5, %v9310_v45, 0  ;;  %v9297_v38 = vpack.c.bf16 %v9289_v25, %v9289_v25  ;;  %v15058_v2 = vpop.eup %15057  ;;  %v14818_v25 = vld [vmem:[#allocation19 + $0x16c] ss:$16 sps:$4 sm:$0xff]   ;;  %v14759_v45 = vld [vmem:[#allocation19 + $0x40] ss:$16 sps:$4 sm:$0xff]  }
 0xf7c   : > { %13043 = vmatpush3.bf16.msra.mxu1 %v9547_v36  ;;  %v8791_v44 = vpop.permute.xlu1 %8790  ;;  %v9291_v42 = vmul.f32 %v15058_v2, %v16797_v53  ;;  %v14767_v36 = vld [vmem:[#allocation19 + $0x64] ss:$16 sps:$4 sm:$0xff]   ;;  %v14824_v2 = vld [vmem:[#allocation19 + $0x18c] ss:$16 sps:$4 sm:$0xff]  }
 0xf7d   : > { %13015 = vmatmul.mubr.msk.bf16.vlgmr.msra.gmra.mrb[76].mxu0 %vm4379_vm7, %v9297_v38  ;;  %13054 = vmatprep.subr.bf16.mxu1 %v15620_v15  ;;  %v9312_v62 = vpack.c.bf16 %v8791_v44, %v8791_v44  ;;  %v14816_v38 = vld [vmem:[#allocation19 + $0x168] ss:$16 sps:$4 sm:$0xff]   ;;  %v14773_v44 = vld [vmem:[#allocation19 + $0x84] ss:$16 sps:$4 sm:$0xff]  }
 0xf7e   : > { %13025 = vmatpush3.bf16.msra.mxu0 %v9409_v29  ;;  %13026 = vmatprep.mubr.msk.bf16.mxu0 %vm15621_vm3, %v15620_v15  ;;  %v9299_v54 = vpack.c.bf16 %v9291_v42, %v9291_v42  ;;  %v14765_v29 = vld [vmem:[#allocation19 + $0x60] ss:$16 sps:$4 sm:$0xff]   ;;  %v14830_v42 = vld [vmem:[#allocation19 + $0x1ac] ss:$16 sps:$4 sm:$0xff]  }
 0xf7f   : > { %v15060_v60 = vpop.eup %15059  ;;  %13036 = vmatprep.subr.bf16.mxu0 %v15620_v15  ;;  %v9639_v57 = vsel %vm4383_vm5, %v9312_v62, 0  ;;  %v14779_v62 = vld [vmem:[#allocation19 + $0xa4] ss:$16 sps:$4 sm:$0xff]  }
 0xf80   : > { %v9294_v49 = vmul.f32 %v15060_v60, %v16805_v41  ;;  %v14822_v60 = vld [vmem:[#allocation19 + $0x188] ss:$16 sps:$4 sm:$0xff]  }
 0xf82   : > { %v9302_v55 = vpack.c.bf16 %v9294_v49, %v9294_v49  ;;  %v14771_v49 = vld [vmem:[#allocation19 + $0x80] ss:$16 sps:$4 sm:$0xff]  }
 0xf84   : > { %13045 = vmatmul.mubr.msk.bf16.vlgmr.msra.gmra.mrb[84].mxu1 %vm4379_vm7, %v9302_v55  ;;  %v14836_v55 = vld [vmem:[#allocation19 + $0x1cc] ss:$16 sps:$4 sm:$0xff]  }
 0xf85   : > { %13027 = vmatmul.mubr.msk.bf16.vlgmr.msra.gmra.mrb[80].mxu0 %vm4379_vm7, %v9299_v54  ;;  %13055 = vmatpush3.bf16.msra.mxu1 %v9639_v57  ;;  %v14777_v54 = vld [vmem:[#allocation19 + $0xa0] ss:$16 sps:$4 sm:$0xff]   ;;  %v14785_v57 = vld [vmem:[#allocation19 + $0xc4] ss:$16 sps:$4 sm:$0xff]  }
 0xf86   : > { %13037 = vmatpush3.bf16.msra.mxu0 %v9501_v17  ;;  %13056 = vmatprep.mubr.msk.bf16.mxu1 %vm15621_vm3, %v15620_v15  ;;  %v14834_v17 = vld [vmem:[#allocation19 + $0x1c8] ss:$16 sps:$4 sm:$0xff]  }
 0xf87   : > { %13038 = vmatprep.mubr.msk.bf16.mxu0 %vm15621_vm3, %v15620_v15  ;;  %13048 = vmatprep.subr.bf16.mxu0 %v15620_v15 }
 0xf88   : > { %10577 = vmatprep.subr.bf16.mxu1 %v14752_v19  ;;  %v14803_v19 = vld [vmem:[#allocation19 + $0x124] ss:$16 sps:$4 sm:$0xff]  }
 0xf8d   : > { %v9280_v53 = vpop.xlane.xlu0 %9279 }
 0xf8e   : > { %15061 = vrcp.f32 %v9280_v53  ;;  %v14783_v53 = vld [vmem:[#allocation19 + $0xc0] ss:$16 sps:$4 sm:$0xff]  }
 0xf98   : > { %v15062_v41 = vpop.eup %15061 }
 0xf99   : > { %v9296_v27 = vmul.f32 %v15062_v41, %v16823_v59  ;;  %v14791_v41 = vld [vmem:[#allocation19 + $0xe4] ss:$16 sps:$4 sm:$0xff]  }
 0xf9b   : > { %v9304_v58 = vpack.c.bf16 %v9296_v27, %v9296_v27  ;;  %v14789_v27 = vld [vmem:[#allocation19 + $0xe0] ss:$16 sps:$4 sm:$0xff]  }
 0xf9d   : > { %13057 = vmatmul.mubr.msk.bf16.vlgmr.msra.gmra.mrb[88].mxu1 %vm4379_vm7, %v9304_v58  ;;  %v14797_v58 = vld [vmem:[#allocation19 + $0x104] ss:$16 sps:$4 sm:$0xff]  }
 0xf9e   : > { %10578 = vmatpush1.bf16.msra.mxu1 %v14750_v4  ;;  %v14795_v4 = vld [vmem:[#allocation19 + $0x100] ss:$16 sps:$4 sm:$0xff]  }
 0xf9f   : > { %10579 = vmatprep.subr.bf16.mxu1 %v14758_v52  ;;  %v14842_v52 = vld [vmem:[#allocation19 + $0x1ec] ss:$16 sps:$4 sm:$0xff]  }
 0xfa2   : > { %10580 = vmatpush1.bf16.msra.mxu1 %v14756_v26 }
 0xfa3   : > { %10581 = vmatprep.subr.bf16.mxu1 %v14764_v39  ;;  %v14801_v39 = vld [vmem:[#allocation19 + $0x120] ss:$16 sps:$4 sm:$0xff]  }
 0xfa6   : > { %10582 = vmatpush1.bf16.msra.mxu1 %v14762_v61  ;;  %v14840_v61 = vld [vmem:[#allocation19 + $0x1e8] ss:$16 sps:$4 sm:$0xff]  }
 0xfa7   : > { %10583 = vmatprep.subr.bf16.mxu1 %v14770_v14 }
 0xfaa   : > { %10584 = vmatpush1.bf16.msra.mxu1 %v14768_v9  ;;  %v14809_v9 = vld [vmem:[#allocation19 + $0x144] ss:$16 sps:$4 sm:$0xff]  }
 0xfab   : > { %10585 = vmatprep.subr.bf16.mxu1 %v14776_v43 }
 0xfae   : > { %10586 = vmatpush1.bf16.msra.mxu1 %v14774_v10  ;;  %v14807_v10 = vld [vmem:[#allocation19 + $0x140] ss:$16 sps:$4 sm:$0xff]  }
 0xfaf   : > { %10587 = vmatprep.subr.bf16.mxu1 %v14782_v1  ;;  %v14848_v1 = vld [vmem:[#allocation19 + $0x20c] ss:$16 sps:$4 sm:$0xff]  }
 0xfb2   : > { %10588 = vmatpush1.bf16.msra.mxu1 %v14780_v33 }
 0xfb3   : > { %10589 = vmatprep.subr.bf16.mxu1 %v14788_v56  ;;  %v14813_v56 = vld [vmem:[#allocation19 + $0x160] ss:$16 sps:$4 sm:$0xff]  }
 0xfb6   : > { %10590 = vmatpush1.bf16.msra.mxu1 %v14786_v0 }
 0xfb7   : > { %10591 = vmatprep.subr.bf16.mxu1 %v14794_v11 }
 0xfba   : > { %10592 = vmatpush1.bf16.msra.mxu1 %v14792_v20  ;;  %v14825_v20 = vld [vmem:[#allocation19 + $0x1a0] ss:$16 sps:$4 sm:$0xff]  }
 0xfbb   : > { %10593 = vmatprep.subr.bf16.mxu1 %v14800_v21  ;;  %v14831_v21 = vld [vmem:[#allocation19 + $0x1c0] ss:$16 sps:$4 sm:$0xff]  }
 0xfbe   : > { %10594 = vmatpush1.bf16.msra.mxu1 %v14798_v16 }
0x1002   : > { %v9271_v59 = vpop.xlane.xlu1 %9270 }
0x1003   : > { %15063 = vrcp.f32 %v9271_v59 }
0x1006   : > { %v9277_v7 = vpop.xlane.xlu0 %9276 }
0x1007   : > { %15065 = vrcp.f32 %v9277_v7  ;;  %v14815_v7 = vld [vmem:[#allocation19 + $0x164] ss:$16 sps:$4 sm:$0xff]  }
0x100d   : > { %v15064_v3 = vpop.eup %15063 }
0x100e   : > { %v9293_v6 = vmul.f32 %v15064_v3, %v16841_v28  ;;  %v14806_v28 = vld [vmem:[#allocation19 + $0x12c] ss:$16 sps:$4 sm:$0xff]   ;;  %v14821_v3 = vld [vmem:[#allocation19 + $0x184] ss:$16 sps:$4 sm:$0xff]  }
0x100f   : > { %10595 = vmatprep.subr.bf16.mxu1 %v14806_v28 }
0x1010   : > { %v9301_v63 = vpack.c.bf16 %v9293_v6, %v9293_v6  ;;  %10596 = vmatpush1.bf16.msra.mxu1 %v14804_v34 }
0x1011   : > { %v15066_v30 = vpop.eup %15065  ;;  %10597 = vmatprep.subr.bf16.mxu1 %v14812_v35 }
0x1012   : > { %13039 = vmatmul.mubr.msk.bf16.vlgmr.msra.gmra.mrb[84].mxu0 %vm4379_vm7, %v9301_v63  ;;  %v9295_v12 = vmul.f32 %v15066_v30, %v16845_v46  ;;  %v14810_v46 = vld [vmem:[#allocation19 + $0x148] ss:$16 sps:$4 sm:$0xff]   ;;  %v14819_v63 = vld [vmem:[#allocation19 + $0x180] ss:$16 sps:$4 sm:$0xff]   ;;  %v14833_v30 = vld [vmem:[#allocation19 + $0x1c4] ss:$16 sps:$4 sm:$0xff]  }
0x1013   : > { %13049 = vmatpush3.bf16.msra.mxu0 %v9593_v24  ;;  %13050 = vmatprep.mubr.msk.bf16.mxu0 %vm15621_vm3, %v15620_v15  ;;  %v14761_v15 = vld [vmem:[#allocation19 + $0x44] ss:$16 sps:$4 sm:$0xff]  }
0x1014   : > { %10495 = vmatprep.subr.bf16.mxu0 %v14749_v22  ;;  %v9303_v31 = vpack.c.bf16 %v9295_v12, %v9295_v12  ;;  %10598 = vmatpush1.bf16.msra.mxu1 %v14810_v46  ;;  %v14827_v22 = vld [vmem:[#allocation19 + $0x1a4] ss:$16 sps:$4 sm:$0xff]  }
0x1015   : > { %10599 = vmatprep.subr.bf16.mxu1 %v14818_v25  ;;  %v14839_v12 = vld [vmem:[#allocation19 + $0x1e4] ss:$16 sps:$4 sm:$0xff]  }
0x1018   : > { %10600 = vmatpush1.bf16.msra.mxu1 %v14816_v38 }
0x1019   : > { %10601 = vmatprep.subr.bf16.mxu1 %v14824_v2 }
0x101a   : > { %13051 = vmatmul.mubr.msk.bf16.vlgmr.msra.gmra.mrb[88].mxu0 %vm4379_vm7, %v9303_v31  ;;  %v14837_v31 = vld [vmem:[#allocation19 + $0x1e0] ss:$16 sps:$4 sm:$0xff]  }
0x101b   : > { %10496 = vmatpush1.bf16.msra.mxu0 %v14747_v5 }
0x101c   : > { %10497 = vmatprep.subr.bf16.mxu0 %v14755_v23  ;;  %10602 = vmatpush1.bf16.msra.mxu1 %v14822_v60  ;;  %v14845_v23 = vld [vmem:[#allocation19 + $0x204] ss:$16 sps:$4 sm:$0xff]  }
0x101d   : > { %10603 = vmatprep.subr.bf16.mxu1 %v14830_v42 }
0x101f   : > { %10498 = vmatpush1.bf16.msra.mxu0 %v14753_v18 }
0x1020   : > { %10499 = vmatprep.subr.bf16.mxu0 %v14761_v15  ;;  %10604 = vmatpush1.bf16.msra.mxu1 %v14828_v8 }
0x1021   : > { %10605 = vmatprep.subr.bf16.mxu1 %v14836_v55 }
0x1023   : > { %10500 = vmatpush1.bf16.msra.mxu0 %v14759_v45 }
0x1024   : > { %10501 = vmatprep.subr.bf16.mxu0 %v14767_v36  ;;  %10606 = vmatpush1.bf16.msra.mxu1 %v14834_v17  ;;  %v14843_v17 = vld [vmem:[#allocation19 + $0x200] ss:$16 sps:$4 sm:$0xff]  }
0x1025   : > { %10607 = vmatprep.subr.bf16.mxu1 %v14842_v52  ;;  %v14860_v52 = vld [vmem:[#allocation19 + $0x24c] ss:$16 sps:$4 sm:$0xff]  }
0x1027   : > { %10502 = vmatpush1.bf16.msra.mxu0 %v14765_v29 }
0x1028   : > { %10503 = vmatprep.subr.bf16.mxu0 %v14773_v44  ;;  %10608 = vmatpush1.bf16.msra.mxu1 %v14840_v61  ;;  %v14863_v61 = vld [vmem:[#allocation19 + $0x264] ss:$16 sps:$4 sm:$0xff]  }
0x1029   : > { %10618 = vmatprep.subr.bf16.mxu1 %v14848_v1  ;;  %v14867_v1 = vld [vmem:[#allocation19 + $0x280] ss:$16 sps:$4 sm:$0xff]  }
0x102b   : > { %10504 = vmatpush1.bf16.msra.mxu0 %v14771_v49 }
0x102c   : > { %10505 = vmatprep.subr.bf16.mxu0 %v14779_v62 }
0x102f   : > { %10506 = vmatpush1.bf16.msra.mxu0 %v14777_v54 }
0x1030   : > { %10507 = vmatprep.subr.bf16.mxu0 %v14785_v57 }
0x1033   : > { %10508 = vmatpush1.bf16.msra.mxu0 %v14783_v53  ;;  %v14846_v53 = vld [vmem:[#allocation19 + $0x208] ss:$16 sps:$4 sm:$0xff]  }
0x1034   : > { %10509 = vmatprep.subr.bf16.mxu0 %v14791_v41  ;;  %v14851_v41 = vld [vmem:[#allocation19 + $0x224] ss:$16 sps:$4 sm:$0xff]  }
0x1037   : > { %10510 = vmatpush1.bf16.msra.mxu0 %v14789_v27  ;;  %v14854_v27 = vld [vmem:[#allocation19 + $0x22c] ss:$16 sps:$4 sm:$0xff]  }
0x1038   : > { %10511 = vmatprep.subr.bf16.mxu0 %v14797_v58  ;;  %v14849_v58 = vld [vmem:[#allocation19 + $0x220] ss:$16 sps:$4 sm:$0xff]  }
0x103b   : > { %v9399_v26 = vpop.f32.mrb[76].mxu1  ;;  %10512 = vmatpush1.bf16.msra.mxu0 %v14795_v4  ;;  %v14852_v4 = vld [vmem:[#allocation19 + $0x228] ss:$16 sps:$4 sm:$0xff]  }
0x103c   : > { %v13022_v14 = vpop.f32.mrb[77].mxu1  ;;  %10513 = vmatprep.subr.bf16.mxu0 %v14803_v19  ;;  %v14857_v19 = vld [vmem:[#allocation19 + $0x244] ss:$16 sps:$4 sm:$0xff]  }
0x103d   : > { %v9402_v43 = vpop.f32.mrb[78].mxu1  ;;  %v14866_v14 = vld [vmem:[#allocation19 + $0x26c] ss:$16 sps:$4 sm:$0xff]  }
0x103e   : > { %v13023_v59 = vpop.f32.mrb[79].mxu1  ;;  %v14864_v43 = vld [vmem:[#allocation19 + $0x268] ss:$16 sps:$4 sm:$0xff]  }
0x103f   : > { %10514 = vmatpush1.bf16.msra.mxu0 %v14801_v39  ;;  %v14858_v39 = vld [vmem:[#allocation19 + $0x248] ss:$16 sps:$4 sm:$0xff]   ;;  %v14869_v59 = vld [vmem:[#allocation19 + $0x284] ss:$16 sps:$4 sm:$0xff]  }
0x1040   : > { %10515 = vmatprep.subr.bf16.mxu0 %v14809_v9  ;;  %v14861_v9 = vld [vmem:[#allocation19 + $0x260] ss:$16 sps:$4 sm:$0xff]  }
0x1043   : > { %v9491_v33 = vpop.f32.mrb[80].mxu1  ;;  %10516 = vmatpush1.bf16.msra.mxu0 %v14807_v10  ;;  %v14872_v10 = vld [vmem:[#allocation19 + $0x28c] ss:$16 sps:$4 sm:$0xff]  }
0x1044   : > { %v13389_v0 = vpack.i.bf16 %v9399_v26, %v9491_v33  ;;  %v13034_v11 = vpop.f32.mrb[81].mxu1  ;;  %10517 = vmatprep.subr.bf16.mxu0 %v14815_v7  ;;  %v14855_v26 = vld [vmem:[#allocation19 + $0x240] ss:$16 sps:$4 sm:$0xff]   ;;  %v14870_v7 = vld [vmem:[#allocation19 + $0x288] ss:$16 sps:$4 sm:$0xff]  }
0x1045   : > { %v9494_v32 = vpop.f32.mrb[82].mxu1  ;;  %v14875_v33 = vld [vmem:[#allocation19 + $0x2a4] ss:$16 sps:$4 sm:$0xff]   ;;  %v14876_v11 = vld [vmem:[#allocation19 + $0x2a8] ss:$16 sps:$4 sm:$0xff]  }
0x1046   : > { %v13035_v6 = vpop.f32.mrb[83].mxu1  ;;  %13390 = vrot.lane.b32.xlu0 %v13389_v0, %s15619_s5  ;;  %v14873_v0 = vld [vmem:[#allocation19 + $0x2a0] ss:$16 sps:$4 sm:$0xff]   ;;  %v14884_v32 = vld [vmem:[#allocation19 + $0x2cc] ss:$16 sps:$4 sm:$0xff]  }
0x1047   : > { %10518 = vmatpush1.bf16.msra.mxu0 %v14813_v56  ;;  %v14878_v56 = vld [vmem:[#allocation19 + $0x2ac] ss:$16 sps:$4 sm:$0xff]   ;;  %v14879_v6 = vld [vmem:[#allocation19 + $0x2c0] ss:$16 sps:$4 sm:$0xff]  }
0x1048   : > { %10519 = vmatprep.subr.bf16.mxu0 %v14821_v3  ;;  %v14881_v3 = vld [vmem:[#allocation19 + $0x2c4] ss:$16 sps:$4 sm:$0xff]  }
0x104b   : > { %10520 = vmatpush1.bf16.msra.mxu0 %v14819_v63  ;;  %v14882_v63 = vld [vmem:[#allocation19 + $0x2c8] ss:$16 sps:$4 sm:$0xff]  }
0x104c   : > { %10521 = vmatprep.subr.bf16.mxu0 %v14827_v22  ;;  %v14887_v22 = vld [vmem:[#allocation19 + $0x2e4] ss:$16 sps:$4 sm:$0xff]  }
0x104f   : > { %10522 = vmatpush1.bf16.msra.mxu0 %v14825_v20  ;;  %v14890_v20 = vld [vmem:[#allocation19 + $0x2ec] ss:$16 sps:$4 sm:$0xff]  }
0x1050   : > { %v9353_v24 = vpop.f32.mrb[76].mxu0  ;;  %10523 = vmatprep.subr.bf16.mxu0 %v14833_v30  ;;  %v14885_v30 = vld [vmem:[#allocation19 + $0x2e0] ss:$16 sps:$4 sm:$0xff]  }
0x1051   : > { %v13016_v16 = vpop.f32.mrb[77].mxu0 }
0x1052   : > { %v9356_v28 = vpop.f32.mrb[78].mxu0  ;;  %v14891_v16 = vld [vmem:[#allocation19 + $0x300] ss:$16 sps:$4 sm:$0xff]  }
0x1053   : > { %v13017_v5 = vpop.f32.mrb[79].mxu0  ;;  %10524 = vmatpush1.bf16.msra.mxu0 %v14831_v21  ;;  %v14888_v21 = vld [vmem:[#allocation19 + $0x2e8] ss:$16 sps:$4 sm:$0xff]  }
0x1054   : > { %10525 = vmatprep.subr.bf16.mxu0 %v14839_v12  ;;  %v14896_v12 = vld [vmem:[#allocation19 + $0x30c] ss:$16 sps:$4 sm:$0xff]   ;;  %v14894_v28 = vld [vmem:[#allocation19 + $0x308] ss:$16 sps:$4 sm:$0xff]   ;;  %v14899_v5 = vld [vmem:[#allocation19 + $0x324] ss:$16 sps:$4 sm:$0xff]  }
0x1057   : > { %v9583_v34 = vpop.f32.mrb[84].mxu1  ;;  %10526 = vmatpush1.bf16.msra.mxu0 %v14837_v31  ;;  %v14902_v31 = vld [vmem:[#allocation19 + $0x32c] ss:$16 sps:$4 sm:$0xff]  }
0x1058   : > { %v9445_v35 = vpop.f32.mrb[80].mxu0  ;;  %v13046_v18 = vpop.f32.mrb[85].mxu1  ;;  %10536 = vmatprep.subr.bf16.mxu0 %v14845_v23  ;;  %v14897_v23 = vld [vmem:[#allocation19 + $0x320] ss:$16 sps:$4 sm:$0xff]  }
0x1059   : > { %v13028_v15 = vpop.f32.mrb[81].mxu0  ;;  %v9586_v46 = vpop.f32.mrb[86].mxu1  ;;  %v14908_v18 = vld [vmem:[#allocation19 + $0x34c] ss:$16 sps:$4 sm:$0xff]  }
0x105a   : > { %v9448_v25 = vpop.f32.mrb[82].mxu0  ;;  %v13047_v45 = vpop.f32.mrb[87].mxu1  ;;  %v14903_v15 = vld [vmem:[#allocation19 + $0x340] ss:$16 sps:$4 sm:$0xff]   ;;  %v14906_v46 = vld [vmem:[#allocation19 + $0x348] ss:$16 sps:$4 sm:$0xff]  }
0x105b   : > { %v13029_v36 = vpop.f32.mrb[83].mxu0  ;;  %v14911_v45 = vld [vmem:[#allocation19 + $0x364] ss:$16 sps:$4 sm:$0xff]  }
0x105c   : > { %v14914_v36 = vld [vmem:[#allocation19 + $0x36c] ss:$16 sps:$4 sm:$0xff]  }
0x1070   : > { %v9675_v38 = vpop.f32.mrb[88].mxu1 }
0x1071   : > { %v13394_v2 = vpack.i.bf16 %v9583_v34, %v9675_v38  ;;  %v13058_v29 = vpop.f32.mrb[89].mxu1  ;;  %v14900_v34 = vld [vmem:[#allocation19 + $0x328] ss:$16 sps:$4 sm:$0xff]  }
0x1072   : > { %v9678_v44 = vpop.f32.mrb[90].mxu1 }
0x1073   : > { %13395 = vrot.lane.b32.xlu0 %v13394_v2, %s15619_s5  ;;  %v13059_v60 = vpop.f32.mrb[91].mxu1  ;;  %v14909_v44 = vld [vmem:[#allocation19 + $0x360] ss:$16 sps:$4 sm:$0xff]   ;;  %s15501_s5 = sshll.u32 %s15623_s7, 4  ;;  %s15502_s5 = int_to_ptr.vmem [resolvable:$false] %s15501_s5 }
0x1074   : > { %v14912_v60 = vld [vmem:[#allocation19 + $0x368] ss:$16 sps:$4 sm:$0xff]   ;;  %s15503_s27 = scalar_lea.vmem %s15502_s5, 512  ;;  %p15504_p13 = scmp.lt.s32.totalorder %s17046_s20, %s15502_s5 }
0x1075   : > { %p15505_p1 = scmp.lt.s32.totalorder %s15503_s27, %s15497_s14 }
0x1077   : > { %p15506_p3 = por %p15505_p1, %p15504_p13 }
0x1079   : > { %p15507_p2 = pnand %p15506_p3, %p15500_p12 }
0x10b8   : > { %v13391_v42 = vpop.permute.xlu0 %13390 }
0x10b9   : > { %v13393_v49 = vunpack.i.h.bf16 %v13391_v42  ;;  %v13392_v62 = vunpack.i.l.bf16 %v13391_v42 }
0x10bb   : > { %v9697_v8 = vsel %vm3873_vm4, %v9353_v24, %v13393_v49  ;;  %v9698_v55 = vsel %vm3873_vm4, %v9445_v35, %v13392_v62  ;;  %v14893_v24 = vld [vmem:[#allocation19 + $0x304] ss:$16 sps:$4 sm:$0xff]   ;;  %v14920_v62 = vld [vmem:[#allocation19 + $0x38c] ss:$16 sps:$4 sm:$0xff]  }
0x10bc   : > { %v9701_v54 = vpack.c.bf16 %v9697_v8, %v9697_v8  ;;  %v9702_v57 = vpack.c.bf16 %v9698_v55, %v9698_v55  ;;  %v14905_v35 = vld [vmem:[#allocation19 + $0x344] ss:$16 sps:$4 sm:$0xff]   ;;  %v14915_v55 = vld [vmem:[#allocation19 + $0x380] ss:$16 sps:$4 sm:$0xff]  }
0x10bd   : > { %v14917_v49 = vld [vmem:[#allocation19 + $0x384] ss:$16 sps:$4 sm:$0xff]  }
0x10be   : > { %10527 = vmatprep.mubr.bf16.mxu0 %v9702_v57  ;;  %10609 = vmatprep.mubr.bf16.mxu1 %v9702_v57 }
0x10bf   : > { %10528 = vmatmul.mubr.bf16.vlgmr.msra.gmra.mrb[92].mxu0 %v9701_v54  ;;  %10610 = vmatmul.mubr.bf16.vlgmr.msra.gmra.mrb[92].mxu1 %v9701_v54  ;;  %v14918_v54 = vld [vmem:[#allocation19 + $0x388] ss:$16 sps:$4 sm:$0xff]  }
0x10c0   : > { %10537 = vmatpush1.bf16.msra.mxu0 %v14843_v17  ;;  %10619 = vmatpush1.bf16.msra.mxu1 %v14846_v53 }
0x10c1   : > { %10538 = vmatprep.subr.bf16.mxu0 %v14851_v41  ;;  %10620 = vmatprep.subr.bf16.mxu1 %v14854_v27  ;;  %v14923_v41 = vld [vmem:[#allocation19 + $0x3a4] ss:$16 sps:$4 sm:$0xff]   ;;  %v14926_v27 = vld [vmem:[#allocation19 + $0x3ac] ss:$16 sps:$4 sm:$0xff]  }
0x10c4   : > { %10539 = vmatpush1.bf16.msra.mxu0 %v14849_v58  ;;  %10621 = vmatpush1.bf16.msra.mxu1 %v14852_v4 }
0x10c5   : > { %10540 = vmatprep.subr.bf16.mxu0 %v14857_v19  ;;  %10622 = vmatprep.subr.bf16.mxu1 %v14860_v52  ;;  %v14921_v52 = vld [vmem:[#allocation19 + $0x3a0] ss:$16 sps:$4 sm:$0xff]  }
0x10c8   : > { %10541 = vmatpush1.bf16.msra.mxu0 %v14855_v26  ;;  %10623 = vmatpush1.bf16.msra.mxu1 %v14858_v39  ;;  %v14924_v26 = vld [vmem:[#allocation19 + $0x3a8] ss:$16 sps:$4 sm:$0xff]   ;;  %v14929_v39 = vld [vmem:[#allocation19 + $0x3c4] ss:$16 sps:$4 sm:$0xff]  }
0x10c9   : > { %10542 = vmatprep.subr.bf16.mxu0 %v14863_v61  ;;  %10624 = vmatprep.subr.bf16.mxu1 %v14866_v14  ;;  %v14932_v61 = vld [vmem:[#allocation19 + $0x3cc] ss:$16 sps:$4 sm:$0xff]   ;;  %v14927_v14 = vld [vmem:[#allocation19 + $0x3c0] ss:$16 sps:$4 sm:$0xff]  }
0x10cc   : > { %10543 = vmatpush1.bf16.msra.mxu0 %v14861_v9  ;;  %10625 = vmatpush1.bf16.msra.mxu1 %v14864_v43  ;;  %v14930_v9 = vld [vmem:[#allocation19 + $0x3c8] ss:$16 sps:$4 sm:$0xff]   ;;  %v14935_v43 = vld [vmem:[#allocation19 + $0x3e4] ss:$16 sps:$4 sm:$0xff]  }
0x10cd   : > { %10544 = vmatprep.subr.bf16.mxu0 %v14869_v59  ;;  %10626 = vmatprep.subr.bf16.mxu1 %v14872_v10  ;;  %v14938_v59 = vld [vmem:[#allocation19 + $0x3ec] ss:$16 sps:$4 sm:$0xff]  }
0x10d0   : > { %10545 = vmatpush1.bf16.msra.mxu0 %v14867_v1  ;;  %10627 = vmatpush1.bf16.msra.mxu1 %v14870_v7  ;;  %v14933_v1 = vld [vmem:[#allocation19 + $0x3e0] ss:$16 sps:$4 sm:$0xff]   ;;  %v14936_v7 = vld [vmem:[#allocation19 + $0x3e8] ss:$16 sps:$4 sm:$0xff]  }
0x10d1   : > { %10546 = vmatprep.subr.bf16.mxu0 %v14875_v33  ;;  %10628 = vmatprep.subr.bf16.mxu1 %v14878_v56 }
0x10d4   : > { %10547 = vmatpush1.bf16.msra.mxu0 %v14873_v0  ;;  %10629 = vmatpush1.bf16.msra.mxu1 %v14876_v11  ;;  %v9833_v0 = vld [vmem:[#allocation20] sm:$0xf] }
0x10d5   : > { %10548 = vmatprep.subr.bf16.mxu0 %v14881_v3  ;;  %10630 = vmatprep.subr.bf16.mxu1 %v14884_v32  ;;  %v9838_v11 = vrot.slane %v9833_v0, %v16241_v47  ;;  %v9846_v3 = vrot.slane %v9833_v0, %v16244_v48  ;;  %v9842_v32 = vrot.slane %v9833_v0, %v16247_v50 }
0x10d8   : > { %10549 = vmatpush1.bf16.msra.mxu0 %v14879_v6  ;;  %10631 = vmatpush1.bf16.msra.mxu1 %v14882_v63  ;;  %v9850_v6 = vrot.slane %v9833_v0, %v16250_v51  ;;  %v14952_v0 = vld [vmem:[%s17191_s3 + $0xd8] sm:$0xff]  }
0x10d9   : > { %10550 = vmatprep.subr.bf16.mxu0 %v14887_v22  ;;  %10632 = vmatprep.subr.bf16.mxu1 %v14890_v20 }
0x10dc   : > { %10551 = vmatpush1.bf16.msra.mxu0 %v14885_v30  ;;  %10633 = vmatpush1.bf16.msra.mxu1 %v14888_v21 }
0x10dd   : > { %10552 = vmatprep.subr.bf16.mxu0 %v14893_v24  ;;  %10634 = vmatprep.subr.bf16.mxu1 %v14896_v12 }
0x10e0   : > { %10553 = vmatpush1.bf16.msra.mxu0 %v14891_v16  ;;  %10635 = vmatpush1.bf16.msra.mxu1 %v14894_v28 }
0x10e1   : > { %10554 = vmatprep.subr.bf16.mxu0 %v14899_v5  ;;  %10636 = vmatprep.subr.bf16.mxu1 %v14902_v31 }
0x10e4   : > { %10555 = vmatpush1.bf16.msra.mxu0 %v14897_v23  ;;  %10637 = vmatpush1.bf16.msra.mxu1 %v14900_v34 }
0x10e5   : > { %v9537_v25 = vpop.f32.mrb[84].mxu0  ;;  %10556 = vmatprep.subr.bf16.mxu0 %v14905_v35  ;;  %10638 = vmatprep.subr.bf16.mxu1 %v14908_v18  ;;  %v13396_v42 = vpop.permute.xlu0 %13395 }
0x10e6   : > { %v13040_v38 = vpop.f32.mrb[85].mxu0  ;;  %v13397_v8 = vunpack.i.l.bf16 %v13396_v42  ;;  %v13398_v10 = vunpack.i.h.bf16 %v13396_v42 }
0x10e7   : > { %v9540_v2 = vpop.f32.mrb[86].mxu0 }
0x10e8   : > { %10557 = vmatpush1.bf16.msra.mxu0 %v14903_v15  ;;  %10639 = vmatpush1.bf16.msra.mxu1 %v14906_v46  ;;  %v13041_v29 = vpop.f32.mrb[87].mxu0  ;;  %v9699_v33 = vsel %vm3873_vm4, %v9537_v25, %v13398_v10  ;;  %v14947_v10 = vld [vmem:[%s17191_s3 + $0x50] sm:$0xff]  }
0x10e9   : > { %10558 = vmatprep.subr.bf16.mxu0 %v14911_v45  ;;  %10640 = vmatprep.subr.bf16.mxu1 %v14914_v36  ;;  %v9703_v56 = vpack.c.bf16 %v9699_v33, %v9699_v33  ;;  %v14950_v33 = vld [vmem:[%s17191_s3 + $0x90] sm:$0xff]  }
0x10ec   : > { %10559 = vmatpush1.bf16.msra.mxu0 %v14909_v44  ;;  %10641 = vmatpush1.bf16.msra.mxu1 %v14912_v60 }
0x10ed   : > { %v9629_v57 = vpop.f32.mrb[88].mxu0  ;;  %10560 = vmatprep.subr.bf16.mxu0 %v14917_v49  ;;  %10642 = vmatprep.subr.bf16.mxu1 %v14920_v62 }
0x10ee   : > { %v9700_v17 = vsel %vm3873_vm4, %v9629_v57, %v13397_v8  ;;  %v13052_v53 = vpop.f32.mrb[89].mxu0 }
0x10ef   : > { %v9704_v58 = vpack.c.bf16 %v9700_v17, %v9700_v17  ;;  %v9632_v4 = vpop.f32.mrb[90].mxu0 }
0x10f0   : > { %10561 = vmatpush1.bf16.msra.mxu0 %v14915_v55  ;;  %10643 = vmatpush1.bf16.msra.mxu1 %v14918_v54  ;;  %v13053_v19 = vpop.f32.mrb[91].mxu0 }
0x10f1   : > { %10568 = vmatprep.mubr.bf16.mxu0 %v9704_v58  ;;  %10650 = vmatprep.mubr.bf16.mxu1 %v9704_v58 }
0x10f2   : > { %10562 = vmatprep.subr.bf16.mxu0 %v14923_v41  ;;  %10644 = vmatprep.subr.bf16.mxu1 %v14926_v27 }
0x10f4   : > { %10563 = vmatpush1.bf16.msra.mxu0 %v14921_v52  ;;  %10645 = vmatpush1.bf16.msra.mxu1 %v14924_v26  ;;  %v14939_v52 = vld [vmem:[%s17191_s3 + $0x40] sm:$0xff]  }
0x10f5   : > { %10564 = vmatprep.subr.bf16.mxu0 %v14929_v39  ;;  %10646 = vmatprep.subr.bf16.mxu1 %v14932_v61  ;;  %v14940_v26 = vld [vmem:[%s17191_s3 + $0xc0] sm:$0xff]  }
0x10f6   : > { %v14941_v39 = vld [vmem:[%s17191_s3] sm:$0xff]  }
0x10f7   : > { %v14942_v61 = vld [vmem:[%s17191_s3 + $0x80] sm:$0xff]  }
0x10f8   : > { %10565 = vmatpush1.bf16.msra.mxu0 %v14927_v14  ;;  %10647 = vmatpush1.bf16.msra.mxu1 %v14930_v9  ;;  %v14943_v14 = vld [vmem:[%s17191_s3 + $0x48] sm:$0xff]  }
0x10f9   : > { %10566 = vmatprep.subr.bf16.mxu0 %v14935_v43  ;;  %10648 = vmatprep.subr.bf16.mxu1 %v14938_v59  ;;  %v14944_v9 = vld [vmem:[%s17191_s3 + $0xc8] sm:$0xff]  }
0x10fa   : > { %v14945_v43 = vld [vmem:[%s17191_s3 + $0x8] sm:$0xff]  }
0x10fb   : > { %v14946_v59 = vld [vmem:[%s17191_s3 + $0x88] sm:$0xff]  }
0x10fc   : > { %10567 = vmatpush1.bf16.msra.mxu0 %v14933_v1  ;;  %10649 = vmatpush1.bf16.msra.mxu1 %v14936_v7  ;;  %v14948_v1 = vld [vmem:[%s17191_s3 + $0xd0] sm:$0xff]  }
0x10fd   : > { %12824 = vmatprep.subr.bf16.mxu0 %v14939_v52  ;;  %12846 = vmatprep.subr.bf16.mxu1 %v14940_v26  ;;  %v14949_v7 = vld [vmem:[%s17191_s3 + $0x10] sm:$0xff]  }
0x10ff   : > { %10569 = vmatmul.mubr.bf16.vlgmr.msra.gmra.mrb[92].mxu0 %v9703_v56  ;;  %10651 = vmatmul.mubr.bf16.vlgmr.msra.gmra.mrb[92].mxu1 %v9703_v56  ;;  %v14951_v56 = vld [vmem:[%s17191_s3 + $0x58] sm:$0xff]  }
0x1100   : > { %12825 = vmatpush3.bf16.msra.mxu0 %v14941_v39  ;;  %12847 = vmatpush3.bf16.msra.mxu1 %v14942_v61 }
0x1101   : > { %12826 = vmatprep.subr.bf16.mxu0 %v14943_v14  ;;  %12848 = vmatprep.subr.bf16.mxu1 %v14944_v9 }
0x1104   : > { %12827 = vmatpush3.bf16.msra.mxu0 %v14945_v43  ;;  %12849 = vmatpush3.bf16.msra.mxu1 %v14946_v59 }
0x1105   : > { %12828 = vmatprep.subr.bf16.mxu0 %v14947_v10  ;;  %12850 = vmatprep.subr.bf16.mxu1 %v14948_v1 }
0x1108   : > { %12829 = vmatpush3.bf16.msra.mxu0 %v14949_v7  ;;  %12851 = vmatpush3.bf16.msra.mxu1 %v14950_v33  ;;  %v14971_v7 = vld [vmem:[#allocation23] ss:$16 sps:$4 sm:$0xff]   ;;  %v14974_v33 = vld [vmem:[#allocation23 + $0x8] ss:$16 sps:$4 sm:$0xff]  }
0x1109   : > { %12830 = vmatprep.subr.bf16.mxu0 %v14951_v56  ;;  %12852 = vmatprep.subr.bf16.mxu1 %v14952_v0 }
0x11d2   : > { %v10570_v63 = vpop.f32.mrb[92].mxu0  ;;  %v10652_v22 = vpop.f32.mrb[92].mxu1 }
0x11d3   : > { %v13088_v20 = vadd.f32 %v10570_v63, %v9838_v11  ;;  %v13090_v30 = vadd.f32 %v10652_v22, %v9846_v3  ;;  %v10572_v21 = vpop.f32.mrb[93].mxu0  ;;  %v10654_v24 = vpop.f32.mrb[93].mxu1  ;;  %v14953_v11 = vld [vmem:[%s17191_s3 + $0x18] sm:$0xff]   ;;  %v14957_v63 = vld [vmem:[%s17191_s3 + $0x20] sm:$0xff]  }
0x11d4   : > { %v13089_v12 = vadd.f32 %v10572_v21, %v9842_v32  ;;  %v13091_v16 = vadd.f32 %v10654_v24, %v9850_v6  ;;  %v10574_v28 = vpop.f32.mrb[94].mxu0  ;;  %v10656_v5 = vpop.f32.mrb[94].mxu1  ;;  %v14954_v3 = vld [vmem:[%s17191_s3 + $0x98] sm:$0xff]   ;;  %v14955_v32 = vld [vmem:[%s17191_s3 + $0x60] sm:$0xff]   ;;  %12831 = vmatpush3.bf16.msra.mxu0 %v14953_v11  ;;  %v14961_v21 = vld [vmem:[%s17191_s3 + $0x28] sm:$0xff]  }
0x11d5   : > { %v10575_v31 = vpop.f32.mrb[95].mxu0  ;;  %v10657_v23 = vpop.f32.mrb[95].mxu1  ;;  %v14956_v6 = vld [vmem:[%s17191_s3 + $0xe0] sm:$0xff]   ;;  %12853 = vmatpush3.bf16.msra.mxu1 %v14954_v3  ;;  %12832 = vmatprep.subr.bf16.mxu0 %v14955_v32  ;;  %v14962_v24 = vld [vmem:[%s17191_s3 + $0xa8] sm:$0xff]   ;;  %v14965_v28 = vld [vmem:[%s17191_s3 + $0x30] sm:$0xff]  }
0x11d6   : > { %v10663_v34 = vcombine.low %v13088_v20, %v13089_v12  ;;  %v10664_v35 = vcombine.low %v13090_v30, %v13091_v16  ;;  %v14958_v22 = vld [vmem:[%s17191_s3 + $0xa0] sm:$0xff]   ;;  %12854 = vmatprep.subr.bf16.mxu1 %v14956_v6  ;;  %v14959_v20 = vld [vmem:[%s17191_s3 + $0x68] sm:$0xff]   ;;  %v14963_v12 = vld [vmem:[%s17191_s3 + $0x70] sm:$0xff]  }
0x11d7   : > { %v14960_v30 = vld [vmem:[%s17191_s3 + $0xe8] sm:$0xff]   ;;  %v14964_v16 = vld [vmem:[%s17191_s3 + $0xf0] sm:$0xff]   ;;  %v14967_v31 = vld [vmem:[%s17191_s3 + $0x78] sm:$0xff]  }
0x11d8   : > { %v16894_v18 = vadd.f32 %v10663_v34, %v16556_v13  ;;  %v16897_v15 = vadd.f32 %v10664_v35, %v16559_v37  ;;  %12833 = vmatpush3.bf16.msra.mxu0 %v14957_v63  ;;  %v14966_v5 = vld [vmem:[%s17191_s3 + $0xb0] sm:$0xff]   ;;  %v14968_v23 = vld [vmem:[%s17191_s3 + $0xf8] sm:$0xff]  }
0x11d9   : > { %12855 = vmatpush3.bf16.msra.mxu1 %v14958_v22  ;;  %12834 = vmatprep.subr.bf16.mxu0 %v14959_v20  ;;  %v14969_v34 = vld [vmem:[%s17191_s3 + $0x38] sm:$0xff]   ;;  %v14980_v6 = vld [vmem:[#allocation23 + $0x28] ss:$16 sps:$4 sm:$0xff]  }
0x11da   : > { %v10675_v46 = vcombine.high %v16894_v18, %v16894_v18  ;;  %v10676_v25 = vcombine.high %v16897_v15, %v16897_v15  ;;  %v10679_v45 = vsel %vm819_vm0, %v16894_v18, 0.0  ;;  %v10682_v2 = vsel %vm819_vm0, %v16897_v15, 0.0  ;;  %12856 = vmatprep.subr.bf16.mxu1 %v14960_v30  ;;  %v14970_v35 = vld [vmem:[%s17191_s3 + $0xb8] sm:$0xff]   ;;  %v14986_v30 = vld [vmem:[#allocation23 + $0x48] ss:$16 sps:$4 sm:$0xff]  }
0x11db   : > { %v14979_v11 = vld [vmem:[#allocation23 + $0x24] ss:$16 sps:$4 sm:$0xff]   ;;  %v14982_v3 = vld [vmem:[#allocation23 + $0x2c] ss:$16 sps:$4 sm:$0xff]   ;;  %v14977_v32 = vld [vmem:[#allocation23 + $0x20] ss:$16 sps:$4 sm:$0xff]  }
0x11dc   : > { %v10680_v36 = vsel %vm819_vm0, %v10675_v46, 0.0  ;;  %v10684_v29 = vsel %vm819_vm0, %v10676_v25, 0.0  ;;  %12835 = vmatpush3.bf16.msra.mxu0 %v14961_v21  ;;  %v14973_v46 = vld [vmem:[#allocation23 + $0x4] ss:$16 sps:$4 sm:$0xff]   ;;  %v14976_v25 = vld [vmem:[#allocation23 + $0xc] ss:$16 sps:$4 sm:$0xff]  }
0x11dd   : > { %v10681_v38 = vadd.f32 %v10680_v36, %v10679_v45  ;;  %12857 = vmatpush3.bf16.msra.mxu1 %v14962_v24  ;;  %12836 = vmatprep.subr.bf16.mxu0 %v14963_v12  ;;  %v14985_v63 = vld [vmem:[#allocation23 + $0x44] ss:$16 sps:$4 sm:$0xff]   ;;  %v14988_v22 = vld [vmem:[#allocation23 + $0x4c] ss:$16 sps:$4 sm:$0xff]   ;;  %v14983_v20 = vld [vmem:[#allocation23 + $0x40] ss:$16 sps:$4 sm:$0xff]  }
0x11de   : > { %12858 = vmatprep.subr.bf16.mxu1 %v14964_v16  ;;  %v14991_v21 = vld [vmem:[#allocation23 + $0x64] ss:$16 sps:$4 sm:$0xff]   ;;  %v14994_v24 = vld [vmem:[#allocation23 + $0x6c] ss:$16 sps:$4 sm:$0xff]   ;;  %v14989_v12 = vld [vmem:[#allocation23 + $0x60] ss:$16 sps:$4 sm:$0xff]  }
0x11df   : > { %v10683_v13 = vadd.f32 %v10682_v2, %v10681_v38  ;;  %v14992_v16 = vld [vmem:[#allocation23 + $0x68] ss:$16 sps:$4 sm:$0xff]  }
0x11e0   : > { %12837 = vmatpush3.bf16.msra.mxu0 %v14965_v28  ;;  %v15622_v28 = vmov 0  }
0x11e1   : > { %v10685_v37 = vadd.f32 %v10684_v29, %v10683_v13  ;;  %12859 = vmatpush3.bf16.msra.mxu1 %v14966_v5  ;;  %12838 = vmatprep.subr.bf16.mxu0 %v14967_v31 }
0x11e2   : > { %12860 = vmatprep.subr.bf16.mxu1 %v14968_v23  ;;  %v12701_v23 = vld [vmem:[#allocation22] ss:$0 sm:$0xff] }
0x11e3   : > { %10686 = vadd.xlane.f32.xlu1 %v10685_v37 }
0x11e4   : > { %12839 = vmatpush3.bf16.msra.mxu0 %v14969_v34 }
0x11e5   : > { %12861 = vmatpush3.bf16.msra.mxu1 %v14970_v35  ;;  %11265 = vmatprep.subr.bf16.mxu0 %v14973_v46 }
0x11e6   : > { %11306 = vmatprep.subr.bf16.mxu1 %v14976_v25 }
0x1270   : > { %v10687_v44 = vpop.xlane.xlu1 %10686 }
0x1271   : > { %v10688_v60 = vmul.f32 0.001953125, %v10687_v44 }
0x1273   : > { %v10696_v42 = vrot.slane %v10688_v60, %v16223_v40  ;;  %v10670_v60 = vld [vmem:[#allocation7 + $0x8] sm:$0xf] }
0x1275   : > { %v16911_v49 = vsub.f32 %v16894_v18, %v10696_v42  ;;  %v16914_v62 = vsub.f32 %v16897_v15, %v10696_v42 }
0x1277   : > { %v10700_v8 = vmul.f32 %v16911_v49, %v16911_v49  ;;  %v10701_v55 = vmul.f32 %v16914_v62, %v16914_v62 }
0x1279   : > { %v10704_v54 = vcombine.high %v10700_v8, %v10700_v8  ;;  %v10705_v57 = vcombine.high %v10701_v55, %v10701_v55  ;;  %v10708_v17 = vsel %vm819_vm0, %v10700_v8, 0.0  ;;  %v10711_v27 = vsel %vm819_vm0, %v10701_v55, 0.0  ;;  %v10672_v8 = vld [vmem:[#allocation8 + $0x8] sm:$0xf] }
0x127b   : > { %v10709_v53 = vsel %vm819_vm0, %v10704_v54, 0.0  ;;  %v10713_v4 = vsel %vm819_vm0, %v10705_v57, 0.0  ;;  %v10743_v54 = vrot.slane %v10670_v60, %v16241_v47  ;;  %v10751_v57 = vrot.slane %v10670_v60, %v16244_v48 }
0x127c   : > { %v10710_v41 = vadd.f32 %v10709_v53, %v10708_v17  ;;  %v10747_v53 = vrot.slane %v10670_v60, %v16247_v50 }
0x127e   : > { %v10712_v58 = vadd.f32 %v10711_v27, %v10710_v41  ;;  %v10755_v27 = vrot.slane %v10670_v60, %v16250_v51  ;;  %v11160_v60 = vld [vmem:[#allocation25] sm:$0xf] }
0x1280   : > { %v10714_v19 = vadd.f32 %v10713_v4, %v10712_v58  ;;  %v10778_v58 = vrot.slane %v10672_v8, %v16247_v50  ;;  %v10786_v4 = vrot.slane %v10672_v8, %v16250_v51 }
0x1282   : > { %10715 = vadd.xlane.f32.xlu0 %v10714_v19  ;;  %v10774_v19 = vrot.slane %v10672_v8, %v16241_v47 }
0x130f   : > { %v10716_v45 = vpop.xlane.xlu0 %10715 }
0x1310   : > { %v10717_v36 = vmul.f32 0.0019569471, %v10716_v45 }
0x1312   : > { %15067 = vrsqrt.f32 %v10717_v36  ;;  %vm10720_vm10 = vcmp.eq.f32.partialorder %v10717_v36, inf  ;;  %v10723_v13 = vand.u32 2147483648, %v10717_v36  ;;  %vm10722_vm11 = vcmp.eq.f32.partialorder %v10717_v36, 0.0 }
0x131c   : > { %v15068_v38 = vpop.eup %15067 }
0x131d   : > { %v10719_v2 = vmul.f32 %v15068_v38, %v10717_v36 }
0x131f   : > { %v10721_v29 = vsel %vm10720_vm10, %v10717_v36, %v10719_v2 }
0x1320   : > { %v10724_v37 = vsel %vm10722_vm11, %v10723_v13, %v10721_v29 }
0x1321   : > { %v10725_v44 = vadd.f32 1e-06, %v10724_v37 }
0x1323   : > { %15069 = vrcp.f32 %v10725_v44 }
0x132d   : > { %v15070_v42 = vpop.eup %15069 }
0x132e   : > { %v10735_v55 = vrot.slane %v15070_v42, %v16223_v40  ;;  %v10782_v40 = vrot.slane %v10672_v8, %v16244_v48  ;;  %v11165_v42 = vrot.slane %v11160_v60, %v16241_v47  ;;  %v11173_v8 = vrot.slane %v11160_v60, %v16244_v48 }
0x1330   : > { %v10737_v17 = vmul.f32 %v10735_v55, %v16911_v49  ;;  %v10738_v41 = vmul.f32 %v10735_v55, %v16914_v62  ;;  %v11169_v55 = vrot.slane %v11160_v60, %v16247_v50 }
0x1332   : > { %v10762_v52 = vcombine.high %v10737_v17, %v10737_v17  ;;  %v10763_v26 = vcombine.high %v10738_v41, %v10738_v41  ;;  %v10766_v39 = vmul.f32 %v10743_v54, %v10737_v17  ;;  %v10768_v61 = vmul.f32 %v10751_v57, %v10738_v41 }
0x1333   : > { %v11177_v54 = vrot.slane %v11160_v60, %v16250_v51 }
0x1334   : > { %v10767_v14 = vmul.f32 %v10762_v52, %v10747_v53  ;;  %v10769_v49 = vmul.f32 %v10763_v26, %v10755_v27  ;;  %v10791_v9 = vadd.f32 %v10774_v19, %v10766_v39  ;;  %v10793_v43 = vadd.f32 %v10782_v40, %v10768_v61 }
0x1336   : > { %v10792_v59 = vadd.f32 %v10778_v58, %v10767_v14  ;;  %v10794_v62 = vadd.f32 %v10786_v4, %v10769_v49  ;;  %v10795_v56 = vpack.c.bf16 %v10791_v9, %v10791_v9  ;;  %v10797_v0 = vpack.c.bf16 %v10793_v43, %v10793_v43 }
0x1338   : > { %v10796_v10 = vpack.c.bf16 %v10792_v59, %v10792_v59  ;;  %v10798_v1 = vpack.c.bf16 %v10794_v62, %v10794_v62 }
0x133a   : > { %11094 = vmatprep.mubr.bf16.mxu0 %v10796_v10  ;;  %11134 = vmatprep.mubr.bf16.mxu1 %v10798_v1 }
0x133b   : > { %11095 = vmatmul.mubr.bf16.vlgmr.msra.gmra.mrb[96].mxu0 %v10795_v56  ;;  %11135 = vmatmul.mubr.bf16.vlgmr.msra.gmra.mrb[96].mxu1 %v10797_v0 }
0x133c   : > { %11266 = vmatpush1.bf16.msra.mxu0 %v14971_v7  ;;  %11307 = vmatpush1.bf16.msra.mxu1 %v14974_v33 }
0x133d   : > { %11267 = vmatprep.subr.bf16.mxu0 %v14979_v11  ;;  %11308 = vmatprep.subr.bf16.mxu1 %v14982_v3 }
0x133e   : > { %11297 = vmatprep.mubr.bf16.mxu0 %v15622_v28  ;;  %11338 = vmatprep.mubr.bf16.mxu1 %v15622_v28 }
0x1340   : > { %11268 = vmatpush1.bf16.msra.mxu0 %v14977_v32  ;;  %11309 = vmatpush1.bf16.msra.mxu1 %v14980_v6 }
0x1341   : > { %11269 = vmatprep.subr.bf16.mxu0 %v14985_v63  ;;  %11310 = vmatprep.subr.bf16.mxu1 %v14988_v22 }
0x1344   : > { %11270 = vmatpush1.bf16.msra.mxu0 %v14983_v20  ;;  %11311 = vmatpush1.bf16.msra.mxu1 %v14986_v30 }
0x1345   : > { %11271 = vmatprep.subr.bf16.mxu0 %v14991_v21  ;;  %11312 = vmatprep.subr.bf16.mxu1 %v14994_v24 }
0x1348   : > { %11272 = vmatpush1.bf16.msra.mxu0 %v14989_v12  ;;  %11313 = vmatpush1.bf16.msra.mxu1 %v14992_v16 }
0x140e   : > { %v12840_v5 = vpop.f32.mrb[96].mxu0  ;;  %v12862_v31 = vpop.f32.mrb[96].mxu1 }
0x140f   : > { %v12841_v34 = vpop.f32.mrb[97].mxu0  ;;  %v12863_v35 = vpop.f32.mrb[97].mxu1 }
0x1410   : > { %v12842_v46 = vadd.f32 %v12841_v34, %v12840_v5  ;;  %v12864_v25 = vadd.f32 %v12863_v35, %v12862_v31  ;;  %v12843_v45 = vpop.f32.mrb[98].mxu0  ;;  %v12865_v36 = vpop.f32.mrb[98].mxu1 }
0x1411   : > { %v12844_v38 = vpop.f32.mrb[99].mxu0  ;;  %v12866_v2 = vpop.f32.mrb[99].mxu1 }
0x1412   : > { %v11097_v13 = vadd.f32 %v12842_v46, %v12701_v23 }
0x1414   : > { %v11137_v29 = vadd.f32 %v12864_v25, %v11097_v13 }
0x1416   : > { %v11142_v37 = vmax.f32 %v11137_v29, 0.0 }
0x1418   : > { %v11143_v44 = vpack.c.bf16 %v11142_v37, %v11142_v37 }
0x141a   : > { %12750 = vmatmul.mubr.msk.bf16.vlgmr.msra.gmra.mrb[100].mxu0 %vm3873_vm4, %v11143_v44  ;;  %12751 = vmatmul.mubr.msk.bf16.vlgmr.msra.gmra.mrb[100].mxu1 %vm3873_vm4, %v11143_v44 }
0x14ed   : > { %v11299_v57 = vpop.f32.mrb[100].mxu0  ;;  %v11340_v17 = vpop.f32.mrb[100].mxu1 }
0x14ee   : > { %v11300_v53 = vadd.f32 %v11299_v57, %v11165_v42  ;;  %v11341_v41 = vadd.f32 %v11340_v17, %v11173_v8  ;;  %v11301_v27 = vpop.f32.mrb[101].mxu0  ;;  %v11342_v58 = vpop.f32.mrb[101].mxu1 }
0x14ef   : > { %v11302_v4 = vadd.f32 %v11301_v27, %v11169_v55  ;;  %v11343_v19 = vadd.f32 %v11342_v58, %v11177_v54  ;;  %v11303_v40 = vpop.f32.mrb[102].mxu0  ;;  %v11344_v52 = vpop.f32.mrb[102].mxu1 }
0x14f0   : > { %v11304_v47 = vpop.f32.mrb[103].mxu0  ;;  %v11345_v26 = vpop.f32.mrb[103].mxu1 }
0x14f1   : > { %v11351_v48 = vcombine.low %v11300_v53, %v11302_v4  ;;  %v11352_v50 = vcombine.low %v11341_v41, %v11343_v19 }
0x14f3   : > { %v11355_v51 = vadd.f32 %v11351_v48, %v16894_v18  ;;  %v11356_v39 = vadd.f32 %v11352_v50, %v16897_v15 }
0x14f5   : > { %11357 = vst [vmem:[%s805_s0] sm:$0xff] %v11355_v51  ;;  %11358 = vst [vmem:[%s805_s0 + $0x8] sm:$0xff] %v11356_v39 }
0x14f6   : > { %15510 = shalt.err (!%p15507_p2)
}
0x14f7   : > { %s15511_s9 = scalar_lea.hbm %s17044_s10, 256  ;;  %s15515_s8 = scalar_lea.hbm %s17192_s18, 512 }
0x14f8   : > { %p15512_p6 = scmp.ne.s32.totalorder %s17044_s10, %s15511_s9  ;;  %p15516_p9 = scmp.lt.u32.totalorder %s17044_s10, %s17192_s18 }
0x14f9   : > { %p15517_p0 = scmp.lt.u32.totalorder %s15515_s8, %s15511_s9  ;;  %p15519_p11 = scmp.lt.u32.totalorder %s15511_s9, %s17044_s10 }
0x14fa   : > { %p15513_p10 = pnand %p15512_p6, %p17193_p8 }
0x14fb   : > { %p15518_p7 = por %p15517_p0, %p15516_p9 }
0x14fc   : > { %p15514_p5 = pneg %p15513_p10 }
0x14fd   : > { %p15520_p4 = por %p15519_p11, %p15518_p7 }
0x14ff   : > { %p15521_p12 = pnand %p15520_p4, %p15514_p5 }
0x1501   : > { %15524 = shalt.err (!%p15521_p12)
}
0x1502   : > { %13212 = dma.vmem_to_hbm [thread:$0]  (%p17193_p8), %s17046_s20, 256, %s17044_s10, %s11360_s28  }
0x1503 PF: > { %s17194_s23 = sld [smem:[#allocation37_spill]]  ;;  %p17195_p13 = scmp.ne.s32.totalorder %s17165_s25, 0 }
0x1504   : > { %p17196_p1 = scmp.ge.s32.totalorder %s15595_s30, 2 }
0x1506   : > { %p13262_p3 = pnand %p17196_p1, %p17195_p13 }
0x1509   : > { %s11386_s14 = sand.u32 1, %s17194_s23  }
0x150a   : > { %s11387_s7 = scalar_lea.sflag [#allocation4], %s11386_s14 }
0x150b   : > { %15578 = dma.done.wait (!%p13262_p3), %s11387_s7, 256  }
0x150c   : > { %15580 = vsyncadd (!%p13262_p3), %s11387_s7, 4294967040  ;;  %s17197_s27 = sld [smem:[#allocation38_spill]]  ;;  %p40_p2 = scmp.ge.s32.totalorder %s16058_s2, 4  }
0x150d   : > { %s17198_s28 = smov %s15591_s29  ;;  %s17199_s29 = smov %s16070_s4 }
0x150e   : > { %s17200_s30 = smov %s16058_s2  ;;  %42 = sbr.rel (!%p40_p2) target bundleno = 28 (0x1c), region = 206 }
0x1515   :  { %11392 = vsyncpa [#allocation3], 1 }
0x1516   :  { %11394 = vsyncpa [#allocation3 + $0x1], 1 }
0x1517   :  { %11395 = vsyncpa [#allocation6], 1 }
0x1518   :  { %11397 = vsyncpa [#allocation6 + $0x1], 1 }
0x1519   :  { %11398 = vsyncpa [#allocation9], 1 }
0x151a   :  { %11399 = vsyncpa [#allocation12], 1 }
0x151b   :  { %11400 = vsyncpa [#allocation15], 1 }
0x151c   :  { %11401 = vsyncpa [#allocation18], 1 }
0x151d   :  { %11402 = vsyncpa [#allocation21], 1 }
0x151e   :  { %11403 = vsyncpa [#allocation24], 1 }
0x151f   :  { %11404 = vsyncpa [#allocation4], 1 }
0x1520   :  { %11406 = vsyncpa [#allocation4 + $0x1], 1 }

</bundles_post_ra>
